<compile_context>
chip_gen: v5e
topology: v5e:2x2
jax: 0.10.0
libtpu: 0.0.40
codegen_flags: <defaults>
</compile_context>

<pallas_src>
import numpy as np

import jax
import jax.numpy as jnp
from jax import lax
from jax.experimental import pallas as pl
from jax.experimental.pallas import tpu as pltpu


# ------------------------------ fused network kernel ------------------------------ #

def _cnn_kernel(x1_ref, w1c_ref, b1c_ref, w2c_ref, b2c_ref, w3c_ref, b3c_ref,
                wf1_ref, bf1_ref, wf2_ref, bf2_ref, out_ref,
                q2_ref, q3_ref, fcin_ref):
    """One image per grid step.

    x1_ref : (1, 512, 144) f32   conv1 LHS, rows=(row, col-group of 8), K=(kh,s,u,cin)
    w1c_ref: (144, 128)    f32   conv1 weight, N = parity-stacked 8 output cols x 16 ch
    w2c_ref: (3, 3, 64, 128) f32 conv2 taps per (kh, s); K = 4 cols x 16 ch
    w3c_ref: (3, 3, 64, 128) f32 conv3 taps per (kh, s); K = 2 cols x 32 ch
    b*c_ref: (1, 64) f32         per-channel bias tiled over pooled column group
    wf1_ref: (8, 512, 128) f32   fc1 weight split over the 8 pooled columns
    wf2_ref: (128, NC) f32, b*   fc weights / biases
    out_ref: (1, 1, NC) f32      logits
    q2_ref : (34, 10, 64) f32    conv2 padded input scratch (rows, col-groups of 4, 4*16)
    q3_ref : (18, 10, 64) f32    conv3 padded input scratch (rows, col-groups of 2, 2*32)
    fcin_ref: (8, 512) f32       lane-dense flattened conv3 output (row t = pooled col)
    """
    f32 = jnp.float32

    # Zero the padded scratch buffers: the untouched border is the conv zero-padding.
    q2_ref[...] = jnp.zeros(q2_ref.shape, f32)
    q3_ref[...] = jnp.zeros(q3_ref.shape, f32)

    def epilogue(acc, bias, h2, ng):
        # acc: (2*h2*ng, 128).  Lanes = [even output col | odd output col] halves.
        m = jnp.maximum(acc[:, :64], acc[:, 64:])        # maxpool over column pairs
        m = jnp.maximum(m + bias, 0.0)                   # bias + ReLU (f32 epilogue)
        y = m.reshape(h2, 2, ng, 64)                     # (pooled row, row pair, group)
        return jnp.maximum(y[:, 0], y[:, 1])             # maxpool over row pairs

    # ---- conv1: single (512,144)x(144,128) matmul (K pre-concatenated on host) ----
    acc = jnp.dot(x1_ref[0], w1c_ref[...], preferred_element_type=f32)   # (512, 128)
    p1 = epilogue(acc, b1c_ref[...], 32, 8)                              # (32, 8, 64)
    q2_ref[pl.ds(1, 32), pl.ds(1, 8), :] = p1            # aligned group write, pad stays 0

    # ---- conv2: 9 matmuls of (256,64)x(64,128) over (kh, s) windows ----
    acc = jnp.zeros((256, 128), f32)
    for kh in range(3):
        for s in range(3):
            lhs = q2_ref[pl.ds(kh, 32), pl.ds(s, 8), :].reshape(256, 64)
            acc = acc + jnp.dot(lhs, w2c_ref[kh, s], preferred_element_type=f32)
    p2 = epilogue(acc, b2c_ref[...], 16, 8)                              # (16, 8, 64)
    q3_ref[pl.ds(1, 16), pl.ds(1, 8), :] = p2

    # ---- conv3: 9 matmuls of (128,64)x(64,128) ----
    acc = jnp.zeros((128, 128), f32)
    for kh in range(3):
        for s in range(3):
            lhs = q3_ref[pl.ds(kh, 16), pl.ds(s, 8), :].reshape(128, 64)
            acc = acc + jnp.dot(lhs, w3c_ref[kh, s], preferred_element_type=f32)
    p3 = epilogue(acc, b3c_ref[...], 8, 8)                               # (8, 8, 64)

    # ---- flatten (pooled row p, pooled col t, 64 ch) -> lane-dense (8, 512) ----
    for p in range(8):
        fcin_ref[:, pl.ds(64 * p, 64)] = p3[p]           # fcin[t, p*64 + c]

    # ---- fc1 (+ReLU) and fc2, weights VMEM-resident across grid steps ----
    h = bf1_ref[...]                                                     # (1, 128)
    for t in range(8):
        h = h + jnp.dot(fcin_ref[pl.ds(t, 1), :], wf1_ref[t],
                        preferred_element_type=f32)
    h = jnp.maximum(h, 0.0)
    out_ref[0] = jnp.dot(h, wf2_ref[...], preferred_element_type=f32) + bf2_ref[...]


# --------------------------------- forward wrapper --------------------------------- #

def cnn_forward(prep, x_nchw):
    """Matches CNN.forward; x_nchw: (B, 3, 64, 64) f32 -> (B, num_classes)."""
    B, C, H, W = x_nchw.shape
    assert (C, H, W) == (3, 64, 64), "kernel layout is specialised to 3x64x64 inputs"
    nc = prep["fc2_b"].shape[-1]

    # Host-side, one-shot prep of conv1's LHS: zero-pad, group 8 output cols per row,
    # and concatenate the 6 (kh, s) taps along K -> (B, 512, 144), f32.
    x = jnp.transpose(x_nchw, (0, 2, 3, 1)).astype(jnp.float32)          # NHWC
    xp = jnp.pad(x, ((0, 0), (1, 1), (1, 7), (0, 0)))                    # (B, 66, 72, 3)
    slabs = []
    for kh in range(3):
        for s in range(2):
            win = lax.slice(xp, (0, kh, 8 * s, 0), (B, kh + 64, 8 * s + 64, 3))
            slabs.append(win.reshape(B, 64, 8, 24))                      # (b, r, t, u*3+c)
    lhs1 = jnp.concatenate(slabs, axis=-1).reshape(B, 512, 144)

    out = pl.pallas_call(
        _cnn_kernel,
        out_shape=jax.ShapeDtypeStruct((B, 1, nc), jnp.float32),
        grid=(B,),
        in_specs=[
            pl.BlockSpec((1, 512, 144), lambda b: (b, 0, 0)),
            pl.BlockSpec((144, 128), lambda b: (0, 0)),
            pl.BlockSpec((1, 64), lambda b: (0, 0)),
            pl.BlockSpec((3, 3, 64, 128), lambda b: (0, 0, 0, 0)),
            pl.BlockSpec((1, 64), lambda b: (0, 0)),
            pl.BlockSpec((3, 3, 64, 128), lambda b: (0, 0, 0, 0)),
            pl.BlockSpec((1, 64), lambda b: (0, 0)),
            pl.BlockSpec((8, 512, 128), lambda b: (0, 0, 0)),
            pl.BlockSpec((1, 128), lambda b: (0, 0)),
            pl.BlockSpec((128, nc), lambda b: (0, 0)),
            pl.BlockSpec((1, nc), lambda b: (0, 0)),
        ],
        out_specs=pl.BlockSpec((1, 1, nc), lambda b: (b, 0, 0)),
        scratch_shapes=[
            pltpu.VMEM((34, 10, 64), jnp.float32),   # conv2 padded input
            pltpu.VMEM((18, 10, 64), jnp.float32),   # conv3 padded input
            pltpu.VMEM((8, 512), jnp.float32),       # flattened fc input
        ],
        compiler_params=pltpu.CompilerParams(
            dimension_semantics=("parallel",),
            vmem_limit_bytes=32 * 1024 * 1024),
    )(lhs1, prep["conv1_w"], prep["conv1_b"], prep["conv2_w"], prep["conv2_b"],
      prep["conv3_w"], prep["conv3_b"], prep["fc1_w"], prep["fc1_b"],
      prep["fc2_w"], prep["fc2_b"])
    return out.reshape(B, nc)


# ----------------------------- one-time weight repack ------------------------------ #

def prepare_params(params):
    """Host-side repack of PyTorch-layout params into the kernel's layouts."""
    prep = {}
    conv_cfg = {"conv1": (8, 1), "conv2": (4, 4), "conv3": (2, 2)}   # (group g, left pad L)
    for name, (g, L) in conv_cfg.items():
        w = np.asarray(params[name + "_w"], np.float32)              # (Cout, Cin, 3, 3)
        b = np.asarray(params[name + "_b"], np.float32)
        cout, cin = w.shape[0], w.shape[1]
        wt = np.transpose(w, (2, 3, 1, 0))                           # (kh, kw, cin, cout)
        ns = (L + g) // g + 1                                        # number of s offsets
        half = (g // 2) * cout                                       # == 64 for all layers
        wk = np.zeros((3, ns, g * cin, g * cout), np.float32)
        for kh in range(3):
            for dc in range(g):                                      # output column in group
                a, v = dc % 2, dc // 2
                n0 = a * half + v * cout
                for kw in range(3):
                    o = dc - 1 + L + kw                              # padded-buffer column
                    s, u = o // g, o % g
                    wk[kh, s, u * cin:(u + 1) * cin, n0:n0 + cout] = wt[kh, kw]
        if name == "conv1":
            wk = wk.reshape(3 * ns * g * cin, g * cout)              # (144, 128) K-concat
        prep[name + "_w"] = jnp.asarray(wk)
        prep[name + "_b"] = jnp.asarray(np.tile(b, g // 2).reshape(1, half))

    # fc1: permute columns from the PyTorch NCHW flatten (c, h, w) to the kernel's
    # (pooled col t, pooled row p, channel c) layout and split over t.
    fc1_w = np.asarray(params["fc1_w"], np.float32)                  # (128, 4096)
    fc1_b = np.asarray(params["fc1_b"], np.float32)
    r = fc1_w.reshape(128, 64, 8, 8)                                 # (n, c, h, w)
    prep["fc1_w"] = jnp.asarray(np.transpose(r, (3, 2, 1, 0)).reshape(8, 512, 128))
    prep["fc1_b"] = jnp.asarray(fc1_b.reshape(1, 128))
    prep["fc2_w"] = jnp.asarray(np.transpose(np.asarray(params["fc2_w"], np.float32)))
    prep["fc2_b"] = jnp.asarray(np.asarray(params["fc2_b"], np.float32).reshape(1, -1))
    return prep


# ------------------------------ params / XLA reference ----------------------------- #

def init_params(key, num_classes=3):
    ks = jax.random.split(key, 10)

    def u(k, shape, fan_in):
        bound = 1.0 / (fan_in ** 0.5)
        return jax.random.uniform(k, shape, jnp.float32, -bound, bound)

    return {
        "conv1_w": u(ks[0], (16, 3, 3, 3), 3 * 9),
        "conv1_b": u(ks[1], (16,), 3 * 9),
        "conv2_w": u(ks[2], (32, 16, 3, 3), 16 * 9),
        "conv2_b": u(ks[3], (32,), 16 * 9),
        "conv3_w": u(ks[4], (64, 32, 3, 3), 32 * 9),
        "conv3_b": u(ks[5], (64,), 32 * 9),
        "fc1_w": u(ks[6], (128, 64 * 8 * 8), 64 * 8 * 8),
        "fc1_b": u(ks[7], (128,), 64 * 8 * 8),
        "fc2_w": u(ks[8], (num_classes, 128), 128),
        "fc2_b": u(ks[9], (num_classes,), 128),
    }


def reference_forward(params, x_nchw):
    """Pure-JAX (XLA) reference reproducing the PyTorch forward, NCHW."""
    def conv(x, w, b):
        y = lax.conv_general_dilated(
            x, w, window_strides=(1, 1), padding=((1, 1), (1, 1)),
            dimension_numbers=("NCHW", "OIHW", "NCHW"),
            precision=lax.Precision.HIGHEST)
        return y + b[None, :, None, None]

    def pool(x):
        return lax.reduce_window(
            x, -jnp.inf, lax.max, (1, 1, 2, 2), (1, 1, 2, 2), "VALID")

    x = x_nchw.astype(jnp.float32)
    x = pool(jnp.maximum(conv(x, params["conv1_w"], params["conv1_b"]), 0.0))
    x = pool(jnp.maximum(conv(x, params["conv2_w"], params["conv2_b"]), 0.0))
    x = pool(jnp.maximum(conv(x, params["conv3_w"], params["conv3_b"]), 0.0))
    x = x.reshape(x.shape[0], -1)
    x = jnp.maximum(x @ params["fc1_w"].T + params["fc1_b"], 0.0)
    return x @ params["fc2_w"].T + params["fc2_b"]


# ---------------------------------------- main ------------------------------------- #

if __name__ == "__main__":
    key = jax.random.PRNGKey(0)
    pkey, xkey = jax.random.split(key)
    params = init_params(pkey, num_classes=3)
    # fc1 expects 64*8*8 features -> 64x64 spatial input (3 maxpools of /2).
    x = jax.random.normal(xkey, (2, 3, 64, 64), jnp.float32)

    prep = prepare_params(params)            # one-time host-side weight repack
    fwd = jax.jit(cnn_forward)
    out = jax.block_until_ready(fwd(prep, x))

    assert out.shape == (2, 3), out.shape
    ref = reference_forward(params, x)
    max_err = float(jnp.max(jnp.abs(out - ref)))
    assert jnp.allclose(out, ref, rtol=2e-2, atol=2e-2), max_err
    print("KERNEL_OK")
</pallas_src>

<mosaic_0001>
module attributes {stable_mosaic.version = 11 : i64} {
  func.func @_cnn_kernel(%arg0: i32, %arg1: memref<1x512x144xf32, #tpu.memory_space<vmem>>, %arg2: memref<144x128xf32, #tpu.memory_space<vmem>>, %arg3: memref<1x64xf32, #tpu.memory_space<vmem>>, %arg4: memref<3x3x64x128xf32, #tpu.memory_space<vmem>>, %arg5: memref<1x64xf32, #tpu.memory_space<vmem>>, %arg6: memref<3x3x64x128xf32, #tpu.memory_space<vmem>>, %arg7: memref<1x64xf32, #tpu.memory_space<vmem>>, %arg8: memref<8x512x128xf32, #tpu.memory_space<vmem>>, %arg9: memref<1x128xf32, #tpu.memory_space<vmem>>, %arg10: memref<128x3xf32, #tpu.memory_space<vmem>>, %arg11: memref<1x3xf32, #tpu.memory_space<vmem>>, %arg12: memref<1x1x3xf32, #tpu.memory_space<vmem>>, %arg13: memref<34x10x64xf32, #tpu.memory_space<vmem>>, %arg14: memref<18x10x64xf32, #tpu.memory_space<vmem>>, %arg15: memref<8x512xf32, #tpu.memory_space<vmem>>) attributes {dimension_semantics = [#tpu.dimension_semantics<parallel>], iteration_bounds = array<i64: 2>, scalar_prefetch = 0 : i64, scratch_operands = 3 : i64, tpu.core_type = #tpu.core_type<tc>, window_params = [{transform_indices = @transform_0, window_bounds = array<i64: 1, 512, 144>}, {pipeline_mode = #tpu.pipeline_mode<synchronous>, transform_indices = @transform_1, window_bounds = array<i64: 144, 128>}, {pipeline_mode = #tpu.pipeline_mode<synchronous>, transform_indices = @transform_2, window_bounds = array<i64: 1, 64>}, {pipeline_mode = #tpu.pipeline_mode<synchronous>, transform_indices = @transform_3, window_bounds = array<i64: 3, 3, 64, 128>}, {pipeline_mode = #tpu.pipeline_mode<synchronous>, transform_indices = @transform_4, window_bounds = array<i64: 1, 64>}, {pipeline_mode = #tpu.pipeline_mode<synchronous>, transform_indices = @transform_5, window_bounds = array<i64: 3, 3, 64, 128>}, {pipeline_mode = #tpu.pipeline_mode<synchronous>, transform_indices = @transform_6, window_bounds = array<i64: 1, 64>}, {pipeline_mode = #tpu.pipeline_mode<synchronous>, transform_indices = @transform_7, window_bounds = array<i64: 8, 512, 128>}, {pipeline_mode = #tpu.pipeline_mode<synchronous>, transform_indices = @transform_8, window_bounds = array<i64: 1, 128>}, {pipeline_mode = #tpu.pipeline_mode<synchronous>, transform_indices = @transform_9, window_bounds = array<i64: 128, 3>}, {pipeline_mode = #tpu.pipeline_mode<synchronous>, transform_indices = @transform_10, window_bounds = array<i64: 1, 3>}, {transform_indices = @transform_11, window_bounds = array<i64: 1, 1, 3>}]} {
    %cst = arith.constant 0.000000e+00 : f32
    %0 = vector.broadcast %cst : f32 to vector<34x10x64xf32>
    %c0 = arith.constant 0 : index
    %c0_0 = arith.constant 0 : index
    %c0_1 = arith.constant 0 : index
    %1 = vector.load %arg13[%c0, %c0_0, %c0_1] : memref<34x10x64xf32, #tpu.memory_space<vmem>>, vector<34x10x64xf32>
    tpu.vector_store %arg13[%c0, %c0_0, %c0_1], %0 {strides = array<i32>} : memref<34x10x64xf32, #tpu.memory_space<vmem>>, vector<34x10x64xf32>,
    %cst_2 = arith.constant 0.000000e+00 : f32
    %2 = vector.broadcast %cst_2 : f32 to vector<18x10x64xf32>
    %c0_3 = arith.constant 0 : index
    %c0_4 = arith.constant 0 : index
    %c0_5 = arith.constant 0 : index
    %3 = vector.load %arg14[%c0_3, %c0_4, %c0_5] : memref<18x10x64xf32, #tpu.memory_space<vmem>>, vector<18x10x64xf32>
    tpu.vector_store %arg14[%c0_3, %c0_4, %c0_5], %2 {strides = array<i32>} : memref<18x10x64xf32, #tpu.memory_space<vmem>>, vector<18x10x64xf32>,
    %c0_6 = arith.constant 0 : index
    %c0_7 = arith.constant 0 : index
    %c0_8 = arith.constant 0 : index
    %4 = vector.load %arg1[%c0_6, %c0_7, %c0_8] : memref<1x512x144xf32, #tpu.memory_space<vmem>>, vector<1x512x144xf32>
    %5 = vector.shape_cast %4 : vector<1x512x144xf32> to vector<512x144xf32>
    %c0_9 = arith.constant 0 : index
    %c0_10 = arith.constant 0 : index
    %6 = vector.load %arg2[%c0_9, %c0_10] : memref<144x128xf32, #tpu.memory_space<vmem>>, vector<144x128xf32>
    %cst_11 = arith.constant dense<0.000000e+00> : vector<512x128xf32>
    %7 = tpu.matmul %5, %6, %cst_11 {dimension_numbers = #tpu.dot_dimension_numbers<[1], [0], [0], [1], [0, 0, 1, 1], [], []>} : vector<512x144xf32>, vector<144x128xf32>, vector<512x128xf32> -> vector<512x128xf32>
    %c0_12 = arith.constant 0 : index
    %c0_13 = arith.constant 0 : index
    %8 = vector.load %arg3[%c0_12, %c0_13] : memref<1x64xf32, #tpu.memory_space<vmem>>, vector<1x64xf32>
    %9 = vector.extract_strided_slice %7 {offsets = [0, 0], sizes = [512, 64], strides = [1, 1]} : vector<512x128xf32> to vector<512x64xf32>
    %10 = vector.extract_strided_slice %7 {offsets = [0, 64], sizes = [512, 64], strides = [1, 1]} : vector<512x128xf32> to vector<512x64xf32>
    %11 = arith.maximumf %9, %10 : vector<512x64xf32>
    %12 = vector.broadcast %8 : vector<1x64xf32> to vector<512x64xf32>
    %13 = arith.addf %11, %12 : vector<512x64xf32>
    %cst_14 = arith.constant 0.000000e+00 : f32
    %14 = vector.broadcast %cst_14 : f32 to vector<512x64xf32>
    %15 = arith.maximumf %13, %14 : vector<512x64xf32>
    %16 = vector.shape_cast %15 : vector<512x64xf32> to vector<32x2x8x64xf32>
    %17 = vector.extract_strided_slice %16 {offsets = [0, 0, 0, 0], sizes = [32, 1, 8, 64], strides = [1, 1, 1, 1]} : vector<32x2x8x64xf32> to vector<32x1x8x64xf32>
    %18 = vector.shape_cast %17 : vector<32x1x8x64xf32> to vector<32x8x64xf32>
    %19 = vector.extract_strided_slice %16 {offsets = [0, 1, 0, 0], sizes = [32, 1, 8, 64], strides = [1, 1, 1, 1]} : vector<32x2x8x64xf32> to vector<32x1x8x64xf32>
    %20 = vector.shape_cast %19 : vector<32x1x8x64xf32> to vector<32x8x64xf32>
    %21 = arith.maximumf %18, %20 : vector<32x8x64xf32>
    %c1 = arith.constant 1 : index
    %c1_15 = arith.constant 1 : index
    %c0_16 = arith.constant 0 : index
    %22 = vector.load %arg13[%c1, %c1_15, %c0_16] : memref<34x10x64xf32, #tpu.memory_space<vmem>>, vector<32x8x64xf32>
    tpu.vector_store %arg13[%c1, %c1_15, %c0_16], %21 {strides = array<i32>} : memref<34x10x64xf32, #tpu.memory_space<vmem>>, vector<32x8x64xf32>,
    %cst_17 = arith.constant 0.000000e+00 : f32
    %23 = vector.broadcast %cst_17 : f32 to vector<256x128xf32>
    %c0_18 = arith.constant 0 : index
    %c0_19 = arith.constant 0 : index
    %c0_20 = arith.constant 0 : index
    %24 = vector.load %arg13[%c0_18, %c0_19, %c0_20] : memref<34x10x64xf32, #tpu.memory_space<vmem>>, vector<32x8x64xf32>
    %25 = vector.shape_cast %24 : vector<32x8x64xf32> to vector<256x64xf32>
    %c0_21 = arith.constant 0 : index
    %c0_22 = arith.constant 0 : index
    %c0_23 = arith.constant 0 : index
    %c0_24 = arith.constant 0 : index
    %26 = vector.load %arg4[%c0_21, %c0_22, %c0_23, %c0_24] : memref<3x3x64x128xf32, #tpu.memory_space<vmem>>, vector<1x1x64x128xf32>
    %27 = vector.shape_cast %26 : vector<1x1x64x128xf32> to vector<64x128xf32>
    %cst_25 = arith.constant dense<0.000000e+00> : vector<256x128xf32>
    %28 = tpu.matmul %25, %27, %cst_25 {dimension_numbers = #tpu.dot_dimension_numbers<[1], [0], [0], [1], [0, 0, 1, 1], [], []>} : vector<256x64xf32>, vector<64x128xf32>, vector<256x128xf32> -> vector<256x128xf32>
    %29 = arith.addf %23, %28 : vector<256x128xf32>
    %c0_26 = arith.constant 0 : index
    %c1_27 = arith.constant 1 : index
    %c0_28 = arith.constant 0 : index
    %30 = vector.load %arg13[%c0_26, %c1_27, %c0_28] : memref<34x10x64xf32, #tpu.memory_space<vmem>>, vector<32x8x64xf32>
    %31 = vector.shape_cast %30 : vector<32x8x64xf32> to vector<256x64xf32>
    %c0_29 = arith.constant 0 : index
    %c1_30 = arith.constant 1 : index
    %c0_31 = arith.constant 0 : index
    %c0_32 = arith.constant 0 : index
    %32 = vector.load %arg4[%c0_29, %c1_30, %c0_31, %c0_32] : memref<3x3x64x128xf32, #tpu.memory_space<vmem>>, vector<1x1x64x128xf32>
    %33 = vector.shape_cast %32 : vector<1x1x64x128xf32> to vector<64x128xf32>
    %cst_33 = arith.constant dense<0.000000e+00> : vector<256x128xf32>
    %34 = tpu.matmul %31, %33, %cst_33 {dimension_numbers = #tpu.dot_dimension_numbers<[1], [0], [0], [1], [0, 0, 1, 1], [], []>} : vector<256x64xf32>, vector<64x128xf32>, vector<256x128xf32> -> vector<256x128xf32>
    %35 = arith.addf %29, %34 : vector<256x128xf32>
    %c0_34 = arith.constant 0 : index
    %c2 = arith.constant 2 : index
    %c0_35 = arith.constant 0 : index
    %36 = vector.load %arg13[%c0_34, %c2, %c0_35] : memref<34x10x64xf32, #tpu.memory_space<vmem>>, vector<32x8x64xf32>
    %37 = vector.shape_cast %36 : vector<32x8x64xf32> to vector<256x64xf32>
    %c0_36 = arith.constant 0 : index
    %c2_37 = arith.constant 2 : index
    %c0_38 = arith.constant 0 : index
    %c0_39 = arith.constant 0 : index
    %38 = vector.load %arg4[%c0_36, %c2_37, %c0_38, %c0_39] : memref<3x3x64x128xf32, #tpu.memory_space<vmem>>, vector<1x1x64x128xf32>
    %39 = vector.shape_cast %38 : vector<1x1x64x128xf32> to vector<64x128xf32>
    %cst_40 = arith.constant dense<0.000000e+00> : vector<256x128xf32>
    %40 = tpu.matmul %37, %39, %cst_40 {dimension_numbers = #tpu.dot_dimension_numbers<[1], [0], [0], [1], [0, 0, 1, 1], [], []>} : vector<256x64xf32>, vector<64x128xf32>, vector<256x128xf32> -> vector<256x128xf32>
    %41 = arith.addf %35, %40 : vector<256x128xf32>
    %c1_41 = arith.constant 1 : index
    %c0_42 = arith.constant 0 : index
    %c0_43 = arith.constant 0 : index
    %42 = vector.load %arg13[%c1_41, %c0_42, %c0_43] : memref<34x10x64xf32, #tpu.memory_space<vmem>>, vector<32x8x64xf32>
    %43 = vector.shape_cast %42 : vector<32x8x64xf32> to vector<256x64xf32>
    %c1_44 = arith.constant 1 : index
    %c0_45 = arith.constant 0 : index
    %c0_46 = arith.constant 0 : index
    %c0_47 = arith.constant 0 : index
    %44 = vector.load %arg4[%c1_44, %c0_45, %c0_46, %c0_47] : memref<3x3x64x128xf32, #tpu.memory_space<vmem>>, vector<1x1x64x128xf32>
    %45 = vector.shape_cast %44 : vector<1x1x64x128xf32> to vector<64x128xf32>
    %cst_48 = arith.constant dense<0.000000e+00> : vector<256x128xf32>
    %46 = tpu.matmul %43, %45, %cst_48 {dimension_numbers = #tpu.dot_dimension_numbers<[1], [0], [0], [1], [0, 0, 1, 1], [], []>} : vector<256x64xf32>, vector<64x128xf32>, vector<256x128xf32> -> vector<256x128xf32>
    %47 = arith.addf %41, %46 : vector<256x128xf32>
    %c1_49 = arith.constant 1 : index
    %c1_50 = arith.constant 1 : index
    %c0_51 = arith.constant 0 : index
    %48 = vector.load %arg13[%c1_49, %c1_50, %c0_51] : memref<34x10x64xf32, #tpu.memory_space<vmem>>, vector<32x8x64xf32>
    %49 = vector.shape_cast %48 : vector<32x8x64xf32> to vector<256x64xf32>
    %c1_52 = arith.constant 1 : index
    %c1_53 = arith.constant 1 : index
    %c0_54 = arith.constant 0 : index
    %c0_55 = arith.constant 0 : index
    %50 = vector.load %arg4[%c1_52, %c1_53, %c0_54, %c0_55] : memref<3x3x64x128xf32, #tpu.memory_space<vmem>>, vector<1x1x64x128xf32>
    %51 = vector.shape_cast %50 : vector<1x1x64x128xf32> to vector<64x128xf32>
    %cst_56 = arith.constant dense<0.000000e+00> : vector<256x128xf32>
    %52 = tpu.matmul %49, %51, %cst_56 {dimension_numbers = #tpu.dot_dimension_numbers<[1], [0], [0], [1], [0, 0, 1, 1], [], []>} : vector<256x64xf32>, vector<64x128xf32>, vector<256x128xf32> -> vector<256x128xf32>
    %53 = arith.addf %47, %52 : vector<256x128xf32>
    %c1_57 = arith.constant 1 : index
    %c2_58 = arith.constant 2 : index
    %c0_59 = arith.constant 0 : index
    %54 = vector.load %arg13[%c1_57, %c2_58, %c0_59] : memref<34x10x64xf32, #tpu.memory_space<vmem>>, vector<32x8x64xf32>
    %55 = vector.shape_cast %54 : vector<32x8x64xf32> to vector<256x64xf32>
    %c1_60 = arith.constant 1 : index
    %c2_61 = arith.constant 2 : index
    %c0_62 = arith.constant 0 : index
    %c0_63 = arith.constant 0 : index
    %56 = vector.load %arg4[%c1_60, %c2_61, %c0_62, %c0_63] : memref<3x3x64x128xf32, #tpu.memory_space<vmem>>, vector<1x1x64x128xf32>
    %57 = vector.shape_cast %56 : vector<1x1x64x128xf32> to vector<64x128xf32>
    %cst_64 = arith.constant dense<0.000000e+00> : vector<256x128xf32>
    %58 = tpu.matmul %55, %57, %cst_64 {dimension_numbers = #tpu.dot_dimension_numbers<[1], [0], [0], [1], [0, 0, 1, 1], [], []>} : vector<256x64xf32>, vector<64x128xf32>, vector<256x128xf32> -> vector<256x128xf32>
    %59 = arith.addf %53, %58 : vector<256x128xf32>
    %c2_65 = arith.constant 2 : index
    %c0_66 = arith.constant 0 : index
    %c0_67 = arith.constant 0 : index
    %60 = vector.load %arg13[%c2_65, %c0_66, %c0_67] : memref<34x10x64xf32, #tpu.memory_space<vmem>>, vector<32x8x64xf32>
    %61 = vector.shape_cast %60 : vector<32x8x64xf32> to vector<256x64xf32>
    %c2_68 = arith.constant 2 : index
    %c0_69 = arith.constant 0 : index
    %c0_70 = arith.constant 0 : index
    %c0_71 = arith.constant 0 : index
    %62 = vector.load %arg4[%c2_68, %c0_69, %c0_70, %c0_71] : memref<3x3x64x128xf32, #tpu.memory_space<vmem>>, vector<1x1x64x128xf32>
    %63 = vector.shape_cast %62 : vector<1x1x64x128xf32> to vector<64x128xf32>
    %cst_72 = arith.constant dense<0.000000e+00> : vector<256x128xf32>
    %64 = tpu.matmul %61, %63, %cst_72 {dimension_numbers = #tpu.dot_dimension_numbers<[1], [0], [0], [1], [0, 0, 1, 1], [], []>} : vector<256x64xf32>, vector<64x128xf32>, vector<256x128xf32> -> vector<256x128xf32>
    %65 = arith.addf %59, %64 : vector<256x128xf32>
    %c2_73 = arith.constant 2 : index
    %c1_74 = arith.constant 1 : index
    %c0_75 = arith.constant 0 : index
    %66 = vector.load %arg13[%c2_73, %c1_74, %c0_75] : memref<34x10x64xf32, #tpu.memory_space<vmem>>, vector<32x8x64xf32>
    %67 = vector.shape_cast %66 : vector<32x8x64xf32> to vector<256x64xf32>
    %c2_76 = arith.constant 2 : index
    %c1_77 = arith.constant 1 : index
    %c0_78 = arith.constant 0 : index
    %c0_79 = arith.constant 0 : index
    %68 = vector.load %arg4[%c2_76, %c1_77, %c0_78, %c0_79] : memref<3x3x64x128xf32, #tpu.memory_space<vmem>>, vector<1x1x64x128xf32>
    %69 = vector.shape_cast %68 : vector<1x1x64x128xf32> to vector<64x128xf32>
    %cst_80 = arith.constant dense<0.000000e+00> : vector<256x128xf32>
    %70 = tpu.matmul %67, %69, %cst_80 {dimension_numbers = #tpu.dot_dimension_numbers<[1], [0], [0], [1], [0, 0, 1, 1], [], []>} : vector<256x64xf32>, vector<64x128xf32>, vector<256x128xf32> -> vector<256x128xf32>
    %71 = arith.addf %65, %70 : vector<256x128xf32>
    %c2_81 = arith.constant 2 : index
    %c2_82 = arith.constant 2 : index
    %c0_83 = arith.constant 0 : index
    %72 = vector.load %arg13[%c2_81, %c2_82, %c0_83] : memref<34x10x64xf32, #tpu.memory_space<vmem>>, vector<32x8x64xf32>
    %73 = vector.shape_cast %72 : vector<32x8x64xf32> to vector<256x64xf32>
    %c2_84 = arith.constant 2 : index
    %c2_85 = arith.constant 2 : index
    %c0_86 = arith.constant 0 : index
    %c0_87 = arith.constant 0 : index
    %74 = vector.load %arg4[%c2_84, %c2_85, %c0_86, %c0_87] : memref<3x3x64x128xf32, #tpu.memory_space<vmem>>, vector<1x1x64x128xf32>
    %75 = vector.shape_cast %74 : vector<1x1x64x128xf32> to vector<64x128xf32>
    %cst_88 = arith.constant dense<0.000000e+00> : vector<256x128xf32>
    %76 = tpu.matmul %73, %75, %cst_88 {dimension_numbers = #tpu.dot_dimension_numbers<[1], [0], [0], [1], [0, 0, 1, 1], [], []>} : vector<256x64xf32>, vector<64x128xf32>, vector<256x128xf32> -> vector<256x128xf32>
    %77 = arith.addf %71, %76 : vector<256x128xf32>
    %c0_89 = arith.constant 0 : index
    %c0_90 = arith.constant 0 : index
    %78 = vector.load %arg5[%c0_89, %c0_90] : memref<1x64xf32, #tpu.memory_space<vmem>>, vector<1x64xf32>
    %79 = vector.extract_strided_slice %77 {offsets = [0, 0], sizes = [256, 64], strides = [1, 1]} : vector<256x128xf32> to vector<256x64xf32>
    %80 = vector.extract_strided_slice %77 {offsets = [0, 64], sizes = [256, 64], strides = [1, 1]} : vector<256x128xf32> to vector<256x64xf32>
    %81 = arith.maximumf %79, %80 : vector<256x64xf32>
    %82 = vector.broadcast %78 : vector<1x64xf32> to vector<256x64xf32>
    %83 = arith.addf %81, %82 : vector<256x64xf32>
    %cst_91 = arith.constant 0.000000e+00 : f32
    %84 = vector.broadcast %cst_91 : f32 to vector<256x64xf32>
    %85 = arith.maximumf %83, %84 : vector<256x64xf32>
    %86 = vector.shape_cast %85 : vector<256x64xf32> to vector<16x2x8x64xf32>
    %87 = vector.extract_strided_slice %86 {offsets = [0, 0, 0, 0], sizes = [16, 1, 8, 64], strides = [1, 1, 1, 1]} : vector<16x2x8x64xf32> to vector<16x1x8x64xf32>
    %88 = vector.shape_cast %87 : vector<16x1x8x64xf32> to vector<16x8x64xf32>
    %89 = vector.extract_strided_slice %86 {offsets = [0, 1, 0, 0], sizes = [16, 1, 8, 64], strides = [1, 1, 1, 1]} : vector<16x2x8x64xf32> to vector<16x1x8x64xf32>
    %90 = vector.shape_cast %89 : vector<16x1x8x64xf32> to vector<16x8x64xf32>
    %91 = arith.maximumf %88, %90 : vector<16x8x64xf32>
    %c1_92 = arith.constant 1 : index
    %c1_93 = arith.constant 1 : index
    %c0_94 = arith.constant 0 : index
    %92 = vector.load %arg14[%c1_92, %c1_93, %c0_94] : memref<18x10x64xf32, #tpu.memory_space<vmem>>, vector<16x8x64xf32>
    tpu.vector_store %arg14[%c1_92, %c1_93, %c0_94], %91 {strides = array<i32>} : memref<18x10x64xf32, #tpu.memory_space<vmem>>, vector<16x8x64xf32>,
    %cst_95 = arith.constant 0.000000e+00 : f32
    %93 = vector.broadcast %cst_95 : f32 to vector<128x128xf32>
    %c0_96 = arith.constant 0 : index
    %c0_97 = arith.constant 0 : index
    %c0_98 = arith.constant 0 : index
    %94 = vector.load %arg14[%c0_96, %c0_97, %c0_98] : memref<18x10x64xf32, #tpu.memory_space<vmem>>, vector<16x8x64xf32>
    %95 = vector.shape_cast %94 : vector<16x8x64xf32> to vector<128x64xf32>
    %c0_99 = arith.constant 0 : index
    %c0_100 = arith.constant 0 : index
    %c0_101 = arith.constant 0 : index
    %c0_102 = arith.constant 0 : index
    %96 = vector.load %arg6[%c0_99, %c0_100, %c0_101, %c0_102] : memref<3x3x64x128xf32, #tpu.memory_space<vmem>>, vector<1x1x64x128xf32>
    %97 = vector.shape_cast %96 : vector<1x1x64x128xf32> to vector<64x128xf32>
    %cst_103 = arith.constant dense<0.000000e+00> : vector<128x128xf32>
    %98 = tpu.matmul %95, %97, %cst_103 {dimension_numbers = #tpu.dot_dimension_numbers<[1], [0], [0], [1], [0, 0, 1, 1], [], []>} : vector<128x64xf32>, vector<64x128xf32>, vector<128x128xf32> -> vector<128x128xf32>
    %99 = arith.addf %93, %98 : vector<128x128xf32>
    %c0_104 = arith.constant 0 : index
    %c1_105 = arith.constant 1 : index
    %c0_106 = arith.constant 0 : index
    %100 = vector.load %arg14[%c0_104, %c1_105, %c0_106] : memref<18x10x64xf32, #tpu.memory_space<vmem>>, vector<16x8x64xf32>
    %101 = vector.shape_cast %100 : vector<16x8x64xf32> to vector<128x64xf32>
    %c0_107 = arith.constant 0 : index
    %c1_108 = arith.constant 1 : index
    %c0_109 = arith.constant 0 : index
    %c0_110 = arith.constant 0 : index
    %102 = vector.load %arg6[%c0_107, %c1_108, %c0_109, %c0_110] : memref<3x3x64x128xf32, #tpu.memory_space<vmem>>, vector<1x1x64x128xf32>
    %103 = vector.shape_cast %102 : vector<1x1x64x128xf32> to vector<64x128xf32>
    %cst_111 = arith.constant dense<0.000000e+00> : vector<128x128xf32>
    %104 = tpu.matmul %101, %103, %cst_111 {dimension_numbers = #tpu.dot_dimension_numbers<[1], [0], [0], [1], [0, 0, 1, 1], [], []>} : vector<128x64xf32>, vector<64x128xf32>, vector<128x128xf32> -> vector<128x128xf32>
    %105 = arith.addf %99, %104 : vector<128x128xf32>
    %c0_112 = arith.constant 0 : index
    %c2_113 = arith.constant 2 : index
    %c0_114 = arith.constant 0 : index
    %106 = vector.load %arg14[%c0_112, %c2_113, %c0_114] : memref<18x10x64xf32, #tpu.memory_space<vmem>>, vector<16x8x64xf32>
    %107 = vector.shape_cast %106 : vector<16x8x64xf32> to vector<128x64xf32>
    %c0_115 = arith.constant 0 : index
    %c2_116 = arith.constant 2 : index
    %c0_117 = arith.constant 0 : index
    %c0_118 = arith.constant 0 : index
    %108 = vector.load %arg6[%c0_115, %c2_116, %c0_117, %c0_118] : memref<3x3x64x128xf32, #tpu.memory_space<vmem>>, vector<1x1x64x128xf32>
    %109 = vector.shape_cast %108 : vector<1x1x64x128xf32> to vector<64x128xf32>
    %cst_119 = arith.constant dense<0.000000e+00> : vector<128x128xf32>
    %110 = tpu.matmul %107, %109, %cst_119 {dimension_numbers = #tpu.dot_dimension_numbers<[1], [0], [0], [1], [0, 0, 1, 1], [], []>} : vector<128x64xf32>, vector<64x128xf32>, vector<128x128xf32> -> vector<128x128xf32>
    %111 = arith.addf %105, %110 : vector<128x128xf32>
    %c1_120 = arith.constant 1 : index
    %c0_121 = arith.constant 0 : index
    %c0_122 = arith.constant 0 : index
    %112 = vector.load %arg14[%c1_120, %c0_121, %c0_122] : memref<18x10x64xf32, #tpu.memory_space<vmem>>, vector<16x8x64xf32>
    %113 = vector.shape_cast %112 : vector<16x8x64xf32> to vector<128x64xf32>
    %c1_123 = arith.constant 1 : index
    %c0_124 = arith.constant 0 : index
    %c0_125 = arith.constant 0 : index
    %c0_126 = arith.constant 0 : index
    %114 = vector.load %arg6[%c1_123, %c0_124, %c0_125, %c0_126] : memref<3x3x64x128xf32, #tpu.memory_space<vmem>>, vector<1x1x64x128xf32>
    %115 = vector.shape_cast %114 : vector<1x1x64x128xf32> to vector<64x128xf32>
    %cst_127 = arith.constant dense<0.000000e+00> : vector<128x128xf32>
    %116 = tpu.matmul %113, %115, %cst_127 {dimension_numbers = #tpu.dot_dimension_numbers<[1], [0], [0], [1], [0, 0, 1, 1], [], []>} : vector<128x64xf32>, vector<64x128xf32>, vector<128x128xf32> -> vector<128x128xf32>
    %117 = arith.addf %111, %116 : vector<128x128xf32>
    %c1_128 = arith.constant 1 : index
    %c1_129 = arith.constant 1 : index
    %c0_130 = arith.constant 0 : index
    %118 = vector.load %arg14[%c1_128, %c1_129, %c0_130] : memref<18x10x64xf32, #tpu.memory_space<vmem>>, vector<16x8x64xf32>
    %119 = vector.shape_cast %118 : vector<16x8x64xf32> to vector<128x64xf32>
    %c1_131 = arith.constant 1 : index
    %c1_132 = arith.constant 1 : index
    %c0_133 = arith.constant 0 : index
    %c0_134 = arith.constant 0 : index
    %120 = vector.load %arg6[%c1_131, %c1_132, %c0_133, %c0_134] : memref<3x3x64x128xf32, #tpu.memory_space<vmem>>, vector<1x1x64x128xf32>
    %121 = vector.shape_cast %120 : vector<1x1x64x128xf32> to vector<64x128xf32>
    %cst_135 = arith.constant dense<0.000000e+00> : vector<128x128xf32>
    %122 = tpu.matmul %119, %121, %cst_135 {dimension_numbers = #tpu.dot_dimension_numbers<[1], [0], [0], [1], [0, 0, 1, 1], [], []>} : vector<128x64xf32>, vector<64x128xf32>, vector<128x128xf32> -> vector<128x128xf32>
    %123 = arith.addf %117, %122 : vector<128x128xf32>
    %c1_136 = arith.constant 1 : index
    %c2_137 = arith.constant 2 : index
    %c0_138 = arith.constant 0 : index
    %124 = vector.load %arg14[%c1_136, %c2_137, %c0_138] : memref<18x10x64xf32, #tpu.memory_space<vmem>>, vector<16x8x64xf32>
    %125 = vector.shape_cast %124 : vector<16x8x64xf32> to vector<128x64xf32>
    %c1_139 = arith.constant 1 : index
    %c2_140 = arith.constant 2 : index
    %c0_141 = arith.constant 0 : index
    %c0_142 = arith.constant 0 : index
    %126 = vector.load %arg6[%c1_139, %c2_140, %c0_141, %c0_142] : memref<3x3x64x128xf32, #tpu.memory_space<vmem>>, vector<1x1x64x128xf32>
    %127 = vector.shape_cast %126 : vector<1x1x64x128xf32> to vector<64x128xf32>
    %cst_143 = arith.constant dense<0.000000e+00> : vector<128x128xf32>
    %128 = tpu.matmul %125, %127, %cst_143 {dimension_numbers = #tpu.dot_dimension_numbers<[1], [0], [0], [1], [0, 0, 1, 1], [], []>} : vector<128x64xf32>, vector<64x128xf32>, vector<128x128xf32> -> vector<128x128xf32>
    %129 = arith.addf %123, %128 : vector<128x128xf32>
    %c2_144 = arith.constant 2 : index
    %c0_145 = arith.constant 0 : index
    %c0_146 = arith.constant 0 : index
    %130 = vector.load %arg14[%c2_144, %c0_145, %c0_146] : memref<18x10x64xf32, #tpu.memory_space<vmem>>, vector<16x8x64xf32>
    %131 = vector.shape_cast %130 : vector<16x8x64xf32> to vector<128x64xf32>
    %c2_147 = arith.constant 2 : index
    %c0_148 = arith.constant 0 : index
    %c0_149 = arith.constant 0 : index
    %c0_150 = arith.constant 0 : index
    %132 = vector.load %arg6[%c2_147, %c0_148, %c0_149, %c0_150] : memref<3x3x64x128xf32, #tpu.memory_space<vmem>>, vector<1x1x64x128xf32>
    %133 = vector.shape_cast %132 : vector<1x1x64x128xf32> to vector<64x128xf32>
    %cst_151 = arith.constant dense<0.000000e+00> : vector<128x128xf32>
    %134 = tpu.matmul %131, %133, %cst_151 {dimension_numbers = #tpu.dot_dimension_numbers<[1], [0], [0], [1], [0, 0, 1, 1], [], []>} : vector<128x64xf32>, vector<64x128xf32>, vector<128x128xf32> -> vector<128x128xf32>
    %135 = arith.addf %129, %134 : vector<128x128xf32>
    %c2_152 = arith.constant 2 : index
    %c1_153 = arith.constant 1 : index
    %c0_154 = arith.constant 0 : index
    %136 = vector.load %arg14[%c2_152, %c1_153, %c0_154] : memref<18x10x64xf32, #tpu.memory_space<vmem>>, vector<16x8x64xf32>
    %137 = vector.shape_cast %136 : vector<16x8x64xf32> to vector<128x64xf32>
    %c2_155 = arith.constant 2 : index
    %c1_156 = arith.constant 1 : index
    %c0_157 = arith.constant 0 : index
    %c0_158 = arith.constant 0 : index
    %138 = vector.load %arg6[%c2_155, %c1_156, %c0_157, %c0_158] : memref<3x3x64x128xf32, #tpu.memory_space<vmem>>, vector<1x1x64x128xf32>
    %139 = vector.shape_cast %138 : vector<1x1x64x128xf32> to vector<64x128xf32>
    %cst_159 = arith.constant dense<0.000000e+00> : vector<128x128xf32>
    %140 = tpu.matmul %137, %139, %cst_159 {dimension_numbers = #tpu.dot_dimension_numbers<[1], [0], [0], [1], [0, 0, 1, 1], [], []>} : vector<128x64xf32>, vector<64x128xf32>, vector<128x128xf32> -> vector<128x128xf32>
    %141 = arith.addf %135, %140 : vector<128x128xf32>
    %c2_160 = arith.constant 2 : index
    %c2_161 = arith.constant 2 : index
    %c0_162 = arith.constant 0 : index
    %142 = vector.load %arg14[%c2_160, %c2_161, %c0_162] : memref<18x10x64xf32, #tpu.memory_space<vmem>>, vector<16x8x64xf32>
    %143 = vector.shape_cast %142 : vector<16x8x64xf32> to vector<128x64xf32>
    %c2_163 = arith.constant 2 : index
    %c2_164 = arith.constant 2 : index
    %c0_165 = arith.constant 0 : index
    %c0_166 = arith.constant 0 : index
    %144 = vector.load %arg6[%c2_163, %c2_164, %c0_165, %c0_166] : memref<3x3x64x128xf32, #tpu.memory_space<vmem>>, vector<1x1x64x128xf32>
    %145 = vector.shape_cast %144 : vector<1x1x64x128xf32> to vector<64x128xf32>
    %cst_167 = arith.constant dense<0.000000e+00> : vector<128x128xf32>
    %146 = tpu.matmul %143, %145, %cst_167 {dimension_numbers = #tpu.dot_dimension_numbers<[1], [0], [0], [1], [0, 0, 1, 1], [], []>} : vector<128x64xf32>, vector<64x128xf32>, vector<128x128xf32> -> vector<128x128xf32>
    %147 = arith.addf %141, %146 : vector<128x128xf32>
    %c0_168 = arith.constant 0 : index
    %c0_169 = arith.constant 0 : index
    %148 = vector.load %arg7[%c0_168, %c0_169] : memref<1x64xf32, #tpu.memory_space<vmem>>, vector<1x64xf32>
    %149 = vector.extract_strided_slice %147 {offsets = [0, 0], sizes = [128, 64], strides = [1, 1]} : vector<128x128xf32> to vector<128x64xf32>
    %150 = vector.extract_strided_slice %147 {offsets = [0, 64], sizes = [128, 64], strides = [1, 1]} : vector<128x128xf32> to vector<128x64xf32>
    %151 = arith.maximumf %149, %150 : vector<128x64xf32>
    %152 = vector.broadcast %148 : vector<1x64xf32> to vector<128x64xf32>
    %153 = arith.addf %151, %152 : vector<128x64xf32>
    %cst_170 = arith.constant 0.000000e+00 : f32
    %154 = vector.broadcast %cst_170 : f32 to vector<128x64xf32>
    %155 = arith.maximumf %153, %154 : vector<128x64xf32>
    %156 = vector.shape_cast %155 : vector<128x64xf32> to vector<8x2x8x64xf32>
    %157 = vector.extract_strided_slice %156 {offsets = [0, 0, 0, 0], sizes = [8, 1, 8, 64], strides = [1, 1, 1, 1]} : vector<8x2x8x64xf32> to vector<8x1x8x64xf32>
    %158 = vector.shape_cast %157 : vector<8x1x8x64xf32> to vector<8x8x64xf32>
    %159 = vector.extract_strided_slice %156 {offsets = [0, 1, 0, 0], sizes = [8, 1, 8, 64], strides = [1, 1, 1, 1]} : vector<8x2x8x64xf32> to vector<8x1x8x64xf32>
    %160 = vector.shape_cast %159 : vector<8x1x8x64xf32> to vector<8x8x64xf32>
    %161 = arith.maximumf %158, %160 : vector<8x8x64xf32>
    %162 = vector.extract_strided_slice %161 {offsets = [0, 0, 0], sizes = [1, 8, 64], strides = [1, 1, 1]} : vector<8x8x64xf32> to vector<1x8x64xf32>
    %163 = vector.shape_cast %162 : vector<1x8x64xf32> to vector<8x64xf32>
    %c0_171 = arith.constant 0 : index
    %c0_172 = arith.constant 0 : index
    %164 = vector.load %arg15[%c0_171, %c0_172] : memref<8x512xf32, #tpu.memory_space<vmem>>, vector<8x64xf32>
    tpu.vector_store %arg15[%c0_171, %c0_172], %163 {strides = array<i32>} : memref<8x512xf32, #tpu.memory_space<vmem>>, vector<8x64xf32>,
    %165 = vector.extract_strided_slice %161 {offsets = [1, 0, 0], sizes = [1, 8, 64], strides = [1, 1, 1]} : vector<8x8x64xf32> to vector<1x8x64xf32>
    %166 = vector.shape_cast %165 : vector<1x8x64xf32> to vector<8x64xf32>
    %c0_173 = arith.constant 0 : index
    %c64 = arith.constant 64 : index
    %167 = vector.load %arg15[%c0_173, %c64] : memref<8x512xf32, #tpu.memory_space<vmem>>, vector<8x64xf32>
    tpu.vector_store %arg15[%c0_173, %c64], %166 {strides = array<i32>} : memref<8x512xf32, #tpu.memory_space<vmem>>, vector<8x64xf32>,
    %168 = vector.extract_strided_slice %161 {offsets = [2, 0, 0], sizes = [1, 8, 64], strides = [1, 1, 1]} : vector<8x8x64xf32> to vector<1x8x64xf32>
    %169 = vector.shape_cast %168 : vector<1x8x64xf32> to vector<8x64xf32>
    %c0_174 = arith.constant 0 : index
    %c128 = arith.constant 128 : index
    %170 = vector.load %arg15[%c0_174, %c128] : memref<8x512xf32, #tpu.memory_space<vmem>>, vector<8x64xf32>
    tpu.vector_store %arg15[%c0_174, %c128], %169 {strides = array<i32>} : memref<8x512xf32, #tpu.memory_space<vmem>>, vector<8x64xf32>,
    %171 = vector.extract_strided_slice %161 {offsets = [3, 0, 0], sizes = [1, 8, 64], strides = [1, 1, 1]} : vector<8x8x64xf32> to vector<1x8x64xf32>
    %172 = vector.shape_cast %171 : vector<1x8x64xf32> to vector<8x64xf32>
    %c0_175 = arith.constant 0 : index
    %c192 = arith.constant 192 : index
    %173 = vector.load %arg15[%c0_175, %c192] : memref<8x512xf32, #tpu.memory_space<vmem>>, vector<8x64xf32>
    tpu.vector_store %arg15[%c0_175, %c192], %172 {strides = array<i32>} : memref<8x512xf32, #tpu.memory_space<vmem>>, vector<8x64xf32>,
    %174 = vector.extract_strided_slice %161 {offsets = [4, 0, 0], sizes = [1, 8, 64], strides = [1, 1, 1]} : vector<8x8x64xf32> to vector<1x8x64xf32>
    %175 = vector.shape_cast %174 : vector<1x8x64xf32> to vector<8x64xf32>
    %c0_176 = arith.constant 0 : index
    %c256 = arith.constant 256 : index
    %176 = vector.load %arg15[%c0_176, %c256] : memref<8x512xf32, #tpu.memory_space<vmem>>, vector<8x64xf32>
    tpu.vector_store %arg15[%c0_176, %c256], %175 {strides = array<i32>} : memref<8x512xf32, #tpu.memory_space<vmem>>, vector<8x64xf32>,
    %177 = vector.extract_strided_slice %161 {offsets = [5, 0, 0], sizes = [1, 8, 64], strides = [1, 1, 1]} : vector<8x8x64xf32> to vector<1x8x64xf32>
    %178 = vector.shape_cast %177 : vector<1x8x64xf32> to vector<8x64xf32>
    %c0_177 = arith.constant 0 : index
    %c320 = arith.constant 320 : index
    %179 = vector.load %arg15[%c0_177, %c320] : memref<8x512xf32, #tpu.memory_space<vmem>>, vector<8x64xf32>
    tpu.vector_store %arg15[%c0_177, %c320], %178 {strides = array<i32>} : memref<8x512xf32, #tpu.memory_space<vmem>>, vector<8x64xf32>,
    %180 = vector.extract_strided_slice %161 {offsets = [6, 0, 0], sizes = [1, 8, 64], strides = [1, 1, 1]} : vector<8x8x64xf32> to vector<1x8x64xf32>
    %181 = vector.shape_cast %180 : vector<1x8x64xf32> to vector<8x64xf32>
    %c0_178 = arith.constant 0 : index
    %c384 = arith.constant 384 : index
    %182 = vector.load %arg15[%c0_178, %c384] : memref<8x512xf32, #tpu.memory_space<vmem>>, vector<8x64xf32>
    tpu.vector_store %arg15[%c0_178, %c384], %181 {strides = array<i32>} : memref<8x512xf32, #tpu.memory_space<vmem>>, vector<8x64xf32>,
    %183 = vector.extract_strided_slice %161 {offsets = [7, 0, 0], sizes = [1, 8, 64], strides = [1, 1, 1]} : vector<8x8x64xf32> to vector<1x8x64xf32>
    %184 = vector.shape_cast %183 : vector<1x8x64xf32> to vector<8x64xf32>
    %c0_179 = arith.constant 0 : index
    %c448 = arith.constant 448 : index
    %185 = vector.load %arg15[%c0_179, %c448] : memref<8x512xf32, #tpu.memory_space<vmem>>, vector<8x64xf32>
    tpu.vector_store %arg15[%c0_179, %c448], %184 {strides = array<i32>} : memref<8x512xf32, #tpu.memory_space<vmem>>, vector<8x64xf32>,
    %c0_180 = arith.constant 0 : index
    %c0_181 = arith.constant 0 : index
    %186 = vector.load %arg9[%c0_180, %c0_181] : memref<1x128xf32, #tpu.memory_space<vmem>>, vector<1x128xf32>
    %c0_182 = arith.constant 0 : index
    %c0_183 = arith.constant 0 : index
    %187 = vector.load %arg15[%c0_182, %c0_183] : memref<8x512xf32, #tpu.memory_space<vmem>>, vector<1x512xf32>
    %c0_184 = arith.constant 0 : index
    %c0_185 = arith.constant 0 : index
    %c0_186 = arith.constant 0 : index
    %188 = vector.load %arg8[%c0_184, %c0_185, %c0_186] : memref<8x512x128xf32, #tpu.memory_space<vmem>>, vector<1x512x128xf32>
    %189 = vector.shape_cast %188 : vector<1x512x128xf32> to vector<512x128xf32>
    %cst_187 = arith.constant dense<0.000000e+00> : vector<1x128xf32>
    %190 = tpu.matmul %187, %189, %cst_187 {dimension_numbers = #tpu.dot_dimension_numbers<[1], [0], [0], [1], [0, 0, 1, 1], [], []>} : vector<1x512xf32>, vector<512x128xf32>, vector<1x128xf32> -> vector<1x128xf32>
    %191 = arith.addf %186, %190 : vector<1x128xf32>
    %c1_188 = arith.constant 1 : index
    %c0_189 = arith.constant 0 : index
    %192 = vector.load %arg15[%c1_188, %c0_189] : memref<8x512xf32, #tpu.memory_space<vmem>>, vector<1x512xf32>
    %c1_190 = arith.constant 1 : index
    %c0_191 = arith.constant 0 : index
    %c0_192 = arith.constant 0 : index
    %193 = vector.load %arg8[%c1_190, %c0_191, %c0_192] : memref<8x512x128xf32, #tpu.memory_space<vmem>>, vector<1x512x128xf32>
    %194 = vector.shape_cast %193 : vector<1x512x128xf32> to vector<512x128xf32>
    %cst_193 = arith.constant dense<0.000000e+00> : vector<1x128xf32>
    %195 = tpu.matmul %192, %194, %cst_193 {dimension_numbers = #tpu.dot_dimension_numbers<[1], [0], [0], [1], [0, 0, 1, 1], [], []>} : vector<1x512xf32>, vector<512x128xf32>, vector<1x128xf32> -> vector<1x128xf32>
    %196 = arith.addf %191, %195 : vector<1x128xf32>
    %c2_194 = arith.constant 2 : index
    %c0_195 = arith.constant 0 : index
    %197 = vector.load %arg15[%c2_194, %c0_195] : memref<8x512xf32, #tpu.memory_space<vmem>>, vector<1x512xf32>
    %c2_196 = arith.constant 2 : index
    %c0_197 = arith.constant 0 : index
    %c0_198 = arith.constant 0 : index
    %198 = vector.load %arg8[%c2_196, %c0_197, %c0_198] : memref<8x512x128xf32, #tpu.memory_space<vmem>>, vector<1x512x128xf32>
    %199 = vector.shape_cast %198 : vector<1x512x128xf32> to vector<512x128xf32>
    %cst_199 = arith.constant dense<0.000000e+00> : vector<1x128xf32>
    %200 = tpu.matmul %197, %199, %cst_199 {dimension_numbers = #tpu.dot_dimension_numbers<[1], [0], [0], [1], [0, 0, 1, 1], [], []>} : vector<1x512xf32>, vector<512x128xf32>, vector<1x128xf32> -> vector<1x128xf32>
    %201 = arith.addf %196, %200 : vector<1x128xf32>
    %c3 = arith.constant 3 : index
    %c0_200 = arith.constant 0 : index
    %202 = vector.load %arg15[%c3, %c0_200] : memref<8x512xf32, #tpu.memory_space<vmem>>, vector<1x512xf32>
    %c3_201 = arith.constant 3 : index
    %c0_202 = arith.constant 0 : index
    %c0_203 = arith.constant 0 : index
    %203 = vector.load %arg8[%c3_201, %c0_202, %c0_203] : memref<8x512x128xf32, #tpu.memory_space<vmem>>, vector<1x512x128xf32>
    %204 = vector.shape_cast %203 : vector<1x512x128xf32> to vector<512x128xf32>
    %cst_204 = arith.constant dense<0.000000e+00> : vector<1x128xf32>
    %205 = tpu.matmul %202, %204, %cst_204 {dimension_numbers = #tpu.dot_dimension_numbers<[1], [0], [0], [1], [0, 0, 1, 1], [], []>} : vector<1x512xf32>, vector<512x128xf32>, vector<1x128xf32> -> vector<1x128xf32>
    %206 = arith.addf %201, %205 : vector<1x128xf32>
    %c4 = arith.constant 4 : index
    %c0_205 = arith.constant 0 : index
    %207 = vector.load %arg15[%c4, %c0_205] : memref<8x512xf32, #tpu.memory_space<vmem>>, vector<1x512xf32>
    %c4_206 = arith.constant 4 : index
    %c0_207 = arith.constant 0 : index
    %c0_208 = arith.constant 0 : index
    %208 = vector.load %arg8[%c4_206, %c0_207, %c0_208] : memref<8x512x128xf32, #tpu.memory_space<vmem>>, vector<1x512x128xf32>
    %209 = vector.shape_cast %208 : vector<1x512x128xf32> to vector<512x128xf32>
    %cst_209 = arith.constant dense<0.000000e+00> : vector<1x128xf32>
    %210 = tpu.matmul %207, %209, %cst_209 {dimension_numbers = #tpu.dot_dimension_numbers<[1], [0], [0], [1], [0, 0, 1, 1], [], []>} : vector<1x512xf32>, vector<512x128xf32>, vector<1x128xf32> -> vector<1x128xf32>
    %211 = arith.addf %206, %210 : vector<1x128xf32>
    %c5 = arith.constant 5 : index
    %c0_210 = arith.constant 0 : index
    %212 = vector.load %arg15[%c5, %c0_210] : memref<8x512xf32, #tpu.memory_space<vmem>>, vector<1x512xf32>
    %c5_211 = arith.constant 5 : index
    %c0_212 = arith.constant 0 : index
    %c0_213 = arith.constant 0 : index
    %213 = vector.load %arg8[%c5_211, %c0_212, %c0_213] : memref<8x512x128xf32, #tpu.memory_space<vmem>>, vector<1x512x128xf32>
    %214 = vector.shape_cast %213 : vector<1x512x128xf32> to vector<512x128xf32>
    %cst_214 = arith.constant dense<0.000000e+00> : vector<1x128xf32>
    %215 = tpu.matmul %212, %214, %cst_214 {dimension_numbers = #tpu.dot_dimension_numbers<[1], [0], [0], [1], [0, 0, 1, 1], [], []>} : vector<1x512xf32>, vector<512x128xf32>, vector<1x128xf32> -> vector<1x128xf32>
    %216 = arith.addf %211, %215 : vector<1x128xf32>
    %c6 = arith.constant 6 : index
    %c0_215 = arith.constant 0 : index
    %217 = vector.load %arg15[%c6, %c0_215] : memref<8x512xf32, #tpu.memory_space<vmem>>, vector<1x512xf32>
    %c6_216 = arith.constant 6 : index
    %c0_217 = arith.constant 0 : index
    %c0_218 = arith.constant 0 : index
    %218 = vector.load %arg8[%c6_216, %c0_217, %c0_218] : memref<8x512x128xf32, #tpu.memory_space<vmem>>, vector<1x512x128xf32>
    %219 = vector.shape_cast %218 : vector<1x512x128xf32> to vector<512x128xf32>
    %cst_219 = arith.constant dense<0.000000e+00> : vector<1x128xf32>
    %220 = tpu.matmul %217, %219, %cst_219 {dimension_numbers = #tpu.dot_dimension_numbers<[1], [0], [0], [1], [0, 0, 1, 1], [], []>} : vector<1x512xf32>, vector<512x128xf32>, vector<1x128xf32> -> vector<1x128xf32>
    %221 = arith.addf %216, %220 : vector<1x128xf32>
    %c7 = arith.constant 7 : index
    %c0_220 = arith.constant 0 : index
    %222 = vector.load %arg15[%c7, %c0_220] : memref<8x512xf32, #tpu.memory_space<vmem>>, vector<1x512xf32>
    %c7_221 = arith.constant 7 : index
    %c0_222 = arith.constant 0 : index
    %c0_223 = arith.constant 0 : index
    %223 = vector.load %arg8[%c7_221, %c0_222, %c0_223] : memref<8x512x128xf32, #tpu.memory_space<vmem>>, vector<1x512x128xf32>
    %224 = vector.shape_cast %223 : vector<1x512x128xf32> to vector<512x128xf32>
    %cst_224 = arith.constant dense<0.000000e+00> : vector<1x128xf32>
    %225 = tpu.matmul %222, %224, %cst_224 {dimension_numbers = #tpu.dot_dimension_numbers<[1], [0], [0], [1], [0, 0, 1, 1], [], []>} : vector<1x512xf32>, vector<512x128xf32>, vector<1x128xf32> -> vector<1x128xf32>
    %226 = arith.addf %221, %225 : vector<1x128xf32>
    %cst_225 = arith.constant 0.000000e+00 : f32
    %227 = vector.broadcast %cst_225 : f32 to vector<1x128xf32>
    %228 = arith.maximumf %226, %227 : vector<1x128xf32>
    %c0_226 = arith.constant 0 : index
    %c0_227 = arith.constant 0 : index
    %229 = vector.load %arg10[%c0_226, %c0_227] : memref<128x3xf32, #tpu.memory_space<vmem>>, vector<128x3xf32>
    %cst_228 = arith.constant dense<0.000000e+00> : vector<1x3xf32>
    %230 = tpu.matmul %228, %229, %cst_228 {dimension_numbers = #tpu.dot_dimension_numbers<[1], [0], [0], [1], [0, 0, 1, 1], [], []>} : vector<1x128xf32>, vector<128x3xf32>, vector<1x3xf32> -> vector<1x3xf32>
    %c0_229 = arith.constant 0 : index
    %c0_230 = arith.constant 0 : index
    %231 = vector.load %arg11[%c0_229, %c0_230] : memref<1x3xf32, #tpu.memory_space<vmem>>, vector<1x3xf32>
    %232 = arith.addf %230, %231 : vector<1x3xf32>
    %c0_231 = arith.constant 0 : index
    %c0_232 = arith.constant 0 : index
    %c0_233 = arith.constant 0 : index
    %233 = vector.load %arg12[%c0_231, %c0_232, %c0_233] : memref<1x1x3xf32, #tpu.memory_space<vmem>>, vector<1x1x3xf32>
    %234 = vector.shape_cast %233 : vector<1x1x3xf32> to vector<1x3xf32>
    %235 = vector.shape_cast %232 : vector<1x3xf32> to vector<1x1x3xf32>
    tpu.vector_store %arg12[%c0_231, %c0_232, %c0_233], %235 {strides = array<i32>} : memref<1x1x3xf32, #tpu.memory_space<vmem>>, vector<1x1x3xf32>,
    return
  }
  func.func @transform_0(%arg0: i32) -> (i32, i32, i32) {
    %c0_i32 = arith.constant 0 : i32
    %c0_i32_0 = arith.constant 0 : i32
    %c0_i32_1 = arith.constant 0 : i32
    return %arg0, %c0_i32, %c0_i32_0 : i32, i32, i32
  }
  func.func @transform_1(%arg0: i32) -> (i32, i32) {
    %c0_i32 = arith.constant 0 : i32
    %c0_i32_0 = arith.constant 0 : i32
    %c0_i32_1 = arith.constant 0 : i32
    return %c0_i32, %c0_i32_0 : i32, i32
  }
  func.func @transform_2(%arg0: i32) -> (i32, i32) {
    %c0_i32 = arith.constant 0 : i32
    %c0_i32_0 = arith.constant 0 : i32
    %c0_i32_1 = arith.constant 0 : i32
    return %c0_i32, %c0_i32_0 : i32, i32
  }
  func.func @transform_3(%arg0: i32) -> (i32, i32, i32, i32) {
    %c0_i32 = arith.constant 0 : i32
    %c0_i32_0 = arith.constant 0 : i32
    %c0_i32_1 = arith.constant 0 : i32
    %c0_i32_2 = arith.constant 0 : i32
    %c0_i32_3 = arith.constant 0 : i32
    return %c0_i32, %c0_i32_0, %c0_i32_1, %c0_i32_2 : i32, i32, i32, i32
  }
  func.func @transform_4(%arg0: i32) -> (i32, i32) {
    %c0_i32 = arith.constant 0 : i32
    %c0_i32_0 = arith.constant 0 : i32
    %c0_i32_1 = arith.constant 0 : i32
    return %c0_i32, %c0_i32_0 : i32, i32
  }
  func.func @transform_5(%arg0: i32) -> (i32, i32, i32, i32) {
    %c0_i32 = arith.constant 0 : i32
    %c0_i32_0 = arith.constant 0 : i32
    %c0_i32_1 = arith.constant 0 : i32
    %c0_i32_2 = arith.constant 0 : i32
    %c0_i32_3 = arith.constant 0 : i32
    return %c0_i32, %c0_i32_0, %c0_i32_1, %c0_i32_2 : i32, i32, i32, i32
  }
  func.func @transform_6(%arg0: i32) -> (i32, i32) {
    %c0_i32 = arith.constant 0 : i32
    %c0_i32_0 = arith.constant 0 : i32
    %c0_i32_1 = arith.constant 0 : i32
    return %c0_i32, %c0_i32_0 : i32, i32
  }
  func.func @transform_7(%arg0: i32) -> (i32, i32, i32) {
    %c0_i32 = arith.constant 0 : i32
    %c0_i32_0 = arith.constant 0 : i32
    %c0_i32_1 = arith.constant 0 : i32
    %c0_i32_2 = arith.constant 0 : i32
    return %c0_i32, %c0_i32_0, %c0_i32_1 : i32, i32, i32
  }
  func.func @transform_8(%arg0: i32) -> (i32, i32) {
    %c0_i32 = arith.constant 0 : i32
    %c0_i32_0 = arith.constant 0 : i32
    %c0_i32_1 = arith.constant 0 : i32
    return %c0_i32, %c0_i32_0 : i32, i32
  }
  func.func @transform_9(%arg0: i32) -> (i32, i32) {
    %c0_i32 = arith.constant 0 : i32
    %c0_i32_0 = arith.constant 0 : i32
    %c0_i32_1 = arith.constant 0 : i32
    return %c0_i32, %c0_i32_0 : i32, i32
  }
  func.func @transform_10(%arg0: i32) -> (i32, i32) {
    %c0_i32 = arith.constant 0 : i32
    %c0_i32_0 = arith.constant 0 : i32
    %c0_i32_1 = arith.constant 0 : i32
    return %c0_i32, %c0_i32_0 : i32, i32
  }
  func.func @transform_11(%arg0: i32) -> (i32, i32, i32) {
    %c0_i32 = arith.constant 0 : i32
    %c0_i32_0 = arith.constant 0 : i32
    %c0_i32_1 = arith.constant 0 : i32
    return %arg0, %c0_i32, %c0_i32_0 : i32, i32, i32
  }
}

</mosaic_0001>

<bundles_post_ra>
// kernel: cnn_forward.1
= control target key start
LH: loop header
LB: loop body
LE: loop exit
PB: predicated region body
PF: predicated region fallthrough
CT: control target
= control target key end

     0   :  { %s13788_s0 = inlined_call_operand.vmem [shape: f32[2,512,144], index: 0, kind: input, shape index: {}]   ;;  %s13789_s1 = inlined_call_operand.vmem [shape: f32[144,128], index: 1, kind: input, shape index: {}]   ;;  %s13790_s2 = inlined_call_operand.vmem [shape: f32[1,64], index: 2, kind: input, shape index: {}]   ;;  %s13791_s3 = inlined_call_operand.vmem [shape: f32[3,3,64,128], index: 3, kind: input, shape index: {}]   ;;  %s13792_s4 = inlined_call_operand.vmem [shape: f32[1,64], index: 4, kind: input, shape index: {}]   ;;  %s13793_s5 = inlined_call_operand.vmem [shape: f32[3,3,64,128], index: 5, kind: input, shape index: {}]   ;;  %s13794_s6 = inlined_call_operand.vmem [shape: f32[1,64], index: 6, kind: input, shape index: {}]   ;;  %s13795_s7 = inlined_call_operand.vmem [shape: f32[8,512,128], index: 7, kind: input, shape index: {}]   ;;  %s13796_s8 = inlined_call_operand.vmem [shape: f32[1,128], index: 8, kind: input, shape index: {}]   ;;  %s13797_s9 = inlined_call_operand.vmem [shape: f32[128,3], index: 9, kind: input, shape index: {}]   ;;  %s13798_s10 = inlined_call_operand.vmem [shape: f32[1,3], index: 10, kind: input, shape index: {}]   ;;  %s13799_s11 = inlined_call_operand.hbm [shape: f32[2,1,3], index: 11, kind: output, shape index: {}]  }
   0x1   :  { %13825 = sst [smem:[#allocation101_spill]] %s13788_s0 }
   0x2   :  { %16 = vsyncpa [#allocation6], 0 }
   0x3   :  { %18 = vsyncpa [#allocation6 + $0x1], 0  ;;  %s8619_s17 = smov 0   ;;  %s8621_s18 = smov 0  }
   0x4   :  { %s8623_s19 = smov 0   ;;  %s8625_s20 = smov 0  }
   0x5 LB: > { %s8640_s21 = sadd.s32 4294967295, %s8555_s20   ;;  %s7365_s22 = sadd.s32 4294967294, %s8555_s20   ;;  %s8555_s20 = sphi %s8625_s20, %s14066_s20   ;;  %s8551_s19 = sphi %s8623_s19, %s14065_s19   ;;  %s8547_s18 = sphi %s8621_s18, %s14064_s18   ;;  %s8543_s17 = sphi %s8619_s17, %s14063_s17  }
   0x6   : > { %s8644_s23 = sadd.s32 1, %s8555_s20   ;;  %s267_s24 = sadd.s32 1, %s8551_s19 }
   0x7   : > { %s264_s25 = ssub.s32 %s8555_s20, %s8644_s23  ;;  %p277_p0 = scmp.ne.s32.totalorder %s8551_s19, %s8547_s18 }
   0x8   : > { %p265_p1 = scmp.eq.s32.totalorder %s264_s25, 0  ;;  %p278_p2 = scmp.eq.s32.totalorder %s8640_s21, 1 }
   0x9   : > { %p283_p3 = scmp.ne.s32.totalorder %s8547_s18, %s8543_s17  ;;  %p284_p4 = scmp.eq.s32.totalorder %s7365_s22, 1 }
   0xa   : > { %s8655_s26 = scalar_select %p265_p1, %s8551_s19, %s267_s24  }
   0xb   : > { %p8657_p5 = por %p278_p2, %p277_p0  ;;  %p8661_p6 = por %p284_p4, %p283_p3 }
   0xc   : > { %13826 = sst [smem:[#allocation8_spill]] %s8655_s26  ;;  %p7368_p7 = scmp.ge.s32.totalorder %s8555_s20, 1 }
   0xd   : > { %p340_p8 = scmp.lt.s32.totalorder %s8555_s20, 3 }
   0xf   : > { %p341_p9 = pnand %p7368_p7, %p340_p8 }
  0x11   : > { %344 = sbr.rel (%p341_p9) target bundleno = 2771 (0xad3), region = 64 }
  0x16   : > { %v633_v0 = vld [vmem:[%s13789_s1 + $0x78] sm:$0xff]  ;;  %v632_v1 = vld [vmem:[%s13789_s1 + $0x70] sm:$0xff]  ;;  %v635_v2 = vld [vmem:[%s13789_s1 + $0x88] sm:$0xff]  ;;  %p379_p10 = scmp.lt.s32.totalorder %s8640_s21, 1  ;;  %vm636_vm0 = vcmask 130048   ;;  %s13829_s0 = sld [smem:[#allocation101_spill]] }
  0x17   : > { %829 = vmatpush.msra.mxu0 %v633_v0  ;;  %1052 = vmatpush.msra.mxu1 %v635_v2  ;;  %v634_v3 = vld [vmem:[%s13789_s1 + $0x80] sm:$0xff]  ;;  %v631_v4 = vld [vmem:[%s13789_s1 + $0x68] sm:$0xff]  ;;  %v629_v7 = vld [vmem:[%s13789_s1 + $0x58] sm:$0xff]  ;;  %vm384_vm1 = vcmask 523264   ;;  %vm386_vm2 = vcmask 517120   ;;  %vm5982_vm3 = vcmask 1048064   ;;  %s7306_s30 = scalar_lea.hbm %s13799_s11, %s8640_s21 }
  0x18   : > { %s380_s29 = scalar_select %p379_p10, %s8640_s21, 1  ;;  %v630_v5 = vld [vmem:[%s13789_s1 + $0x60] sm:$0xff]  ;;  %v628_v8 = vld [vmem:[%s13789_s1 + $0x50] sm:$0xff]  ;;  %v627_v9 = vld [vmem:[%s13789_s1 + $0x48] sm:$0xff]  ;;  %vm7295_vm4 = vcmask 16384  }
  0x19   : > { %830 = vmatpush.msra.mxu0 %v632_v1  ;;  %1053 = vmatpush.msra.mxu1 %v634_v3  ;;  %v626_v10 = vld [vmem:[%s13789_s1 + $0x40] sm:$0xff]  ;;  %v625_v12 = vld [vmem:[%s13789_s1 + $0x38] sm:$0xff]  ;;  %v624_v13 = vld [vmem:[%s13789_s1 + $0x30] sm:$0xff]  ;;  %s377_s22 = sand.u32 1, %s8547_s18   ;;  %s8513_s25 = scalar_lea.hbm %s13799_s11, 2 }
  0x1a   : > { %s8445_s13 = sshll.u32 %s380_s29, 10  ;;  %v623_v14 = vld [vmem:[%s13789_s1 + $0x28] sm:$0xff]  ;;  %v622_v15 = vld [vmem:[%s13789_s1 + $0x20] sm:$0xff]  ;;  %v621_v17 = vld [vmem:[%s13789_s1 + $0x18] sm:$0xff]  ;;  %s8557_s29 = smov 64  }
  0x1b   : > { %831 = vmatpush.msra.mxu0 %v631_v4  ;;  %v620_v18 = vld [vmem:[%s13789_s1 + $0x10] sm:$0xff]  ;;  %v619_v19 = vld [vmem:[%s13789_s1 + $0x8] sm:$0xff]  ;;  %v618_v20 = vld [vmem:[%s13789_s1] sm:$0xff]  ;;  %s378_s14 = scalar_lea.vmem [#allocation5], %s377_s22  ;;  %s7298_s16 = scalar_lea.sflag [#allocation6], %s377_s22 }
  0x1c   : > { %s8690_s26 = scalar_lea.vmem %s13829_s0, %s8445_s13  ;;  %s7308_s15 = sshll.u32 %s378_s14, 4  ;;  %s7309_s15 = int_to_ptr.vmem [resolvable:$true] %s7308_s15 }
  0x1d   : > { %v491_v6 = vld [vmem:[%s8690_s26 + $0x8] sm:$0xff]  ;;  %832 = vmatpush.msra.mxu0 %v630_v5  ;;  %v493_v11 = vld [vmem:[%s8690_s26 + $0x18] sm:$0xff]  ;;  %v490_v22 = vld [vmem:[%s8690_s26] sm:$0xff] }
  0x1e   : > { %7371 = vmatmul.msk.f32.vlgmr.msra.gmra.mxu1 %vm636_vm0, %v491_v6  ;;  %v495_v16 = vld [vmem:[%s8690_s26 + $0x28] sm:$0xff]  ;;  %v497_v21 = vld [vmem:[%s8690_s26 + $0x38] sm:$0xff]  ;;  %v492_v24 = vld [vmem:[%s8690_s26 + $0x10] sm:$0xff] }
  0x1f   : > { %833 = vmatpush.msra.mxu0 %v629_v7  ;;  %v499_v23 = vld [vmem:[%s8690_s26 + $0x48] sm:$0xff]  ;;  %v501_v25 = vld [vmem:[%s8690_s26 + $0x58] sm:$0xff]  ;;  %v494_v26 = vld [vmem:[%s8690_s26 + $0x20] sm:$0xff] }
  0x20   : > { %v503_v27 = vld [vmem:[%s8690_s26 + $0x68] sm:$0xff]  ;;  %v496_v28 = vld [vmem:[%s8690_s26 + $0x30] sm:$0xff]  ;;  %v505_v29 = vld [vmem:[%s8690_s26 + $0x78] sm:$0xff] }
  0x21   : > { %834 = vmatpush.msra.mxu0 %v628_v8  ;;  %v498_v30 = vld [vmem:[%s8690_s26 + $0x40] sm:$0xff]  ;;  %v507_v31 = vld [vmem:[%s8690_s26 + $0x88] sm:$0xff]  ;;  %v500_v32 = vld [vmem:[%s8690_s26 + $0x50] sm:$0xff] }
  0x22   : > { %v509_v33 = vld [vmem:[%s8690_s26 + $0x98] sm:$0xff]  ;;  %v502_v34 = vld [vmem:[%s8690_s26 + $0x60] sm:$0xff]  ;;  %v511_v35 = vld [vmem:[%s8690_s26 + $0xa8] sm:$0xff] }
  0x23   : > { %835 = vmatpush.msra.mxu0 %v627_v9  ;;  %v504_v36 = vld [vmem:[%s8690_s26 + $0x70] sm:$0xff]  ;;  %v513_v37 = vld [vmem:[%s8690_s26 + $0xb8] sm:$0xff]  ;;  %v506_v38 = vld [vmem:[%s8690_s26 + $0x80] sm:$0xff] }
  0x24   : > { %v515_v39 = vld [vmem:[%s8690_s26 + $0xc8] sm:$0xff]  ;;  %v508_v40 = vld [vmem:[%s8690_s26 + $0x90] sm:$0xff]  ;;  %v517_v41 = vld [vmem:[%s8690_s26 + $0xd8] sm:$0xff] }
  0x25   : > { %836 = vmatpush.msra.mxu0 %v626_v10  ;;  %v510_v42 = vld [vmem:[%s8690_s26 + $0xa0] sm:$0xff]  ;;  %v519_v43 = vld [vmem:[%s8690_s26 + $0xe8] sm:$0xff]  ;;  %v512_v44 = vld [vmem:[%s8690_s26 + $0xb0] sm:$0xff] }
  0x26   : > { %7372 = vmatmul.msk.f32.gmra.mxu1 %vm636_vm0, %v493_v11  ;;  %v521_v45 = vld [vmem:[%s8690_s26 + $0xf8] sm:$0xff]  ;;  %v514_v46 = vld [vmem:[%s8690_s26 + $0xc0] sm:$0xff]  ;;  %v523_v48 = vld [vmem:[%s8690_s26 + $0x108] sm:$0xff] }
  0x27   : > { %837 = vmatpush.msra.mxu0 %v625_v12  ;;  %v516_v49 = vld [vmem:[%s8690_s26 + $0xd0] sm:$0xff]  ;;  %v525_v51 = vld [vmem:[%s8690_s26 + $0x118] sm:$0xff]  ;;  %v518_v52 = vld [vmem:[%s8690_s26 + $0xe0] sm:$0xff] }
  0x28   : > { %v527_v54 = vld [vmem:[%s8690_s26 + $0x128] sm:$0xff]  ;;  %v520_v55 = vld [vmem:[%s8690_s26 + $0xf0] sm:$0xff]  ;;  %v529_v57 = vld [vmem:[%s8690_s26 + $0x138] sm:$0xff] }
  0x29   : > { %838 = vmatpush.msra.mxu0 %v624_v13  ;;  %v522_v59 = vld [vmem:[%s8690_s26 + $0x100] sm:$0xff]  ;;  %v531_v62 = vld [vmem:[%s8690_s26 + $0x148] sm:$0xff]  ;;  %v524_v0 = vld [vmem:[%s8690_s26 + $0x110] sm:$0xff] }
  0x2a   : > { %v533_v3 = vld [vmem:[%s8690_s26 + $0x158] sm:$0xff]  ;;  %v526_v5 = vld [vmem:[%s8690_s26 + $0x120] sm:$0xff]  ;;  %v535_v8 = vld [vmem:[%s8690_s26 + $0x168] sm:$0xff] }
  0x2b   : > { %839 = vmatpush.msra.mxu0 %v623_v14  ;;  %v528_v10 = vld [vmem:[%s8690_s26 + $0x130] sm:$0xff]  ;;  %v537_v13 = vld [vmem:[%s8690_s26 + $0x178] sm:$0xff] }
  0x2d   : > { %840 = vmatpush.msra.mxu0 %v622_v15  ;;  %v530_v15 = vld [vmem:[%s8690_s26 + $0x140] sm:$0xff] }
  0x2e   : > { %7373 = vmatmul.msk.f32.gmra.mxu1 %vm636_vm0, %v495_v16 }
  0x2f   : > { %841 = vmatpush.msra.mxu0 %v621_v17 }
  0x31   : > { %842 = vmatpush.msra.mxu0 %v620_v18  ;;  %v539_v18 = vld [vmem:[%s8690_s26 + $0x188] sm:$0xff] }
  0x33   : > { %843 = vmatpush.msra.mxu0 %v619_v19 }
  0x35   : > { %844 = vmatpush.msra.mxu0 %v618_v20  ;;  %v532_v20 = vld [vmem:[%s8690_s26 + $0x150] sm:$0xff] }
  0x36   : > { %7374 = vmatmul.msk.f32.gmra.mxu1 %vm636_vm0, %v497_v21  ;;  %845 = vmatmul.f32.vlgmr.msra.gmra.mxu0 %v490_v22  ;;  %v541_v22 = vld [vmem:[%s8690_s26 + $0x198] sm:$0xff] }
  0x3e   : > { %7375 = vmatmul.msk.f32.gmra.mxu1 %vm636_vm0, %v499_v23  ;;  %848 = vmatmul.f32.gmra.mxu0 %v492_v24 }
  0x46   : > { %7376 = vmatmul.msk.f32.gmra.mxu1 %vm636_vm0, %v501_v25  ;;  %851 = vmatmul.f32.gmra.mxu0 %v494_v26  ;;  %v534_v25 = vld [vmem:[%s8690_s26 + $0x160] sm:$0xff] }
  0x4e   : > { %7377 = vmatmul.msk.f32.gmra.mxu1 %vm636_vm0, %v503_v27  ;;  %854 = vmatmul.f32.gmra.mxu0 %v496_v28  ;;  %v543_v27 = vld [vmem:[%s8690_s26 + $0x1a8] sm:$0xff] }
  0x56   : > { %7378 = vmatmul.msk.f32.gmra.mxu1 %vm636_vm0, %v505_v29  ;;  %857 = vmatmul.f32.gmra.mxu0 %v498_v30  ;;  %v536_v29 = vld [vmem:[%s8690_s26 + $0x170] sm:$0xff] }
  0x5e   : > { %7379 = vmatmul.msk.f32.gmra.mxu1 %vm636_vm0, %v507_v31  ;;  %860 = vmatmul.f32.gmra.mxu0 %v500_v32  ;;  %v545_v32 = vld [vmem:[%s8690_s26 + $0x1b8] sm:$0xff] }
  0x66   : > { %7380 = vmatmul.msk.f32.gmra.mxu1 %vm636_vm0, %v509_v33  ;;  %863 = vmatmul.f32.gmra.mxu0 %v502_v34  ;;  %v538_v34 = vld [vmem:[%s8690_s26 + $0x180] sm:$0xff] }
  0x6e   : > { %7381 = vmatmul.msk.f32.gmra.mxu1 %vm636_vm0, %v511_v35  ;;  %866 = vmatmul.f32.gmra.mxu0 %v504_v36 }
  0x76   : > { %7382 = vmatmul.msk.f32.gmra.mxu1 %vm636_vm0, %v513_v37  ;;  %869 = vmatmul.f32.gmra.mxu0 %v506_v38  ;;  %v547_v37 = vld [vmem:[%s8690_s26 + $0x1c8] sm:$0xff] }
  0x7e   : > { %7383 = vmatmul.msk.f32.gmra.mxu1 %vm636_vm0, %v515_v39  ;;  %872 = vmatmul.f32.gmra.mxu0 %v508_v40  ;;  %v540_v39 = vld [vmem:[%s8690_s26 + $0x190] sm:$0xff] }
  0x86   : > { %7384 = vmatmul.msk.f32.gmra.mxu1 %vm636_vm0, %v517_v41  ;;  %875 = vmatmul.f32.gmra.mxu0 %v510_v42  ;;  %v549_v42 = vld [vmem:[%s8690_s26 + $0x1d8] sm:$0xff] }
  0x8e   : > { %7385 = vmatmul.msk.f32.gmra.mxu1 %vm636_vm0, %v519_v43  ;;  %878 = vmatmul.f32.gmra.mxu0 %v512_v44  ;;  %v542_v44 = vld [vmem:[%s8690_s26 + $0x1a0] sm:$0xff] }
  0x96   : > { %7386 = vmatmul.msk.f32.gmra.mxu1 %vm636_vm0, %v521_v45  ;;  %881 = vmatmul.f32.gmra.mxu0 %v514_v46  ;;  %v7442_v46 = vld [vmem:[%s13791_s3 + $0x78] sm:$0xff] }
  0x97   : > { %1949 = vmatpush.msra.mxu2 %v7442_v46 }
  0x9b   : > { %v1055_v47 = vpop.f32.mrf.mxu1 }
  0x9e   : > { %7387 = vmatmul.msk.f32.gmra.mxu1 %vm636_vm0, %v523_v48  ;;  %884 = vmatmul.f32.gmra.mxu0 %v516_v49  ;;  %v551_v48 = vld [vmem:[%s8690_s26 + $0x1e8] sm:$0xff] }
  0xa3   : > { %v1058_v50 = vpop.f32.mrf.mxu1 }
  0xa6   : > { %7388 = vmatmul.msk.f32.gmra.mxu1 %vm636_vm0, %v525_v51  ;;  %887 = vmatmul.f32.gmra.mxu0 %v518_v52  ;;  %v544_v51 = vld [vmem:[%s8690_s26 + $0x1b0] sm:$0xff] }
  0xa7   : > { %v7441_v52 = vld [vmem:[%s13791_s3 + $0x70] sm:$0xff] }
  0xa8   : > { %1950 = vmatpush.msra.mxu2 %v7441_v52 }
  0xab   : > { %v1061_v53 = vpop.f32.mrf.mxu1 }
  0xae   : > { %7389 = vmatmul.msk.f32.gmra.mxu1 %vm636_vm0, %v527_v54  ;;  %890 = vmatmul.f32.gmra.mxu0 %v520_v55  ;;  %v7440_v55 = vld [vmem:[%s13791_s3 + $0x68] sm:$0xff] }
  0xaf   : > { %1951 = vmatpush.msra.mxu2 %v7440_v55  ;;  %v563_v55 = vld [vmem:[%s8690_s26 + $0x248] sm:$0xff] }
  0xb3   : > { %v1064_v56 = vpop.f32.mrf.mxu1  ;;  %v846_v58 = vpop.f32.mrf.mxu0 }
  0xb4   : > { %v8784_v60 = vadd.f32 %v1055_v47, %v846_v58  ;;  %v1803_v47 = vld [vmem:[%s13791_s3 + $0x38] sm:$0xff]  ;;  %v1800_v58 = vld [vmem:[%s13791_s3 + $0x20] sm:$0xff] }
  0xb5   : > { %2158 = vmatpush.msra.mxu3 %v1803_v47 }
  0xb6   : > { %7390 = vmatmul.msk.f32.gmra.mxu1 %vm636_vm0, %v529_v57  ;;  %893 = vmatmul.f32.gmra.mxu0 %v522_v59  ;;  %v7439_v57 = vld [vmem:[%s13791_s3 + $0x60] sm:$0xff]  ;;  %v8558_v59 = vmov 0.0  }
  0xb7   : > { %1312 = vrot.lane.b32.xlu0 %v8784_v60, %s8557_s29  ;;  %388 = vst.msk [vmem:[#allocation2 + $0x10] sm:$0xff] %vm384_vm1, %v8558_v59  ;;  %1952 = vmatpush.msra.mxu2 %v7439_v57 }
  0xb8   : > { %389 = vst.msk [vmem:[#allocation2 + $0x18] sm:$0x3] %vm386_vm2, %v8558_v59 }
  0xb9   : > { %385 = vst.msk [vmem:[#allocation2] sm:$0xff] %vm384_vm1, %v8558_v59 }
  0xba   : > { %387 = vst.msk [vmem:[#allocation2 + $0x8] sm:$0x3] %vm386_vm2, %v8558_v59 }
  0xbb   : > { %v1067_v61 = vpop.f32.mrf.mxu1  ;;  %v849_v63 = vpop.f32.mrf.mxu0  ;;  %390 = vst.msk [vmem:[#allocation2 + $0x20] sm:$0xff] %vm384_vm1, %v8558_v59 }
  0xbc   : > { %v8791_v1 = vadd.f32 %v1058_v50, %v849_v63  ;;  %v553_v63 = vld [vmem:[%s8690_s26 + $0x1f8] sm:$0xff]  ;;  %391 = vst.msk [vmem:[#allocation2 + $0x28] sm:$0x3] %vm386_vm2, %v8558_v59 }
  0xbd   : > { %392 = vst.msk [vmem:[#allocation2 + $0x30] sm:$0xff] %vm384_vm1, %v8558_v59 }
  0xbe   : > { %7391 = vmatmul.msk.f32.gmra.mxu1 %vm636_vm0, %v531_v62  ;;  %896 = vmatmul.f32.gmra.mxu0 %v524_v0  ;;  %v1799_v62 = vld [vmem:[%s13791_s3 + $0x18] sm:$0xff]  ;;  %393 = vst.msk [vmem:[#allocation2 + $0x38] sm:$0x3] %vm386_vm2, %v8558_v59 }
  0xbf   : > { %1314 = vrot.lane.b32.xlu0 %v8791_v1, %s8557_s29  ;;  %394 = vst.msk [vmem:[#allocation2 + $0x40] sm:$0xff] %vm384_vm1, %v8558_v59 }
  0xc0   : > { %395 = vst.msk [vmem:[#allocation2 + $0x48] sm:$0x3] %vm386_vm2, %v8558_v59 }
  0xc1   : > { %396 = vst.msk [vmem:[#allocation2 + $0x50] sm:$0xff] %vm384_vm1, %v8558_v59 }
  0xc2   : > { %397 = vst.msk [vmem:[#allocation2 + $0x58] sm:$0x3] %vm386_vm2, %v8558_v59 }
  0xc3   : > { %v1070_v2 = vpop.f32.mrf.mxu1  ;;  %v852_v4 = vpop.f32.mrf.mxu0  ;;  %398 = vst.msk [vmem:[#allocation2 + $0x60] sm:$0xff] %vm384_vm1, %v8558_v59 }
  0xc4   : > { %v8798_v6 = vadd.f32 %v1061_v53, %v852_v4  ;;  %v1802_v53 = vld [vmem:[%s13791_s3 + $0x30] sm:$0xff]  ;;  %399 = vst.msk [vmem:[#allocation2 + $0x68] sm:$0x3] %vm386_vm2, %v8558_v59 }
  0xc5   : > { %2159 = vmatpush.msra.mxu3 %v1802_v53  ;;  %400 = vst.msk [vmem:[#allocation2 + $0x70] sm:$0xff] %vm384_vm1, %v8558_v59 }
  0xc6   : > { %7392 = vmatmul.msk.f32.gmra.mxu1 %vm636_vm0, %v533_v3  ;;  %899 = vmatmul.f32.gmra.mxu0 %v526_v5  ;;  %v7437_v3 = vld [vmem:[%s13791_s3 + $0x50] sm:$0xff]  ;;  %401 = vst.msk [vmem:[#allocation2 + $0x78] sm:$0x3] %vm386_vm2, %v8558_v59 }
  0xc7   : > { %1316 = vrot.lane.b32.xlu1 %v8798_v6, %s8557_s29  ;;  %v1798_v5 = vld [vmem:[%s13791_s3 + $0x10] sm:$0xff]  ;;  %402 = vst.msk [vmem:[#allocation2 + $0x80] sm:$0xff] %vm384_vm1, %v8558_v59 }
  0xc8   : > { %403 = vst.msk [vmem:[#allocation2 + $0x88] sm:$0x3] %vm386_vm2, %v8558_v59 }
  0xc9   : > { %404 = vst.msk [vmem:[#allocation2 + $0x90] sm:$0xff] %vm384_vm1, %v8558_v59 }
  0xca   : > { %405 = vst.msk [vmem:[#allocation2 + $0x98] sm:$0x3] %vm386_vm2, %v8558_v59 }
  0xcb   : > { %v1073_v7 = vpop.f32.mrf.mxu1  ;;  %v855_v9 = vpop.f32.mrf.mxu0  ;;  %406 = vst.msk [vmem:[#allocation2 + $0xa0] sm:$0xff] %vm384_vm1, %v8558_v59 }
  0xcc   : > { %v8805_v11 = vadd.f32 %v1064_v56, %v855_v9  ;;  %v1801_v56 = vld [vmem:[%s13791_s3 + $0x28] sm:$0xff]  ;;  %407 = vst.msk [vmem:[#allocation2 + $0xa8] sm:$0x3] %vm386_vm2, %v8558_v59 }
  0xcd   : > { %2160 = vmatpush.msra.mxu3 %v1801_v56  ;;  %v1797_v9 = vld [vmem:[%s13791_s3 + $0x8] sm:$0xff]  ;;  %408 = vst.msk [vmem:[#allocation2 + $0xb0] sm:$0xff] %vm384_vm1, %v8558_v59  ;;  %v556_v56 = vld [vmem:[%s8690_s26 + $0x210] sm:$0xff] }
  0xce   : > { %7393 = vmatmul.msk.f32.gmra.mxu1 %vm636_vm0, %v535_v8  ;;  %902 = vmatmul.f32.gmra.mxu0 %v528_v10  ;;  %v7436_v8 = vld [vmem:[%s13791_s3 + $0x48] sm:$0xff]  ;;  %v7435_v10 = vld [vmem:[%s13791_s3 + $0x40] sm:$0xff]  ;;  %409 = vst.msk [vmem:[#allocation2 + $0xb8] sm:$0x3] %vm386_vm2, %v8558_v59 }
  0xcf   : > { %1318 = vrot.lane.b32.xlu1 %v8805_v11, %s8557_s29  ;;  %2161 = vmatpush.msra.mxu3 %v1800_v58  ;;  %410 = vst.msk [vmem:[#allocation2 + $0xc0] sm:$0xff] %vm384_vm1, %v8558_v59 }
  0xd0   : > { %411 = vst.msk [vmem:[#allocation2 + $0xc8] sm:$0x3] %vm386_vm2, %v8558_v59 }
  0xd1   : > { %2162 = vmatpush.msra.mxu3 %v1799_v62  ;;  %412 = vst.msk [vmem:[#allocation2 + $0xd0] sm:$0xff] %vm384_vm1, %v8558_v59 }
  0xd2   : > { %413 = vst.msk [vmem:[#allocation2 + $0xd8] sm:$0x3] %vm386_vm2, %v8558_v59 }
  0xd3   : > { %v1076_v12 = vpop.f32.mrf.mxu1  ;;  %v858_v14 = vpop.f32.mrf.mxu0  ;;  %2163 = vmatpush.msra.mxu3 %v1798_v5  ;;  %414 = vst.msk [vmem:[#allocation2 + $0xe0] sm:$0xff] %vm384_vm1, %v8558_v59 }
  0xd4   : > { %v8812_v16 = vadd.f32 %v1067_v61, %v858_v14  ;;  %v7438_v61 = vld [vmem:[%s13791_s3 + $0x58] sm:$0xff]  ;;  %415 = vst.msk [vmem:[#allocation2 + $0xe8] sm:$0x3] %vm386_vm2, %v8558_v59 }
  0xd5   : > { %1953 = vmatpush.msra.mxu2 %v7438_v61  ;;  %2164 = vmatpush.msra.mxu3 %v1797_v9  ;;  %416 = vst.msk [vmem:[#allocation2 + $0xf0] sm:$0xff] %vm384_vm1, %v8558_v59  ;;  %v567_v9 = vld [vmem:[%s8690_s26 + $0x268] sm:$0xff] }
  0xd6   : > { %7394 = vmatmul.msk.f32.gmra.mxu1 %vm636_vm0, %v537_v13  ;;  %905 = vmatmul.f32.gmra.mxu0 %v530_v15  ;;  %v555_v13 = vld [vmem:[%s8690_s26 + $0x208] sm:$0xff]  ;;  %v548_v15 = vld [vmem:[%s8690_s26 + $0x1d0] sm:$0xff]  ;;  %417 = vst.msk [vmem:[#allocation2 + $0xf8] sm:$0x3] %vm386_vm2, %v8558_v59 }
  0xd7   : > { %1320 = vrot.lane.b32.xlu2 %v8812_v16, %s8557_s29  ;;  %1954 = vmatpush.msra.mxu2 %v7437_v3  ;;  %418 = vst.msk [vmem:[#allocation2 + $0x100] sm:$0xff] %vm384_vm1, %v8558_v59  ;;  %v558_v3 = vld [vmem:[%s8690_s26 + $0x220] sm:$0xff] }
  0xd8   : > { %419 = vst.msk [vmem:[#allocation2 + $0x108] sm:$0x3] %vm386_vm2, %v8558_v59 }
  0xd9   : > { %1955 = vmatpush.msra.mxu2 %v7436_v8  ;;  %420 = vst.msk [vmem:[#allocation2 + $0x110] sm:$0xff] %vm384_vm1, %v8558_v59 }
  0xda   : > { %421 = vst.msk [vmem:[#allocation2 + $0x118] sm:$0x3] %vm386_vm2, %v8558_v59 }
  0xdb   : > { %v1079_v17 = vpop.f32.mrf.mxu1  ;;  %v861_v19 = vpop.f32.mrf.mxu0  ;;  %1956 = vmatpush.msra.mxu2 %v7435_v10  ;;  %422 = vst.msk [vmem:[#allocation2 + $0x120] sm:$0xff] %vm384_vm1, %v8558_v59 }
  0xdc   : > { %v8819_v21 = vadd.f32 %v1070_v2, %v861_v19  ;;  %v546_v2 = vld [vmem:[%s8690_s26 + $0x1c0] sm:$0xff]  ;;  %v557_v19 = vld [vmem:[%s8690_s26 + $0x218] sm:$0xff]  ;;  %423 = vst.msk [vmem:[#allocation2 + $0x128] sm:$0x3] %vm386_vm2, %v8558_v59 }
  0xdd   : > { %424 = vst.msk [vmem:[#allocation2 + $0x130] sm:$0xff] %vm384_vm1, %v8558_v59 }
  0xde   : > { %7395 = vmatmul.msk.f32.gmra.mxu1 %vm636_vm0, %v539_v18  ;;  %908 = vmatmul.f32.gmra.mxu0 %v532_v20  ;;  %425 = vst.msk [vmem:[#allocation2 + $0x138] sm:$0x3] %vm386_vm2, %v8558_v59 }
  0xdf   : > { %1322 = vrot.lane.b32.xlu2 %v8819_v21, %s8557_s29  ;;  %426 = vst.msk [vmem:[#allocation2 + $0x140] sm:$0xff] %vm384_vm1, %v8558_v59 }
  0xe0   : > { %427 = vst.msk [vmem:[#allocation2 + $0x148] sm:$0x3] %vm386_vm2, %v8558_v59 }
  0xe1   : > { %428 = vst.msk [vmem:[#allocation2 + $0x150] sm:$0xff] %vm384_vm1, %v8558_v59 }
  0xe2   : > { %429 = vst.msk [vmem:[#allocation2 + $0x158] sm:$0x3] %vm386_vm2, %v8558_v59 }
  0xe3   : > { %v1082_v23 = vpop.f32.mrf.mxu1  ;;  %v864_v24 = vpop.f32.mrf.mxu0  ;;  %430 = vst.msk [vmem:[#allocation2 + $0x160] sm:$0xff] %vm384_vm1, %v8558_v59 }
  0xe4   : > { %v8826_v26 = vadd.f32 %v1073_v7, %v864_v24  ;;  %431 = vst.msk [vmem:[#allocation2 + $0x168] sm:$0x3] %vm386_vm2, %v8558_v59 }
  0xe5   : > { %432 = vst.msk [vmem:[#allocation2 + $0x170] sm:$0xff] %vm384_vm1, %v8558_v59 }
  0xe6   : > { %7396 = vmatmul.msk.f32.gmra.mxu1 %vm636_vm0, %v541_v22  ;;  %911 = vmatmul.f32.gmra.mxu0 %v534_v25  ;;  %v550_v22 = vld [vmem:[%s8690_s26 + $0x1e0] sm:$0xff]  ;;  %433 = vst.msk [vmem:[#allocation2 + $0x178] sm:$0x3] %vm386_vm2, %v8558_v59 }
  0xe7   : > { %1324 = vrot.lane.b32.xlu0 %v8826_v26, %s8557_s29  ;;  %434 = vst.msk [vmem:[#allocation2 + $0x180] sm:$0xff] %vm384_vm1, %v8558_v59 }
  0xe8   : > { %435 = vst.msk [vmem:[#allocation2 + $0x188] sm:$0x3] %vm386_vm2, %v8558_v59 }
  0xe9   : > { %436 = vst.msk [vmem:[#allocation2 + $0x190] sm:$0xff] %vm384_vm1, %v8558_v59 }
  0xea   : > { %437 = vst.msk [vmem:[#allocation2 + $0x198] sm:$0x3] %vm386_vm2, %v8558_v59 }
  0xeb   : > { %v867_v28 = vpop.f32.mrf.mxu0  ;;  %v1085_v31 = vpop.f32.mrf.mxu1  ;;  %438 = vst.msk [vmem:[#allocation2 + $0x1a0] sm:$0xff] %vm384_vm1, %v8558_v59 }
  0xec   : > { %v8833_v30 = vadd.f32 %v1076_v12, %v867_v28  ;;  %v1796_v12 = vld [vmem:[%s13791_s3] sm:$0xff]  ;;  %439 = vst.msk [vmem:[#allocation2 + $0x1a8] sm:$0x3] %vm386_vm2, %v8558_v59 }
  0xed   : > { %2165 = vmatpush.msra.mxu3 %v1796_v12  ;;  %440 = vst.msk [vmem:[#allocation2 + $0x1b0] sm:$0xff] %vm384_vm1, %v8558_v59 }
  0xee   : > { %7397 = vmatmul.msk.f32.gmra.mxu1 %vm636_vm0, %v543_v27  ;;  %914 = vmatmul.f32.gmra.mxu0 %v536_v29  ;;  %v559_v27 = vld [vmem:[%s8690_s26 + $0x228] sm:$0xff]  ;;  %v552_v29 = vld [vmem:[%s8690_s26 + $0x1f0] sm:$0xff]  ;;  %441 = vst.msk [vmem:[#allocation2 + $0x1b8] sm:$0x3] %vm386_vm2, %v8558_v59 }
  0xef   : > { %1326 = vrot.lane.b32.xlu1 %v8833_v30, %s8557_s29  ;;  %442 = vst.msk [vmem:[#allocation2 + $0x1c0] sm:$0xff] %vm384_vm1, %v8558_v59 }
  0xf0   : > { %443 = vst.msk [vmem:[#allocation2 + $0x1c8] sm:$0x3] %vm386_vm2, %v8558_v59 }
  0xf1   : > { %444 = vst.msk [vmem:[#allocation2 + $0x1d0] sm:$0xff] %vm384_vm1, %v8558_v59 }
  0xf2   : > { %445 = vst.msk [vmem:[#allocation2 + $0x1d8] sm:$0x3] %vm386_vm2, %v8558_v59 }
  0xf3   : > { %v870_v33 = vpop.f32.mrf.mxu0  ;;  %v1088_v36 = vpop.f32.mrf.mxu1  ;;  %446 = vst.msk [vmem:[#allocation2 + $0x1e0] sm:$0xff] %vm384_vm1, %v8558_v59 }
  0xf4   : > { %v8840_v35 = vadd.f32 %v1079_v17, %v870_v33  ;;  %447 = vst.msk [vmem:[#allocation2 + $0x1e8] sm:$0x3] %vm386_vm2, %v8558_v59 }
  0xf5   : > { %448 = vst.msk [vmem:[#allocation2 + $0x1f0] sm:$0xff] %vm384_vm1, %v8558_v59 }
  0xf6   : > { %7398 = vmatmul.msk.f32.gmra.mxu1 %vm636_vm0, %v545_v32  ;;  %917 = vmatmul.f32.gmra.mxu0 %v538_v34  ;;  %v9002_v32 = vld [vmem:[%s13790_s2] ss:$0 sm:$0xff]  ;;  %449 = vst.msk [vmem:[#allocation2 + $0x1f8] sm:$0x3] %vm386_vm2, %v8558_v59 }
  0xf7   : > { %1328 = vrot.lane.b32.xlu2 %v8840_v35, %s8557_s29  ;;  %450 = vst.msk [vmem:[#allocation2 + $0x200] sm:$0xff] %vm384_vm1, %v8558_v59 }
  0xf8   : > { %451 = vst.msk [vmem:[#allocation2 + $0x208] sm:$0x3] %vm386_vm2, %v8558_v59 }
  0xf9   : > { %452 = vst.msk [vmem:[#allocation2 + $0x210] sm:$0xff] %vm384_vm1, %v8558_v59 }
  0xfa   : > { %453 = vst.msk [vmem:[#allocation2 + $0x218] sm:$0x3] %vm386_vm2, %v8558_v59 }
  0xfb   : > { %v873_v38 = vpop.f32.mrf.mxu0  ;;  %v1091_v41 = vpop.f32.mrf.mxu1  ;;  %454 = vst.msk [vmem:[#allocation3] sm:$0xff] %vm384_vm1, %v8558_v59 }
  0xfc   : > { %v8847_v40 = vadd.f32 %v1082_v23, %v873_v38  ;;  %455 = vst.msk [vmem:[#allocation3 + $0x8] sm:$0x3] %vm386_vm2, %v8558_v59 }
  0xfd   : > { %456 = vst.msk [vmem:[#allocation3 + $0x10] sm:$0xff] %vm384_vm1, %v8558_v59 }
  0xfe   : > { %7399 = vmatmul.msk.f32.gmra.mxu1 %vm636_vm0, %v547_v37  ;;  %920 = vmatmul.f32.gmra.mxu0 %v540_v39  ;;  %v561_v37 = vld [vmem:[%s8690_s26 + $0x238] sm:$0xff]  ;;  %457 = vst.msk [vmem:[#allocation3 + $0x18] sm:$0x3] %vm386_vm2, %v8558_v59 }
  0xff   : > { %1330 = vrot.lane.b32.xlu0 %v8847_v40, %s8557_s29  ;;  %458 = vst.msk [vmem:[#allocation3 + $0x20] sm:$0xff] %vm384_vm1, %v8558_v59 }
 0x100   : > { %459 = vst.msk [vmem:[#allocation3 + $0x28] sm:$0x3] %vm386_vm2, %v8558_v59 }
 0x101   : > { %460 = vst.msk [vmem:[#allocation3 + $0x30] sm:$0xff] %vm384_vm1, %v8558_v59 }
 0x102   : > { %461 = vst.msk [vmem:[#allocation3 + $0x38] sm:$0x3] %vm386_vm2, %v8558_v59 }
 0x103   : > { %v876_v43 = vpop.f32.mrf.mxu0  ;;  %v1094_v49 = vpop.f32.mrf.mxu1  ;;  %462 = vst.msk [vmem:[#allocation3 + $0x40] sm:$0xff] %vm384_vm1, %v8558_v59 }
 0x104   : > { %v8854_v45 = vadd.f32 %v1085_v31, %v876_v43  ;;  %463 = vst.msk [vmem:[#allocation3 + $0x48] sm:$0x3] %vm386_vm2, %v8558_v59 }
 0x105   : > { %464 = vst.msk [vmem:[#allocation3 + $0x50] sm:$0xff] %vm384_vm1, %v8558_v59 }
 0x106   : > { %7400 = vmatmul.msk.f32.gmra.mxu1 %vm636_vm0, %v549_v42  ;;  %923 = vmatmul.f32.gmra.mxu0 %v542_v44  ;;  %v554_v42 = vld [vmem:[%s8690_s26 + $0x200] sm:$0xff]  ;;  %465 = vst.msk [vmem:[#allocation3 + $0x58] sm:$0x3] %vm386_vm2, %v8558_v59 }
 0x107   : > { %1332 = vrot.lane.b32.xlu1 %v8854_v45, %s8557_s29  ;;  %466 = vst.msk [vmem:[#allocation3 + $0x60] sm:$0xff] %vm384_vm1, %v8558_v59 }
 0x108   : > { %467 = vst.msk [vmem:[#allocation3 + $0x68] sm:$0x3] %vm386_vm2, %v8558_v59 }
 0x109   : > { %468 = vst.msk [vmem:[#allocation3 + $0x70] sm:$0xff] %vm384_vm1, %v8558_v59 }
 0x10a   : > { %469 = vst.msk [vmem:[#allocation3 + $0x78] sm:$0x3] %vm386_vm2, %v8558_v59 }
 0x10b   : > { %v879_v50 = vpop.f32.mrf.mxu0  ;;  %v1097_v7 = vpop.f32.mrf.mxu1  ;;  %470 = vst.msk [vmem:[#allocation3 + $0x80] sm:$0xff] %vm384_vm1, %v8558_v59 }
 0x10c   : > { %v8873_v54 = vadd.f32 %v1088_v36, %v879_v50  ;;  %v1764_v50 = vld [vmem:[#allocation2] sm:$0xff]  ;;  %471 = vst.msk [vmem:[#allocation3 + $0x88] sm:$0x3] %vm386_vm2, %v8558_v59 }
 0x10d   : > { %7475 = vmatmul.msk.f32.vlgmr.msra.gmra.mxu3 %vm384_vm1, %v1764_v50  ;;  %472 = vst.msk [vmem:[#allocation3 + $0x90] sm:$0xff] %vm384_vm1, %v8558_v59 }
 0x10e   : > { %7401 = vmatmul.msk.f32.gmra.mxu1 %vm636_vm0, %v551_v48  ;;  %926 = vmatmul.f32.gmra.mxu0 %v544_v51  ;;  %473 = vst.msk [vmem:[#allocation3 + $0x98] sm:$0x3] %vm386_vm2, %v8558_v59 }
 0x10f   : > { %1334 = vrot.lane.b32.xlu2 %v8873_v54, %s8557_s29  ;;  %474 = vst.msk [vmem:[#allocation3 + $0xa0] sm:$0xff] %vm384_vm1, %v8558_v59 }
 0x110   : > { %475 = vst.msk [vmem:[#allocation3 + $0xa8] sm:$0x3] %vm386_vm2, %v8558_v59 }
 0x111   : > { %476 = vst.msk [vmem:[#allocation3 + $0xb0] sm:$0xff] %vm384_vm1, %v8558_v59 }
 0x112   : > { %477 = vst.msk [vmem:[#allocation3 + $0xb8] sm:$0x3] %vm386_vm2, %v8558_v59 }
 0x113   : > { %v882_v0 = vpop.f32.mrf.mxu0  ;;  %v1100_v18 = vpop.f32.mrf.mxu1  ;;  %478 = vst.msk [vmem:[#allocation3 + $0xc0] sm:$0xff] %vm384_vm1, %v8558_v59 }
 0x114   : > { %v8911_v4 = vadd.f32 %v1091_v41, %v882_v0  ;;  %v565_v0 = vld [vmem:[%s8690_s26 + $0x258] sm:$0xff]  ;;  %479 = vst.msk [vmem:[#allocation3 + $0xc8] sm:$0x3] %vm386_vm2, %v8558_v59 }
 0x115   : > { %480 = vst.msk [vmem:[#allocation3 + $0xd0] sm:$0xff] %vm384_vm1, %v8558_v59 }
 0x116   : > { %7402 = vmatmul.msk.f32.gmra.mxu1 %vm636_vm0, %v553_v63  ;;  %929 = vmatmul.f32.gmra.mxu0 %v546_v2  ;;  %481 = vst.msk [vmem:[#allocation3 + $0xd8] sm:$0x3] %vm386_vm2, %v8558_v59 }
 0x117   : > { %1336 = vrot.lane.b32.xlu0 %v8911_v4, %s8557_s29  ;;  %482 = vst.msk [vmem:[#allocation3 + $0xe0] sm:$0xff] %vm384_vm1, %v8558_v59 }
 0x118   : > { %483 = vst.msk [vmem:[#allocation3 + $0xe8] sm:$0x3] %vm386_vm2, %v8558_v59 }
 0x119   : > { %484 = vst.msk [vmem:[#allocation3 + $0xf0] sm:$0xff] %vm384_vm1, %v8558_v59 }
 0x11a   : > { %485 = vst.msk [vmem:[#allocation3 + $0xf8] sm:$0x3] %vm386_vm2, %v8558_v59 }
 0x11b   : > { %v885_v14 = vpop.f32.mrf.mxu0  ;;  %v1103_v25 = vpop.f32.mrf.mxu1  ;;  %486 = vst.msk [vmem:[#allocation3 + $0x100] sm:$0xff] %vm384_vm1, %v8558_v59 }
 0x11c   : > { %v8949_v17 = vadd.f32 %v1094_v49, %v885_v14  ;;  %v1804_v49 = vld [vmem:[#allocation2 + $0x1] sm:$0xff]  ;;  %487 = vst.msk [vmem:[#allocation3 + $0x108] sm:$0x3] %vm386_vm2, %v8558_v59 }
 0x11d   : > { %7443 = vmatmul.msk.f32.vlgmr.msra.gmra.mxu2 %vm384_vm1, %v1804_v49  ;;  %488 = vst.msk [vmem:[#allocation3 + $0x110] sm:$0xff] %vm384_vm1, %v8558_v59 }
 0x11e   : > { %7403 = vmatmul.msk.f32.gmra.mxu1 %vm636_vm0, %v555_v13  ;;  %932 = vmatmul.f32.gmra.mxu0 %v548_v15  ;;  %v560_v13 = vld [vmem:[%s8690_s26 + $0x230] sm:$0xff]  ;;  %489 = vst.msk [vmem:[#allocation3 + $0x118] sm:$0x3] %vm386_vm2, %v8558_v59 }
 0x11f   : > { %1338 = vrot.lane.b32.xlu1 %v8949_v17, %s8557_s29 }
 0x123   : > { %v888_v20 = vpop.f32.mrf.mxu0  ;;  %v1106_v38 = vpop.f32.mrf.mxu1 }
 0x124   : > { %v8972_v23 = vadd.f32 %v1097_v7, %v888_v20 }
 0x126   : > { %7404 = vmatmul.msk.f32.gmra.mxu1 %vm636_vm0, %v557_v19  ;;  %935 = vmatmul.f32.gmra.mxu0 %v550_v22  ;;  %v569_v22 = vld [vmem:[%s8690_s26 + $0x278] sm:$0xff] }
 0x127   : > { %1340 = vrot.lane.b32.xlu2 %v8972_v23, %s8557_s29 }
 0x129   : > { %v1313_v24 = vpop.permute.xlu0 %1312 }
 0x12a   : > { %v1504_v33 = vmax.f32 %v8784_v60, %v1313_v24 }
 0x12b   : > { %v891_v28 = vpop.f32.mrf.mxu0  ;;  %v1109_v47 = vpop.f32.mrf.mxu1 }
 0x12c   : > { %v8995_v31 = vadd.f32 %v1100_v18, %v891_v28  ;;  %v1571_v60 = vadd.f32 %v9002_v32, %v1504_v33 }
 0x12e   : > { %7405 = vmatmul.msk.f32.gmra.mxu1 %vm636_vm0, %v559_v27  ;;  %938 = vmatmul.f32.gmra.mxu0 %v552_v29  ;;  %v562_v29 = vld [vmem:[%s8690_s26 + $0x240] sm:$0xff] }
 0x12f   : > { %1342 = vrot.lane.b32.xlu0 %v8995_v31, %s8557_s29 }
 0x131   : > { %v1315_v34 = vpop.permute.xlu0 %1314  ;;  %v9120_v62 = vpop.permute.xlu2 %1320 }
 0x132   : > { %v1505_v36 = vmax.f32 %v8791_v1, %v1315_v34  ;;  %v1635_v1 = vmax.f32 %v1571_v60, 0.0 }
 0x133   : > { %v894_v41 = vpop.f32.mrf.mxu0  ;;  %v1112_v48 = vpop.f32.mrf.mxu1 }
 0x134   : > { %v1572_v39 = vadd.f32 %v9002_v32, %v1505_v36  ;;  %v9029_v43 = vadd.f32 %v1103_v25, %v894_v41  ;;  %v1508_v25 = vmax.f32 %v8812_v16, %v9120_v62 }
 0x136   : > { %v1636_v44 = vmax.f32 %v1572_v39, 0.0  ;;  %7406 = vmatmul.msk.f32.gmra.mxu1 %vm636_vm0, %v561_v37  ;;  %941 = vmatmul.f32.gmra.mxu0 %v554_v42 }
 0x137   : > { %1344 = vrot.lane.b32.xlu1 %v9029_v43, %s8557_s29 }
 0x138   : > { %v1699_v46 = vmax.f32 %v1635_v1, %v1636_v44  ;;  %v571_v1 = vld [vmem:[%s8690_s26 + $0x288] sm:$0xff] }
 0x139   : > { %v9114_v57 = vpop.permute.xlu1 %1316  ;;  %v1323_v10 = vpop.permute.xlu2 %1322 }
 0x13a   : > { %1732 = vst.msk [vmem:[#allocation2 + $0x11] sm:$0xff] %vm384_vm1, %v1699_v46  ;;  %v1509_v15 = vmax.f32 %v8819_v21, %v1323_v10 }
 0x13b   : > { %v9093_v51 = vpop.f32.mrf.mxu1  ;;  %v897_v52 = vpop.f32.mrf.mxu0 }
 0x13c   : > { %v9099_v53 = vadd.f32 %v1106_v38, %v897_v52  ;;  %v1576_v34 = vadd.f32 %v9002_v32, %v1509_v15 }
 0x13e   : > { %7407 = vmatmul.msk.f32.gmra.mxu1 %vm636_vm0, %v563_v55  ;;  %944 = vmatmul.f32.gmra.mxu0 %v556_v56 }
 0x13f   : > { %1346 = vrot.lane.b32.xlu2 %v9099_v53, %s8557_s29 }
 0x141   : > { %v9116_v58 = vld [vmem:[#allocation2 + $0x11] sm:$0xff]  ;;  %v1319_v7 = vpop.permute.xlu1 %1318 }
 0x142   : > { %v1765_v61 = vld [vmem:[#allocation2 + $0x10] sm:$0xff]  ;;  %7444 = vmatmul.msk.f32.gmra.mxu2 %vm384_vm1, %v9116_v58  ;;  %v1507_v19 = vmax.f32 %v8805_v11, %v1319_v7  ;;  %v1506_v11 = vmax.f32 %v8798_v6, %v9114_v57  ;;  %v1575_v6 = vadd.f32 %v9002_v32, %v1508_v25  ;;  %v575_v25 = vld [vmem:[%s8690_s26 + $0x2a8] sm:$0xff] }
 0x143   : > { %7476 = vmatmul.msk.f32.gmra.mxu3 %vm384_vm1, %v1765_v61  ;;  %v9127_v63 = vpop.f32.mrf.mxu1  ;;  %v900_v2 = vpop.f32.mrf.mxu0 }
 0x144   : > { %v9135_v5 = vadd.f32 %v1109_v47, %v900_v2  ;;  %v1639_v46 = vmax.f32 %v1575_v6, 0.0 }
 0x146   : > { %7408 = vmatmul.msk.f32.gmra.mxu1 %vm636_vm0, %v565_v0  ;;  %947 = vmatmul.f32.gmra.mxu0 %v558_v3 }
 0x147   : > { %1348 = vrot.lane.b32.xlu0 %v9135_v5, %s8557_s29 }
 0x14b   : > { %v9152_v8 = vpop.f32.mrf.mxu1  ;;  %v903_v12 = vpop.f32.mrf.mxu0 }
 0x14c   : > { %v9160_v14 = vadd.f32 %v1112_v48, %v903_v12  ;;  %v564_v48 = vld [vmem:[%s8690_s26 + $0x250] sm:$0xff] }
 0x14e   : > { %7409 = vmatmul.msk.f32.gmra.mxu1 %vm636_vm0, %v567_v9  ;;  %950 = vmatmul.f32.gmra.mxu0 %v560_v13  ;;  %v573_v9 = vld [vmem:[%s8690_s26 + $0x298] sm:$0xff]  ;;  %v566_v13 = vld [vmem:[%s8690_s26 + $0x260] sm:$0xff] }
 0x14f   : > { %1350 = vrot.lane.b32.xlu1 %v9160_v14, %s8557_s29 }
 0x151   : > { %v1329_v27 = vpop.permute.xlu2 %1328 }
 0x152   : > { %v1512_v60 = vmax.f32 %v8840_v35, %v1329_v27  ;;  %v1640_v35 = vmax.f32 %v1576_v34, 0.0 }
 0x153   : > { %v9179_v20 = vpop.f32.mrf.mxu1  ;;  %v906_v28 = vpop.f32.mrf.mxu0 }
 0x154   : > { %v9193_v33 = vadd.f32 %v9093_v51, %v906_v28  ;;  %v1579_v41 = vadd.f32 %v9002_v32, %v1512_v60  ;;  %v568_v28 = vld [vmem:[%s8690_s26 + $0x270] sm:$0xff] }
 0x156   : > { %7410 = vmatmul.msk.f32.gmra.mxu1 %vm636_vm0, %v569_v22  ;;  %953 = vmatmul.f32.gmra.mxu0 %v562_v29  ;;  %v1643_v61 = vmax.f32 %v1579_v41, 0.0 }
 0x157   : > { %1352 = vrot.lane.b32.xlu2 %v9193_v33, %s8557_s29 }
 0x159   : > { %v1325_v18 = vpop.permute.xlu0 %1324 }
 0x15a   : > { %v1510_v16 = vmax.f32 %v8826_v26, %v1325_v18  ;;  %v1573_v26 = vadd.f32 %v9002_v32, %v1506_v11 }
 0x15b   : > { %v9219_v42 = vpop.f32.mrf.mxu1  ;;  %v909_v47 = vpop.f32.mrf.mxu0 }
 0x15c   : > { %v1577_v37 = vadd.f32 %v9002_v32, %v1510_v16  ;;  %v1637_v51 = vmax.f32 %v1573_v26, 0.0  ;;  %v9229_v52 = vadd.f32 %v9127_v63, %v909_v47  ;;  %v577_v16 = vld [vmem:[%s8690_s26 + $0x2b8] sm:$0xff] }
 0x15e   : > { %v1641_v56 = vmax.f32 %v1577_v37, 0.0  ;;  %7411 = vmatmul.msk.f32.gmra.mxu1 %vm636_vm0, %v571_v1  ;;  %956 = vmatmul.f32.gmra.mxu0 %v564_v48 }
 0x15f   : > { %1354 = vrot.lane.b32.xlu0 %v9229_v52, %s8557_s29 }
 0x161   : > { %v1327_v24 = vpop.permute.xlu1 %1326 }
 0x162   : > { %v1511_v21 = vmax.f32 %v8833_v30, %v1327_v24  ;;  %v1574_v30 = vadd.f32 %v9002_v32, %v1507_v19 }
 0x163   : > { %v1130_v7 = vpop.f32.mrf.mxu1  ;;  %v912_v12 = vpop.f32.mrf.mxu0 }
 0x164   : > { %v1578_v36 = vadd.f32 %v9002_v32, %v1511_v21  ;;  %v1638_v39 = vmax.f32 %v1574_v30, 0.0  ;;  %v9252_v15 = vadd.f32 %v9152_v8, %v912_v12 }
 0x166   : > { %v1642_v49 = vmax.f32 %v1578_v36, 0.0  ;;  %v1700_v57 = vmax.f32 %v1637_v51, %v1638_v39  ;;  %7412 = vmatmul.msk.f32.gmra.mxu1 %vm636_vm0, %v573_v9  ;;  %959 = vmatmul.f32.gmra.mxu0 %v566_v13  ;;  %v579_v39 = vld [vmem:[%s8690_s26 + $0x2c8] sm:$0xff] }
 0x167   : > { %1356 = vrot.lane.b32.xlu1 %v9252_v15, %s8557_s29  ;;  %v583_v9 = vld [vmem:[%s8690_s26 + $0x2e8] sm:$0xff] }
 0x168   : > { %v1702_v0 = vmax.f32 %v1641_v56, %v1642_v49  ;;  %1733 = vst.msk [vmem:[#allocation2 + $0x21] sm:$0xff] %vm384_vm1, %v1700_v57  ;;  %v574_v57 = vld [vmem:[%s8690_s26 + $0x2a0] sm:$0xff] }
 0x169   : > { %v1335_v50 = vpop.permute.xlu2 %1334 }
 0x16a   : > { %v1515_v62 = vmax.f32 %v8873_v54, %v1335_v50  ;;  %1735 = vst.msk [vmem:[#allocation2 + $0x41] sm:$0xff] %vm384_vm1, %v1702_v0 }
 0x16b   : > { %v1133_v8 = vpop.f32.mrf.mxu1  ;;  %v915_v27 = vpop.f32.mrf.mxu0 }
 0x16c   : > { %v1582_v10 = vadd.f32 %v9002_v32, %v1515_v62  ;;  %v9268_v29 = vadd.f32 %v9179_v20, %v915_v27  ;;  %v570_v20 = vld [vmem:[%s8690_s26 + $0x280] sm:$0xff]  ;;  %v585_v27 = vld [vmem:[%s8690_s26 + $0x2f8] sm:$0xff] }
 0x16e   : > { %7413 = vmatmul.msk.f32.gmra.mxu1 %vm636_vm0, %v575_v25  ;;  %962 = vmatmul.f32.gmra.mxu0 %v568_v28 }
 0x16f   : > { %v9259_v22 = vld [vmem:[#allocation2 + $0x21] sm:$0xff]  ;;  %1358 = vrot.lane.b32.xlu2 %v9268_v29, %s8557_s29 }
 0x170   : > { %v1766_v24 = vld [vmem:[#allocation2 + $0x20] sm:$0xff]  ;;  %7445 = vmatmul.msk.f32.gmra.mxu2 %vm384_vm1, %v9259_v22 }
 0x171   : > { %v1331_v38 = vpop.permute.xlu0 %1330  ;;  %7477 = vmatmul.msk.f32.gmra.mxu3 %vm384_vm1, %v1766_v24  ;;  %v9287_v26 = vld [vmem:[#allocation2 + $0x41] sm:$0xff] }
 0x172   : > { %v1513_v44 = vmax.f32 %v8847_v40, %v1331_v38  ;;  %v1701_v40 = vmax.f32 %v1639_v46, %v1640_v35  ;;  %v1768_v35 = vld [vmem:[#allocation2 + $0x40] sm:$0xff] }
 0x173   : > { %v1136_v34 = vpop.f32.mrf.mxu1  ;;  %v918_v30 = vpop.f32.mrf.mxu0 }
 0x174   : > { %v1580_v55 = vadd.f32 %v9002_v32, %v1513_v44  ;;  %1734 = vst.msk [vmem:[#allocation2 + $0x31] sm:$0xff] %vm384_vm1, %v1701_v40  ;;  %v9281_v6 = vadd.f32 %v9219_v42, %v918_v30  ;;  %v572_v44 = vld [vmem:[%s8690_s26 + $0x290] sm:$0xff] }
 0x176   : > { %v1644_v63 = vmax.f32 %v1580_v55, 0.0  ;;  %7414 = vmatmul.msk.f32.gmra.mxu1 %vm636_vm0, %v577_v16  ;;  %965 = vmatmul.f32.gmra.mxu0 %v570_v20  ;;  %v581_v55 = vld [vmem:[%s8690_s26 + $0x2d8] sm:$0xff] }
 0x177   : > { %1360 = vrot.lane.b32.xlu0 %v9281_v6, %s8557_s29 }
 0x178   : > { %v1703_v2 = vmax.f32 %v1643_v61, %v1644_v63 }
 0x179   : > { %v1333_v3 = vpop.permute.xlu1 %1332 }
 0x17a   : > { %v1514_v54 = vmax.f32 %v8854_v45, %v1333_v3  ;;  %1736 = vst.msk [vmem:[#allocation2 + $0x51] sm:$0xff] %vm384_vm1, %v1703_v2  ;;  %v1646_v45 = vmax.f32 %v1582_v10, 0.0 }
 0x17b   : > { %v9273_v21 = vld [vmem:[#allocation2 + $0x31] sm:$0xff]  ;;  %v1139_v38 = vpop.f32.mrf.mxu1  ;;  %v921_v1 = vpop.f32.mrf.mxu0 }
 0x17c   : > { %v1581_v59 = vadd.f32 %v9002_v32, %v1514_v54  ;;  %v1767_v11 = vld [vmem:[#allocation2 + $0x30] sm:$0xff]  ;;  %7446 = vmatmul.msk.f32.gmra.mxu2 %vm384_vm1, %v9273_v21  ;;  %v9296_v46 = vadd.f32 %v1130_v7, %v921_v1 }
 0x17d   : > { %7478 = vmatmul.msk.f32.gmra.mxu3 %vm384_vm1, %v1767_v11  ;;  %v576_v54 = vld [vmem:[%s8690_s26 + $0x2b0] sm:$0xff]  ;;  %v578_v11 = vld [vmem:[%s8690_s26 + $0x2c0] sm:$0xff] }
 0x17e   : > { %v1645_v18 = vmax.f32 %v1581_v59, 0.0  ;;  %7415 = vmatmul.msk.f32.gmra.mxu1 %vm636_vm0, %v579_v39  ;;  %968 = vmatmul.f32.gmra.mxu0 %v572_v44  ;;  %v7594_v59 = vld [vmem:[%s13791_s3 + $0x138] sm:$0xff] }
 0x17f   : > { %1362 = vrot.lane.b32.xlu1 %v9296_v46, %s8557_s29  ;;  %2972 = vmatpush.msrb.mxu1 %v7594_v59 }
 0x180   : > { %v1704_v19 = vmax.f32 %v1645_v18, %v1646_v45 }
 0x181   : > { %v9302_v49 = vld [vmem:[#allocation2 + $0x51] sm:$0xff]  ;;  %v1341_v40 = vpop.permute.xlu2 %1340 }
 0x182   : > { %1737 = vst.msk [vmem:[#allocation2 + $0x61] sm:$0xff] %vm384_vm1, %v1704_v19  ;;  %v1769_v50 = vld [vmem:[#allocation2 + $0x50] sm:$0xff]  ;;  %v1518_v62 = vmax.f32 %v8972_v23, %v1341_v40 }
 0x183   : > { %v1142_v51 = vpop.f32.mrf.mxu1  ;;  %v924_v56 = vpop.f32.mrf.mxu0 }
 0x184   : > { %7447 = vmatmul.msk.f32.gmra.mxu2 %vm384_vm1, %v9287_v26  ;;  %v9310_v61 = vadd.f32 %v1133_v8, %v924_v56  ;;  %v1585_v3 = vadd.f32 %v9002_v32, %v1518_v62  ;;  %v591_v56 = vld [vmem:[%s8690_s26 + $0x328] sm:$0xff]  ;;  %v584_v62 = vld [vmem:[%s8690_s26 + $0x2f0] sm:$0xff] }
 0x185   : > { %7479 = vmatmul.msk.f32.gmra.mxu3 %vm384_vm1, %v1768_v35 }
 0x186   : > { %7416 = vmatmul.msk.f32.gmra.mxu1 %vm636_vm0, %v581_v55  ;;  %971 = vmatmul.f32.gmra.mxu0 %v574_v57  ;;  %v1649_v45 = vmax.f32 %v1585_v3, 0.0  ;;  %v593_v3 = vld [vmem:[%s8690_s26 + $0x338] sm:$0xff] }
 0x187   : > { %1364 = vrot.lane.b32.xlu2 %v9310_v61, %s8557_s29 }
 0x189   : > { %v1337_v60 = vpop.permute.xlu0 %1336  ;;  %v9316_v63 = vld [vmem:[#allocation2 + $0x61] sm:$0xff] }
 0x18a   : > { %v1516_v36 = vmax.f32 %v8911_v4, %v1337_v60  ;;  %v1770_v0 = vld [vmem:[#allocation2 + $0x60] sm:$0xff] }
 0x18b   : > { %v1145_v7 = vpop.f32.mrf.mxu1  ;;  %v927_v23 = vpop.f32.mrf.mxu0 }
 0x18c   : > { %v1583_v41 = vadd.f32 %v9002_v32, %v1516_v36  ;;  %7448 = vmatmul.msk.f32.gmra.mxu2 %vm384_vm1, %v9302_v49  ;;  %v9325_v12 = vadd.f32 %v1136_v34, %v927_v23 }
 0x18d   : > { %7480 = vmatmul.msk.f32.gmra.mxu3 %vm384_vm1, %v1769_v50  ;;  %v582_v50 = vld [vmem:[%s8690_s26 + $0x2e0] sm:$0xff] }
 0x18e   : > { %v1647_v47 = vmax.f32 %v1583_v41, 0.0  ;;  %7417 = vmatmul.msk.f32.gmra.mxu1 %vm636_vm0, %v583_v9  ;;  %974 = vmatmul.f32.gmra.mxu0 %v576_v54  ;;  %v580_v41 = vld [vmem:[%s8690_s26 + $0x2d0] sm:$0xff]  ;;  %v586_v9 = vld [vmem:[%s8690_s26 + $0x300] sm:$0xff] }
 0x18f   : > { %1366 = vrot.lane.b32.xlu0 %v9325_v12, %s8557_s29 }
 0x191   : > { %v1339_v37 = vpop.permute.xlu1 %1338 }
 0x192   : > { %v1517_v42 = vmax.f32 %v8949_v17, %v1339_v37 }
 0x193   : > { %v1148_v25 = vpop.f32.mrf.mxu1  ;;  %v930_v28 = vpop.f32.mrf.mxu0 }
 0x194   : > { %v1584_v4 = vadd.f32 %v9002_v32, %v1517_v42  ;;  %7449 = vmatmul.msk.f32.gmra.mxu2 %vm384_vm1, %v9316_v63  ;;  %v9343_v16 = vadd.f32 %v1139_v38, %v930_v28  ;;  %v597_v28 = vld [vmem:[%s8690_s26 + $0x358] sm:$0xff] }
 0x195   : > { %7481 = vmatmul.msk.f32.gmra.mxu3 %vm384_vm1, %v1770_v0 }
 0x196   : > { %v1648_v48 = vmax.f32 %v1584_v4, 0.0  ;;  %7418 = vmatmul.msk.f32.gmra.mxu1 %vm636_vm0, %v585_v27  ;;  %977 = vmatmul.f32.gmra.mxu0 %v578_v11 }
 0x197   : > { %1368 = vrot.lane.b32.xlu1 %v9343_v16, %s8557_s29 }
 0x198   : > { %v1705_v17 = vmax.f32 %v1647_v47, %v1648_v48  ;;  %v589_v47 = vld [vmem:[%s8690_s26 + $0x318] sm:$0xff] }
 0x199   : > { %v1347_v20 = vpop.permute.xlu2 %1346 }
 0x19a   : > { %1738 = vst.msk [vmem:[#allocation2 + $0x71] sm:$0xff] %vm384_vm1, %v1705_v17  ;;  %v1521_v60 = vmax.f32 %v9099_v53, %v1347_v20 }
 0x19b   : > { %v1151_v37 = vpop.f32.mrf.mxu1  ;;  %v933_v39 = vpop.f32.mrf.mxu0 }
 0x19c   : > { %v1588_v38 = vadd.f32 %v9002_v32, %v1521_v60  ;;  %v9358_v1 = vadd.f32 %v1142_v51, %v933_v39  ;;  %v592_v39 = vld [vmem:[%s8690_s26 + $0x330] sm:$0xff] }
 0x19e   : > { %v1652_v53 = vmax.f32 %v1588_v38, 0.0  ;;  %980 = vmatmul.f32.gmra.mxu0 %v580_v41  ;;  %1370 = vrot.lane.b32.xlu2 %v9358_v1, %s8557_s29 }
 0x1a1   : > { %v1343_v2 = vpop.permute.xlu0 %1342  ;;  %v9334_v18 = vld [vmem:[#allocation2 + $0x71] sm:$0xff] }
 0x1a2   : > { %v1519_v10 = vmax.f32 %v8995_v31, %v1343_v2  ;;  %v1771_v19 = vld [vmem:[#allocation2 + $0x70] sm:$0xff]  ;;  %7450 = vmatmul.msk.f32.gmra.mxu2 %vm384_vm1, %v9334_v18 }
 0x1a3   : > { %7482 = vmatmul.msk.f32.gmra.mxu3 %vm384_vm1, %v1771_v19  ;;  %v1154_v4 = vpop.f32.mrf.mxu1  ;;  %v936_v48 = vpop.f32.mrf.mxu0 }
 0x1a4   : > { %v1586_v13 = vadd.f32 %v9002_v32, %v1519_v10  ;;  %v9366_v17 = vadd.f32 %v1145_v7, %v936_v48 }
 0x1a6   : > { %v1650_v31 = vmax.f32 %v1586_v13, 0.0  ;;  %983 = vmatmul.f32.gmra.mxu0 %v582_v50  ;;  %1372 = vrot.lane.b32.xlu0 %v9366_v17, %s8557_s29  ;;  %v595_v13 = vld [vmem:[%s8690_s26 + $0x348] sm:$0xff] }
 0x1a8   : > { %v1706_v24 = vmax.f32 %v1649_v45, %v1650_v31  ;;  %v588_v45 = vld [vmem:[%s8690_s26 + $0x310] sm:$0xff] }
 0x1a9   : > { %v1345_v8 = vpop.permute.xlu1 %1344 }
 0x1aa   : > { %1739 = vst.msk [vmem:[#allocation2 + $0x81] sm:$0xff] %vm384_vm1, %v1706_v24  ;;  %v1520_v34 = vmax.f32 %v9029_v43, %v1345_v8  ;;  %v587_v43 = vld [vmem:[%s8690_s26 + $0x308] sm:$0xff] }
 0x1ab   : > { %7419 = vmatmul.msk.f32.gmra.mxu1 %vm636_vm0, %v587_v43  ;;  %v1157_v40 = vpop.f32.mrf.mxu1  ;;  %v939_v57 = vpop.f32.mrf.mxu0  ;;  %v599_v43 = vld [vmem:[%s8690_s26 + $0x368] sm:$0xff] }
 0x1ac   : > { %v1587_v30 = vadd.f32 %v9002_v32, %v1520_v34  ;;  %v9378_v0 = vadd.f32 %v1148_v25, %v939_v57  ;;  %v594_v57 = vld [vmem:[%s8690_s26 + $0x340] sm:$0xff] }
 0x1ae   : > { %v1651_v42 = vmax.f32 %v1587_v30, 0.0  ;;  %986 = vmatmul.f32.gmra.mxu0 %v584_v62  ;;  %1374 = vrot.lane.b32.xlu1 %v9378_v0, %s8557_s29  ;;  %v590_v30 = vld [vmem:[%s8690_s26 + $0x320] sm:$0xff] }
 0x1b0   : > { %v1707_v44 = vmax.f32 %v1651_v42, %v1652_v53 }
 0x1b1   : > { %v9350_v36 = vld [vmem:[#allocation2 + $0x81] sm:$0xff] }
 0x1b2   : > { %v1772_v35 = vld [vmem:[#allocation2 + $0x80] sm:$0xff]  ;;  %7451 = vmatmul.msk.f32.gmra.mxu2 %vm384_vm1, %v9350_v36  ;;  %1740 = vst.msk [vmem:[#allocation2 + $0x91] sm:$0xff] %vm384_vm1, %v1707_v44 }
 0x1b3   : > { %7483 = vmatmul.msk.f32.gmra.mxu3 %vm384_vm1, %v1772_v35  ;;  %7420 = vmatmul.msk.f32.gmra.mxu1 %vm636_vm0, %v589_v47  ;;  %v1160_v2 = vpop.f32.mrf.mxu1  ;;  %v942_v7 = vpop.f32.mrf.mxu0 }
 0x1b4   : > { %v9385_v10 = vadd.f32 %v1151_v37, %v942_v7 }
 0x1b6   : > { %989 = vmatmul.f32.gmra.mxu0 %v586_v9  ;;  %1376 = vrot.lane.b32.xlu2 %v9385_v10, %s8557_s29  ;;  %v7593_v9 = vld [vmem:[%s13791_s3 + $0x130] sm:$0xff] }
 0x1b7   : > { %2973 = vmatpush.msrb.mxu1 %v7593_v9 }
 0x1b9   : > { %v9371_v51 = vld [vmem:[#allocation2 + $0x91] sm:$0xff]  ;;  %v1349_v23 = vpop.permute.xlu0 %1348 }
 0x1ba   : > { %v1773_v55 = vld [vmem:[#allocation2 + $0x90] sm:$0xff]  ;;  %7452 = vmatmul.msk.f32.gmra.mxu2 %vm384_vm1, %v9371_v51  ;;  %v1522_v19 = vmax.f32 %v9135_v5, %v1349_v23 }
 0x1bb   : > { %7484 = vmatmul.msk.f32.gmra.mxu3 %vm384_vm1, %v1773_v55  ;;  %7421 = vmatmul.msk.f32.gmra.mxu1 %vm636_vm0, %v591_v56  ;;  %v1163_v54 = vpop.f32.mrf.mxu1  ;;  %v945_v59 = vpop.f32.mrf.mxu0  ;;  %v601_v55 = vld [vmem:[%s8690_s26 + $0x378] sm:$0xff] }
 0x1bc   : > { %v9392_v31 = vadd.f32 %v1154_v4, %v945_v59  ;;  %v1589_v8 = vadd.f32 %v9002_v32, %v1522_v19  ;;  %v603_v59 = vld [vmem:[%s8690_s26 + $0x388] sm:$0xff] }
 0x1be   : > { %992 = vmatmul.f32.gmra.mxu0 %v588_v45  ;;  %1378 = vrot.lane.b32.xlu0 %v9392_v31, %s8557_s29  ;;  %v1653_v20 = vmax.f32 %v1589_v8, 0.0 }
 0x1c1   : > { %v1351_v24 = vpop.permute.xlu1 %1350 }
 0x1c2   : > { %v1523_v25 = vmax.f32 %v9160_v14, %v1351_v24  ;;  %v1353_v14 = vpop.permute.xlu2 %1352  ;;  %v596_v24 = vld [vmem:[%s8690_s26 + $0x350] sm:$0xff] }
 0x1c3   : > { %7422 = vmatmul.msk.f32.gmra.mxu1 %vm636_vm0, %v593_v3  ;;  %v1166_v27 = vpop.f32.mrf.mxu1  ;;  %v948_v34 = vpop.f32.mrf.mxu0  ;;  %v1524_v42 = vmax.f32 %v9193_v33, %v1353_v14 }
 0x1c4   : > { %v1590_v11 = vadd.f32 %v9002_v32, %v1523_v25  ;;  %v9403_v5 = vadd.f32 %v1157_v40, %v948_v34 }
 0x1c5   : > { %v1591_v47 = vadd.f32 %v9002_v32, %v1524_v42 }
 0x1c6   : > { %v1654_v60 = vmax.f32 %v1590_v11, 0.0  ;;  %995 = vmatmul.f32.gmra.mxu0 %v590_v30  ;;  %1380 = vrot.lane.b32.xlu1 %v9403_v5, %s8557_s29  ;;  %v605_v30 = vld [vmem:[%s8690_s26 + $0x398] sm:$0xff] }
 0x1c8   : > { %v1708_v35 = vmax.f32 %v1653_v20, %v1654_v60  ;;  %v598_v60 = vld [vmem:[%s8690_s26 + $0x360] sm:$0xff] }
 0x1ca   : > { %1741 = vst.msk [vmem:[#allocation2 + $0xa1] sm:$0xff] %vm384_vm1, %v1708_v35  ;;  %v1359_v33 = vpop.permute.xlu2 %1358 }
 0x1cb   : > { %7423 = vmatmul.msk.f32.gmra.mxu1 %vm636_vm0, %v595_v13  ;;  %v1169_v37 = vpop.f32.mrf.mxu1  ;;  %v951_v38 = vpop.f32.mrf.mxu0  ;;  %v1527_v3 = vmax.f32 %v9268_v29, %v1359_v33 }
 0x1cc   : > { %v9411_v41 = vadd.f32 %v1160_v2, %v951_v38  ;;  %v1655_v2 = vmax.f32 %v1591_v47, 0.0 }
 0x1ce   : > { %998 = vmatmul.f32.gmra.mxu0 %v592_v39  ;;  %1382 = vrot.lane.b32.xlu2 %v9411_v41, %s8557_s29 }
 0x1d1   : > { %v1355_v53 = vpop.permute.xlu0 %1354  ;;  %v9417_v44 = vld [vmem:[#allocation2 + $0xa1] sm:$0xff] }
 0x1d2   : > { %v1774_v4 = vld [vmem:[#allocation2 + $0xa0] sm:$0xff]  ;;  %v1525_v48 = vmax.f32 %v9229_v52, %v1355_v53  ;;  %7453 = vmatmul.msk.f32.gmra.mxu2 %vm384_vm1, %v9417_v44  ;;  %v600_v53 = vld [vmem:[%s8690_s26 + $0x370] sm:$0xff] }
 0x1d3   : > { %7424 = vmatmul.msk.f32.gmra.mxu1 %vm636_vm0, %v597_v28  ;;  %7485 = vmatmul.msk.f32.gmra.mxu3 %vm384_vm1, %v1774_v4  ;;  %v1172_v50 = vpop.f32.mrf.mxu1  ;;  %v954_v56 = vpop.f32.mrf.mxu0 }
 0x1d4   : > { %v1592_v40 = vadd.f32 %v9002_v32, %v1525_v48  ;;  %v9427_v62 = vadd.f32 %v1163_v54, %v954_v56  ;;  %v1594_v54 = vadd.f32 %v9002_v32, %v1527_v3  ;;  %v609_v56 = vld [vmem:[%s8690_s26 + $0x3b8] sm:$0xff] }
 0x1d6   : > { %v1656_v52 = vmax.f32 %v1592_v40, 0.0  ;;  %1001 = vmatmul.f32.gmra.mxu0 %v594_v57  ;;  %1384 = vrot.lane.b32.xlu0 %v9427_v62, %s8557_s29  ;;  %v1658_v25 = vmax.f32 %v1594_v54, 0.0 }
 0x1d8   : > { %v1709_v7 = vmax.f32 %v1655_v2, %v1656_v52  ;;  %v602_v2 = vld [vmem:[%s8690_s26 + $0x380] sm:$0xff] }
 0x1d9   : > { %v1357_v23 = vpop.permute.xlu1 %1356 }
 0x1da   : > { %1742 = vst.msk [vmem:[#allocation2 + $0xb1] sm:$0xff] %vm384_vm1, %v1709_v7  ;;  %v1526_v29 = vmax.f32 %v9252_v15, %v1357_v23  ;;  %v7592_v7 = vld [vmem:[%s13791_s3 + $0x128] sm:$0xff]  ;;  %v7590_v23 = vld [vmem:[%s13791_s3 + $0x118] sm:$0xff] }
 0x1db   : > { %7425 = vmatmul.msk.f32.gmra.mxu1 %vm636_vm0, %v599_v43  ;;  %v1175_v13 = vpop.f32.mrf.mxu1  ;;  %v957_v19 = vpop.f32.mrf.mxu0 }
 0x1dc   : > { %v1593_v45 = vadd.f32 %v9002_v32, %v1526_v29  ;;  %v9442_v8 = vadd.f32 %v1166_v27, %v957_v19  ;;  %2974 = vmatpush.msrb.mxu1 %v7592_v7 }
 0x1de   : > { %v1657_v28 = vmax.f32 %v1593_v45, 0.0  ;;  %1004 = vmatmul.f32.gmra.mxu0 %v596_v24  ;;  %1386 = vrot.lane.b32.xlu1 %v9442_v8, %s8557_s29  ;;  %v604_v45 = vld [vmem:[%s8690_s26 + $0x390] sm:$0xff] }
 0x1df   : > { %v7589_v24 = vld [vmem:[%s13791_s3 + $0x110] sm:$0xff] }
 0x1e0   : > { %v1710_v11 = vmax.f32 %v1657_v28, %v1658_v25  ;;  %v7588_v28 = vld [vmem:[%s13791_s3 + $0x108] sm:$0xff] }
 0x1e1   : > { %v9447_v15 = vld [vmem:[#allocation2 + $0xb1] sm:$0xff]  ;;  %v1365_v54 = vpop.permute.xlu2 %1364 }
 0x1e2   : > { %v1775_v34 = vld [vmem:[#allocation2 + $0xb0] sm:$0xff]  ;;  %1743 = vst.msk [vmem:[#allocation2 + $0xc1] sm:$0xff] %vm384_vm1, %v1710_v11  ;;  %7454 = vmatmul.msk.f32.gmra.mxu2 %vm384_vm1, %v9447_v15  ;;  %v1530_v25 = vmax.f32 %v9310_v61, %v1365_v54 }
 0x1e3   : > { %7426 = vmatmul.msk.f32.gmra.mxu1 %vm636_vm0, %v601_v55  ;;  %7486 = vmatmul.msk.f32.gmra.mxu3 %vm384_vm1, %v1775_v34  ;;  %v1178_v27 = vpop.f32.mrf.mxu1  ;;  %v960_v20 = vpop.f32.mrf.mxu0 }
 0x1e4   : > { %v9455_v35 = vadd.f32 %v1169_v37, %v960_v20  ;;  %v607_v37 = vld [vmem:[%s8690_s26 + $0x3a8] sm:$0xff]  ;;  %v7587_v20 = vld [vmem:[%s13791_s3 + $0x100] sm:$0xff] }
 0x1e6   : > { %1007 = vmatmul.f32.gmra.mxu0 %v598_v60  ;;  %1388 = vrot.lane.b32.xlu2 %v9455_v35, %s8557_s29 }
 0x1e9   : > { %v9460_v14 = vld [vmem:[#allocation2 + $0xc1] sm:$0xff]  ;;  %v1361_v38 = vpop.permute.xlu0 %1360 }
 0x1ea   : > { %v1776_v43 = vld [vmem:[#allocation2 + $0xc0] sm:$0xff]  ;;  %7455 = vmatmul.msk.f32.gmra.mxu2 %vm384_vm1, %v9460_v14  ;;  %v1528_v47 = vmax.f32 %v9281_v6, %v1361_v38  ;;  %v613_v38 = vld [vmem:[%s8690_s26 + $0x3d8] sm:$0xff] }
 0x1eb   : > { %7427 = vmatmul.msk.f32.gmra.mxu1 %vm636_vm0, %v603_v59  ;;  %7487 = vmatmul.msk.f32.gmra.mxu3 %vm384_vm1, %v1776_v43  ;;  %v1181_v39 = vpop.f32.mrf.mxu1  ;;  %v963_v42 = vpop.f32.mrf.mxu0 }
 0x1ec   : > { %v9467_v4 = vadd.f32 %v1172_v50, %v963_v42  ;;  %v1595_v33 = vadd.f32 %v9002_v32, %v1528_v47 }
 0x1ee   : > { %1010 = vmatmul.f32.gmra.mxu0 %v600_v53  ;;  %1390 = vrot.lane.b32.xlu0 %v9467_v4, %s8557_s29  ;;  %v1659_v3 = vmax.f32 %v1595_v33, 0.0  ;;  %v606_v53 = vld [vmem:[%s8690_s26 + $0x3a0] sm:$0xff] }
 0x1f1   : > { %v1363_v48 = vpop.permute.xlu1 %1362 }
 0x1f2   : > { %v1529_v55 = vmax.f32 %v9296_v46, %v1363_v48  ;;  %v7591_v46 = vld [vmem:[%s13791_s3 + $0x120] sm:$0xff] }
 0x1f3   : > { %7428 = vmatmul.msk.f32.gmra.mxu1 %vm636_vm0, %v605_v30  ;;  %v9475_v40 = vpop.f32.mrf.mxu1  ;;  %v966_v50 = vpop.f32.mrf.mxu0  ;;  %v1597_v30 = vadd.f32 %v9002_v32, %v1530_v25  ;;  %v617_v25 = vld [vmem:[%s8690_s26 + $0x3f8] sm:$0xff] }
 0x1f4   : > { %v1596_v57 = vadd.f32 %v9002_v32, %v1529_v55  ;;  %v9480_v6 = vadd.f32 %v1175_v13, %v966_v50  ;;  %2975 = vmatpush.msrb.mxu1 %v7591_v46  ;;  %v611_v13 = vld [vmem:[%s8690_s26 + $0x3c8] sm:$0xff] }
 0x1f5   : > { %v1661_v47 = vmax.f32 %v1597_v30, 0.0  ;;  %v7710_v30 = vld [vmem:[%s13791_s3 + $0x1d8] sm:$0xff] }
 0x1f6   : > { %v1660_v52 = vmax.f32 %v1596_v57, 0.0  ;;  %1013 = vmatmul.f32.gmra.mxu0 %v602_v2  ;;  %1392 = vrot.lane.b32.xlu1 %v9480_v6, %s8557_s29  ;;  %v615_v2 = vld [vmem:[%s8690_s26 + $0x3e8] sm:$0xff] }
 0x1f7   : > { %2976 = vmatpush.msrb.mxu1 %v7590_v23  ;;  %v7713_v23 = vld [vmem:[%s13791_s3 + $0x1f0] sm:$0xff] }
 0x1f8   : > { %v1711_v9 = vmax.f32 %v1659_v3, %v1660_v52  ;;  %v1371_v60 = vpop.permute.xlu2 %1370  ;;  %v9542_v3 = vld [vmem:[%s13790_s2] ss:$0 sm:$0xff] }
 0x1f9   : > { %2977 = vmatpush.msrb.mxu1 %v7589_v24  ;;  %v1533_v48 = vmax.f32 %v9358_v1, %v1371_v60  ;;  %v7714_v1 = vld [vmem:[%s13791_s3 + $0x1f8] sm:$0xff]  ;;  %v7708_v60 = vld [vmem:[%s13791_s3 + $0x1c8] sm:$0xff] }
 0x1fa   : > { %1744 = vst.msk [vmem:[#allocation2 + $0xd1] sm:$0xff] %vm384_vm1, %v1711_v9  ;;  %3819 = vmatpush.msrb.mxu0 %v7714_v1 }
 0x1fb   : > { %7429 = vmatmul.msk.f32.gmra.mxu1 %vm636_vm0, %v607_v37  ;;  %v9495_v29 = vpop.f32.mrf.mxu1  ;;  %v969_v59 = vpop.f32.mrf.mxu0  ;;  %v1600_v57 = vadd.f32 %v9002_v32, %v1533_v48  ;;  %v7707_v48 = vld [vmem:[%s13791_s3 + $0x1c0] sm:$0xff] }
 0x1fc   : > { %v9499_v19 = vadd.f32 %v1178_v27, %v969_v59  ;;  %2978 = vmatpush.msrb.mxu1 %v7588_v28  ;;  %3820 = vmatpush.msrb.mxu0 %v7713_v23 }
 0x1fe   : > { %1016 = vmatmul.f32.gmra.mxu0 %v604_v45  ;;  %1394 = vrot.lane.b32.xlu2 %v9499_v19, %s8557_s29  ;;  %v7711_v45 = vld [vmem:[%s13791_s3 + $0x1e0] sm:$0xff] }
 0x1ff   : > { %2979 = vmatpush.msrb.mxu1 %v7587_v20 }
 0x201   : > { %v1367_v11 = vpop.permute.xlu0 %1366  ;;  %v9511_v34 = vld [vmem:[#allocation2 + $0xd1] sm:$0xff] }
 0x202   : > { %v1777_v27 = vld [vmem:[#allocation2 + $0xd0] sm:$0xff]  ;;  %v1531_v61 = vmax.f32 %v9325_v12, %v1367_v11  ;;  %7456 = vmatmul.msk.f32.gmra.mxu2 %vm384_vm1, %v9511_v34  ;;  %v610_v11 = vld [vmem:[%s8690_s26 + $0x3c0] sm:$0xff] }
 0x203   : > { %7430 = vmatmul.msk.f32.gmra.mxu1 %vm636_vm0, %v609_v56  ;;  %7488 = vmatmul.msk.f32.gmra.mxu3 %vm384_vm1, %v1777_v27  ;;  %v9521_v43 = vpop.f32.mrf.mxu1  ;;  %v972_v42 = vpop.f32.mrf.mxu0 }
 0x204   : > { %v1598_v37 = vadd.f32 %v9002_v32, %v1531_v61  ;;  %v9526_v12 = vadd.f32 %v1181_v39, %v972_v42  ;;  %v608_v32 = vld [vmem:[%s8690_s26 + $0x3b0] sm:$0xff] }
 0x206   : > { %v1662_v33 = vmax.f32 %v1598_v37, 0.0  ;;  %1019 = vmatmul.f32.gmra.mxu0 %v606_v53  ;;  %1396 = vrot.lane.b32.xlu0 %v9526_v12, %s8557_s29  ;;  %v612_v53 = vld [vmem:[%s8690_s26 + $0x3d0] sm:$0xff] }
 0x208   : > { %v1712_v55 = vmax.f32 %v1661_v47, %v1662_v33 }
 0x209   : > { %v1369_v56 = vpop.permute.xlu1 %1368 }
 0x20a   : > { %1745 = vst.msk [vmem:[#allocation2 + $0xe1] sm:$0xff] %vm384_vm1, %v1712_v55  ;;  %v1532_v39 = vmax.f32 %v9343_v16, %v1369_v56  ;;  %v1664_v16 = vmax.f32 %v1600_v57, 0.0 }
 0x20b   : > { %7431 = vmatmul.msk.f32.gmra.mxu1 %vm636_vm0, %v611_v13  ;;  %v1193_v50 = vpop.f32.mrf.mxu1  ;;  %v975_v7 = vpop.f32.mrf.mxu0 }
 0x20c   : > { %v1599_v52 = vadd.f32 %v9542_v3, %v1532_v39  ;;  %v9547_v46 = vadd.f32 %v9475_v40, %v975_v7  ;;  %v7712_v40 = vld [vmem:[%s13791_s3 + $0x1e8] sm:$0xff] }
 0x20d   : > { %3821 = vmatpush.msrb.mxu0 %v7712_v40 }
 0x20e   : > { %v1663_v9 = vmax.f32 %v1599_v52, 0.0  ;;  %1022 = vmatmul.f32.gmra.mxu0 %v608_v32  ;;  %1398 = vrot.lane.b32.xlu1 %v9547_v46, %s8557_s29 }
 0x20f   : > { %3822 = vmatpush.msrb.mxu0 %v7711_v45 }
 0x210   : > { %v1713_v54 = vmax.f32 %v1663_v9, %v1664_v16  ;;  %v616_v9 = vld [vmem:[%s8690_s26 + $0x3f0] sm:$0xff] }
 0x211   : > { %v9558_v13 = vld [vmem:[#allocation2 + $0xe1] sm:$0xff]  ;;  %3823 = vmatpush.msrb.mxu0 %v7710_v30 }
 0x212   : > { %v1778_v59 = vld [vmem:[#allocation2 + $0xe0] sm:$0xff]  ;;  %1746 = vst.msk [vmem:[#allocation2 + $0xf1] sm:$0xff] %vm384_vm1, %v1713_v54  ;;  %7457 = vmatmul.msk.f32.gmra.mxu2 %vm384_vm1, %v9558_v13 }
 0x213   : > { %7432 = vmatmul.msk.f32.gmra.mxu1 %vm636_vm0, %v613_v38  ;;  %7489 = vmatmul.msk.f32.gmra.mxu3 %vm384_vm1, %v1778_v59  ;;  %v1196_v24 = vpop.f32.mrf.mxu1  ;;  %v978_v28 = vpop.f32.mrf.mxu0 }
 0x214   : > { %v9570_v27 = vadd.f32 %v9495_v29, %v978_v28  ;;  %v7709_v29 = vld [vmem:[%s13791_s3 + $0x1d0] sm:$0xff] }
 0x215   : > { %3824 = vmatpush.msrb.mxu0 %v7709_v29 }
 0x216   : > { %1025 = vmatmul.f32.gmra.mxu0 %v610_v11  ;;  %1400 = vrot.lane.b32.xlu2 %v9570_v27, %s8557_s29 }
 0x217   : > { %3825 = vmatpush.msrb.mxu0 %v7708_v60 }
 0x218   : > { %v1373_v38 = vpop.permute.xlu0 %1372 }
 0x219   : > { %v9578_v61 = vld [vmem:[#allocation2 + $0xf1] sm:$0xff]  ;;  %v1534_v33 = vmax.f32 %v9366_v17, %v1373_v38  ;;  %3826 = vmatpush.msrb.mxu0 %v7707_v48 }
 0x21a   : > { %v1779_v20 = vld [vmem:[#allocation2 + $0xf0] sm:$0xff]  ;;  %7458 = vmatmul.msk.f32.gmra.mxu2 %vm384_vm1, %v9578_v61 }
 0x21b   : > { %7433 = vmatmul.msk.f32.gmra.mxu1 %vm636_vm0, %v615_v2  ;;  %7490 = vmatmul.msk.f32.gmra.mxu3 %vm384_vm1, %v1779_v20  ;;  %v981_v42 = vpop.f32.mrf.mxu0  ;;  %v1601_v56 = vadd.f32 %v9542_v3, %v1534_v33  ;;  %v614_v2 = vld [vmem:[%s8690_s26 + $0x3e0] sm:$0xff]  ;;  %s7310_s26 = sshll.u32 %s7306_s30, 4  ;;  %s7311_s26 = int_to_ptr.hbm [resolvable:$true] %s7310_s26 }
 0x21c   : > { %v9591_v47 = vadd.f32 %v9521_v43, %v981_v42 }
 0x21d   : > { %v1665_v52 = vmax.f32 %v1601_v56, 0.0 }
 0x21e   : > { %1028 = vmatmul.f32.gmra.mxu0 %v612_v53  ;;  %1402 = vrot.lane.b32.xlu0 %v9591_v47, %s8557_s29 }
 0x220   : > { %v1375_v55 = vpop.permute.xlu1 %1374 }
 0x221   : > { %v1535_v43 = vmax.f32 %v9378_v0, %v1375_v55  ;;  %v1377_v0 = vpop.permute.xlu2 %1376 }
 0x223   : > { %7434 = vmatmul.msk.f32.gmra.mxu1 %vm636_vm0, %v617_v25  ;;  %v1602_v39 = vadd.f32 %v9542_v3, %v1535_v43  ;;  %v984_v1 = vpop.f32.mrf.mxu0 }
 0x224   : > { %v9605_v17 = vadd.f32 %v1193_v50, %v984_v1  ;;  %v1536_v50 = vmax.f32 %v9385_v10, %v1377_v0 }
 0x226   : > { %1031 = vmatmul.f32.gmra.mxu0 %v614_v2  ;;  %1404 = vrot.lane.b32.xlu1 %v9605_v17, %s8557_s29  ;;  %v1603_v45 = vadd.f32 %v9542_v3, %v1536_v50 }
 0x228   : > { %v1199_v37 = vpop.f32.mrf.mxu1  ;;  %v1667_v20 = vmax.f32 %v1603_v45, 0.0 }
 0x229   : > { %v1383_v10 = vpop.permute.xlu2 %1382 }
 0x22a   : > { %v1539_v29 = vmax.f32 %v9411_v41, %v1383_v10 }
 0x22b   : > { %7595 = vmatmul.msk.f32.vlgmr.msrb.gmra.mxu1 %vm384_vm1, %v9116_v58  ;;  %v1666_v58 = vmax.f32 %v1602_v39, 0.0  ;;  %v987_v16 = vpop.f32.mrf.mxu0 }
 0x22c   : > { %v9613_v23 = vadd.f32 %v1196_v24, %v987_v16  ;;  %v1606_v42 = vadd.f32 %v9542_v3, %v1539_v29 }
 0x22d   : > { %v1714_v7 = vmax.f32 %v1665_v52, %v1666_v58 }
 0x22e   : > { %1034 = vmatmul.f32.gmra.mxu0 %v616_v9  ;;  %1406 = vrot.lane.b32.xlu2 %v9613_v23, %s8557_s29  ;;  %v1670_v55 = vmax.f32 %v1606_v42, 0.0 }
 0x22f   : > { %1747 = vst.msk [vmem:[#allocation2 + $0x101] sm:$0xff] %vm384_vm1, %v1714_v7 }
 0x230   : > { %v1202_v57 = vpop.f32.mrf.mxu1  ;;  %v1379_v54 = vpop.permute.xlu0 %1378 }
 0x231   : > { %v1537_v25 = vmax.f32 %v9392_v31, %v1379_v54 }
 0x233   : > { %7596 = vmatmul.msk.f32.gmra.mxu1 %vm384_vm1, %v9259_v22  ;;  %v1604_v28 = vadd.f32 %v9542_v3, %v1537_v25  ;;  %v990_v11 = vpop.f32.mrf.mxu0 }
 0x234   : > { %v9628_v30 = vadd.f32 %v1199_v37, %v990_v11 }
 0x235   : > { %v1668_v60 = vmax.f32 %v1604_v28, 0.0 }
 0x236   : > { %v9620_v40 = vld [vmem:[#allocation2 + $0x101] sm:$0xff]  ;;  %7715 = vmatmul.msk.f32.vlgmr.msrb.gmra.mxu0 %vm384_vm1, %v9259_v22  ;;  %1408 = vrot.lane.b32.xlu0 %v9628_v30, %s8557_s29 }
 0x237   : > { %v1780_v59 = vld [vmem:[#allocation2 + $0x100] sm:$0xff]  ;;  %7459 = vmatmul.msk.f32.gmra.mxu2 %vm384_vm1, %v9620_v40  ;;  %v1715_v31 = vmax.f32 %v1667_v20, %v1668_v60 }
 0x238   : > { %v1205_v32 = vpop.f32.mrf.mxu1  ;;  %7491 = vmatmul.msk.f32.gmra.mxu3 %vm384_vm1, %v1780_v59  ;;  %v1381_v38 = vpop.permute.xlu1 %1380 }
 0x239   : > { %1748 = vst.msk [vmem:[#allocation2 + $0x111] sm:$0xff] %vm384_vm1, %v1715_v31  ;;  %v1538_v37 = vmax.f32 %v9403_v5, %v1381_v38 }
 0x23b   : > { %7597 = vmatmul.msk.f32.gmra.mxu1 %vm384_vm1, %v9273_v21  ;;  %v1605_v41 = vadd.f32 %v9542_v3, %v1538_v37  ;;  %v993_v48 = vpop.f32.mrf.mxu0 }
 0x23c   : > { %v9641_v33 = vadd.f32 %v1202_v57, %v993_v48 }
 0x23d   : > { %v1669_v56 = vmax.f32 %v1605_v41, 0.0 }
 0x23e   : > { %7716 = vmatmul.msk.f32.gmra.mxu0 %vm384_vm1, %v9273_v21  ;;  %1410 = vrot.lane.b32.xlu1 %v9641_v33, %s8557_s29 }
 0x23f   : > { %v1716_v22 = vmax.f32 %v1669_v56, %v1670_v55 }
 0x240   : > { %v1208_v24 = vpop.f32.mrf.mxu1  ;;  %v9649_v43 = vld [vmem:[#allocation2 + $0x111] sm:$0xff]  ;;  %v1389_v25 = vpop.permute.xlu2 %1388 }
 0x241   : > { %v1781_v5 = vld [vmem:[#allocation2 + $0x110] sm:$0xff]  ;;  %1749 = vst.msk [vmem:[#allocation2 + $0x121] sm:$0xff] %vm384_vm1, %v1716_v22  ;;  %7460 = vmatmul.msk.f32.gmra.mxu2 %vm384_vm1, %v9649_v43  ;;  %v1542_v28 = vmax.f32 %v9455_v35, %v1389_v25 }
 0x242   : > { %7492 = vmatmul.msk.f32.gmra.mxu3 %vm384_vm1, %v1781_v5 }
 0x243   : > { %7598 = vmatmul.msk.f32.gmra.mxu1 %vm384_vm1, %v9287_v26  ;;  %v996_v57 = vpop.f32.mrf.mxu0  ;;  %v1609_v29 = vadd.f32 %v9542_v3, %v1542_v28 }
 0x244   : > { %v9655_v39 = vadd.f32 %v1205_v32, %v996_v57 }
 0x245   : > { %v1673_v37 = vmax.f32 %v1609_v29, 0.0 }
 0x246   : > { %7717 = vmatmul.msk.f32.gmra.mxu0 %vm384_vm1, %v9287_v26  ;;  %1412 = vrot.lane.b32.xlu2 %v9655_v39, %s8557_s29 }
 0x248   : > { %v1211_v53 = vpop.f32.mrf.mxu1  ;;  %v9663_v21 = vld [vmem:[#allocation2 + $0x121] sm:$0xff]  ;;  %v1385_v52 = vpop.permute.xlu0 %1384 }
 0x249   : > { %v1782_v2 = vld [vmem:[#allocation2 + $0x120] sm:$0xff]  ;;  %7461 = vmatmul.msk.f32.gmra.mxu2 %vm384_vm1, %v9663_v21  ;;  %v1540_v0 = vmax.f32 %v9427_v62, %v1385_v52 }
 0x24a   : > { %7493 = vmatmul.msk.f32.gmra.mxu3 %vm384_vm1, %v1782_v2 }
 0x24b   : > { %7599 = vmatmul.msk.f32.gmra.mxu1 %vm384_vm1, %v9302_v49  ;;  %v999_v58 = vpop.f32.mrf.mxu0  ;;  %v1607_v16 = vadd.f32 %v9542_v3, %v1540_v0 }
 0x24c   : > { %v9668_v7 = vadd.f32 %v1208_v24, %v999_v58 }
 0x24d   : > { %v1671_v62 = vmax.f32 %v1607_v16, 0.0 }
 0x24e   : > { %7718 = vmatmul.msk.f32.gmra.mxu0 %vm384_vm1, %v9302_v49  ;;  %1414 = vrot.lane.b32.xlu0 %v9668_v7, %s8557_s29 }
 0x250   : > { %v1214_v1 = vpop.f32.mrf.mxu1  ;;  %v1387_v32 = vpop.permute.xlu1 %1386 }
 0x251   : > { %v1541_v9 = vmax.f32 %v9442_v8, %v1387_v32 }
 0x253   : > { %7600 = vmatmul.msk.f32.gmra.mxu1 %vm384_vm1, %v9316_v63  ;;  %v1608_v50 = vadd.f32 %v9542_v3, %v1541_v9  ;;  %v1002_v54 = vpop.f32.mrf.mxu0 }
 0x254   : > { %v9680_v59 = vadd.f32 %v1211_v53, %v1002_v54 }
 0x255   : > { %v1672_v45 = vmax.f32 %v1608_v50, 0.0 }
 0x256   : > { %7719 = vmatmul.msk.f32.gmra.mxu0 %vm384_vm1, %v9316_v63  ;;  %1416 = vrot.lane.b32.xlu1 %v9680_v59, %s8557_s29 }
 0x257   : > { %v1717_v49 = vmax.f32 %v1671_v62, %v1672_v45 }
 0x258   : > { %v1217_v26 = vpop.f32.mrf.mxu1  ;;  %v1395_v35 = vpop.permute.xlu2 %1394 }
 0x259   : > { %1750 = vst.msk [vmem:[#allocation2 + $0x131] sm:$0xff] %vm384_vm1, %v1717_v49  ;;  %v1545_v41 = vmax.f32 %v9499_v19, %v1395_v35 }
 0x25b   : > { %7601 = vmatmul.msk.f32.gmra.mxu1 %vm384_vm1, %v9334_v18  ;;  %v1005_v10 = vpop.f32.mrf.mxu0  ;;  %v1612_v55 = vadd.f32 %v9542_v3, %v1545_v41 }
 0x25c   : > { %v9689_v24 = vadd.f32 %v1214_v1, %v1005_v10 }
 0x25d   : > { %v1676_v57 = vmax.f32 %v1612_v55, 0.0 }
 0x25e   : > { %7720 = vmatmul.msk.f32.gmra.mxu0 %vm384_vm1, %v9334_v18  ;;  %1418 = vrot.lane.b32.xlu2 %v9689_v24, %s8557_s29 }
 0x260   : > { %v1220_v8 = vpop.f32.mrf.mxu1  ;;  %v1391_v63 = vpop.permute.xlu0 %1390  ;;  %v9698_v11 = vld [vmem:[#allocation2 + $0x131] sm:$0xff] }
 0x261   : > { %v1783_v20 = vld [vmem:[#allocation2 + $0x130] sm:$0xff]  ;;  %v1543_v60 = vmax.f32 %v9467_v4, %v1391_v63  ;;  %7462 = vmatmul.msk.f32.gmra.mxu2 %vm384_vm1, %v9698_v11  ;;  %v7554_v63 = vld [vmem:[%s13791_s3 + $0xf8] sm:$0xff] }
 0x262   : > { %7494 = vmatmul.msk.f32.gmra.mxu3 %vm384_vm1, %v1783_v20 }
 0x263   : > { %7602 = vmatmul.msk.f32.gmra.mxu1 %vm384_vm1, %v9350_v36  ;;  %v1610_v18 = vadd.f32 %v9542_v3, %v1543_v60  ;;  %v1008_v38 = vpop.f32.mrf.mxu0  ;;  %2690 = vmatpush.msrb.mxu3 %v7554_v63 }
 0x264   : > { %v9706_v42 = vadd.f32 %v1217_v26, %v1008_v38 }
 0x265   : > { %v1674_v53 = vmax.f32 %v1610_v18, 0.0 }
 0x266   : > { %7721 = vmatmul.msk.f32.gmra.mxu0 %vm384_vm1, %v9350_v36  ;;  %1420 = vrot.lane.b32.xlu0 %v9706_v42, %s8557_s29 }
 0x267   : > { %v1718_v4 = vmax.f32 %v1673_v37, %v1674_v53 }
 0x268   : > { %v1223_v31 = vpop.f32.mrf.mxu1  ;;  %v1393_v48 = vpop.permute.xlu1 %1392 }
 0x269   : > { %1751 = vst.msk [vmem:[#allocation2 + $0x141] sm:$0xff] %vm384_vm1, %v1718_v4  ;;  %v1544_v56 = vmax.f32 %v9480_v6, %v1393_v48  ;;  %v9792_v48 = vpop.f32.mrf.mxu2 }
 0x26b   : > { %7603 = vmatmul.msk.f32.gmra.mxu1 %vm384_vm1, %v9371_v51  ;;  %v1611_v19 = vadd.f32 %v9542_v3, %v1544_v56  ;;  %v1011_v22 = vpop.f32.mrf.mxu0 }
 0x26c   : > { %v9719_v5 = vadd.f32 %v1220_v8, %v1011_v22 }
 0x26d   : > { %v1675_v2 = vmax.f32 %v1611_v19, 0.0 }
 0x26e   : > { %7722 = vmatmul.msk.f32.gmra.mxu0 %vm384_vm1, %v9371_v51  ;;  %1422 = vrot.lane.b32.xlu1 %v9719_v5, %s8557_s29 }
 0x26f   : > { %v1719_v36 = vmax.f32 %v1675_v2, %v1676_v57 }
 0x270   : > { %v1226_v1 = vpop.f32.mrf.mxu1  ;;  %v9727_v52 = vld [vmem:[#allocation2 + $0x141] sm:$0xff]  ;;  %v1401_v20 = vpop.permute.xlu2 %1400 }
 0x271   : > { %v1784_v6 = vld [vmem:[#allocation2 + $0x140] sm:$0xff]  ;;  %1752 = vst.msk [vmem:[#allocation2 + $0x151] sm:$0xff] %vm384_vm1, %v1719_v36  ;;  %7463 = vmatmul.msk.f32.gmra.mxu2 %vm384_vm1, %v9727_v52 }
 0x272   : > { %7495 = vmatmul.msk.f32.gmra.mxu3 %vm384_vm1, %v1784_v6 }
 0x273   : > { %7604 = vmatmul.msk.f32.gmra.mxu1 %vm384_vm1, %v9417_v44  ;;  %v1014_v58 = vpop.f32.mrf.mxu0 }
 0x274   : > { %v9733_v0 = vadd.f32 %v1223_v31, %v1014_v58  ;;  %v1548_v31 = vmax.f32 %v9570_v27, %v1401_v20 }
 0x276   : > { %7723 = vmatmul.msk.f32.gmra.mxu0 %vm384_vm1, %v9417_v44  ;;  %1424 = vrot.lane.b32.xlu2 %v9733_v0, %s8557_s29  ;;  %v1615_v37 = vadd.f32 %v9542_v3, %v1548_v31 }
 0x278   : > { %v1229_v51 = vpop.f32.mrf.mxu1  ;;  %v9741_v26 = vld [vmem:[#allocation2 + $0x151] sm:$0xff]  ;;  %v1397_v16 = vpop.permute.xlu0 %1396  ;;  %v1679_v55 = vmax.f32 %v1615_v37, 0.0 }
 0x279   : > { %v1785_v32 = vld [vmem:[#allocation2 + $0x150] sm:$0xff]  ;;  %7464 = vmatmul.msk.f32.gmra.mxu2 %vm384_vm1, %v9741_v26  ;;  %v1546_v54 = vmax.f32 %v9526_v12, %v1397_v16 }
 0x27a   : > { %7496 = vmatmul.msk.f32.gmra.mxu3 %vm384_vm1, %v1785_v32 }
 0x27b   : > { %7605 = vmatmul.msk.f32.gmra.mxu1 %vm384_vm1, %v9447_v15  ;;  %v1017_v9 = vpop.f32.mrf.mxu0  ;;  %v1613_v45 = vadd.f32 %v9542_v3, %v1546_v54 }
 0x27c   : > { %v9746_v50 = vadd.f32 %v1226_v1, %v1017_v9 }
 0x27d   : > { %v1677_v12 = vmax.f32 %v1613_v45, 0.0 }
 0x27e   : > { %7724 = vmatmul.msk.f32.gmra.mxu0 %vm384_vm1, %v9447_v15  ;;  %1426 = vrot.lane.b32.xlu0 %v9746_v50, %s8557_s29  ;;  %v7514_v15 = vld [vmem:[%s13791_s3 + $0xb8] sm:$0xff] }
 0x27f   : > { %2408 = vmatpush.msrb.mxu2 %v7514_v15 }
 0x280   : > { %v1399_v44 = vpop.permute.xlu1 %1398  ;;  %v1232_v62 = vpop.f32.mrf.mxu1 }
 0x281   : > { %v1547_v49 = vmax.f32 %v9547_v46, %v1399_v44 }
 0x283   : > { %7606 = vmatmul.msk.f32.gmra.mxu1 %vm384_vm1, %v9460_v14  ;;  %v1614_v8 = vadd.f32 %v9542_v3, %v1547_v49  ;;  %v1020_v25 = vpop.f32.mrf.mxu0 }
 0x284   : > { %v9758_v10 = vadd.f32 %v1229_v51, %v1020_v25 }
 0x285   : > { %v1678_v28 = vmax.f32 %v1614_v8, 0.0 }
 0x286   : > { %7725 = vmatmul.msk.f32.gmra.mxu0 %vm384_vm1, %v9460_v14  ;;  %1428 = vrot.lane.b32.xlu1 %v9758_v10, %s8557_s29 }
 0x287   : > { %v1720_v46 = vmax.f32 %v1677_v12, %v1678_v28  ;;  %v7553_v28 = vld [vmem:[%s13791_s3 + $0xf0] sm:$0xff] }
 0x288   : > { %v1235_v29 = vpop.f32.mrf.mxu1  ;;  %v1407_v27 = vpop.permute.xlu2 %1406  ;;  %2691 = vmatpush.msrb.mxu3 %v7553_v28 }
 0x289   : > { %1753 = vst.msk [vmem:[#allocation2 + $0x161] sm:$0xff] %vm384_vm1, %v1720_v46  ;;  %v1551_v19 = vmax.f32 %v9613_v23, %v1407_v27 }
 0x28b   : > { %7607 = vmatmul.msk.f32.gmra.mxu1 %vm384_vm1, %v9511_v34  ;;  %v1023_v60 = vpop.f32.mrf.mxu0  ;;  %v1618_v2 = vadd.f32 %v9542_v3, %v1551_v19 }
 0x28c   : > { %v9773_v35 = vadd.f32 %v1232_v62, %v1023_v60 }
 0x28d   : > { %v1682_v51 = vmax.f32 %v1618_v2, 0.0 }
 0x28e   : > { %7726 = vmatmul.msk.f32.gmra.mxu0 %vm384_vm1, %v9511_v34  ;;  %1430 = vrot.lane.b32.xlu2 %v9773_v35, %s8557_s29 }
 0x290   : > { %v1403_v14 = vpop.permute.xlu0 %1402  ;;  %v9782_v18 = vld [vmem:[#allocation2 + $0x161] sm:$0xff]  ;;  %v1238_v56 = vpop.f32.mrf.mxu1 }
 0x291   : > { %v1786_v38 = vld [vmem:[#allocation2 + $0x160] sm:$0xff]  ;;  %v1549_v41 = vmax.f32 %v9591_v47, %v1403_v14  ;;  %7465 = vmatmul.msk.f32.gmra.mxu2 %vm384_vm1, %v9782_v18  ;;  %v9797_v47 = vpop.f32.mrf.mxu3 }
 0x292   : > { %7497 = vmatmul.msk.f32.gmra.mxu3 %vm384_vm1, %v1786_v38 }
 0x293   : > { %7608 = vmatmul.msk.f32.gmra.mxu1 %vm384_vm1, %v9558_v13  ;;  %v1616_v53 = vadd.f32 %v9542_v3, %v1549_v41  ;;  %v1026_v34 = vpop.f32.mrf.mxu0 }
 0x294   : > { %v9790_v4 = vadd.f32 %v1235_v29, %v1026_v34 }
 0x295   : > { %v1680_v22 = vmax.f32 %v1616_v53, 0.0 }
 0x296   : > { %7727 = vmatmul.msk.f32.gmra.mxu0 %vm384_vm1, %v9558_v13  ;;  %1432 = vrot.lane.b32.xlu0 %v9790_v4, %s8557_s29  ;;  %v9815_v13 = vpop.f32.mrf.mxu2 }
 0x297   : > { %v1721_v57 = vmax.f32 %v1679_v55, %v1680_v22 }
 0x298   : > { %v1405_v1 = vpop.permute.xlu1 %1404  ;;  %v1241_v16 = vpop.f32.mrf.mxu1 }
 0x299   : > { %1754 = vst.msk [vmem:[#allocation2 + $0x171] sm:$0xff] %vm384_vm1, %v1721_v57  ;;  %v1550_v23 = vmax.f32 %v9605_v17, %v1405_v1  ;;  %v9817_v9 = vpop.f32.mrf.mxu3 }
 0x29b   : > { %7609 = vmatmul.msk.f32.gmra.mxu1 %vm384_vm1, %v9578_v61  ;;  %v1617_v36 = vadd.f32 %v9542_v3, %v1550_v23  ;;  %v1029_v6 = vpop.f32.mrf.mxu0 }
 0x29c   : > { %v9807_v58 = vadd.f32 %v1238_v56, %v1029_v6 }
 0x29d   : > { %v1681_v32 = vmax.f32 %v1617_v36, 0.0 }
 0x29e   : > { %7728 = vmatmul.msk.f32.gmra.mxu0 %vm384_vm1, %v9578_v61  ;;  %1434 = vrot.lane.b32.xlu1 %v9807_v58, %s8557_s29  ;;  %v9836_v45 = vpop.f32.mrf.mxu2 }
 0x29f   : > { %v1722_v17 = vmax.f32 %v1681_v32, %v1682_v51 }
 0x2a0   : > { %v9819_v54 = vld [vmem:[#allocation2 + $0x171] sm:$0xff]  ;;  %v1244_v12 = vpop.f32.mrf.mxu1  ;;  %v1413_v34 = vpop.permute.xlu2 %1412 }
 0x2a1   : > { %v9821_v44 = vld [vmem:[#allocation2 + $0x170] sm:$0xff]  ;;  %1755 = vst.msk [vmem:[#allocation2 + $0x181] sm:$0xff] %vm384_vm1, %v1722_v17  ;;  %7466 = vmatmul.msk.f32.gmra.mxu2 %vm384_vm1, %v9819_v54  ;;  %v9838_v49 = vpop.f32.mrf.mxu3  ;;  %v1554_v55 = vmax.f32 %v9655_v39, %v1413_v34 }
 0x2a2   : > { %7498 = vmatmul.msk.f32.gmra.mxu3 %vm384_vm1, %v9821_v44 }
 0x2a3   : > { %7610 = vmatmul.msk.f32.gmra.mxu1 %vm384_vm1, %v9620_v40  ;;  %v1032_v61 = vpop.f32.mrf.mxu0  ;;  %v1621_v1 = vadd.f32 %v9542_v3, %v1554_v55 }
 0x2a4   : > { %v9828_v62 = vadd.f32 %v1241_v16, %v1032_v61 }
 0x2a5   : > { %v1685_v36 = vmax.f32 %v1621_v1, 0.0 }
 0x2a6   : > { %7729 = vmatmul.msk.f32.gmra.mxu0 %vm384_vm1, %v9620_v40  ;;  %1436 = vrot.lane.b32.xlu2 %v9828_v62, %s8557_s29  ;;  %v7513_v40 = vld [vmem:[%s13791_s3 + $0xb0] sm:$0xff]  ;;  %v9863_v60 = vpop.f32.mrf.mxu2 }
 0x2a7   : > { %2409 = vmatpush.msrb.mxu2 %v7513_v40 }
 0x2a8   : > { %v9840_v8 = vld [vmem:[#allocation2 + $0x181] sm:$0xff]  ;;  %v1409_v15 = vpop.permute.xlu0 %1408  ;;  %v9869_v37 = vpop.f32.mrf.mxu1 }
 0x2a9   : > { %v9842_v25 = vld [vmem:[#allocation2 + $0x180] sm:$0xff]  ;;  %7467 = vmatmul.msk.f32.gmra.mxu2 %vm384_vm1, %v9840_v8  ;;  %v1552_v20 = vmax.f32 %v9628_v30, %v1409_v15  ;;  %v9867_v38 = vpop.f32.mrf.mxu3  ;;  %13830 = vst [vmem:[#allocation9_spill] sm:$0xff] %v9869_v37 }
 0x2aa   : > { %7499 = vmatmul.msk.f32.gmra.mxu3 %vm384_vm1, %v9842_v25  ;;  %v10206_v37 = vld [vmem:[#allocation2 + $0x60] sm:$0xff] }
 0x2ab   : > { %7611 = vmatmul.msk.f32.gmra.mxu1 %vm384_vm1, %v9649_v43  ;;  %v1035_v63 = vpop.f32.mrf.mxu0  ;;  %v1619_v31 = vadd.f32 %v9542_v3, %v1552_v20  ;;  %13861 = vst [vmem:[#allocation40_spill] sm:$0xff] %v10206_v37 }
 0x2ac   : > { %v9854_v46 = vadd.f32 %v1244_v12, %v1035_v63  ;;  %v7552_v12 = vld [vmem:[%s13791_s3 + $0xe8] sm:$0xff] }
 0x2ad   : > { %v1683_v41 = vmax.f32 %v1619_v31, 0.0  ;;  %2692 = vmatpush.msrb.mxu3 %v7552_v12 }
 0x2ae   : > { %7730 = vmatmul.msk.f32.gmra.mxu0 %vm384_vm1, %v9649_v43  ;;  %1438 = vrot.lane.b32.xlu0 %v9854_v46, %s8557_s29  ;;  %v9876_v53 = vpop.f32.mrf.mxu2 }
 0x2b0   : > { %v1411_v29 = vpop.permute.xlu1 %1410  ;;  %v9882_v56 = vpop.f32.mrf.mxu1 }
 0x2b1   : > { %v1553_v14 = vmax.f32 %v9641_v33, %v1411_v29  ;;  %v9879_v33 = vpop.f32.mrf.mxu3  ;;  %13831 = vst [vmem:[#allocation10_spill] sm:$0xff] %v9882_v56 }
 0x2b3   : > { %7612 = vmatmul.msk.f32.gmra.mxu1 %vm384_vm1, %v9663_v21  ;;  %v1620_v30 = vadd.f32 %v9542_v3, %v1553_v14  ;;  %v9985_v12 = vpop.f32.mrf.mxu0 }
 0x2b4   : > { %13836 = vst [vmem:[#allocation15_spill] sm:$0xff] %v9985_v12  ;;  %v10204_v12 = vld [vmem:[#allocation2 + $0x52] sm:$0xff] }
 0x2b5   : > { %v1684_v27 = vmax.f32 %v1620_v30, 0.0  ;;  %13860 = vst [vmem:[#allocation39_spill] sm:$0xff] %v10204_v12 }
 0x2b6   : > { %7731 = vmatmul.msk.f32.gmra.mxu0 %vm384_vm1, %v9663_v21  ;;  %v9892_v57 = vpop.f32.mrf.mxu2 }
 0x2b7   : > { %v1723_v43 = vmax.f32 %v1683_v41, %v1684_v27 }
 0x2b9   : > { %1756 = vst.msk [vmem:[#allocation2 + $0x191] sm:$0xff] %vm384_vm1, %v1723_v43  ;;  %v9900_v39 = vpop.f32.mrf.mxu3 }
 0x2bb   : > { %7613 = vmatmul.msk.f32.gmra.mxu1 %vm384_vm1, %v9698_v11 }
 0x2be   : > { %7732 = vmatmul.msk.f32.gmra.mxu0 %vm384_vm1, %v9698_v11  ;;  %v1419_v11 = vpop.permute.xlu2 %1418 }
 0x2bf   : > { %v1557_v6 = vmax.f32 %v9689_v24, %v1419_v11  ;;  %v7512_v24 = vld [vmem:[%s13791_s3 + $0xa8] sm:$0xff]  ;;  %v7511_v11 = vld [vmem:[%s13791_s3 + $0xa0] sm:$0xff] }
 0x2c0   : > { %v1415_v19 = vpop.permute.xlu0 %1414  ;;  %v9888_v21 = vld [vmem:[#allocation2 + $0x191] sm:$0xff]  ;;  %2410 = vmatpush.msrb.mxu2 %v7512_v24 }
 0x2c1   : > { %v9890_v22 = vld [vmem:[#allocation2 + $0x190] sm:$0xff]  ;;  %v1555_v2 = vmax.f32 %v9668_v7, %v1415_v19  ;;  %7468 = vmatmul.msk.f32.gmra.mxu2 %vm384_vm1, %v9888_v21  ;;  %v9908_v7 = vpop.f32.mrf.mxu1  ;;  %v1624_v17 = vadd.f32 %v9542_v3, %v1557_v6  ;;  %v9922_v28 = vpop.f32.mrf.mxu3 }
 0x2c2   : > { %7500 = vmatmul.msk.f32.gmra.mxu3 %vm384_vm1, %v9890_v22  ;;  %13832 = vst [vmem:[#allocation11_spill] sm:$0xff] %v9908_v7  ;;  %2411 = vmatpush.msrb.mxu2 %v7511_v11 }
 0x2c3   : > { %7614 = vmatmul.msk.f32.gmra.mxu1 %vm384_vm1, %v9727_v52  ;;  %v1622_v23 = vadd.f32 %v9542_v3, %v1555_v2  ;;  %v1688_v15 = vmax.f32 %v1624_v17, 0.0 }
 0x2c5   : > { %v1686_v51 = vmax.f32 %v1622_v23, 0.0 }
 0x2c6   : > { %7733 = vmatmul.msk.f32.gmra.mxu0 %vm384_vm1, %v9727_v52  ;;  %v9919_v52 = vpop.f32.mrf.mxu2 }
 0x2c7   : > { %v1724_v32 = vmax.f32 %v1685_v36, %v1686_v51 }
 0x2c8   : > { %v1417_v16 = vpop.permute.xlu1 %1416 }
 0x2c9   : > { %1757 = vst.msk [vmem:[#allocation2 + $0x1a1] sm:$0xff] %vm384_vm1, %v1724_v32  ;;  %v1556_v61 = vmax.f32 %v9680_v59, %v1417_v16  ;;  %v9930_v31 = vpop.f32.mrf.mxu1  ;;  %v9938_v30 = vpop.f32.mrf.mxu3 }
 0x2ca   : > { %13833 = vst [vmem:[#allocation12_spill] sm:$0xff] %v9930_v31 }
 0x2cb   : > { %7615 = vmatmul.msk.f32.gmra.mxu1 %vm384_vm1, %v9741_v26  ;;  %v1623_v40 = vadd.f32 %v9542_v3, %v1556_v61 }
 0x2cd   : > { %v1687_v63 = vmax.f32 %v1623_v40, 0.0 }
 0x2ce   : > { %7734 = vmatmul.msk.f32.gmra.mxu0 %vm384_vm1, %v9741_v26  ;;  %v9936_v14 = vpop.f32.mrf.mxu2 }
 0x2cf   : > { %v1725_v59 = vmax.f32 %v1687_v63, %v1688_v15 }
 0x2d0   : > { %v1830_v20 = vld [vmem:[#allocation2 + $0x1a1] sm:$0xff]  ;;  %v1425_v16 = vpop.permute.xlu2 %1424 }
 0x2d1   : > { %v9928_v29 = vld [vmem:[#allocation2 + $0x1a0] sm:$0xff]  ;;  %1758 = vst.msk [vmem:[#allocation2 + $0x1b1] sm:$0xff] %vm384_vm1, %v1725_v59  ;;  %7469 = vmatmul.msk.f32.gmra.mxu2 %vm384_vm1, %v1830_v20  ;;  %v9951_v34 = vpop.f32.mrf.mxu1  ;;  %v9953_v55 = vpop.f32.mrf.mxu3  ;;  %v1560_v61 = vmax.f32 %v9733_v0, %v1425_v16 }
 0x2d2   : > { %7501 = vmatmul.msk.f32.gmra.mxu3 %vm384_vm1, %v9928_v29  ;;  %13834 = vst [vmem:[#allocation13_spill] sm:$0xff] %v9951_v34 }
 0x2d3   : > { %7616 = vmatmul.msk.f32.gmra.mxu1 %vm384_vm1, %v9782_v18  ;;  %v1627_v59 = vadd.f32 %v9542_v3, %v1560_v61 }
 0x2d6   : > { %7735 = vmatmul.msk.f32.gmra.mxu0 %vm384_vm1, %v9782_v18  ;;  %v9949_v43 = vpop.f32.mrf.mxu2 }
 0x2d8   : > { %v1831_v26 = vld [vmem:[#allocation2 + $0x1b1] sm:$0xff]  ;;  %v1421_v27 = vpop.permute.xlu0 %1420 }
 0x2d9   : > { %v9944_v41 = vld [vmem:[#allocation2 + $0x1b0] sm:$0xff]  ;;  %7470 = vmatmul.msk.f32.gmra.mxu2 %vm384_vm1, %v1831_v26  ;;  %v1558_v19 = vmax.f32 %v9706_v42, %v1421_v27  ;;  %v7551_v42 = vld [vmem:[%s13791_s3 + $0xe0] sm:$0xff] }
 0x2da   : > { %7502 = vmatmul.msk.f32.gmra.mxu3 %vm384_vm1, %v9944_v41 }
 0x2db   : > { %7617 = vmatmul.msk.f32.gmra.mxu1 %vm384_vm1, %v9819_v54  ;;  %v1625_v1 = vadd.f32 %v9542_v3, %v1558_v19  ;;  %2693 = vmatpush.msrb.mxu3 %v7551_v42  ;;  %v10006_v42 = vpop.f32.mrf.mxu0 }
 0x2dc   : > { %13838 = vst [vmem:[#allocation17_spill] sm:$0xff] %v10006_v42 }
 0x2dd   : > { %v1689_v6 = vmax.f32 %v1625_v1, 0.0 }
 0x2de   : > { %7736 = vmatmul.msk.f32.gmra.mxu0 %vm384_vm1, %v9819_v54  ;;  %v9969_v36 = vpop.f32.mrf.mxu2  ;;  %v9971_v54 = vpop.f32.mrf.mxu1 }
 0x2df   : > { %13835 = vst [vmem:[#allocation14_spill] sm:$0xff] %v9971_v54 }
 0x2e0   : > { %v1423_v18 = vpop.permute.xlu1 %1422 }
 0x2e1   : > { %v1559_v2 = vmax.f32 %v9719_v5, %v1423_v18  ;;  %v9974_v5 = vpop.f32.mrf.mxu3 }
 0x2e3   : > { %7618 = vmatmul.msk.f32.gmra.mxu1 %vm384_vm1, %v9840_v8  ;;  %v1626_v23 = vadd.f32 %v9542_v3, %v1559_v2 }
 0x2e5   : > { %v1690_v51 = vmax.f32 %v1626_v23, 0.0 }
 0x2e6   : > { %7737 = vmatmul.msk.f32.gmra.mxu0 %vm384_vm1, %v9840_v8  ;;  %v9979_v17 = vpop.f32.mrf.mxu2  ;;  %v9989_v40 = vpop.f32.mrf.mxu1 }
 0x2e7   : > { %v1726_v32 = vmax.f32 %v1689_v6, %v1690_v51  ;;  %13837 = vst [vmem:[#allocation16_spill] sm:$0xff] %v9989_v40  ;;  %v7750_v40 = vld [vmem:[%s13791_s3 + $0x218] sm:$0xff] }
 0x2e8   : > { %v1431_v0 = vpop.permute.xlu2 %1430 }
 0x2e9   : > { %1759 = vst.msk [vmem:[#allocation2 + $0x1c1] sm:$0xff] %vm384_vm1, %v1726_v32  ;;  %v9983_v24 = vpop.f32.mrf.mxu3  ;;  %v1563_v1 = vmax.f32 %v9773_v35, %v1431_v0 }
 0x2eb   : > { %7619 = vmatmul.msk.f32.gmra.mxu1 %vm384_vm1, %v9888_v21  ;;  %v1630_v51 = vadd.f32 %v9542_v3, %v1563_v1 }
 0x2ed   : > { %v1694_v16 = vmax.f32 %v1630_v51, 0.0 }
 0x2ee   : > { %7738 = vmatmul.msk.f32.gmra.mxu0 %vm384_vm1, %v9888_v21  ;;  %v9999_v18 = vpop.f32.mrf.mxu2  ;;  %v1691_v21 = vmax.f32 %v1627_v59, 0.0  ;;  %v10008_v6 = vpop.f32.mrf.mxu1 }
 0x2ef   : > { %13839 = vst [vmem:[#allocation18_spill] sm:$0xff] %v10008_v6  ;;  %v7547_v6 = vld [vmem:[%s13791_s3 + $0xc0] sm:$0xff] }
 0x2f0   : > { %v1427_v8 = vpop.permute.xlu0 %1426  ;;  %v1832_v15 = vld [vmem:[#allocation2 + $0x1c1] sm:$0xff] }
 0x2f1   : > { %v9991_v63 = vld [vmem:[#allocation2 + $0x1c0] sm:$0xff]  ;;  %v1561_v27 = vmax.f32 %v9746_v50, %v1427_v8  ;;  %7471 = vmatmul.msk.f32.gmra.mxu2 %vm384_vm1, %v1832_v15  ;;  %v10003_v11 = vpop.f32.mrf.mxu3 }
 0x2f2   : > { %7503 = vmatmul.msk.f32.gmra.mxu3 %vm384_vm1, %v9991_v63 }
 0x2f3   : > { %7620 = vmatmul.msk.f32.gmra.mxu1 %vm384_vm1, %v1830_v20  ;;  %v1628_v19 = vadd.f32 %v9542_v3, %v1561_v27 }
 0x2f5   : > { %v1692_v2 = vmax.f32 %v1628_v19, 0.0 }
 0x2f6   : > { %7739 = vmatmul.msk.f32.gmra.mxu0 %vm384_vm1, %v1830_v20  ;;  %v10015_v8 = vpop.f32.mrf.mxu2 }
 0x2f7   : > { %v1727_v50 = vmax.f32 %v1691_v21, %v1692_v2 }
 0x2f8   : > { %v1429_v23 = vpop.permute.xlu1 %1428 }
 0x2f9   : > { %1760 = vst.msk [vmem:[#allocation2 + $0x1d1] sm:$0xff] %vm384_vm1, %v1727_v50  ;;  %v1562_v32 = vmax.f32 %v9758_v10, %v1429_v23  ;;  %v10017_v59 = vpop.f32.mrf.mxu3  ;;  %v10025_v10 = vpop.f32.mrf.mxu0  ;;  %v7510_v50 = vld [vmem:[%s13791_s3 + $0x98] sm:$0xff]  ;;  %v7509_v23 = vld [vmem:[%s13791_s3 + $0x90] sm:$0xff] }
 0x2fa   : > { %13840 = vst [vmem:[#allocation19_spill] sm:$0xff] %v10025_v10  ;;  %2412 = vmatpush.msrb.mxu2 %v7510_v50  ;;  %v10188_v10 = vld [vmem:[#allocation2 + $0x42] sm:$0xff] }
 0x2fb   : > { %7621 = vmatmul.msk.f32.gmra.mxu1 %vm384_vm1, %v1831_v26  ;;  %v1629_v35 = vadd.f32 %v9542_v3, %v1562_v32  ;;  %v7549_v32 = vld [vmem:[%s13791_s3 + $0xd0] sm:$0xff] }
 0x2fc   : > { %2413 = vmatpush.msrb.mxu2 %v7509_v23  ;;  %v7753_v23 = vld [vmem:[%s13791_s3 + $0x230] sm:$0xff] }
 0x2fd   : > { %v1693_v61 = vmax.f32 %v1629_v35, 0.0  ;;  %v7508_v35 = vld [vmem:[%s13791_s3 + $0x88] sm:$0xff] }
 0x2fe   : > { %7740 = vmatmul.msk.f32.gmra.mxu0 %vm384_vm1, %v1831_v26  ;;  %v10028_v26 = vpop.f32.mrf.mxu1  ;;  %v10031_v19 = vpop.f32.mrf.mxu2  ;;  %2414 = vmatpush.msrb.mxu2 %v7508_v35 }
 0x2ff   : > { %v1728_v20 = vmax.f32 %v1693_v61, %v1694_v16  ;;  %13841 = vst [vmem:[#allocation20_spill] sm:$0xff] %v10028_v26  ;;  %v7548_v61 = vld [vmem:[%s13791_s3 + $0xc8] sm:$0xff] }
 0x300   : > { %v1833_v27 = vld [vmem:[#allocation2 + $0x1d1] sm:$0xff] }
 0x301   : > { %v10019_v0 = vld [vmem:[#allocation2 + $0x1d0] sm:$0xff]  ;;  %1761 = vst.msk [vmem:[#allocation2 + $0x1e1] sm:$0xff] %vm384_vm1, %v1728_v20  ;;  %7472 = vmatmul.msk.f32.gmra.mxu2 %vm384_vm1, %v1833_v27  ;;  %v10033_v21 = vpop.f32.mrf.mxu3  ;;  %v10056_v16 = vpop.f32.mrf.mxu0  ;;  %v7754_v20 = vld [vmem:[%s13791_s3 + $0x238] sm:$0xff] }
 0x302   : > { %7504 = vmatmul.msk.f32.gmra.mxu3 %vm384_vm1, %v10019_v0  ;;  %13842 = vst [vmem:[#allocation21_spill] sm:$0xff] %v10056_v16  ;;  %4101 = vmatpush.msra.mxu1 %v7754_v20 }
 0x303   : > { %7622 = vmatmul.msk.f32.gmra.mxu1 %vm384_vm1, %v1832_v15 }
 0x304   : > { %4102 = vmatpush.msra.mxu1 %v7753_v23 }
 0x306   : > { %7741 = vmatmul.msk.f32.gmra.mxu0 %vm384_vm1, %v1832_v15  ;;  %v7550_v15 = vld [vmem:[%s13791_s3 + $0xd8] sm:$0xff]  ;;  %v10064_v50 = vpop.f32.mrf.mxu1 }
 0x307   : > { %2694 = vmatpush.msrb.mxu3 %v7550_v15  ;;  %13843 = vst [vmem:[#allocation22_spill] sm:$0xff] %v10064_v50  ;;  %v7507_v15 = vld [vmem:[%s13791_s3 + $0x80] sm:$0xff] }
 0x308   : > { %v1834_v1 = vld [vmem:[#allocation2 + $0x1e1] sm:$0xff]  ;;  %v1433_v51 = vpop.permute.xlu0 %1432  ;;  %2415 = vmatpush.msrb.mxu2 %v7507_v15  ;;  %v7749_v15 = vld [vmem:[%s13791_s3 + $0x210] sm:$0xff] }
 0x309   : > { %v10035_v2 = vld [vmem:[#allocation2 + $0x1e0] sm:$0xff]  ;;  %7473 = vmatmul.msk.f32.gmra.mxu2 %vm384_vm1, %v1834_v1  ;;  %v1564_v26 = vmax.f32 %v9790_v4, %v1433_v51  ;;  %2695 = vmatpush.msrb.mxu3 %v7549_v32  ;;  %v7752_v4 = vld [vmem:[%s13791_s3 + $0x228] sm:$0xff]  ;;  %v10080_v51 = vpop.f32.mrf.mxu2  ;;  %v10082_v32 = vpop.f32.mrf.mxu3 }
 0x30a   : > { %7505 = vmatmul.msk.f32.gmra.mxu3 %vm384_vm1, %v10035_v2  ;;  %4103 = vmatpush.msra.mxu1 %v7752_v4  ;;  %v10096_v34 = vpop.f32.mrf.mxu0  ;;  %v7747_v4 = vld [vmem:[%s13791_s3 + $0x200] sm:$0xff] }
 0x30b   : > { %7623 = vmatmul.msk.f32.gmra.mxu1 %vm384_vm1, %v1833_v27  ;;  %2696 = vmatpush.msrb.mxu3 %v7548_v61  ;;  %v1631_v35 = vadd.f32 %v9542_v3, %v1564_v26  ;;  %13844 = vst [vmem:[#allocation23_spill] sm:$0xff] %v10096_v34 }
 0x30d   : > { %2697 = vmatpush.msrb.mxu3 %v7547_v6  ;;  %v1695_v23 = vmax.f32 %v1631_v35, 0.0 }
 0x30e   : > { %7742 = vmatmul.msk.f32.gmra.mxu0 %vm384_vm1, %v1833_v27  ;;  %v7751_v27 = vld [vmem:[%s13791_s3 + $0x220] sm:$0xff]  ;;  %v10102_v6 = vpop.f32.mrf.mxu1 }
 0x30f   : > { %4104 = vmatpush.msra.mxu1 %v7751_v27  ;;  %13845 = vst [vmem:[#allocation24_spill] sm:$0xff] %v10102_v6 }
 0x310   : > { %v1435_v20 = vpop.permute.xlu1 %1434 }
 0x311   : > { %v1565_v50 = vmax.f32 %v9807_v58, %v1435_v20  ;;  %4105 = vmatpush.msra.mxu1 %v7750_v40  ;;  %v7748_v58 = vld [vmem:[%s13791_s3 + $0x208] sm:$0xff]  ;;  %v10107_v20 = vpop.f32.mrf.mxu2  ;;  %v10110_v40 = vpop.f32.mrf.mxu3 }
 0x313   : > { %7624 = vmatmul.msk.f32.gmra.mxu1 %vm384_vm1, %v1834_v1  ;;  %v1632_v61 = vadd.f32 %v9542_v3, %v1565_v50  ;;  %v1437_v50 = vpop.permute.xlu2 %1436 }
 0x314   : > { %4106 = vmatpush.msra.mxu1 %v7749_v15 }
 0x315   : > { %v1696_v54 = vmax.f32 %v1632_v61, 0.0 }
 0x316   : > { %7743 = vmatmul.msk.f32.gmra.mxu0 %vm384_vm1, %v1834_v1  ;;  %4107 = vmatpush.msra.mxu1 %v7748_v58  ;;  %v1566_v1 = vmax.f32 %v9828_v62, %v1437_v50  ;;  %v10126_v62 = vpop.f32.mrf.mxu0 }
 0x317   : > { %v1729_v26 = vmax.f32 %v1695_v23, %v1696_v54  ;;  %v10118_v23 = vpop.f32.mrf.mxu1  ;;  %13847 = vst [vmem:[#allocation26_spill] sm:$0xff] %v10126_v62 }
 0x318   : > { %4108 = vmatpush.msra.mxu1 %v7747_v4  ;;  %v1633_v27 = vadd.f32 %v9542_v3, %v1566_v1  ;;  %13846 = vst [vmem:[#allocation25_spill] sm:$0xff] %v10118_v23  ;;  %v2263_v1 = vld [vmem:[#allocation2 + $0x2] sm:$0xff] }
 0x319   : > { %1762 = vst.msk [vmem:[#allocation2 + $0x1f1] sm:$0xff] %vm384_vm1, %v1729_v26  ;;  %v10116_v15 = vpop.f32.mrf.mxu2  ;;  %v10124_v58 = vpop.f32.mrf.mxu3 }
 0x31a   : > { %v1697_v26 = vmax.f32 %v1633_v27, 0.0  ;;  %v10142_v27 = vld [vmem:[#allocation2 + $0x20] sm:$0xff] }
 0x31f   : > { %v10138_v34 = vpop.f32.mrf.mxu1 }
 0x320   : > { %v1439_v35 = vpop.permute.xlu0 %1438  ;;  %v1835_v54 = vld [vmem:[#allocation2 + $0x1f1] sm:$0xff]  ;;  %13848 = vst [vmem:[#allocation27_spill] sm:$0xff] %v10138_v34 }
 0x321   : > { %v10114_v61 = vld [vmem:[#allocation2 + $0x1f0] sm:$0xff]  ;;  %v1567_v6 = vmax.f32 %v9854_v46, %v1439_v35  ;;  %7474 = vmatmul.msk.f32.gmra.mxu2 %vm384_vm1, %v1835_v54  ;;  %7625 = vmatmul.msk.f32.gmra.mxu1 %vm384_vm1, %v1835_v54  ;;  %v10134_v35 = vpop.f32.mrf.mxu2  ;;  %v10136_v62 = vpop.f32.mrf.mxu3 }
 0x322   : > { %7506 = vmatmul.msk.f32.gmra.mxu3 %vm384_vm1, %v10114_v61  ;;  %7744 = vmatmul.msk.f32.gmra.mxu0 %vm384_vm1, %v1835_v54  ;;  %v2545_v46 = vld [vmem:[#allocation2 + $0x10] sm:$0xff] }
 0x323   : > { %v1634_v50 = vadd.f32 %v9542_v3, %v1567_v6  ;;  %v10140_v54 = vld [vmem:[#allocation2 + $0x12] sm:$0xff]  ;;  %v10148_v6 = vpop.f32.mrf.mxu0 }
 0x324   : > { %13849 = vst [vmem:[#allocation28_spill] sm:$0xff] %v10148_v6  ;;  %v10176_v6 = vld [vmem:[#allocation2 + $0x40] sm:$0xff] }
 0x325   : > { %v1698_v4 = vmax.f32 %v1634_v50, 0.0 }
 0x327   : > { %v1730_v23 = vmax.f32 %v1697_v26, %v1698_v4  ;;  %v10156_v50 = vpop.f32.mrf.mxu1  ;;  %v10158_v4 = vld [vmem:[#allocation2 + $0x22] sm:$0xff] }
 0x328   : > { %13850 = vst [vmem:[#allocation29_spill] sm:$0xff] %v10156_v50  ;;  %v10174_v50 = vld [vmem:[#allocation2 + $0x32] sm:$0xff] }
 0x329   : > { %1763 = vst.msk [vmem:[#allocation2 + $0x201] sm:$0xff] %vm384_vm1, %v1730_v23  ;;  %7515 = vmatmul.msk.f32.vlgmr.msrb.gmra.mxu2 %vm384_vm1, %v2263_v1  ;;  %v10152_v23 = vpop.f32.mrf.mxu2  ;;  %v10154_v26 = vpop.f32.mrf.mxu3  ;;  %v10160_v1 = vld [vmem:[#allocation2 + $0x30] sm:$0xff] }
 0x32a   : > { %7555 = vmatmul.msk.f32.vlgmr.msrb.gmra.mxu3 %vm384_vm1, %v2545_v46 }
 0x32f   : > { %v10172_v34 = vpop.f32.mrf.mxu1 }
 0x330   : > { %v2858_v3 = vld [vmem:[#allocation2 + $0x201] sm:$0xff]  ;;  %13853 = vst [vmem:[#allocation32_spill] sm:$0xff] %v10172_v34  ;;  %v10190_v34 = vld [vmem:[#allocation2 + $0x50] sm:$0xff] }
 0x331   : > { %7516 = vmatmul.msk.f32.gmra.mxu2 %vm384_vm1, %v10140_v54  ;;  %7626 = vmatmul.msk.f32.gmra.mxu1 %vm384_vm1, %v2858_v3  ;;  %v10168_v46 = vpop.f32.mrf.mxu2  ;;  %13856 = vst [vmem:[#allocation35_spill] sm:$0xff] %v10190_v34 }
 0x332   : > { %7556 = vmatmul.msk.f32.gmra.mxu3 %vm384_vm1, %v10142_v27  ;;  %7745 = vmatmul.msk.f32.gmra.mxu0 %vm384_vm1, %v2858_v3  ;;  %13851 = vst [vmem:[#allocation30_spill] sm:$0xff] %v10168_v46  ;;  %v10170_v3 = vpop.f32.mrf.mxu3  ;;  %v10384_v46 = vld [vmem:[#allocation2 + $0x110] sm:$0xff] }
 0x333   : > { %13852 = vst [vmem:[#allocation31_spill] sm:$0xff] %v10170_v3  ;;  %v10318_v3 = vld [vmem:[#allocation2 + $0xd0] sm:$0xff] }
 0x334   : > { %13893 = vst [vmem:[#allocation72_spill] sm:$0xff] %v10318_v3 }
 0x337   : > { %v10192_v7 = vpop.f32.mrf.mxu1 }
 0x338   : > { %13857 = vst [vmem:[#allocation36_spill] sm:$0xff] %v10192_v7 }
 0x339   : > { %7517 = vmatmul.msk.f32.gmra.mxu2 %vm384_vm1, %v10158_v4  ;;  %7755 = vmatmul.msk.f32.vlgmr.msra.gmra.mxu1 %vm384_vm1, %v10158_v4  ;;  %v10184_v16 = vpop.f32.mrf.mxu2 }
 0x33a   : > { %7557 = vmatmul.msk.f32.gmra.mxu3 %vm384_vm1, %v10160_v1  ;;  %13854 = vst [vmem:[#allocation33_spill] sm:$0xff] %v10184_v16  ;;  %v10186_v31 = vpop.f32.mrf.mxu3  ;;  %v10222_v16 = vld [vmem:[#allocation2 + $0x70] sm:$0xff] }
 0x33b   : > { %13855 = vst [vmem:[#allocation34_spill] sm:$0xff] %v10186_v31 }
 0x33c   : > { %13866 = vst [vmem:[#allocation45_spill] sm:$0xff] %v10222_v16 }
 0x33f   : > { %v10214_v7 = vpop.f32.mrf.mxu1 }
 0x340   : > { %13862 = vst [vmem:[#allocation41_spill] sm:$0xff] %v10214_v7 }
 0x341   : > { %7518 = vmatmul.msk.f32.gmra.mxu2 %vm384_vm1, %v10174_v50  ;;  %7756 = vmatmul.msk.f32.gmra.mxu1 %vm384_vm1, %v10174_v50  ;;  %v10200_v42 = vpop.f32.mrf.mxu2 }
 0x342   : > { %7558 = vmatmul.msk.f32.gmra.mxu3 %vm384_vm1, %v10176_v6  ;;  %13858 = vst [vmem:[#allocation37_spill] sm:$0xff] %v10200_v42  ;;  %v10202_v56 = vpop.f32.mrf.mxu3 }
 0x343   : > { %13859 = vst [vmem:[#allocation38_spill] sm:$0xff] %v10202_v56  ;;  %v10220_v56 = vld [vmem:[#allocation2 + $0x62] sm:$0xff] }
 0x344   : > { %13865 = vst [vmem:[#allocation44_spill] sm:$0xff] %v10220_v56 }
 0x349   : > { %7519 = vmatmul.msk.f32.gmra.mxu2 %vm384_vm1, %v10188_v10  ;;  %7757 = vmatmul.msk.f32.gmra.mxu1 %vm384_vm1, %v10188_v10  ;;  %v10216_v31 = vpop.f32.mrf.mxu2 }
 0x34a   : > { %7559 = vmatmul.msk.f32.gmra.mxu3 %vm384_vm1, %v10190_v34  ;;  %13863 = vst [vmem:[#allocation42_spill] sm:$0xff] %v10216_v31  ;;  %v10218_v42 = vpop.f32.mrf.mxu3  ;;  %v10400_v34 = vld [vmem:[#allocation2 + $0x120] sm:$0xff] }
 0x34b   : > { %13864 = vst [vmem:[#allocation43_spill] sm:$0xff] %v10218_v42  ;;  %v10236_v42 = vld [vmem:[#allocation2 + $0x72] sm:$0xff] }
 0x34c   : > { %13870 = vst [vmem:[#allocation49_spill] sm:$0xff] %v10236_v42 }
 0x351   : > { %7520 = vmatmul.msk.f32.gmra.mxu2 %vm384_vm1, %v10204_v12  ;;  %7758 = vmatmul.msk.f32.gmra.mxu1 %vm384_vm1, %v10204_v12  ;;  %v10232_v7 = vpop.f32.mrf.mxu2  ;;  %v10238_v12 = vld [vmem:[#allocation2 + $0x80] sm:$0xff] }
 0x352   : > { %7560 = vmatmul.msk.f32.gmra.mxu3 %vm384_vm1, %v10206_v37  ;;  %v10230_v37 = vpop.f32.mrf.mxu1  ;;  %13868 = vst [vmem:[#allocation47_spill] sm:$0xff] %v10232_v7  ;;  %v10234_v31 = vpop.f32.mrf.mxu3 }
 0x353   : > { %13867 = vst [vmem:[#allocation46_spill] sm:$0xff] %v10230_v37 }
 0x354   : > { %13869 = vst [vmem:[#allocation48_spill] sm:$0xff] %v10234_v31  ;;  %v10252_v31 = vld [vmem:[#allocation2 + $0x82] sm:$0xff] }
 0x355   : > { %13871 = vst [vmem:[#allocation50_spill] sm:$0xff] %v10238_v12 }
 0x356   : > { %13875 = vst [vmem:[#allocation54_spill] sm:$0xff] %v10252_v31 }
 0x359   : > { %7521 = vmatmul.msk.f32.gmra.mxu2 %vm384_vm1, %v10220_v56  ;;  %7759 = vmatmul.msk.f32.gmra.mxu1 %vm384_vm1, %v10220_v56  ;;  %v10248_v37 = vpop.f32.mrf.mxu2  ;;  %v10254_v56 = vld [vmem:[#allocation2 + $0x90] sm:$0xff] }
 0x35a   : > { %7561 = vmatmul.msk.f32.gmra.mxu3 %vm384_vm1, %v10222_v16  ;;  %v10246_v16 = vpop.f32.mrf.mxu1  ;;  %13873 = vst [vmem:[#allocation52_spill] sm:$0xff] %v10248_v37  ;;  %v10250_v7 = vpop.f32.mrf.mxu3  ;;  %v10266_v37 = vld [vmem:[#allocation2 + $0x92] sm:$0xff] }
 0x35b   : > { %13872 = vst [vmem:[#allocation51_spill] sm:$0xff] %v10246_v16 }
 0x35c   : > { %13874 = vst [vmem:[#allocation53_spill] sm:$0xff] %v10250_v7  ;;  %v10268_v7 = vld [vmem:[#allocation2 + $0xa0] sm:$0xff] }
 0x35d   : > { %13876 = vst [vmem:[#allocation55_spill] sm:$0xff] %v10254_v56 }
 0x35e   : > { %13879 = vst [vmem:[#allocation58_spill] sm:$0xff] %v10266_v37 }
 0x35f   : > { %13880 = vst [vmem:[#allocation59_spill] sm:$0xff] %v10268_v7 }
 0x361   : > { %7522 = vmatmul.msk.f32.gmra.mxu2 %vm384_vm1, %v10236_v42  ;;  %7760 = vmatmul.msk.f32.gmra.mxu1 %vm384_vm1, %v10236_v42 }
 0x362   : > { %7562 = vmatmul.msk.f32.gmra.mxu3 %vm384_vm1, %v10238_v12  ;;  %v10262_v12 = vpop.f32.mrf.mxu2  ;;  %v10264_v16 = vpop.f32.mrf.mxu3 }
 0x363   : > { %13877 = vst [vmem:[#allocation56_spill] sm:$0xff] %v10262_v12  ;;  %v10270_v42 = vpop.f32.mrf.mxu1 }
 0x364   : > { %13878 = vst [vmem:[#allocation57_spill] sm:$0xff] %v10264_v16  ;;  %v10282_v16 = vld [vmem:[#allocation2 + $0xa2] sm:$0xff] }
 0x365   : > { %13881 = vst [vmem:[#allocation60_spill] sm:$0xff] %v10270_v42 }
 0x366   : > { %13884 = vst [vmem:[#allocation63_spill] sm:$0xff] %v10282_v16 }
 0x369   : > { %7523 = vmatmul.msk.f32.gmra.mxu2 %vm384_vm1, %v10252_v31  ;;  %7761 = vmatmul.msk.f32.gmra.mxu1 %vm384_vm1, %v10252_v31  ;;  %v10284_v31 = vld [vmem:[#allocation2 + $0xb0] sm:$0xff] }
 0x36a   : > { %7563 = vmatmul.msk.f32.gmra.mxu3 %vm384_vm1, %v10254_v56  ;;  %v10278_v56 = vpop.f32.mrf.mxu2  ;;  %v10280_v12 = vpop.f32.mrf.mxu3  ;;  %13885 = vst [vmem:[#allocation64_spill] sm:$0xff] %v10284_v31 }
 0x36b   : > { %13882 = vst [vmem:[#allocation61_spill] sm:$0xff] %v10278_v56  ;;  %v10292_v42 = vpop.f32.mrf.mxu1  ;;  %v10296_v56 = vld [vmem:[#allocation2 + $0xc0] sm:$0xff] }
 0x36c   : > { %13883 = vst [vmem:[#allocation62_spill] sm:$0xff] %v10280_v12  ;;  %v7634_v12 = vld [vmem:[%s13791_s3 + $0x178] sm:$0xff] }
 0x36d   : > { %13886 = vst [vmem:[#allocation65_spill] sm:$0xff] %v10292_v42  ;;  %3254 = vmatpush.msra.mxu2 %v7634_v12  ;;  %v7674_v42 = vld [vmem:[%s13791_s3 + $0x1b8] sm:$0xff] }
 0x36e   : > { %13888 = vst [vmem:[#allocation67_spill] sm:$0xff] %v10296_v56  ;;  %3537 = vmatpush.msra.mxu3 %v7674_v42 }
 0x371   : > { %7524 = vmatmul.msk.f32.gmra.mxu2 %vm384_vm1, %v10266_v37  ;;  %7762 = vmatmul.msk.f32.gmra.mxu1 %vm384_vm1, %v10266_v37 }
 0x372   : > { %7564 = vmatmul.msk.f32.gmra.mxu3 %vm384_vm1, %v10268_v7  ;;  %v10294_v7 = vld [vmem:[#allocation2 + $0xb2] sm:$0xff]  ;;  %v10307_v37 = vpop.f32.mrf.mxu3 }
 0x373   : > { %13887 = vst [vmem:[#allocation66_spill] sm:$0xff] %v10294_v7 }
 0x374   : > { %13890 = vst [vmem:[#allocation69_spill] sm:$0xff] %v10307_v37 }
 0x379   : > { %7525 = vmatmul.msk.f32.gmra.mxu2 %vm384_vm1, %v10282_v16  ;;  %7763 = vmatmul.msk.f32.gmra.mxu1 %vm384_vm1, %v10282_v16  ;;  %v10314_v16 = vpop.f32.mrf.mxu1 }
 0x37a   : > { %7565 = vmatmul.msk.f32.gmra.mxu3 %vm384_vm1, %v10284_v31  ;;  %v10305_v31 = vpop.f32.mrf.mxu2  ;;  %13891 = vst [vmem:[#allocation70_spill] sm:$0xff] %v10314_v16  ;;  %v10326_v12 = vpop.f32.mrf.mxu3  ;;  %v10332_v16 = vld [vmem:[#allocation2 + $0xd2] sm:$0xff] }
 0x37b   : > { %13889 = vst [vmem:[#allocation68_spill] sm:$0xff] %v10305_v31  ;;  %v10334_v31 = vld [vmem:[#allocation2 + $0xe0] sm:$0xff] }
 0x37c   : > { %13895 = vst [vmem:[#allocation74_spill] sm:$0xff] %v10326_v12  ;;  %v10346_v12 = vld [vmem:[#allocation2 + $0xe2] sm:$0xff] }
 0x37d   : > { %13897 = vst [vmem:[#allocation76_spill] sm:$0xff] %v10332_v16 }
 0x37e   : > { %13898 = vst [vmem:[#allocation77_spill] sm:$0xff] %v10334_v31 }
 0x37f   : > { %13901 = vst [vmem:[#allocation80_spill] sm:$0xff] %v10346_v12 }
 0x381   : > { %7526 = vmatmul.msk.f32.gmra.mxu2 %vm384_vm1, %v10294_v7  ;;  %7764 = vmatmul.msk.f32.gmra.mxu1 %vm384_vm1, %v10294_v7  ;;  %v10330_v42 = vpop.f32.mrf.mxu1 }
 0x382   : > { %7566 = vmatmul.msk.f32.gmra.mxu3 %vm384_vm1, %v10296_v56  ;;  %v10316_v56 = vld [vmem:[#allocation2 + $0xc2] sm:$0xff]  ;;  %v10324_v37 = vpop.f32.mrf.mxu2  ;;  %13896 = vst [vmem:[#allocation75_spill] sm:$0xff] %v10330_v42  ;;  %v10348_v42 = vld [vmem:[#allocation2 + $0xf0] sm:$0xff] }
 0x383   : > { %13892 = vst [vmem:[#allocation71_spill] sm:$0xff] %v10316_v56 }
 0x384   : > { %13894 = vst [vmem:[#allocation73_spill] sm:$0xff] %v10324_v37 }
 0x385   : > { %v10342_v37 = vpop.f32.mrf.mxu3  ;;  %13902 = vst [vmem:[#allocation81_spill] sm:$0xff] %v10348_v42 }
 0x386   : > { %13900 = vst [vmem:[#allocation79_spill] sm:$0xff] %v10342_v37 }
 0x389   : > { %7527 = vmatmul.msk.f32.gmra.mxu2 %vm384_vm1, %v10316_v56  ;;  %7765 = vmatmul.msk.f32.gmra.mxu1 %vm384_vm1, %v10316_v56  ;;  %v10350_v56 = vpop.f32.mrf.mxu1 }
 0x38a   : > { %7567 = vmatmul.msk.f32.gmra.mxu3 %vm384_vm1, %v10318_v3  ;;  %v10340_v3 = vpop.f32.mrf.mxu2  ;;  %13903 = vst [vmem:[#allocation82_spill] sm:$0xff] %v10350_v56  ;;  %v7633_v56 = vld [vmem:[%s13791_s3 + $0x170] sm:$0xff] }
 0x38b   : > { %13899 = vst [vmem:[#allocation78_spill] sm:$0xff] %v10340_v3  ;;  %3255 = vmatpush.msra.mxu2 %v7633_v56 }
 0x38d   : > { %v10360_v37 = vpop.f32.mrf.mxu3 }
 0x38e   : > { %13905 = vst [vmem:[#allocation84_spill] sm:$0xff] %v10360_v37  ;;  %v7673_v37 = vld [vmem:[%s13791_s3 + $0x1b0] sm:$0xff] }
 0x38f   : > { %3538 = vmatpush.msra.mxu3 %v7673_v37  ;;  %v2168_v37 = vadd.f32 %v9797_v47, %v9792_v48  ;;  %v2171_v48 = vadd.f32 %v9817_v9, %v9815_v13  ;;  %v2174_v13 = vadd.f32 %v9838_v49, %v9836_v45  ;;  %v7632_v45 = vld [vmem:[%s13791_s3 + $0x168] sm:$0xff] }
 0x390   : > { %3256 = vmatpush.msra.mxu2 %v7632_v45  ;;  %v7672_v49 = vld [vmem:[%s13791_s3 + $0x1a8] sm:$0xff] }
 0x391   : > { %7528 = vmatmul.msk.f32.gmra.mxu2 %vm384_vm1, %v10332_v16  ;;  %7766 = vmatmul.msk.f32.gmra.mxu1 %vm384_vm1, %v10332_v16  ;;  %v10364_v16 = vld [vmem:[#allocation2 + $0x100] sm:$0xff] }
 0x392   : > { %7568 = vmatmul.msk.f32.gmra.mxu3 %vm384_vm1, %v10334_v31  ;;  %v10358_v3 = vpop.f32.mrf.mxu2  ;;  %v10362_v31 = vld [vmem:[#allocation2 + $0xf2] sm:$0xff]  ;;  %13907 = vst [vmem:[#allocation86_spill] sm:$0xff] %v10364_v16 }
 0x393   : > { %13904 = vst [vmem:[#allocation83_spill] sm:$0xff] %v10358_v3  ;;  %v10378_v3 = vpop.f32.mrf.mxu1  ;;  %3539 = vmatpush.msra.mxu3 %v7672_v49 }
 0x394   : > { %13906 = vst [vmem:[#allocation85_spill] sm:$0xff] %v10362_v31 }
 0x395   : > { %13908 = vst [vmem:[#allocation87_spill] sm:$0xff] %v10378_v3 }
 0x399   : > { %7529 = vmatmul.msk.f32.gmra.mxu2 %vm384_vm1, %v10346_v12  ;;  %7767 = vmatmul.msk.f32.gmra.mxu1 %vm384_vm1, %v10346_v12 }
 0x39a   : > { %7569 = vmatmul.msk.f32.gmra.mxu3 %vm384_vm1, %v10348_v42 }
 0x3a1   : > { %7530 = vmatmul.msk.f32.gmra.mxu2 %vm384_vm1, %v10362_v31  ;;  %7768 = vmatmul.msk.f32.gmra.mxu1 %vm384_vm1, %v10362_v31  ;;  %v10398_v31 = vld [vmem:[#allocation2 + $0x112] sm:$0xff] }
 0x3a2   : > { %7570 = vmatmul.msk.f32.gmra.mxu3 %vm384_vm1, %v10364_v16  ;;  %v10382_v16 = vld [vmem:[#allocation2 + $0x102] sm:$0xff] }
 0x3a4   : > { %v2051_v42 = vpop.f32.mrf.mxu2 }
 0x3a5   : > { %v2260_v12 = vpop.f32.mrf.mxu3 }
 0x3a6   : > { %v10380_v7 = vadd.f32 %v2260_v12, %v2051_v42  ;;  %v10394_v12 = vpop.f32.mrf.mxu1 }
 0x3a7   : > { %13910 = vst [vmem:[#allocation89_spill] sm:$0xff] %v10394_v12  ;;  %v10414_v12 = vld [vmem:[#allocation2 + $0x122] sm:$0xff] }
 0x3a8   : > { %13909 = vst [vmem:[#allocation88_spill] sm:$0xff] %v10380_v7 }
 0x3a9   : > { %7531 = vmatmul.msk.f32.gmra.mxu2 %vm384_vm1, %v10382_v16  ;;  %7769 = vmatmul.msk.f32.gmra.mxu1 %vm384_vm1, %v10382_v16 }
 0x3aa   : > { %7571 = vmatmul.msk.f32.gmra.mxu3 %vm384_vm1, %v10384_v46 }
 0x3ac   : > { %v2417_v56 = vpop.f32.mrf.mxu2 }
 0x3ad   : > { %v2699_v3 = vpop.f32.mrf.mxu3  ;;  %v2513_v42 = vadd.f32 %v2417_v56, %v2168_v37 }
 0x3ae   : > { %v10410_v56 = vpop.f32.mrf.mxu1 }
 0x3af   : > { %v10396_v7 = vadd.f32 %v2699_v3, %v2513_v42  ;;  %13912 = vst [vmem:[#allocation91_spill] sm:$0xff] %v10410_v56  ;;  %v10430_v56 = vld [vmem:[#allocation2 + $0x140] sm:$0xff] }
 0x3b0   : > { %13916 = vst [vmem:[#allocation95_spill] sm:$0xff] %v10430_v56 }
 0x3b1   : > { %13911 = vst [vmem:[#allocation90_spill] sm:$0xff] %v10396_v7  ;;  %7532 = vmatmul.msk.f32.gmra.mxu2 %vm384_vm1, %v10398_v31  ;;  %7770 = vmatmul.msk.f32.gmra.mxu1 %vm384_vm1, %v10398_v31  ;;  %v10416_v7 = vld [vmem:[#allocation2 + $0x130] sm:$0xff] }
 0x3b2   : > { %7572 = vmatmul.msk.f32.gmra.mxu3 %vm384_vm1, %v10400_v34  ;;  %13914 = vst [vmem:[#allocation93_spill] sm:$0xff] %v10416_v7 }
 0x3b4   : > { %v2420_v47 = vpop.f32.mrf.mxu2 }
 0x3b5   : > { %v2702_v37 = vpop.f32.mrf.mxu3  ;;  %v2514_v3 = vadd.f32 %v2420_v47, %v2171_v48 }
 0x3b7   : > { %v10412_v42 = vadd.f32 %v2702_v37, %v2514_v3  ;;  %v10428_v3 = vld [vmem:[#allocation2 + $0x132] sm:$0xff] }
 0x3b9   : > { %13913 = vst [vmem:[#allocation92_spill] sm:$0xff] %v10412_v42  ;;  %7533 = vmatmul.msk.f32.gmra.mxu2 %vm384_vm1, %v10414_v12  ;;  %7771 = vmatmul.msk.f32.gmra.mxu1 %vm384_vm1, %v10414_v12  ;;  %v10432_v42 = vpop.f32.mrf.mxu1 }
 0x3ba   : > { %7573 = vmatmul.msk.f32.gmra.mxu3 %vm384_vm1, %v10416_v7  ;;  %13917 = vst [vmem:[#allocation96_spill] sm:$0xff] %v10432_v42 }
 0x3bc   : > { %v2423_v9 = vpop.f32.mrf.mxu2 }
 0x3bd   : > { %v2705_v48 = vpop.f32.mrf.mxu3  ;;  %v2515_v47 = vadd.f32 %v2423_v9, %v2174_v13  ;;  %v2177_v13 = vadd.f32 %v9867_v38, %v9863_v60  ;;  %v2180_v60 = vadd.f32 %v9879_v33, %v9876_v53  ;;  %v2183_v53 = vadd.f32 %v9900_v39, %v9892_v57 }
 0x3be   : > { %v2186_v57 = vadd.f32 %v9922_v28, %v9919_v52  ;;  %v7671_v52 = vld [vmem:[%s13791_s3 + $0x1a0] sm:$0xff]  ;;  %v2189_v28 = vadd.f32 %v9938_v30, %v9936_v14  ;;  %v2192_v14 = vadd.f32 %v9953_v55, %v9949_v43 }
 0x3bf   : > { %v10426_v37 = vadd.f32 %v2705_v48, %v2515_v47  ;;  %3540 = vmatpush.msra.mxu3 %v7671_v52 }
 0x3c1   : > { %13915 = vst [vmem:[#allocation94_spill] sm:$0xff] %v10426_v37  ;;  %7534 = vmatmul.msk.f32.gmra.mxu2 %vm384_vm1, %v10428_v3  ;;  %7772 = vmatmul.msk.f32.gmra.mxu1 %vm384_vm1, %v10428_v3  ;;  %v10450_v37 = vld [vmem:[#allocation2 + $0x142] sm:$0xff]  ;;  %v10454_v7 = vpop.f32.mrf.mxu1 }
 0x3c2   : > { %7574 = vmatmul.msk.f32.gmra.mxu3 %vm384_vm1, %v10430_v56  ;;  %v10452_v56 = vld [vmem:[#allocation2 + $0x150] sm:$0xff]  ;;  %13918 = vst [vmem:[#allocation97_spill] sm:$0xff] %v10454_v7 }
 0x3c4   : > { %v2426_v9 = vpop.f32.mrf.mxu2 }
 0x3c5   : > { %v2708_v48 = vpop.f32.mrf.mxu3  ;;  %v2516_v47 = vadd.f32 %v2426_v9, %v2177_v13  ;;  %v10466_v9 = vld [vmem:[#allocation2 + $0x152] sm:$0xff] }
 0x3c7   : > { %v10448_v42 = vadd.f32 %v2708_v48, %v2516_v47  ;;  %v10468_v48 = vld [vmem:[#allocation2 + $0x160] sm:$0xff] }
 0x3c9   : > { %7535 = vmatmul.msk.f32.gmra.mxu2 %vm384_vm1, %v10450_v37  ;;  %7773 = vmatmul.msk.f32.gmra.mxu1 %vm384_vm1, %v10450_v37  ;;  %v10478_v33 = vpop.f32.mrf.mxu1 }
 0x3ca   : > { %7575 = vmatmul.msk.f32.gmra.mxu3 %vm384_vm1, %v10452_v56  ;;  %13919 = vst [vmem:[#allocation98_spill] sm:$0xff] %v10478_v33 }
 0x3cc   : > { %v2429_v38 = vpop.f32.mrf.mxu2 }
 0x3cd   : > { %v2711_v45 = vpop.f32.mrf.mxu3  ;;  %v2517_v49 = vadd.f32 %v2429_v38, %v2180_v60 }
 0x3cf   : > { %v10464_v13 = vadd.f32 %v2711_v45, %v2517_v49  ;;  %v10482_v49 = vld [vmem:[#allocation2 + $0x162] sm:$0xff] }
 0x3d1   : > { %7536 = vmatmul.msk.f32.gmra.mxu2 %vm384_vm1, %v10466_v9  ;;  %7774 = vmatmul.msk.f32.gmra.mxu1 %vm384_vm1, %v10466_v9  ;;  %v10492_v39 = vpop.f32.mrf.mxu1 }
 0x3d2   : > { %7576 = vmatmul.msk.f32.gmra.mxu3 %vm384_vm1, %v10468_v48  ;;  %13920 = vst [vmem:[#allocation99_spill] sm:$0xff] %v10492_v39  ;;  %v10516_v39 = vld [vmem:[#allocation2 + $0x182] sm:$0xff] }
 0x3d4   : > { %v2432_v47 = vpop.f32.mrf.mxu2 }
 0x3d5   : > { %v2714_v60 = vpop.f32.mrf.mxu3  ;;  %v2518_v38 = vadd.f32 %v2432_v47, %v2183_v53 }
 0x3d7   : > { %v10480_v45 = vadd.f32 %v2714_v60, %v2518_v38  ;;  %v10496_v38 = vld [vmem:[#allocation2 + $0x172] sm:$0xff] }
 0x3d9   : > { %7537 = vmatmul.msk.f32.gmra.mxu2 %vm384_vm1, %v10482_v49  ;;  %7775 = vmatmul.msk.f32.gmra.mxu1 %vm384_vm1, %v10482_v49 }
 0x3da   : > { %7577 = vmatmul.msk.f32.gmra.mxu3 %vm384_vm1, %v9821_v44  ;;  %v7631_v44 = vld [vmem:[%s13791_s3 + $0x160] sm:$0xff] }
 0x3db   : > { %3257 = vmatpush.msra.mxu2 %v7631_v44 }
 0x3dc   : > { %v2435_v33 = vpop.f32.mrf.mxu2 }
 0x3dd   : > { %v2717_v53 = vpop.f32.mrf.mxu3  ;;  %v2519_v47 = vadd.f32 %v2435_v33, %v2186_v57  ;;  %v10512_v33 = vpop.f32.mrf.mxu1 }
 0x3de   : > { %13921 = vst [vmem:[#allocation100_spill] sm:$0xff] %v10512_v33  ;;  %v10585_v33 = vld [vmem:[#allocation2 + $0x1c2] sm:$0xff] }
 0x3df   : > { %v10494_v60 = vadd.f32 %v2717_v53, %v2519_v47 }
 0x3e1   : > { %7538 = vmatmul.msk.f32.gmra.mxu2 %vm384_vm1, %v10496_v38  ;;  %7776 = vmatmul.msk.f32.gmra.mxu1 %vm384_vm1, %v10496_v38 }
 0x3e2   : > { %7578 = vmatmul.msk.f32.gmra.mxu3 %vm384_vm1, %v9842_v25 }
 0x3e4   : > { %v2438_v57 = vpop.f32.mrf.mxu2 }
 0x3e5   : > { %v2720_v25 = vpop.f32.mrf.mxu3  ;;  %v2520_v53 = vadd.f32 %v2438_v57, %v2189_v28  ;;  %v10526_v52 = vpop.f32.mrf.mxu1 }
 0x3e7   : > { %v10514_v47 = vadd.f32 %v2720_v25, %v2520_v53  ;;  %v10530_v25 = vld [vmem:[#allocation2 + $0x192] sm:$0xff] }
 0x3e9   : > { %7539 = vmatmul.msk.f32.gmra.mxu2 %vm384_vm1, %v10516_v39  ;;  %7777 = vmatmul.msk.f32.gmra.mxu1 %vm384_vm1, %v10516_v39 }
 0x3ea   : > { %7579 = vmatmul.msk.f32.gmra.mxu3 %vm384_vm1, %v9890_v22  ;;  %v2195_v22 = vadd.f32 %v9974_v5, %v9969_v36 }
 0x3ec   : > { %v2441_v30 = vpop.f32.mrf.mxu2 }
 0x3ed   : > { %v2723_v44 = vpop.f32.mrf.mxu3  ;;  %v2521_v28 = vadd.f32 %v2441_v30, %v2192_v14  ;;  %v10540_v14 = vpop.f32.mrf.mxu1 }
 0x3ef   : > { %v10528_v57 = vadd.f32 %v2723_v44, %v2521_v28  ;;  %v10544_v44 = vld [vmem:[#allocation2 + $0x1a2] sm:$0xff] }
 0x3f1   : > { %7540 = vmatmul.msk.f32.gmra.mxu2 %vm384_vm1, %v10530_v25  ;;  %7778 = vmatmul.msk.f32.gmra.mxu1 %vm384_vm1, %v10530_v25 }
 0x3f2   : > { %7580 = vmatmul.msk.f32.gmra.mxu3 %vm384_vm1, %v9928_v29  ;;  %v2198_v29 = vadd.f32 %v9983_v24, %v9979_v17  ;;  %v7670_v17 = vld [vmem:[%s13791_s3 + $0x198] sm:$0xff]  ;;  %v2201_v24 = vadd.f32 %v10003_v11, %v9999_v18  ;;  %v7668_v18 = vld [vmem:[%s13791_s3 + $0x188] sm:$0xff]  ;;  %v7627_v11 = vld [vmem:[%s13791_s3 + $0x140] sm:$0xff] }
 0x3f3   : > { %3541 = vmatpush.msra.mxu3 %v7670_v17  ;;  %v7667_v17 = vld [vmem:[%s13791_s3 + $0x180] sm:$0xff] }
 0x3f4   : > { %v2444_v43 = vpop.f32.mrf.mxu2 }
 0x3f5   : > { %v2726_v55 = vpop.f32.mrf.mxu3  ;;  %v2522_v53 = vadd.f32 %v2444_v43, %v2195_v22  ;;  %v10556_v43 = vld [vmem:[#allocation2 + $0x1b2] sm:$0xff] }
 0x3f7   : > { %v10542_v30 = vadd.f32 %v2726_v55, %v2522_v53  ;;  %v10558_v55 = vpop.f32.mrf.mxu1 }
 0x3f9   : > { %7541 = vmatmul.msk.f32.gmra.mxu2 %vm384_vm1, %v10544_v44  ;;  %7779 = vmatmul.msk.f32.gmra.mxu1 %vm384_vm1, %v10544_v44 }
 0x3fa   : > { %7581 = vmatmul.msk.f32.gmra.mxu3 %vm384_vm1, %v9944_v41  ;;  %v7630_v41 = vld [vmem:[%s13791_s3 + $0x158] sm:$0xff] }
 0x3fb   : > { %3258 = vmatpush.msra.mxu2 %v7630_v41  ;;  %v7628_v41 = vld [vmem:[%s13791_s3 + $0x148] sm:$0xff] }
 0x3fc   : > { %v2447_v36 = vpop.f32.mrf.mxu2 }
 0x3fd   : > { %v2729_v5 = vpop.f32.mrf.mxu3  ;;  %v2523_v28 = vadd.f32 %v2447_v36, %v2198_v29 }
 0x3ff   : > { %v10554_v22 = vadd.f32 %v2729_v5, %v2523_v28  ;;  %v7629_v5 = vld [vmem:[%s13791_s3 + $0x150] sm:$0xff] }
 0x400   : > { %v7669_v28 = vld [vmem:[%s13791_s3 + $0x190] sm:$0xff]  ;;  %3259 = vmatpush.msra.mxu2 %v7629_v5 }
 0x401   : > { %7542 = vmatmul.msk.f32.gmra.mxu2 %vm384_vm1, %v10556_v43  ;;  %7780 = vmatmul.msk.f32.gmra.mxu1 %vm384_vm1, %v10556_v43 }
 0x402   : > { %7582 = vmatmul.msk.f32.gmra.mxu3 %vm384_vm1, %v9991_v63  ;;  %3260 = vmatpush.msra.mxu2 %v7628_v41 }
 0x403   : > { %3542 = vmatpush.msra.mxu3 %v7669_v28  ;;  %v10608_v28 = vld [vmem:[#allocation2 + $0x1d2] sm:$0xff] }
 0x404   : > { %v2450_v53 = vpop.f32.mrf.mxu2  ;;  %3261 = vmatpush.msra.mxu2 %v7627_v11 }
 0x405   : > { %v2732_v29 = vpop.f32.mrf.mxu3  ;;  %v2524_v36 = vadd.f32 %v2450_v53, %v2201_v24  ;;  %v2204_v24 = vadd.f32 %v10017_v59, %v10015_v8  ;;  %v10604_v53 = vpop.f32.mrf.mxu1  ;;  %3543 = vmatpush.msra.mxu3 %v7668_v18  ;;  %v2207_v8 = vadd.f32 %v10033_v21, %v10031_v19  ;;  %v2210_v19 = vadd.f32 %v10082_v32, %v10080_v51 }
 0x406   : > { %v2213_v51 = vadd.f32 %v10110_v40, %v10107_v20  ;;  %v2216_v20 = vadd.f32 %v10124_v58, %v10116_v15  ;;  %v2222_v15 = vadd.f32 %v10154_v26, %v10152_v23  ;;  %v13925_v23 = vld [vmem:[#allocation39_spill] sm:$0xff]  ;;  %v13926_v26 = vld [vmem:[#allocation40_spill] sm:$0xff] }
 0x407   : > { %v10574_v63 = vadd.f32 %v2732_v29, %v2524_v36  ;;  %3544 = vmatpush.msra.mxu3 %v7667_v17 }
 0x409   : > { %7543 = vmatmul.msk.f32.gmra.mxu2 %vm384_vm1, %v10585_v33  ;;  %7781 = vmatmul.msk.f32.gmra.mxu1 %vm384_vm1, %v10585_v33 }
 0x40a   : > { %7583 = vmatmul.msk.f32.gmra.mxu3 %vm384_vm1, %v10019_v0 }
 0x40c   : > { %v2453_v29 = vpop.f32.mrf.mxu2 }
 0x40d   : > { %v2735_v0 = vpop.f32.mrf.mxu3  ;;  %v2525_v36 = vadd.f32 %v2453_v29, %v2204_v24  ;;  %v10618_v11 = vpop.f32.mrf.mxu1  ;;  %v10622_v24 = vld [vmem:[#allocation2 + $0x1e2] sm:$0xff] }
 0x40f   : > { %v10606_v5 = vadd.f32 %v2735_v0, %v2525_v36 }
 0x411   : > { %7544 = vmatmul.msk.f32.gmra.mxu2 %vm384_vm1, %v10608_v28  ;;  %7782 = vmatmul.msk.f32.gmra.mxu1 %vm384_vm1, %v10608_v28 }
 0x412   : > { %7584 = vmatmul.msk.f32.gmra.mxu3 %vm384_vm1, %v10035_v2 }
 0x414   : > { %v2456_v59 = vpop.f32.mrf.mxu2 }
 0x415   : > { %v2738_v41 = vpop.f32.mrf.mxu3  ;;  %v2526_v18 = vadd.f32 %v2456_v59, %v2207_v8  ;;  %v10634_v36 = vpop.f32.mrf.mxu1  ;;  %v10636_v8 = vld [vmem:[#allocation2 + $0x1f2] sm:$0xff]  ;;  %v10638_v59 = vld [vmem:[#allocation2 + $0x200] sm:$0xff] }
 0x417   : > { %v10620_v17 = vadd.f32 %v2738_v41, %v2526_v18 }
 0x419   : > { %7545 = vmatmul.msk.f32.gmra.mxu2 %vm384_vm1, %v10622_v24  ;;  %7783 = vmatmul.msk.f32.gmra.mxu1 %vm384_vm1, %v10622_v24 }
 0x41a   : > { %7585 = vmatmul.msk.f32.gmra.mxu3 %vm384_vm1, %v10114_v61 }
 0x41c   : > { %v2459_v21 = vpop.f32.mrf.mxu2 }
 0x41d   : > { %v2741_v2 = vpop.f32.mrf.mxu3  ;;  %v2527_v29 = vadd.f32 %v2459_v21, %v2210_v19  ;;  %v10654_v19 = vld [vmem:[#allocation2 + $0x202] sm:$0xff]  ;;  %v10656_v21 = vpop.f32.mrf.mxu1 }
 0x41f   : > { %v10632_v0 = vadd.f32 %v2741_v2, %v2527_v29 }
 0x421   : > { %7546 = vmatmul.msk.f32.gmra.mxu2 %vm384_vm1, %v10636_v8  ;;  %7784 = vmatmul.msk.f32.gmra.mxu1 %vm384_vm1, %v10636_v8 }
 0x422   : > { %7586 = vmatmul.msk.f32.gmra.mxu3 %vm384_vm1, %v10638_v59 }
 0x424   : > { %v2462_v32 = vpop.f32.mrf.mxu2 }
 0x425   : > { %v2744_v61 = vpop.f32.mrf.mxu3  ;;  %v2528_v41 = vadd.f32 %v2462_v32, %v2213_v51 }
 0x427   : > { %v10648_v18 = vadd.f32 %v2744_v61, %v2528_v41 }
 0x429   : > { %7635 = vmatmul.msk.f32.vlgmr.msra.gmra.mxu2 %vm384_vm1, %v10140_v54  ;;  %7785 = vmatmul.msk.f32.gmra.mxu1 %vm384_vm1, %v10654_v19  ;;  %v2219_v54 = vadd.f32 %v10136_v62, %v10134_v35  ;;  %v13922_v62 = vld [vmem:[#allocation35_spill] sm:$0xff]  ;;  %v13923_v35 = vld [vmem:[#allocation30_spill] sm:$0xff] }
 0x42a   : > { %7675 = vmatmul.msk.f32.vlgmr.msra.gmra.mxu3 %vm384_vm1, %v10142_v27 }
 0x42c   : > { %v2465_v40 = vpop.f32.mrf.mxu2 }
 0x42d   : > { %v2747_v2 = vpop.f32.mrf.mxu3  ;;  %v2529_v29 = vadd.f32 %v2465_v40, %v2216_v20  ;;  %v13924_v40 = vld [vmem:[#allocation31_spill] sm:$0xff] }
 0x42f   : > { %v10662_v51 = vadd.f32 %v2747_v2, %v2529_v29 }
 0x431   : > { %7636 = vmatmul.msk.f32.gmra.mxu2 %vm384_vm1, %v10158_v4 }
 0x432   : > { %7676 = vmatmul.msk.f32.gmra.mxu3 %vm384_vm1, %v10160_v1 }
 0x434   : > { %v2468_v27 = vpop.f32.mrf.mxu2 }
 0x435   : > { %v2750_v32 = vpop.f32.mrf.mxu3  ;;  %v2530_v61 = vadd.f32 %v2468_v27, %v2219_v54  ;;  %v13927_v27 = vld [vmem:[#allocation33_spill] sm:$0xff] }
 0x437   : > { %v10670_v41 = vadd.f32 %v2750_v32, %v2530_v61  ;;  %v13928_v32 = vld [vmem:[#allocation34_spill] sm:$0xff] }
 0x439   : > { %7637 = vmatmul.msk.f32.gmra.mxu2 %vm384_vm1, %v10174_v50  ;;  %v2225_v50 = vadd.f32 %v13924_v40, %v13923_v35  ;;  %v13931_v35 = vld [vmem:[#allocation37_spill] sm:$0xff]  ;;  %v13932_v40 = vld [vmem:[#allocation38_spill] sm:$0xff] }
 0x43a   : > { %7677 = vmatmul.msk.f32.gmra.mxu3 %vm384_vm1, %v10176_v6 }
 0x43c   : > { %v2471_v58 = vpop.f32.mrf.mxu2 }
 0x43d   : > { %v2753_v4 = vpop.f32.mrf.mxu3  ;;  %v2531_v1 = vadd.f32 %v2471_v58, %v2222_v15 }
 0x43f   : > { %v10678_v20 = vadd.f32 %v2753_v4, %v2531_v1  ;;  %v13929_v1 = vld [vmem:[#allocation44_spill] sm:$0xff] }
 0x441   : > { %7638 = vmatmul.msk.f32.gmra.mxu2 %vm384_vm1, %v10188_v10  ;;  %v2228_v10 = vadd.f32 %v13928_v32, %v13927_v27  ;;  %v13934_v27 = vld [vmem:[#allocation50_spill] sm:$0xff] }
 0x442   : > { %7678 = vmatmul.msk.f32.gmra.mxu3 %vm384_vm1, %v13922_v62  ;;  %v13930_v62 = vld [vmem:[#allocation45_spill] sm:$0xff]  ;;  %v13935_v32 = vld [vmem:[#allocation42_spill] sm:$0xff] }
 0x444   : > { %v2474_v2 = vpop.f32.mrf.mxu2 }
 0x445   : > { %v2756_v29 = vpop.f32.mrf.mxu3  ;;  %v2532_v6 = vadd.f32 %v2474_v2, %v2225_v50  ;;  %v2231_v50 = vadd.f32 %v13932_v40, %v13931_v35  ;;  %v13938_v35 = vld [vmem:[#allocation54_spill] sm:$0xff]  ;;  %v13939_v40 = vld [vmem:[#allocation55_spill] sm:$0xff] }
 0x447   : > { %v10686_v54 = vadd.f32 %v2756_v29, %v2532_v6 }
 0x449   : > { %7639 = vmatmul.msk.f32.gmra.mxu2 %vm384_vm1, %v13925_v23 }
 0x44a   : > { %7679 = vmatmul.msk.f32.gmra.mxu3 %vm384_vm1, %v13926_v26  ;;  %v13933_v26 = vld [vmem:[#allocation49_spill] sm:$0xff] }
 0x44c   : > { %v2477_v61 = vpop.f32.mrf.mxu2 }
 0x44d   : > { %v2759_v15 = vpop.f32.mrf.mxu3  ;;  %v2533_v58 = vadd.f32 %v2477_v61, %v2228_v10  ;;  %v13936_v10 = vld [vmem:[#allocation43_spill] sm:$0xff] }
 0x44e   : > { %v2234_v61 = vadd.f32 %v13936_v10, %v13935_v32  ;;  %v13943_v32 = vld [vmem:[#allocation58_spill] sm:$0xff]  ;;  %v13944_v10 = vld [vmem:[#allocation59_spill] sm:$0xff] }
 0x44f   : > { %v10694_v4 = vadd.f32 %v2759_v15, %v2533_v58 }
 0x451   : > { %7640 = vmatmul.msk.f32.gmra.mxu2 %vm384_vm1, %v13929_v1 }
 0x452   : > { %7680 = vmatmul.msk.f32.gmra.mxu3 %vm384_vm1, %v13930_v62 }
 0x454   : > { %v2480_v2 = vpop.f32.mrf.mxu2 }
 0x455   : > { %v2762_v29 = vpop.f32.mrf.mxu3  ;;  %v2534_v6 = vadd.f32 %v2480_v2, %v2231_v50  ;;  %v13940_v50 = vld [vmem:[#allocation47_spill] sm:$0xff]  ;;  %v13941_v2 = vld [vmem:[#allocation48_spill] sm:$0xff] }
 0x457   : > { %v10702_v23 = vadd.f32 %v2762_v29, %v2534_v6  ;;  %v2237_v29 = vadd.f32 %v13941_v2, %v13940_v50  ;;  %v13948_v50 = vld [vmem:[#allocation63_spill] sm:$0xff]  ;;  %v13949_v2 = vld [vmem:[#allocation64_spill] sm:$0xff] }
 0x459   : > { %7641 = vmatmul.msk.f32.gmra.mxu2 %vm384_vm1, %v13933_v26 }
 0x45a   : > { %7681 = vmatmul.msk.f32.gmra.mxu3 %vm384_vm1, %v13934_v27 }
 0x45c   : > { %v2483_v15 = vpop.f32.mrf.mxu2 }
 0x45d   : > { %v2765_v58 = vpop.f32.mrf.mxu3  ;;  %v2535_v1 = vadd.f32 %v2483_v15, %v2234_v61  ;;  %v13945_v61 = vld [vmem:[#allocation52_spill] sm:$0xff]  ;;  %v13946_v15 = vld [vmem:[#allocation53_spill] sm:$0xff] }
 0x45f   : > { %v10710_v62 = vadd.f32 %v2765_v58, %v2535_v1  ;;  %v2240_v58 = vadd.f32 %v13946_v15, %v13945_v61  ;;  %v13953_v61 = vld [vmem:[#allocation66_spill] sm:$0xff]  ;;  %v13954_v15 = vld [vmem:[#allocation67_spill] sm:$0xff] }
 0x461   : > { %13937 = vst [vmem:[#allocation35_spill] sm:$0xff] %v10710_v62  ;;  %7642 = vmatmul.msk.f32.gmra.mxu2 %vm384_vm1, %v13938_v35 }
 0x462   : > { %7682 = vmatmul.msk.f32.gmra.mxu3 %vm384_vm1, %v13939_v40 }
 0x464   : > { %v2486_v6 = vpop.f32.mrf.mxu2 }
 0x465   : > { %v2768_v26 = vpop.f32.mrf.mxu3  ;;  %v2536_v27 = vadd.f32 %v2486_v6, %v2237_v29  ;;  %v13950_v29 = vld [vmem:[#allocation56_spill] sm:$0xff]  ;;  %v13951_v6 = vld [vmem:[#allocation57_spill] sm:$0xff] }
 0x467   : > { %v10718_v7 = vadd.f32 %v2768_v26, %v2536_v27  ;;  %v2243_v26 = vadd.f32 %v13951_v6, %v13950_v29  ;;  %v13958_v29 = vld [vmem:[#allocation71_spill] sm:$0xff]  ;;  %v13959_v6 = vld [vmem:[#allocation72_spill] sm:$0xff] }
 0x469   : > { %13942 = vst [vmem:[#allocation30_spill] sm:$0xff] %v10718_v7  ;;  %7643 = vmatmul.msk.f32.gmra.mxu2 %vm384_vm1, %v13943_v32 }
 0x46a   : > { %7683 = vmatmul.msk.f32.gmra.mxu3 %vm384_vm1, %v13944_v10 }
 0x46c   : > { %v2489_v1 = vpop.f32.mrf.mxu2 }
 0x46d   : > { %v2771_v35 = vpop.f32.mrf.mxu3  ;;  %v2537_v40 = vadd.f32 %v2489_v1, %v2240_v58  ;;  %v13955_v58 = vld [vmem:[#allocation61_spill] sm:$0xff]  ;;  %v13956_v1 = vld [vmem:[#allocation62_spill] sm:$0xff] }
 0x46f   : > { %v10726_v62 = vadd.f32 %v2771_v35, %v2537_v40  ;;  %v2246_v35 = vadd.f32 %v13956_v1, %v13955_v58  ;;  %v13963_v58 = vld [vmem:[#allocation76_spill] sm:$0xff]  ;;  %v13964_v1 = vld [vmem:[#allocation77_spill] sm:$0xff] }
 0x471   : > { %13947 = vst [vmem:[#allocation31_spill] sm:$0xff] %v10726_v62  ;;  %7644 = vmatmul.msk.f32.gmra.mxu2 %vm384_vm1, %v13948_v50 }
 0x472   : > { %7684 = vmatmul.msk.f32.gmra.mxu3 %vm384_vm1, %v13949_v2 }
 0x474   : > { %v2492_v27 = vpop.f32.mrf.mxu2 }
 0x475   : > { %v2774_v32 = vpop.f32.mrf.mxu3  ;;  %v2538_v10 = vadd.f32 %v2492_v27, %v2243_v26  ;;  %v13960_v26 = vld [vmem:[#allocation68_spill] sm:$0xff]  ;;  %v13961_v27 = vld [vmem:[#allocation69_spill] sm:$0xff] }
 0x477   : > { %v10734_v7 = vadd.f32 %v2774_v32, %v2538_v10  ;;  %v2249_v32 = vadd.f32 %v13961_v27, %v13960_v26  ;;  %v13968_v26 = vld [vmem:[#allocation80_spill] sm:$0xff]  ;;  %v13969_v27 = vld [vmem:[#allocation81_spill] sm:$0xff] }
 0x479   : > { %13952 = vst [vmem:[#allocation39_spill] sm:$0xff] %v10734_v7  ;;  %7645 = vmatmul.msk.f32.gmra.mxu2 %vm384_vm1, %v13953_v61 }
 0x47a   : > { %7685 = vmatmul.msk.f32.gmra.mxu3 %vm384_vm1, %v13954_v15 }
 0x47c   : > { %v2495_v40 = vpop.f32.mrf.mxu2 }
 0x47d   : > { %v2777_v50 = vpop.f32.mrf.mxu3  ;;  %v2539_v2 = vadd.f32 %v2495_v40, %v2246_v35  ;;  %v13965_v35 = vld [vmem:[#allocation73_spill] sm:$0xff]  ;;  %v13966_v40 = vld [vmem:[#allocation74_spill] sm:$0xff] }
 0x47f   : > { %v10742_v62 = vadd.f32 %v2777_v50, %v2539_v2  ;;  %v2252_v50 = vadd.f32 %v13966_v40, %v13965_v35  ;;  %v13972_v35 = vld [vmem:[#allocation85_spill] sm:$0xff]  ;;  %v13973_v40 = vld [vmem:[#allocation86_spill] sm:$0xff] }
 0x481   : > { %13957 = vst [vmem:[#allocation40_spill] sm:$0xff] %v10742_v62  ;;  %7646 = vmatmul.msk.f32.gmra.mxu2 %vm384_vm1, %v13958_v29 }
 0x482   : > { %7686 = vmatmul.msk.f32.gmra.mxu3 %vm384_vm1, %v13959_v6 }
 0x484   : > { %v2498_v10 = vpop.f32.mrf.mxu2 }
 0x485   : > { %v2780_v61 = vpop.f32.mrf.mxu3  ;;  %v2540_v15 = vadd.f32 %v2498_v10, %v2249_v32  ;;  %v13970_v32 = vld [vmem:[#allocation78_spill] sm:$0xff]  ;;  %v13971_v10 = vld [vmem:[#allocation79_spill] sm:$0xff] }
 0x487   : > { %v10750_v7 = vadd.f32 %v2780_v61, %v2540_v15  ;;  %v2255_v61 = vadd.f32 %v13971_v10, %v13970_v32 }
 0x489   : > { %13962 = vst [vmem:[#allocation33_spill] sm:$0xff] %v10750_v7  ;;  %7647 = vmatmul.msk.f32.gmra.mxu2 %vm384_vm1, %v13963_v58 }
 0x48a   : > { %7687 = vmatmul.msk.f32.gmra.mxu3 %vm384_vm1, %v13964_v1 }
 0x48c   : > { %v2501_v2 = vpop.f32.mrf.mxu2 }
 0x48d   : > { %v2783_v29 = vpop.f32.mrf.mxu3  ;;  %v2541_v6 = vadd.f32 %v2501_v2, %v2252_v50  ;;  %v13974_v50 = vld [vmem:[#allocation83_spill] sm:$0xff]  ;;  %v13975_v2 = vld [vmem:[#allocation84_spill] sm:$0xff] }
 0x48f   : > { %v10758_v62 = vadd.f32 %v2783_v29, %v2541_v6  ;;  %v2258_v29 = vadd.f32 %v13975_v2, %v13974_v50 }
 0x491   : > { %13967 = vst [vmem:[#allocation34_spill] sm:$0xff] %v10758_v62  ;;  %7648 = vmatmul.msk.f32.gmra.mxu2 %vm384_vm1, %v13968_v26 }
 0x492   : > { %7688 = vmatmul.msk.f32.gmra.mxu3 %vm384_vm1, %v13969_v27 }
 0x494   : > { %v2504_v15 = vpop.f32.mrf.mxu2 }
 0x495   : > { %v2786_v58 = vpop.f32.mrf.mxu3  ;;  %v2542_v1 = vadd.f32 %v2504_v15, %v2255_v61  ;;  %v13976_v61 = vld [vmem:[#allocation88_spill] sm:$0xff] }
 0x497   : > { %v10766_v7 = vadd.f32 %v2786_v58, %v2542_v1  ;;  %v13977_v1 = vld [vmem:[#allocation90_spill] sm:$0xff] }
 0x499   : > { %7649 = vmatmul.msk.f32.gmra.mxu2 %vm384_vm1, %v13972_v35  ;;  %v13978_v35 = vld [vmem:[#allocation9_spill] sm:$0xff] }
 0x49a   : > { %7689 = vmatmul.msk.f32.gmra.mxu3 %vm384_vm1, %v13973_v40  ;;  %v3077_v40 = vadd.f32 %v13978_v35, %v13977_v1  ;;  %v10801_v35 = vpop.f32.mrf.mxu1 }
 0x49c   : > { %v2507_v6 = vpop.f32.mrf.mxu2 }
 0x49d   : > { %v2789_v26 = vpop.f32.mrf.mxu3  ;;  %v2543_v27 = vadd.f32 %v2507_v6, %v2258_v29 }
 0x49f   : > { %v10774_v62 = vadd.f32 %v2789_v26, %v2543_v27  ;;  %v13980_v26 = vld [vmem:[#allocation93_spill] sm:$0xff]  ;;  %v13981_v27 = vld [vmem:[#allocation92_spill] sm:$0xff] }
 0x4a1   : > { %7650 = vmatmul.msk.f32.gmra.mxu2 %vm384_vm1, %v10382_v16 }
 0x4a2   : > { %7690 = vmatmul.msk.f32.gmra.mxu3 %vm384_vm1, %v10384_v46  ;;  %v13979_v46 = vld [vmem:[#allocation15_spill] sm:$0xff] }
 0x4a4   : > { %v2510_v32 = vpop.f32.mrf.mxu2 }
 0x4a5   : > { %v2792_v10 = vpop.f32.mrf.mxu3  ;;  %v2544_v15 = vadd.f32 %v2510_v32, %v13976_v61 }
 0x4a7   : > { %v10781_v58 = vadd.f32 %v2792_v10, %v2544_v15 }
 0x4a9   : > { %7651 = vmatmul.msk.f32.gmra.mxu2 %vm384_vm1, %v10398_v31  ;;  %v13982_v31 = vld [vmem:[#allocation10_spill] sm:$0xff] }
 0x4aa   : > { %7691 = vmatmul.msk.f32.gmra.mxu3 %vm384_vm1, %v10400_v34  ;;  %v3078_v32 = vadd.f32 %v13982_v31, %v13981_v27 }
 0x4ac   : > { %v3263_v50 = vpop.f32.mrf.mxu2 }
 0x4ad   : > { %v3546_v16 = vpop.f32.mrf.mxu3  ;;  %v3359_v2 = vadd.f32 %v3263_v50, %v3077_v40  ;;  %v13983_v40 = vld [vmem:[#allocation17_spill] sm:$0xff]  ;;  %v13984_v50 = vld [vmem:[#allocation95_spill] sm:$0xff] }
 0x4af   : > { %v3642_v29 = vadd.f32 %v3546_v16, %v3359_v2  ;;  %v13985_v16 = vld [vmem:[#allocation94_spill] sm:$0xff] }
 0x4b1   : > { %v3924_v6 = vadd.f32 %v13979_v46, %v3642_v29  ;;  %7652 = vmatmul.msk.f32.gmra.mxu2 %vm384_vm1, %v10414_v12 }
 0x4b2   : > { %7692 = vmatmul.msk.f32.gmra.mxu3 %vm384_vm1, %v13980_v26  ;;  %v10813_v26 = vpop.f32.mrf.mxu0 }
 0x4b3   : > { %v10797_v34 = vadd.f32 %v10526_v52, %v3924_v6  ;;  %v13986_v52 = vld [vmem:[#allocation11_spill] sm:$0xff] }
 0x4b4   : > { %v3266_v10 = vpop.f32.mrf.mxu2  ;;  %v3079_v2 = vadd.f32 %v13986_v52, %v13985_v16  ;;  %v13989_v16 = vld [vmem:[#allocation21_spill] sm:$0xff] }
 0x4b5   : > { %v3549_v61 = vpop.f32.mrf.mxu3  ;;  %v3360_v15 = vadd.f32 %v3266_v10, %v3078_v32  ;;  %4271 = vrot.lane.b32.xlu1 %v10797_v34, %s8557_s29  ;;  %v13987_v32 = vld [vmem:[#allocation19_spill] sm:$0xff]  ;;  %v10822_v10 = vpop.f32.mrf.mxu1 }
 0x4b7   : > { %v3643_v1 = vadd.f32 %v3549_v61, %v3360_v15 }
 0x4b9   : > { %v3925_v12 = vadd.f32 %v13983_v40, %v3643_v1  ;;  %7653 = vmatmul.msk.f32.gmra.mxu2 %vm384_vm1, %v10428_v3 }
 0x4ba   : > { %7693 = vmatmul.msk.f32.gmra.mxu3 %vm384_vm1, %v13984_v50  ;;  %v10831_v50 = vpop.f32.mrf.mxu0 }
 0x4bb   : > { %v10811_v29 = vadd.f32 %v10540_v14, %v3925_v12  ;;  %v13988_v14 = vld [vmem:[#allocation12_spill] sm:$0xff] }
 0x4bc   : > { %v3269_v46 = vpop.f32.mrf.mxu2  ;;  %v3080_v61 = vadd.f32 %v13988_v14, %v10448_v42 }
 0x4bd   : > { %v3552_v6 = vpop.f32.mrf.mxu3  ;;  %v3361_v27 = vadd.f32 %v3269_v46, %v3079_v2  ;;  %4273 = vrot.lane.b32.xlu2 %v10811_v29, %s8557_s29 }
 0x4bf   : > { %v3644_v31 = vadd.f32 %v3552_v6, %v3361_v27  ;;  %v10843_v6 = vpop.f32.mrf.mxu1 }
 0x4c1   : > { %v3926_v3 = vadd.f32 %v13987_v32, %v3644_v31  ;;  %7654 = vmatmul.msk.f32.gmra.mxu2 %vm384_vm1, %v10450_v37  ;;  %v3413_v32 = vld [vmem:[#allocation2 + $0x170] sm:$0xff] }
 0x4c2   : > { %7694 = vmatmul.msk.f32.gmra.mxu3 %vm384_vm1, %v10452_v56  ;;  %v13990_v56 = vld [vmem:[#allocation13_spill] sm:$0xff] }
 0x4c3   : > { %v10827_v15 = vadd.f32 %v10558_v55, %v3926_v3  ;;  %v3081_v42 = vadd.f32 %v13990_v56, %v10464_v13  ;;  %v13991_v3 = vld [vmem:[#allocation23_spill] sm:$0xff]  ;;  %v13992_v13 = vld [vmem:[#allocation14_spill] sm:$0xff] }
 0x4c4   : > { %v3272_v1 = vpop.f32.mrf.mxu2 }
 0x4c5   : > { %v3555_v40 = vpop.f32.mrf.mxu3  ;;  %v3362_v12 = vadd.f32 %v3272_v1, %v3080_v61  ;;  %4275 = vrot.lane.b32.xlu0 %v10827_v15, %s8557_s29 }
 0x4c7   : > { %v3645_v37 = vadd.f32 %v3555_v40, %v3362_v12  ;;  %v10860_v12 = vpop.f32.mrf.mxu1 }
 0x4c9   : > { %v3927_v52 = vadd.f32 %v13989_v16, %v3645_v37  ;;  %7655 = vmatmul.msk.f32.gmra.mxu2 %vm384_vm1, %v10466_v9  ;;  %v10847_v9 = vpop.f32.mrf.mxu0  ;;  %v3414_v16 = vld [vmem:[#allocation2 + $0x180] sm:$0xff] }
 0x4ca   : > { %7695 = vmatmul.msk.f32.gmra.mxu3 %vm384_vm1, %v10468_v48 }
 0x4cb   : > { %v10841_v55 = vadd.f32 %v10604_v53, %v3927_v52  ;;  %v3082_v53 = vadd.f32 %v13992_v13, %v10480_v45  ;;  %v13993_v52 = vld [vmem:[#allocation26_spill] sm:$0xff] }
 0x4cc   : > { %v3275_v2 = vpop.f32.mrf.mxu2 }
 0x4cd   : > { %v3558_v46 = vpop.f32.mrf.mxu3  ;;  %v3363_v27 = vadd.f32 %v3275_v2, %v3081_v42  ;;  %4277 = vrot.lane.b32.xlu1 %v10841_v55, %s8557_s29 }
 0x4cf   : > { %v3646_v31 = vadd.f32 %v3558_v46, %v3363_v27 }
 0x4d1   : > { %v3928_v48 = vadd.f32 %v13991_v3, %v3646_v31  ;;  %7656 = vmatmul.msk.f32.gmra.mxu2 %vm384_vm1, %v10482_v49  ;;  %v3858_v45 = vpop.f32.mrf.mxu0  ;;  %v10873_v3 = vpop.f32.mrf.mxu1 }
 0x4d2   : > { %7696 = vmatmul.msk.f32.gmra.mxu3 %vm384_vm1, %v3413_v32  ;;  %v3415_v32 = vld [vmem:[#allocation2 + $0x190] sm:$0xff] }
 0x4d3   : > { %v10856_v14 = vadd.f32 %v10618_v11, %v3928_v48  ;;  %v13994_v11 = vld [vmem:[#allocation16_spill] sm:$0xff] }
 0x4d4   : > { %v3278_v61 = vpop.f32.mrf.mxu2  ;;  %v3083_v56 = vadd.f32 %v13994_v11, %v10494_v60  ;;  %v13996_v60 = vld [vmem:[#allocation18_spill] sm:$0xff] }
 0x4d5   : > { %v3561_v1 = vpop.f32.mrf.mxu3  ;;  %v3364_v40 = vadd.f32 %v3278_v61, %v3082_v53  ;;  %4279 = vrot.lane.b32.xlu2 %v10856_v14, %s8557_s29 }
 0x4d7   : > { %v3647_v37 = vadd.f32 %v3561_v1, %v3364_v40 }
 0x4d9   : > { %v3929_v49 = vadd.f32 %v13993_v52, %v3647_v37  ;;  %7657 = vmatmul.msk.f32.gmra.mxu2 %vm384_vm1, %v10496_v38  ;;  %v13995_v38 = vld [vmem:[#allocation28_spill] sm:$0xff]  ;;  %v10884_v1 = vpop.f32.mrf.mxu0 }
 0x4da   : > { %7697 = vmatmul.msk.f32.gmra.mxu3 %vm384_vm1, %v3414_v16  ;;  %v3416_v16 = vld [vmem:[#allocation2 + $0x1a0] sm:$0xff] }
 0x4db   : > { %v10869_v42 = vadd.f32 %v10634_v36, %v3929_v49  ;;  %v3084_v36 = vadd.f32 %v13996_v60, %v10514_v47  ;;  %v10892_v47 = vpop.f32.mrf.mxu1 }
 0x4dc   : > { %v3281_v2 = vpop.f32.mrf.mxu2 }
 0x4dd   : > { %v3564_v46 = vpop.f32.mrf.mxu3  ;;  %v3365_v27 = vadd.f32 %v3281_v2, %v3083_v56  ;;  %4281 = vrot.lane.b32.xlu0 %v10869_v42, %s8557_s29 }
 0x4df   : > { %v3648_v31 = vadd.f32 %v3564_v46, %v3365_v27 }
 0x4e1   : > { %v3930_v48 = vadd.f32 %v13995_v38, %v3648_v31  ;;  %7658 = vmatmul.msk.f32.gmra.mxu2 %vm384_vm1, %v10516_v39 }
 0x4e2   : > { %7698 = vmatmul.msk.f32.gmra.mxu3 %vm384_vm1, %v3415_v32 }
 0x4e3   : > { %v10882_v13 = vadd.f32 %v10656_v21, %v3930_v48  ;;  %v13997_v21 = vld [vmem:[#allocation20_spill] sm:$0xff]  ;;  %v10912_v48 = vpop.f32.mrf.mxu1 }
 0x4e4   : > { %v3284_v53 = vpop.f32.mrf.mxu2  ;;  %v3085_v52 = vadd.f32 %v13997_v21, %v10528_v57  ;;  %v13998_v57 = vld [vmem:[#allocation22_spill] sm:$0xff] }
 0x4e5   : > { %v3567_v61 = vpop.f32.mrf.mxu3  ;;  %v3366_v40 = vadd.f32 %v3284_v53, %v3084_v36  ;;  %4283 = vrot.lane.b32.xlu1 %v10882_v13, %s8557_s29  ;;  %v3418_v36 = vld [vmem:[#allocation2 + $0x1c0] sm:$0xff]  ;;  %v3419_v21 = vld [vmem:[#allocation2 + $0x1d0] sm:$0xff] }
 0x4e7   : > { %v3649_v37 = vadd.f32 %v3567_v61, %v3366_v40 }
 0x4e9   : > { %v3931_v39 = vadd.f32 %v10813_v26, %v3649_v37  ;;  %7659 = vmatmul.msk.f32.gmra.mxu2 %vm384_vm1, %v10530_v25  ;;  %v10901_v26 = vpop.f32.mrf.mxu0  ;;  %v3417_v25 = vld [vmem:[#allocation2 + $0x1b0] sm:$0xff] }
 0x4ea   : > { %7699 = vmatmul.msk.f32.gmra.mxu3 %vm384_vm1, %v3416_v16 }
 0x4eb   : > { %v10897_v49 = vadd.f32 %v10801_v35, %v3931_v39  ;;  %v3086_v35 = vadd.f32 %v13998_v57, %v10542_v30  ;;  %v13999_v30 = vld [vmem:[#allocation24_spill] sm:$0xff]  ;;  %v10929_v39 = vpop.f32.mrf.mxu1 }
 0x4ec   : > { %v3287_v11 = vpop.f32.mrf.mxu2 }
 0x4ed   : > { %v3570_v56 = vpop.f32.mrf.mxu3  ;;  %v3367_v2 = vadd.f32 %v3287_v11, %v3085_v52  ;;  %4285 = vrot.lane.b32.xlu2 %v10897_v49, %s8557_s29 }
 0x4ef   : > { %v3650_v46 = vadd.f32 %v3570_v56, %v3367_v2  ;;  %v14000_v56 = vld [vmem:[#allocation25_spill] sm:$0xff] }
 0x4f0   : > { %v3088_v2 = vadd.f32 %v14000_v56, %v10574_v63  ;;  %v3987_v56 = vld [vmem:[#allocation2 + $0x212] sm:$0xff] }
 0x4f1   : > { %v3932_v27 = vadd.f32 %v10831_v50, %v3650_v46  ;;  %7660 = vmatmul.msk.f32.gmra.mxu2 %vm384_vm1, %v10544_v44  ;;  %v10916_v53 = vpop.f32.mrf.mxu0  ;;  %7786 = vmatmul.msk.f32.gmra.mxu1 %vm384_vm1, %v3987_v56 }
 0x4f2   : > { %7700 = vmatmul.msk.f32.gmra.mxu3 %vm384_vm1, %v3417_v25  ;;  %v7833_v25 = vld [vmem:[%s13793_s5 + $0xb0] sm:$0xff] }
 0x4f3   : > { %v10910_v31 = vadd.f32 %v10822_v10, %v3932_v27  ;;  %v3087_v10 = vadd.f32 %v13999_v30, %v10554_v22  ;;  %v7794_v22 = vld [vmem:[%s13793_s5 + $0x78] sm:$0xff]  ;;  %v10961_v63 = vpop.f32.mrf.mxu1 }
 0x4f4   : > { %v3290_v32 = vpop.f32.mrf.mxu2  ;;  %4604 = vmatpush.msrb.mxu2 %v7794_v22  ;;  %v14001_v30 = vld [vmem:[#allocation27_spill] sm:$0xff] }
 0x4f5   : > { %v3573_v38 = vpop.f32.mrf.mxu3  ;;  %v3368_v60 = vadd.f32 %v3290_v32, %v3086_v35  ;;  %4287 = vrot.lane.b32.xlu0 %v10910_v31, %s8557_s29  ;;  %v3421_v22 = vld [vmem:[#allocation2 + $0x1f0] sm:$0xff] }
 0x4f7   : > { %v3651_v50 = vadd.f32 %v3573_v38, %v3368_v60  ;;  %v3420_v38 = vld [vmem:[#allocation2 + $0x1e0] sm:$0xff]  ;;  %v7792_v60 = vld [vmem:[%s13793_s5 + $0x68] sm:$0xff] }
 0x4f9   : > { %v3933_v44 = vadd.f32 %v10847_v9, %v3651_v50  ;;  %7661 = vmatmul.msk.f32.gmra.mxu2 %vm384_vm1, %v10556_v43  ;;  %v4522_v43 = vld [vmem:[%s13793_s5 + $0x38] sm:$0xff]  ;;  %v10949_v11 = vpop.f32.mrf.mxu0  ;;  %v4520_v50 = vld [vmem:[%s13793_s5 + $0x28] sm:$0xff] }
 0x4fa   : > { %7701 = vmatmul.msk.f32.gmra.mxu3 %vm384_vm1, %v3418_v36  ;;  %v7832_v36 = vld [vmem:[%s13793_s5 + $0xa8] sm:$0xff] }
 0x4fb   : > { %v10925_v61 = vadd.f32 %v10843_v6, %v3933_v44  ;;  %v7834_v6 = vld [vmem:[%s13793_s5 + $0xb8] sm:$0xff]  ;;  %4717 = vmatpush.msrb.mxu3 %v4522_v43  ;;  %v7831_v44 = vld [vmem:[%s13793_s5 + $0xa0] sm:$0xff] }
 0x4fc   : > { %v3293_v40 = vpop.f32.mrf.mxu2  ;;  %4855 = vmatpush.msra.mxu0 %v7834_v6  ;;  %v3705_v43 = vld [vmem:[#allocation2 + $0x211] sm:$0xff] }
 0x4fd   : > { %v3576_v37 = vpop.f32.mrf.mxu3  ;;  %v3369_v16 = vadd.f32 %v3293_v40, %v3087_v10  ;;  %4289 = vrot.lane.b32.xlu1 %v10925_v61, %s8557_s29  ;;  %v3089_v10 = vadd.f32 %v14001_v30, %v10606_v5  ;;  %v7790_v5 = vld [vmem:[%s13793_s5 + $0x58] sm:$0xff]  ;;  %7746 = vmatmul.msk.f32.gmra.mxu0 %vm384_vm1, %v3705_v43 }
 0x4fe   : > { %4856 = vmatpush.msra.mxu0 %v7833_v25 }
 0x4ff   : > { %v3652_v9 = vadd.f32 %v3576_v37, %v3369_v16 }
 0x500   : > { %4857 = vmatpush.msra.mxu0 %v7832_v36 }
 0x501   : > { %v3934_v52 = vadd.f32 %v3858_v45, %v3652_v9  ;;  %7662 = vmatmul.msk.f32.gmra.mxu2 %vm384_vm1, %v10585_v33  ;;  %v7793_v33 = vld [vmem:[%s13793_s5 + $0x70] sm:$0xff]  ;;  %v10990_v9 = vpop.f32.mrf.mxu0 }
 0x502   : > { %7702 = vmatmul.msk.f32.gmra.mxu3 %vm384_vm1, %v3419_v21  ;;  %v4521_v45 = vld [vmem:[%s13793_s5 + $0x30] sm:$0xff]  ;;  %4605 = vmatpush.msrb.mxu2 %v7793_v33  ;;  %v7830_v33 = vld [vmem:[%s13793_s5 + $0x98] sm:$0xff] }
 0x503   : > { %v10954_v46 = vadd.f32 %v10860_v12, %v3934_v52  ;;  %4718 = vmatpush.msrb.mxu3 %v4521_v45  ;;  %4858 = vmatpush.msra.mxu0 %v7831_v44  ;;  %v7789_v45 = vld [vmem:[%s13793_s5 + $0x50] sm:$0xff]  ;;  %v4774_v44 = vld [vmem:[#allocation3 + $0x2] sm:$0xff] }
 0x504   : > { %v3296_v27 = vpop.f32.mrf.mxu2  ;;  %4606 = vmatpush.msrb.mxu2 %v7792_v60  ;;  %v7787_v60 = vld [vmem:[%s13793_s5 + $0x40] sm:$0xff] }
 0x505   : > { %v3579_v57 = vpop.f32.mrf.mxu3  ;;  %v3370_v35 = vadd.f32 %v3296_v27, %v3088_v2  ;;  %4291 = vrot.lane.b32.xlu2 %v10954_v46, %s8557_s29  ;;  %4719 = vmatpush.msrb.mxu3 %v4520_v50  ;;  %v11014_v2 = vpop.f32.mrf.mxu1 }
 0x506   : > { %4859 = vmatpush.msra.mxu0 %v7830_v33  ;;  %v11076_v33 = vld [vmem:[%s13792_s4] ss:$0 sm:$0xff] }
 0x507   : > { %v3653_v32 = vadd.f32 %v3579_v57, %v3370_v35  ;;  %v7829_v57 = vld [vmem:[%s13793_s5 + $0x90] sm:$0xff]  ;;  %v7788_v35 = vld [vmem:[%s13793_s5 + $0x48] sm:$0xff] }
 0x508   : > { %4860 = vmatpush.msra.mxu0 %v7829_v57 }
 0x509   : > { %v3935_v12 = vadd.f32 %v10884_v1, %v3653_v32  ;;  %7663 = vmatmul.msk.f32.gmra.mxu2 %vm384_vm1, %v10608_v28  ;;  %v7791_v28 = vld [vmem:[%s13793_s5 + $0x60] sm:$0xff]  ;;  %v11039_v50 = vpop.f32.mrf.mxu0 }
 0x50a   : > { %7703 = vmatmul.msk.f32.gmra.mxu3 %vm384_vm1, %v3420_v38  ;;  %v4519_v1 = vld [vmem:[%s13793_s5 + $0x20] sm:$0xff]  ;;  %4607 = vmatpush.msrb.mxu2 %v7791_v28 }
 0x50b   : > { %v10988_v40 = vadd.f32 %v10873_v3, %v3935_v12  ;;  %4720 = vmatpush.msrb.mxu3 %v4519_v1  ;;  %v4518_v3 = vld [vmem:[%s13793_s5 + $0x18] sm:$0xff]  ;;  %v7828_v12 = vld [vmem:[%s13793_s5 + $0x88] sm:$0xff]  ;;  %v4515_v28 = vld [vmem:[%s13793_s5] sm:$0xff] }
 0x50c   : > { %v3299_v37 = vpop.f32.mrf.mxu2  ;;  %4608 = vmatpush.msrb.mxu2 %v7790_v5  ;;  %v7827_v1 = vld [vmem:[%s13793_s5 + $0x80] sm:$0xff]  ;;  %4861 = vmatpush.msra.mxu0 %v7828_v12 }
 0x50d   : > { %v3582_v16 = vpop.f32.mrf.mxu3  ;;  %v3371_v21 = vadd.f32 %v3299_v37, %v3089_v10  ;;  %4293 = vrot.lane.b32.xlu0 %v10988_v40, %s8557_s29  ;;  %4721 = vmatpush.msrb.mxu3 %v4518_v3  ;;  %v14003_v10 = vld [vmem:[#allocation32_spill] sm:$0xff] }
 0x50e   : > { %4609 = vmatpush.msrb.mxu2 %v7789_v45  ;;  %4862 = vmatpush.msra.mxu0 %v7827_v1  ;;  %v3091_v37 = vadd.f32 %v14003_v10, %v10632_v0 }
 0x50f   : > { %v3654_v52 = vadd.f32 %v3582_v16, %v3371_v21  ;;  %7835 = vmatmul.msk.f32.vlgmr.msra.gmra.mxu0 %vm384_vm1, %v4774_v44 }
 0x510   : > { %4610 = vmatpush.msrb.mxu2 %v7788_v35 }
 0x511   : > { %v3936_v6 = vadd.f32 %v10901_v26, %v3654_v52  ;;  %7664 = vmatmul.msk.f32.gmra.mxu2 %vm384_vm1, %v10622_v24  ;;  %v4517_v26 = vld [vmem:[%s13793_s5 + $0x10] sm:$0xff]  ;;  %v14002_v24 = vld [vmem:[#allocation29_spill] sm:$0xff]  ;;  %v11062_v43 = vpop.f32.mrf.mxu0 }
 0x512   : > { %7704 = vmatmul.msk.f32.gmra.mxu3 %vm384_vm1, %v3421_v22  ;;  %v3090_v25 = vadd.f32 %v14002_v24, %v10620_v17  ;;  %v4516_v17 = vld [vmem:[%s13793_s5 + $0x8] sm:$0xff]  ;;  %4611 = vmatpush.msrb.mxu2 %v7787_v60  ;;  %v11058_v22 = vpop.f32.mrf.mxu1  ;;  %v4499_v24 = vld [vmem:[#allocation3] sm:$0xff] }
 0x513   : > { %v11019_v27 = vadd.f32 %v10892_v47, %v3936_v6  ;;  %4722 = vmatpush.msrb.mxu3 %v4517_v26 }
 0x514   : > { %v3302_v32 = vpop.f32.mrf.mxu2 }
 0x515   : > { %v3585_v38 = vpop.f32.mrf.mxu3  ;;  %v3372_v47 = vadd.f32 %v3302_v32, %v3090_v25  ;;  %4295 = vrot.lane.b32.xlu1 %v11019_v27, %s8557_s29  ;;  %4723 = vmatpush.msrb.mxu3 %v4516_v17 }
 0x517   : > { %v3655_v36 = vadd.f32 %v3585_v38, %v3372_v47  ;;  %4724 = vmatpush.msrb.mxu3 %v4515_v28  ;;  %v4274_v5 = vpop.permute.xlu2 %4273  ;;  %v7929_v38 = vld [vmem:[%s13793_s5 + $0x1b0] sm:$0xff] }
 0x518   : > { %v4368_v45 = vmax.f32 %v10811_v29, %v4274_v5  ;;  %v7930_v29 = vld [vmem:[%s13793_s5 + $0x1b8] sm:$0xff] }
 0x519   : > { %v3937_v30 = vadd.f32 %v10916_v53, %v3655_v36  ;;  %7665 = vmatmul.msk.f32.gmra.mxu2 %vm384_vm1, %v10636_v8  ;;  %v3423_v8 = vld [vmem:[#allocation2 + $0x210] sm:$0xff]  ;;  %5472 = vmatpush.msrb.mxu1 %v7930_v29  ;;  %v3882_v47 = vpop.f32.mrf.mxu0 }
 0x51a   : > { %7705 = vmatmul.msk.f32.gmra.mxu3 %vm384_vm1, %v10638_v59  ;;  %v11081_v25 = vpop.f32.mrf.mxu1  ;;  %v4403_v57 = vadd.f32 %v11076_v33, %v4368_v45 }
 0x51b   : > { %v11055_v16 = vadd.f32 %v10912_v48, %v3937_v30  ;;  %v14004_v48 = vld [vmem:[#allocation36_spill] sm:$0xff]  ;;  %5473 = vmatpush.msrb.mxu1 %v7929_v38 }
 0x51c   : > { %v3305_v21 = vpop.f32.mrf.mxu2  ;;  %v3092_v3 = vadd.f32 %v14004_v48, %v10648_v18  ;;  %v4435_v36 = vmax.f32 %v4403_v57, 0.0 }
 0x51d   : > { %v3588_v52 = vpop.f32.mrf.mxu3  ;;  %v3373_v53 = vadd.f32 %v3305_v21, %v3091_v37  ;;  %4297 = vrot.lane.b32.xlu2 %v11055_v16, %s8557_s29  ;;  %v7926_v37 = vld [vmem:[%s13793_s5 + $0x198] sm:$0xff] }
 0x51f   : > { %v3656_v59 = vadd.f32 %v3588_v52, %v3373_v53  ;;  %v7925_v53 = vld [vmem:[%s13793_s5 + $0x190] sm:$0xff] }
 0x521   : > { %v3938_v0 = vadd.f32 %v10949_v11, %v3656_v59  ;;  %7666 = vmatmul.msk.f32.gmra.mxu2 %vm384_vm1, %v10654_v19  ;;  %v4523_v19 = vld [vmem:[#allocation3 + $0x1] sm:$0xff]  ;;  %v3885_v45 = vpop.f32.mrf.mxu0 }
 0x522   : > { %7706 = vmatmul.msk.f32.gmra.mxu3 %vm384_vm1, %v3423_v8  ;;  %v4167_v21 = vpop.f32.mrf.mxu1  ;;  %v14006_v8 = vld [vmem:[#allocation46_spill] sm:$0xff] }
 0x523   : > { %v11071_v6 = vadd.f32 %v10929_v39, %v3938_v0  ;;  %v3094_v59 = vadd.f32 %v14006_v8, %v10670_v41  ;;  %v7924_v0 = vld [vmem:[%s13793_s5 + $0x188] sm:$0xff]  ;;  %v7923_v41 = vld [vmem:[%s13793_s5 + $0x180] sm:$0xff] }
 0x524   : > { %v3308_v26 = vpop.f32.mrf.mxu2 }
 0x525   : > { %v3591_v11 = vpop.f32.mrf.mxu3  ;;  %v3374_v56 = vadd.f32 %v3308_v26, %v3092_v3  ;;  %4299 = vrot.lane.b32.xlu0 %v11071_v6, %s8557_s29 }
 0x527   : > { %v3657_v18 = vadd.f32 %v3591_v11, %v3374_v56  ;;  %v4272_v39 = vpop.permute.xlu1 %4271 }
 0x528   : > { %v4367_v35 = vmax.f32 %v10797_v34, %v4272_v39  ;;  %v14005_v34 = vld [vmem:[#allocation41_spill] sm:$0xff]  ;;  %v14007_v39 = vld [vmem:[#allocation51_spill] sm:$0xff] }
 0x529   : > { %v3939_v32 = vadd.f32 %v10990_v9, %v3657_v18  ;;  %7795 = vmatmul.msk.f32.vlgmr.msrb.gmra.mxu2 %vm384_vm1, %v4523_v19  ;;  %v3093_v12 = vadd.f32 %v14005_v34, %v10662_v51  ;;  %v7928_v9 = vld [vmem:[%s13793_s5 + $0x1a8] sm:$0xff]  ;;  %v7927_v51 = vld [vmem:[%s13793_s5 + $0x1a0] sm:$0xff]  ;;  %v3095_v57 = vadd.f32 %v14007_v39, %v10678_v20 }
 0x52a   : > { %7811 = vmatmul.msk.f32.vlgmr.msrb.gmra.mxu3 %vm384_vm1, %v4499_v24  ;;  %v4402_v17 = vadd.f32 %v11076_v33, %v4367_v35  ;;  %5474 = vmatpush.msrb.mxu1 %v7928_v9  ;;  %v4170_v18 = vpop.f32.mrf.mxu1 }
 0x52b   : > { %v11098_v60 = vadd.f32 %v10961_v63, %v3939_v32 }
 0x52c   : > { %v4434_v28 = vmax.f32 %v4402_v17, 0.0  ;;  %v3311_v1 = vpop.f32.mrf.mxu2  ;;  %5475 = vmatpush.msrb.mxu1 %v7927_v51 }
 0x52d   : > { %v3594_v44 = vpop.f32.mrf.mxu3  ;;  %v3375_v30 = vadd.f32 %v3311_v1, %v3093_v12  ;;  %4301 = vrot.lane.b32.xlu1 %v11098_v60, %s8557_s29 }
 0x52e   : > { %v4466_v10 = vmax.f32 %v4434_v28, %v4435_v36  ;;  %5476 = vmatpush.msrb.mxu1 %v7926_v37 }
 0x52f   : > { %v3658_v63 = vadd.f32 %v3594_v44, %v3375_v30 }
 0x530   : > { %4483 = vst.msk [vmem:[#allocation3 + $0x11] sm:$0xff] %vm384_vm1, %v4466_v10  ;;  %5477 = vmatpush.msrb.mxu1 %v7925_v53  ;;  %v4280_v53 = vpop.permute.xlu2 %4279 }
 0x531   : > { %v3940_v52 = vadd.f32 %v11039_v50, %v3658_v63 }
 0x532   : > { %5478 = vmatpush.msrb.mxu1 %v7924_v0  ;;  %v4173_v63 = vpop.f32.mrf.mxu1  ;;  %v4371_v0 = vmax.f32 %v10856_v14, %v4280_v53 }
 0x533   : > { %v11119_v5 = vadd.f32 %v11014_v2, %v3940_v52 }
 0x534   : > { %v3314_v48 = vpop.f32.mrf.mxu2  ;;  %5479 = vmatpush.msrb.mxu1 %v7923_v41 }
 0x535   : > { %v3597_v3 = vpop.f32.mrf.mxu3  ;;  %v3376_v50 = vadd.f32 %v3314_v48, %v3094_v59  ;;  %4303 = vrot.lane.b32.xlu2 %v11119_v5, %s8557_s29 }
 0x537   : > { %v3659_v26 = vadd.f32 %v3597_v3, %v3376_v50  ;;  %v11129_v2 = vld [vmem:[#allocation3 + $0x11] sm:$0xff]  ;;  %v4276_v24 = vpop.permute.xlu0 %4275 }
 0x538   : > { %v11131_v11 = vld [vmem:[#allocation3 + $0x10] sm:$0xff]  ;;  %7796 = vmatmul.msk.f32.gmra.mxu2 %vm384_vm1, %v11129_v2  ;;  %v4369_v29 = vmax.f32 %v10827_v15, %v4276_v24 }
 0x539   : > { %v11133_v56 = vld [vmem:[#allocation3 + $0x12] sm:$0xff]  ;;  %7812 = vmatmul.msk.f32.gmra.mxu3 %vm384_vm1, %v11131_v11  ;;  %v3941_v19 = vadd.f32 %v11062_v43, %v3659_v26  ;;  %v3888_v43 = vpop.f32.mrf.mxu0 }
 0x53a   : > { %7836 = vmatmul.msk.f32.gmra.mxu0 %vm384_vm1, %v11133_v56  ;;  %v4404_v9 = vadd.f32 %v11076_v33, %v4369_v29  ;;  %v4176_v41 = vpop.f32.mrf.mxu1 }
 0x53b   : > { %v11145_v35 = vadd.f32 %v11058_v22, %v3941_v19  ;;  %v14008_v22 = vld [vmem:[#allocation60_spill] sm:$0xff] }
 0x53c   : > { %v3317_v32 = vpop.f32.mrf.mxu2  ;;  %v3096_v1 = vadd.f32 %v14008_v22, %v10686_v54  ;;  %v4436_v44 = vmax.f32 %v4404_v9, 0.0  ;;  %v14009_v54 = vld [vmem:[#allocation65_spill] sm:$0xff] }
 0x53d   : > { %v3600_v38 = vpop.f32.mrf.mxu3  ;;  %v3377_v17 = vadd.f32 %v3317_v32, %v3095_v57  ;;  %4305 = vrot.lane.b32.xlu0 %v11145_v35, %s8557_s29 }
 0x53f   : > { %v3660_v34 = vadd.f32 %v3600_v38, %v3377_v17  ;;  %v4278_v12 = vpop.permute.xlu1 %4277  ;;  %v14010_v38 = vld [vmem:[#allocation70_spill] sm:$0xff] }
 0x540   : > { %v4370_v36 = vmax.f32 %v10841_v55, %v4278_v12 }
 0x541   : > { %v3942_v28 = vadd.f32 %v3882_v47, %v3660_v34  ;;  %v3891_v47 = vpop.f32.mrf.mxu0 }
 0x542   : > { %v4405_v20 = vadd.f32 %v11076_v33, %v4370_v36 }
 0x543   : > { %v11156_v15 = vadd.f32 %v11081_v25, %v3942_v28  ;;  %v3097_v25 = vadd.f32 %v14009_v54, %v10694_v4  ;;  %v4406_v4 = vadd.f32 %v11076_v33, %v4371_v0 }
 0x544   : > { %v4437_v30 = vmax.f32 %v4405_v20, 0.0  ;;  %v3320_v51 = vpop.f32.mrf.mxu2 }
 0x545   : > { %v3603_v10 = vpop.f32.mrf.mxu3  ;;  %v3378_v37 = vadd.f32 %v3320_v51, %v3096_v1  ;;  %4307 = vrot.lane.b32.xlu1 %v11156_v15, %s8557_s29  ;;  %v4438_v34 = vmax.f32 %v4406_v4, 0.0  ;;  %v14011_v51 = vld [vmem:[#allocation35_spill] sm:$0xff]  ;;  %v14014_v4 = vld [vmem:[#allocation82_spill] sm:$0xff] }
 0x546   : > { %v4467_v52 = vmax.f32 %v4436_v44, %v4437_v30 }
 0x547   : > { %v3661_v55 = vadd.f32 %v3603_v10, %v3378_v37  ;;  %v4286_v14 = vpop.permute.xlu2 %4285  ;;  %v14012_v10 = vld [vmem:[#allocation75_spill] sm:$0xff] }
 0x548   : > { %4484 = vst.msk [vmem:[#allocation3 + $0x21] sm:$0xff] %vm384_vm1, %v4467_v52  ;;  %v4374_v12 = vmax.f32 %v10897_v49, %v4286_v14  ;;  %v3099_v37 = vadd.f32 %v14012_v10, %v14011_v51 }
 0x549   : > { %v3943_v8 = vadd.f32 %v3885_v45, %v3661_v55  ;;  %v3894_v32 = vpop.f32.mrf.mxu0 }
 0x54a   : > { %v4409_v44 = vadd.f32 %v11076_v33, %v4374_v12 }
 0x54b   : > { %v11163_v59 = vadd.f32 %v4167_v21, %v3943_v8 }
 0x54c   : > { %v3323_v48 = vpop.f32.mrf.mxu2  ;;  %v4441_v55 = vmax.f32 %v4409_v44, 0.0 }
 0x54d   : > { %v3606_v3 = vpop.f32.mrf.mxu3  ;;  %v3379_v50 = vadd.f32 %v3323_v48, %v3097_v25  ;;  %4309 = vrot.lane.b32.xlu2 %v11163_v59, %s8557_s29 }
 0x54f   : > { %v3662_v26 = vadd.f32 %v3606_v3, %v3379_v50  ;;  %v4282_v19 = vpop.permute.xlu0 %4281  ;;  %v11168_v24 = vld [vmem:[#allocation3 + $0x21] sm:$0xff] }
 0x550   : > { %v11170_v39 = vld [vmem:[#allocation3 + $0x20] sm:$0xff]  ;;  %v4372_v21 = vmax.f32 %v10869_v42, %v4282_v19  ;;  %7797 = vmatmul.msk.f32.gmra.mxu2 %vm384_vm1, %v11168_v24  ;;  %v3098_v42 = vadd.f32 %v14010_v38, %v10702_v23  ;;  %v14013_v19 = vld [vmem:[#allocation30_spill] sm:$0xff] }
 0x551   : > { %v11172_v45 = vld [vmem:[#allocation3 + $0x22] sm:$0xff]  ;;  %7813 = vmatmul.msk.f32.gmra.mxu3 %vm384_vm1, %v11170_v39  ;;  %v3944_v57 = vadd.f32 %v3888_v43, %v3662_v26  ;;  %7931 = vmatmul.msk.f32.vlgmr.msrb.gmra.mxu1 %vm384_vm1, %v11170_v39  ;;  %v3897_v25 = vpop.f32.mrf.mxu0 }
 0x552   : > { %7837 = vmatmul.msk.f32.gmra.mxu0 %vm384_vm1, %v11172_v45  ;;  %v4407_v29 = vadd.f32 %v11076_v33, %v4372_v21  ;;  %v3100_v21 = vadd.f32 %v14014_v4, %v14013_v19 }
 0x553   : > { %v11187_v17 = vadd.f32 %v4170_v18, %v3944_v57  ;;  %v4179_v18 = vpop.f32.mrf.mxu1 }
 0x554   : > { %v4439_v9 = vmax.f32 %v4407_v29, 0.0  ;;  %v3326_v36 = vpop.f32.mrf.mxu2 }
 0x555   : > { %v3609_v43 = vpop.f32.mrf.mxu3  ;;  %v3380_v28 = vadd.f32 %v3326_v36, %v3098_v42  ;;  %4311 = vrot.lane.b32.xlu0 %v11187_v17, %s8557_s29 }
 0x556   : > { %v4468_v20 = vmax.f32 %v4438_v34, %v4439_v9 }
 0x557   : > { %v3663_v22 = vadd.f32 %v3609_v43, %v3380_v28  ;;  %v4284_v1 = vpop.permute.xlu1 %4283  ;;  %v14015_v43 = vld [vmem:[#allocation31_spill] sm:$0xff] }
 0x558   : > { %4485 = vst.msk [vmem:[#allocation3 + $0x31] sm:$0xff] %vm384_vm1, %v4468_v20  ;;  %v4373_v23 = vmax.f32 %v10882_v13, %v4284_v1  ;;  %v14016_v28 = vld [vmem:[#allocation87_spill] sm:$0xff] }
 0x559   : > { %v3945_v30 = vadd.f32 %v3891_v47, %v3663_v22  ;;  %v3900_v42 = vpop.f32.mrf.mxu0  ;;  %v3101_v20 = vadd.f32 %v14016_v28, %v14015_v43 }
 0x55a   : > { %v4408_v49 = vadd.f32 %v11076_v33, %v4373_v23 }
 0x55b   : > { %v11198_v52 = vadd.f32 %v4173_v63, %v3945_v30  ;;  %v4182_v26 = vpop.f32.mrf.mxu1 }
 0x55c   : > { %v4440_v53 = vmax.f32 %v4408_v49, 0.0  ;;  %v3329_v8 = vpop.f32.mrf.mxu2 }
 0x55d   : > { %v3612_v54 = vpop.f32.mrf.mxu3  ;;  %v3381_v0 = vadd.f32 %v3329_v8, %v3099_v37  ;;  %4313 = vrot.lane.b32.xlu1 %v11198_v52, %s8557_s29 }
 0x55e   : > { %v4469_v48 = vmax.f32 %v4440_v53, %v4441_v55 }
 0x55f   : > { %v3664_v13 = vadd.f32 %v3612_v54, %v3381_v0  ;;  %v11202_v3 = vld [vmem:[#allocation3 + $0x31] sm:$0xff] }
 0x560   : > { %v11204_v47 = vld [vmem:[#allocation3 + $0x30] sm:$0xff]  ;;  %4486 = vst.msk [vmem:[#allocation3 + $0x41] sm:$0xff] %vm384_vm1, %v4469_v48  ;;  %7798 = vmatmul.msk.f32.gmra.mxu2 %vm384_vm1, %v11202_v3 }
 0x561   : > { %v11206_v50 = vld [vmem:[#allocation3 + $0x32] sm:$0xff]  ;;  %7814 = vmatmul.msk.f32.gmra.mxu3 %vm384_vm1, %v11204_v47  ;;  %v3946_v63 = vadd.f32 %v3894_v32, %v3664_v13  ;;  %7932 = vmatmul.msk.f32.gmra.mxu1 %vm384_vm1, %v11204_v47  ;;  %v3903_v53 = vpop.f32.mrf.mxu0 }
 0x562   : > { %7838 = vmatmul.msk.f32.gmra.mxu0 %vm384_vm1, %v11206_v50  ;;  %v14017_v54 = vld [vmem:[#allocation39_spill] sm:$0xff] }
 0x563   : > { %v11219_v14 = vadd.f32 %v4176_v41, %v3946_v63  ;;  %v4185_v30 = vpop.f32.mrf.mxu1 }
 0x564   : > { %v3332_v57 = vpop.f32.mrf.mxu2 }
 0x565   : > { %v3615_v29 = vpop.f32.mrf.mxu3  ;;  %v3382_v38 = vadd.f32 %v3332_v57, %v3100_v21  ;;  %4315 = vrot.lane.b32.xlu2 %v11219_v14, %s8557_s29 }
 0x567   : > { %v3665_v32 = vadd.f32 %v3615_v29, %v3382_v38  ;;  %v11223_v34 = vld [vmem:[#allocation3 + $0x41] sm:$0xff]  ;;  %v4288_v36 = vpop.permute.xlu0 %4287  ;;  %v4292_v29 = vpop.permute.xlu2 %4291 }
 0x568   : > { %v11225_v12 = vld [vmem:[#allocation3 + $0x40] sm:$0xff]  ;;  %7799 = vmatmul.msk.f32.gmra.mxu2 %vm384_vm1, %v11223_v34  ;;  %v4375_v1 = vmax.f32 %v10910_v31, %v4288_v36  ;;  %v4377_v43 = vmax.f32 %v10954_v46, %v4292_v29 }
 0x569   : > { %v11227_v9 = vld [vmem:[#allocation3 + $0x42] sm:$0xff]  ;;  %7815 = vmatmul.msk.f32.gmra.mxu3 %vm384_vm1, %v11225_v12  ;;  %v3947_v41 = vadd.f32 %v3897_v25, %v3665_v32  ;;  %7933 = vmatmul.msk.f32.gmra.mxu1 %vm384_vm1, %v11225_v12  ;;  %v14019_v32 = vld [vmem:[#allocation40_spill] sm:$0xff] }
 0x56a   : > { %7839 = vmatmul.msk.f32.gmra.mxu0 %vm384_vm1, %v11227_v9  ;;  %v4410_v37 = vadd.f32 %v11076_v33, %v4375_v1  ;;  %v14018_v25 = vld [vmem:[#allocation89_spill] sm:$0xff] }
 0x56b   : > { %v11239_v22 = vadd.f32 %v4179_v18, %v3947_v41  ;;  %v3102_v31 = vadd.f32 %v14018_v25, %v14017_v54  ;;  %v4188_v57 = vpop.f32.mrf.mxu1  ;;  %v14020_v41 = vld [vmem:[#allocation91_spill] sm:$0xff]  ;;  %v14022_v54 = vld [vmem:[#allocation96_spill] sm:$0xff] }
 0x56c   : > { %v3335_v44 = vpop.f32.mrf.mxu2  ;;  %v4442_v48 = vmax.f32 %v4410_v37, 0.0  ;;  %v4412_v37 = vadd.f32 %v11076_v33, %v4377_v43  ;;  %v14024_v43 = vld [vmem:[#allocation97_spill] sm:$0xff] }
 0x56d   : > { %v3618_v23 = vpop.f32.mrf.mxu3  ;;  %v3383_v49 = vadd.f32 %v3335_v44, %v3101_v20  ;;  %4317 = vrot.lane.b32.xlu0 %v11239_v22, %s8557_s29 }
 0x56f   : > { %v3666_v51 = vadd.f32 %v3618_v23, %v3383_v49  ;;  %v4290_v10 = vpop.permute.xlu1 %4289 }
 0x570   : > { %v4376_v55 = vmax.f32 %v10925_v61, %v4290_v10 }
 0x571   : > { %v3948_v8 = vadd.f32 %v3900_v42, %v3666_v51  ;;  %v3906_v42 = vpop.f32.mrf.mxu0 }
 0x572   : > { %v4411_v18 = vadd.f32 %v11076_v33, %v4376_v55 }
 0x573   : > { %v11249_v0 = vadd.f32 %v4182_v26, %v3948_v8  ;;  %v3103_v26 = vadd.f32 %v14020_v41, %v14019_v32  ;;  %v4191_v46 = vpop.f32.mrf.mxu1 }
 0x574   : > { %v4443_v13 = vmax.f32 %v4411_v18, 0.0  ;;  %v3338_v63 = vpop.f32.mrf.mxu2  ;;  %v14021_v18 = vld [vmem:[#allocation33_spill] sm:$0xff] }
 0x575   : > { %v3621_v19 = vpop.f32.mrf.mxu3  ;;  %v3384_v4 = vadd.f32 %v3338_v63, %v3102_v31  ;;  %4319 = vrot.lane.b32.xlu1 %v11249_v0, %s8557_s29  ;;  %v4444_v31 = vmax.f32 %v4412_v37, 0.0 }
 0x576   : > { %v4470_v21 = vmax.f32 %v4442_v48, %v4443_v13 }
 0x577   : > { %v3667_v61 = vadd.f32 %v3621_v19, %v3384_v4  ;;  %v4298_v55 = vpop.permute.xlu2 %4297 }
 0x578   : > { %4487 = vst.msk [vmem:[#allocation3 + $0x51] sm:$0xff] %vm384_vm1, %v4470_v21  ;;  %v4380_v48 = vmax.f32 %v11055_v16, %v4298_v55 }
 0x579   : > { %v3949_v38 = vadd.f32 %v3903_v53, %v3667_v61  ;;  %v3909_v21 = vpop.f32.mrf.mxu0 }
 0x57b   : > { %v11256_v36 = vadd.f32 %v4185_v30, %v3949_v38  ;;  %v4194_v41 = vpop.f32.mrf.mxu1 }
 0x57c   : > { %v3341_v28 = vpop.f32.mrf.mxu2 }
 0x57d   : > { %v3624_v20 = vpop.f32.mrf.mxu3  ;;  %v3385_v1 = vadd.f32 %v3341_v28, %v3103_v26  ;;  %4321 = vrot.lane.b32.xlu2 %v11256_v36, %s8557_s29  ;;  %v14023_v26 = vld [vmem:[#allocation34_spill] sm:$0xff] }
 0x57e   : > { %v3105_v28 = vadd.f32 %v14024_v43, %v14023_v26 }
 0x57f   : > { %v3668_v44 = vadd.f32 %v3624_v20, %v3385_v1  ;;  %v4294_v23 = vpop.permute.xlu0 %4293  ;;  %v11261_v49 = vld [vmem:[#allocation3 + $0x51] sm:$0xff] }
 0x580   : > { %v11263_v51 = vld [vmem:[#allocation3 + $0x50] sm:$0xff]  ;;  %v4378_v30 = vmax.f32 %v10988_v40, %v4294_v23  ;;  %7800 = vmatmul.msk.f32.gmra.mxu2 %vm384_vm1, %v11261_v49  ;;  %v3104_v40 = vadd.f32 %v14022_v54, %v14021_v18 }
 0x581   : > { %v11265_v10 = vld [vmem:[#allocation3 + $0x52] sm:$0xff]  ;;  %7816 = vmatmul.msk.f32.gmra.mxu3 %vm384_vm1, %v11263_v51  ;;  %v3950_v53 = vadd.f32 %v3906_v42, %v3668_v44  ;;  %7934 = vmatmul.msk.f32.gmra.mxu1 %vm384_vm1, %v11263_v51  ;;  %v4415_v42 = vadd.f32 %v11076_v33, %v4380_v48  ;;  %v3912_v54 = vpop.f32.mrf.mxu0 }
 0x582   : > { %7840 = vmatmul.msk.f32.gmra.mxu0 %vm384_vm1, %v11265_v10  ;;  %v4413_v8 = vadd.f32 %v11076_v33, %v4378_v30 }
 0x583   : > { %v11280_v25 = vadd.f32 %v4188_v57, %v3950_v53  ;;  %v4447_v1 = vmax.f32 %v4415_v42, 0.0 }
 0x584   : > { %v4445_v13 = vmax.f32 %v4413_v8, 0.0  ;;  %v3344_v63 = vpop.f32.mrf.mxu2 }
 0x585   : > { %v3627_v19 = vpop.f32.mrf.mxu3  ;;  %v3386_v4 = vadd.f32 %v3344_v63, %v3104_v40  ;;  %4323 = vrot.lane.b32.xlu0 %v11280_v25, %s8557_s29  ;;  %v14025_v40 = vld [vmem:[#allocation98_spill] sm:$0xff] }
 0x586   : > { %v4471_v61 = vmax.f32 %v4444_v31, %v4445_v13  ;;  %v3106_v31 = vadd.f32 %v14025_v40, %v10766_v7 }
 0x587   : > { %v3669_v29 = vadd.f32 %v3627_v19, %v3386_v4  ;;  %v4296_v38 = vpop.permute.xlu1 %4295  ;;  %v4197_v4 = vpop.f32.mrf.mxu1 }
 0x588   : > { %4488 = vst.msk [vmem:[#allocation3 + $0x61] sm:$0xff] %vm384_vm1, %v4471_v61  ;;  %v4379_v57 = vmax.f32 %v11019_v27, %v4296_v38 }
 0x589   : > { %v3951_v32 = vadd.f32 %v3909_v21, %v3669_v29  ;;  %v3915_v42 = vpop.f32.mrf.mxu0 }
 0x58a   : > { %v4414_v16 = vadd.f32 %v11076_v33, %v4379_v57 }
 0x58b   : > { %v11291_v20 = vadd.f32 %v4191_v46, %v3951_v32  ;;  %v14026_v32 = vld [vmem:[#allocation99_spill] sm:$0xff] }
 0x58c   : > { %v4446_v44 = vmax.f32 %v4414_v16, 0.0  ;;  %v3347_v23 = vpop.f32.mrf.mxu2  ;;  %v3107_v16 = vadd.f32 %v14026_v32, %v10774_v62 }
 0x58d   : > { %v3630_v37 = vpop.f32.mrf.mxu3  ;;  %v3387_v30 = vadd.f32 %v3347_v23, %v3105_v28  ;;  %4325 = vrot.lane.b32.xlu1 %v11291_v20, %s8557_s29 }
 0x58e   : > { %v4472_v55 = vmax.f32 %v4446_v44, %v4447_v1 }
 0x58f   : > { %v3670_v53 = vadd.f32 %v3630_v37, %v3387_v30  ;;  %v11295_v27 = vld [vmem:[#allocation3 + $0x61] sm:$0xff]  ;;  %v4200_v30 = vpop.f32.mrf.mxu1 }
 0x590   : > { %v11297_v8 = vld [vmem:[#allocation3 + $0x60] sm:$0xff]  ;;  %4489 = vst.msk [vmem:[#allocation3 + $0x71] sm:$0xff] %vm384_vm1, %v4472_v55  ;;  %7801 = vmatmul.msk.f32.gmra.mxu2 %vm384_vm1, %v11295_v27 }
 0x591   : > { %v11299_v18 = vld [vmem:[#allocation3 + $0x62] sm:$0xff]  ;;  %7817 = vmatmul.msk.f32.gmra.mxu3 %vm384_vm1, %v11297_v8  ;;  %v3952_v46 = vadd.f32 %v3912_v54, %v3670_v53  ;;  %7935 = vmatmul.msk.f32.gmra.mxu1 %vm384_vm1, %v11297_v8  ;;  %v3918_v37 = vpop.f32.mrf.mxu0 }
 0x592   : > { %7841 = vmatmul.msk.f32.gmra.mxu0 %vm384_vm1, %v11299_v18 }
 0x593   : > { %v11312_v48 = vadd.f32 %v4194_v41, %v3952_v46  ;;  %v14027_v46 = vld [vmem:[#allocation100_spill] sm:$0xff] }
 0x594   : > { %v3350_v13 = vpop.f32.mrf.mxu2 }
 0x595   : > { %v3633_v63 = vpop.f32.mrf.mxu3  ;;  %v3388_v19 = vadd.f32 %v3350_v13, %v3106_v31  ;;  %4327 = vrot.lane.b32.xlu2 %v11312_v48, %s8557_s29 }
 0x597   : > { %v3671_v21 = vadd.f32 %v3633_v63, %v3388_v19  ;;  %v11316_v61 = vld [vmem:[#allocation3 + $0x71] sm:$0xff]  ;;  %v4300_v57 = vpop.permute.xlu0 %4299 }
 0x598   : > { %v11318_v29 = vld [vmem:[#allocation3 + $0x70] sm:$0xff]  ;;  %7802 = vmatmul.msk.f32.gmra.mxu2 %vm384_vm1, %v11316_v61  ;;  %v4381_v26 = vmax.f32 %v11071_v6, %v4300_v57  ;;  %v3108_v6 = vadd.f32 %v14027_v46, %v10781_v58  ;;  %v4304_v57 = vpop.permute.xlu2 %4303 }
 0x599   : > { %v11320_v38 = vld [vmem:[#allocation3 + $0x72] sm:$0xff]  ;;  %7818 = vmatmul.msk.f32.gmra.mxu3 %vm384_vm1, %v11318_v29  ;;  %v3953_v7 = vadd.f32 %v3915_v42, %v3671_v21  ;;  %7936 = vmatmul.msk.f32.gmra.mxu1 %vm384_vm1, %v11318_v29  ;;  %v4383_v58 = vmax.f32 %v11119_v5, %v4304_v57 }
 0x59a   : > { %7842 = vmatmul.msk.f32.gmra.mxu0 %vm384_vm1, %v11320_v38  ;;  %v4416_v55 = vadd.f32 %v11076_v33, %v4381_v26 }
 0x59b   : > { %v11332_v41 = vadd.f32 %v4197_v4, %v3953_v7  ;;  %v4203_v7 = vpop.f32.mrf.mxu1 }
 0x59c   : > { %v3353_v43 = vpop.f32.mrf.mxu2  ;;  %v4448_v31 = vmax.f32 %v4416_v55, 0.0 }
 0x59d   : > { %v3636_v28 = vpop.f32.mrf.mxu3  ;;  %v3389_v1 = vadd.f32 %v3353_v43, %v3107_v16  ;;  %4329 = vrot.lane.b32.xlu0 %v11332_v41, %s8557_s29 }
 0x59f   : > { %v3672_v44 = vadd.f32 %v3636_v28, %v3389_v1  ;;  %v4302_v23 = vpop.permute.xlu1 %4301 }
 0x5a0   : > { %v4382_v53 = vmax.f32 %v11098_v60, %v4302_v23  ;;  %v3921_v60 = vpop.f32.mrf.mxu0 }
 0x5a1   : > { %v3954_v54 = vadd.f32 %v3918_v37, %v3672_v44  ;;  %v4418_v44 = vadd.f32 %v11076_v33, %v4383_v58 }
 0x5a2   : > { %v4417_v62 = vadd.f32 %v11076_v33, %v4382_v53 }
 0x5a3   : > { %v11342_v40 = vadd.f32 %v4200_v30, %v3954_v54  ;;  %v4450_v30 = vmax.f32 %v4418_v44, 0.0 }
 0x5a4   : > { %v4449_v13 = vmax.f32 %v4417_v62, 0.0  ;;  %v3356_v63 = vpop.f32.mrf.mxu2 }
 0x5a5   : > { %v3639_v19 = vpop.f32.mrf.mxu3  ;;  %v3390_v4 = vadd.f32 %v3356_v63, %v3108_v6  ;;  %4331 = vrot.lane.b32.xlu1 %v11342_v40, %s8557_s29 }
 0x5a6   : > { %v4473_v21 = vmax.f32 %v4448_v31, %v4449_v13 }
 0x5a7   : > { %v3673_v42 = vadd.f32 %v3639_v19, %v3390_v4  ;;  %v4310_v5 = vpop.permute.xlu2 %4309 }
 0x5a8   : > { %4490 = vst.msk [vmem:[#allocation3 + $0x81] sm:$0xff] %vm384_vm1, %v4473_v21  ;;  %v4386_v55 = vmax.f32 %v11163_v59, %v4310_v5 }
 0x5a9   : > { %v3955_v32 = vadd.f32 %v3921_v60, %v3673_v42 }
 0x5aa   : > { %v4421_v62 = vadd.f32 %v11076_v33, %v4386_v55 }
 0x5ab   : > { %v11347_v16 = vadd.f32 %v4203_v7, %v3955_v32 }
 0x5ac   : > { %v4453_v31 = vmax.f32 %v4421_v62, 0.0 }
 0x5ad   : > { %4333 = vrot.lane.b32.xlu2 %v11347_v16, %s8557_s29 }
 0x5af   : > { %v4306_v26 = vpop.permute.xlu0 %4305  ;;  %v11352_v43 = vld [vmem:[#allocation3 + $0x81] sm:$0xff] }
 0x5b0   : > { %v11354_v28 = vld [vmem:[#allocation3 + $0x80] sm:$0xff]  ;;  %v4384_v23 = vmax.f32 %v11145_v35, %v4306_v26  ;;  %7803 = vmatmul.msk.f32.gmra.mxu2 %vm384_vm1, %v11352_v43 }
 0x5b1   : > { %v11356_v1 = vld [vmem:[#allocation3 + $0x82] sm:$0xff]  ;;  %7819 = vmatmul.msk.f32.gmra.mxu3 %vm384_vm1, %v11354_v28  ;;  %7937 = vmatmul.msk.f32.gmra.mxu1 %vm384_vm1, %v11354_v28 }
 0x5b2   : > { %7843 = vmatmul.msk.f32.gmra.mxu0 %vm384_vm1, %v11356_v1  ;;  %v4419_v37 = vadd.f32 %v11076_v33, %v4384_v23 }
 0x5b4   : > { %v4451_v53 = vmax.f32 %v4419_v37, 0.0 }
 0x5b6   : > { %v4474_v35 = vmax.f32 %v4450_v30, %v4451_v53 }
 0x5b7   : > { %v4308_v54 = vpop.permute.xlu1 %4307 }
 0x5b8   : > { %4491 = vst.msk [vmem:[#allocation3 + $0x91] sm:$0xff] %vm384_vm1, %v4474_v35  ;;  %v4385_v46 = vmax.f32 %v11156_v15, %v4308_v54 }
 0x5ba   : > { %v4420_v6 = vadd.f32 %v11076_v33, %v4385_v46 }
 0x5bc   : > { %v4452_v13 = vmax.f32 %v4420_v6, 0.0 }
 0x5be   : > { %v4475_v63 = vmax.f32 %v4452_v13, %v4453_v31 }
 0x5bf   : > { %v11374_v19 = vld [vmem:[#allocation3 + $0x91] sm:$0xff]  ;;  %v4316_v37 = vpop.permute.xlu2 %4315 }
 0x5c0   : > { %v11376_v4 = vld [vmem:[#allocation3 + $0x90] sm:$0xff]  ;;  %4492 = vst.msk [vmem:[#allocation3 + $0xa1] sm:$0xff] %vm384_vm1, %v4475_v63  ;;  %7804 = vmatmul.msk.f32.gmra.mxu2 %vm384_vm1, %v11374_v19  ;;  %v4389_v30 = vmax.f32 %v11219_v14, %v4316_v37 }
 0x5c1   : > { %v11378_v21 = vld [vmem:[#allocation3 + $0x92] sm:$0xff]  ;;  %7820 = vmatmul.msk.f32.gmra.mxu3 %vm384_vm1, %v11376_v4  ;;  %7938 = vmatmul.msk.f32.gmra.mxu1 %vm384_vm1, %v11376_v4 }
 0x5c2   : > { %7844 = vmatmul.msk.f32.gmra.mxu0 %vm384_vm1, %v11378_v21  ;;  %v4424_v54 = vadd.f32 %v11076_v33, %v4389_v30 }
 0x5c4   : > { %v4456_v46 = vmax.f32 %v4424_v54, 0.0 }
 0x5c7   : > { %v11389_v15 = vld [vmem:[#allocation3 + $0xa1] sm:$0xff]  ;;  %v4312_v60 = vpop.permute.xlu0 %4311 }
 0x5c8   : > { %v11391_v59 = vld [vmem:[#allocation3 + $0xa0] sm:$0xff]  ;;  %7805 = vmatmul.msk.f32.gmra.mxu2 %vm384_vm1, %v11389_v15  ;;  %v4387_v7 = vmax.f32 %v11187_v17, %v4312_v60 }
 0x5c9   : > { %v11393_v42 = vld [vmem:[#allocation3 + $0xa2] sm:$0xff]  ;;  %7821 = vmatmul.msk.f32.gmra.mxu3 %vm384_vm1, %v11391_v59  ;;  %7939 = vmatmul.msk.f32.gmra.mxu1 %vm384_vm1, %v11391_v59 }
 0x5ca   : > { %7845 = vmatmul.msk.f32.gmra.mxu0 %vm384_vm1, %v11393_v42  ;;  %v4422_v32 = vadd.f32 %v11076_v33, %v4387_v7 }
 0x5cc   : > { %v4454_v44 = vmax.f32 %v4422_v32, 0.0 }
 0x5cf   : > { %v4314_v57 = vpop.permute.xlu1 %4313 }
 0x5d0   : > { %v4388_v58 = vmax.f32 %v11198_v52, %v4314_v57 }
 0x5d2   : > { %v4423_v26 = vadd.f32 %v11076_v33, %v4388_v58 }
 0x5d4   : > { %v4455_v23 = vmax.f32 %v4423_v26, 0.0 }
 0x5d6   : > { %v4476_v5 = vmax.f32 %v4454_v44, %v4455_v23 }
 0x5d7   : > { %v4322_v62 = vpop.permute.xlu2 %4321 }
 0x5d8   : > { %4493 = vst.msk [vmem:[#allocation3 + $0xb1] sm:$0xff] %vm384_vm1, %v4476_v5  ;;  %v4392_v6 = vmax.f32 %v11256_v36, %v4322_v62  ;;  %v7858_v62 = vld [vmem:[%s13793_s5 + $0xf8] sm:$0xff] }
 0x5d9   : > { %5009 = vmatpush.msra.mxu2 %v7858_v62  ;;  %v7877_v62 = vld [vmem:[%s13793_s5 + $0x110] sm:$0xff] }
 0x5da   : > { %v4427_v63 = vadd.f32 %v11076_v33, %v4392_v6  ;;  %v7905_v6 = vld [vmem:[%s13793_s5 + $0x170] sm:$0xff] }
 0x5dc   : > { %v4459_v57 = vmax.f32 %v4427_v63, 0.0  ;;  %v7904_v63 = vld [vmem:[%s13793_s5 + $0x168] sm:$0xff] }
 0x5df   : > { %v4318_v55 = vpop.permute.xlu0 %4317  ;;  %v11409_v53 = vld [vmem:[#allocation3 + $0xb1] sm:$0xff] }
 0x5e0   : > { %v11411_v35 = vld [vmem:[#allocation3 + $0xb0] sm:$0xff]  ;;  %v4390_v52 = vmax.f32 %v11239_v22, %v4318_v55  ;;  %7806 = vmatmul.msk.f32.gmra.mxu2 %vm384_vm1, %v11409_v53 }
 0x5e1   : > { %v11413_v17 = vld [vmem:[#allocation3 + $0xb2] sm:$0xff]  ;;  %7822 = vmatmul.msk.f32.gmra.mxu3 %vm384_vm1, %v11411_v35  ;;  %7940 = vmatmul.msk.f32.gmra.mxu1 %vm384_vm1, %v11411_v35 }
 0x5e2   : > { %7846 = vmatmul.msk.f32.gmra.mxu0 %vm384_vm1, %v11413_v17  ;;  %v4425_v14 = vadd.f32 %v11076_v33, %v4390_v52 }
 0x5e4   : > { %v4457_v31 = vmax.f32 %v4425_v14, 0.0  ;;  %v7882_v14 = vld [vmem:[%s13793_s5 + $0x138] sm:$0xff] }
 0x5e5   : > { %5163 = vmatpush.msra.mxu3 %v7882_v14 }
 0x5e6   : > { %v4477_v22 = vmax.f32 %v4456_v46, %v4457_v31  ;;  %v7906_v46 = vld [vmem:[%s13793_s5 + $0x178] sm:$0xff] }
 0x5e7   : > { %v4320_v13 = vpop.permute.xlu1 %4319  ;;  %5317 = vmatpush.msrb.mxu0 %v7906_v46  ;;  %v7901_v46 = vld [vmem:[%s13793_s5 + $0x150] sm:$0xff] }
 0x5e8   : > { %4494 = vst.msk [vmem:[#allocation3 + $0xc1] sm:$0xff] %vm384_vm1, %v4477_v22  ;;  %v4391_v60 = vmax.f32 %v11249_v0, %v4320_v13  ;;  %v7856_v22 = vld [vmem:[%s13793_s5 + $0xe8] sm:$0xff] }
 0x5e9   : > { %v7880_v13 = vld [vmem:[%s13793_s5 + $0x128] sm:$0xff]  ;;  %5318 = vmatpush.msrb.mxu0 %v7905_v6 }
 0x5ea   : > { %v4426_v7 = vadd.f32 %v11076_v33, %v4391_v60  ;;  %v7900_v6 = vld [vmem:[%s13793_s5 + $0x148] sm:$0xff] }
 0x5eb   : > { %5319 = vmatpush.msrb.mxu0 %v7904_v63  ;;  %v7899_v63 = vld [vmem:[%s13793_s5 + $0x140] sm:$0xff] }
 0x5ec   : > { %v4458_v32 = vmax.f32 %v4426_v7, 0.0 }
 0x5ee   : > { %v4478_v58 = vmax.f32 %v4458_v32, %v4459_v57  ;;  %v7855_v57 = vld [vmem:[%s13793_s5 + $0xe0] sm:$0xff] }
 0x5ef   : > { %v11431_v26 = vld [vmem:[#allocation3 + $0xc1] sm:$0xff]  ;;  %v4328_v14 = vpop.permute.xlu2 %4327 }
 0x5f0   : > { %v11433_v44 = vld [vmem:[#allocation3 + $0xc0] sm:$0xff]  ;;  %4495 = vst.msk [vmem:[#allocation3 + $0xd1] sm:$0xff] %vm384_vm1, %v4478_v58  ;;  %7807 = vmatmul.msk.f32.gmra.mxu2 %vm384_vm1, %v11431_v26 }
 0x5f1   : > { %v11435_v23 = vld [vmem:[#allocation3 + $0xc2] sm:$0xff]  ;;  %7823 = vmatmul.msk.f32.gmra.mxu3 %vm384_vm1, %v11433_v44  ;;  %7941 = vmatmul.msk.f32.gmra.mxu1 %vm384_vm1, %v11433_v44 }
 0x5f2   : > { %7847 = vmatmul.msk.f32.gmra.mxu0 %vm384_vm1, %v11435_v23  ;;  %v7879_v32 = vld [vmem:[%s13793_s5 + $0x120] sm:$0xff] }
 0x5f3   : > { %v7903_v58 = vld [vmem:[%s13793_s5 + $0x160] sm:$0xff] }
 0x5f4   : > { %5320 = vmatpush.msrb.mxu0 %v7903_v58 }
 0x5f7   : > { %v11446_v0 = vld [vmem:[#allocation3 + $0xd1] sm:$0xff]  ;;  %v4324_v37 = vpop.permute.xlu0 %4323 }
 0x5f8   : > { %v11448_v36 = vld [vmem:[#allocation3 + $0xd0] sm:$0xff]  ;;  %7808 = vmatmul.msk.f32.gmra.mxu2 %vm384_vm1, %v11446_v0  ;;  %v4393_v30 = vmax.f32 %v11280_v25, %v4324_v37 }
 0x5f9   : > { %v11450_v5 = vld [vmem:[#allocation3 + $0xd2] sm:$0xff]  ;;  %7824 = vmatmul.msk.f32.gmra.mxu3 %vm384_vm1, %v11448_v36  ;;  %7942 = vmatmul.msk.f32.gmra.mxu1 %vm384_vm1, %v11448_v36 }
 0x5fa   : > { %7848 = vmatmul.msk.f32.gmra.mxu0 %vm384_vm1, %v11450_v5  ;;  %v4428_v54 = vadd.f32 %v11076_v33, %v4393_v30  ;;  %v7857_v25 = vld [vmem:[%s13793_s5 + $0xf0] sm:$0xff]  ;;  %v7854_v30 = vld [vmem:[%s13793_s5 + $0xd8] sm:$0xff] }
 0x5fb   : > { %5010 = vmatpush.msra.mxu2 %v7857_v25  ;;  %v7852_v25 = vld [vmem:[%s13793_s5 + $0xc8] sm:$0xff] }
 0x5fc   : > { %v4460_v60 = vmax.f32 %v4428_v54, 0.0  ;;  %v7902_v54 = vld [vmem:[%s13793_s5 + $0x158] sm:$0xff] }
 0x5fd   : > { %5011 = vmatpush.msra.mxu2 %v7856_v22  ;;  %5321 = vmatpush.msrb.mxu0 %v7902_v54  ;;  %v7851_v22 = vld [vmem:[%s13793_s5 + $0xc0] sm:$0xff] }
 0x5ff   : > { %v4326_v55 = vpop.permute.xlu1 %4325  ;;  %5012 = vmatpush.msra.mxu2 %v7855_v57  ;;  %5322 = vmatpush.msrb.mxu0 %v7901_v46 }
 0x600   : > { %v4394_v52 = vmax.f32 %v11291_v20, %v4326_v55  ;;  %v7881_v20 = vld [vmem:[%s13793_s5 + $0x130] sm:$0xff]  ;;  %v7878_v55 = vld [vmem:[%s13793_s5 + $0x118] sm:$0xff] }
 0x601   : > { %5164 = vmatpush.msra.mxu3 %v7881_v20  ;;  %5013 = vmatpush.msra.mxu2 %v7854_v30  ;;  %v7876_v20 = vld [vmem:[%s13793_s5 + $0x108] sm:$0xff] }
 0x602   : > { %v4429_v31 = vadd.f32 %v11076_v33, %v4394_v52  ;;  %v7853_v52 = vld [vmem:[%s13793_s5 + $0xd0] sm:$0xff]  ;;  %5323 = vmatpush.msrb.mxu0 %v7900_v6 }
 0x603   : > { %5165 = vmatpush.msra.mxu3 %v7880_v13  ;;  %5014 = vmatpush.msra.mxu2 %v7853_v52  ;;  %v7875_v13 = vld [vmem:[%s13793_s5 + $0x100] sm:$0xff] }
 0x604   : > { %v4461_v7 = vmax.f32 %v4429_v31, 0.0  ;;  %v4395_v31 = vmax.f32 %v11312_v48, %v4328_v14  ;;  %5324 = vmatpush.msrb.mxu0 %v7899_v63 }
 0x605   : > { %5166 = vmatpush.msra.mxu3 %v7879_v32  ;;  %5015 = vmatpush.msra.mxu2 %v7852_v25 }
 0x606   : > { %v4479_v37 = vmax.f32 %v4460_v60, %v4461_v7  ;;  %v4430_v32 = vadd.f32 %v11076_v33, %v4395_v31 }
 0x607   : > { %5167 = vmatpush.msra.mxu3 %v7878_v55  ;;  %5016 = vmatpush.msra.mxu2 %v7851_v22 }
 0x608   : > { %4496 = vst.msk [vmem:[#allocation3 + $0xe1] sm:$0xff] %vm384_vm1, %v4479_v37  ;;  %v4334_v37 = vpop.permute.xlu2 %4333  ;;  %v4462_v55 = vmax.f32 %v4430_v32, 0.0 }
 0x609   : > { %5168 = vmatpush.msra.mxu3 %v7877_v62  ;;  %v4398_v54 = vmax.f32 %v11347_v16, %v4334_v37 }
 0x60b   : > { %5169 = vmatpush.msra.mxu3 %v7876_v20  ;;  %v4433_v14 = vadd.f32 %v11076_v33, %v4398_v54  ;;  %v11560_v20 = vpop.f32.mrf.mxu0 }
 0x60d   : > { %5170 = vmatpush.msra.mxu3 %v7875_v13  ;;  %v4465_v6 = vmax.f32 %v4433_v14, 0.0 }
 0x60f   : > { %v4330_v60 = vpop.permute.xlu0 %4329  ;;  %v11538_v7 = vld [vmem:[#allocation3 + $0xe1] sm:$0xff] }
 0x610   : > { %v11540_v48 = vld [vmem:[#allocation3 + $0xe0] sm:$0xff]  ;;  %v4396_v58 = vmax.f32 %v11332_v41, %v4330_v60  ;;  %7809 = vmatmul.msk.f32.gmra.mxu2 %vm384_vm1, %v11538_v7 }
 0x611   : > { %v11542_v57 = vld [vmem:[#allocation3 + $0xe2] sm:$0xff]  ;;  %7825 = vmatmul.msk.f32.gmra.mxu3 %vm384_vm1, %v11540_v48  ;;  %7943 = vmatmul.msk.f32.gmra.mxu1 %vm384_vm1, %v11540_v48 }
 0x612   : > { %7849 = vmatmul.msk.f32.gmra.mxu0 %vm384_vm1, %v11542_v57  ;;  %v4431_v30 = vadd.f32 %v11076_v33, %v4396_v58 }
 0x613   : > { %v11581_v60 = vpop.f32.mrf.mxu0 }
 0x614   : > { %v4463_v41 = vmax.f32 %v4431_v30, 0.0 }
 0x616   : > { %v4480_v52 = vmax.f32 %v4462_v55, %v4463_v41 }
 0x617   : > { %v4332_v62 = vpop.permute.xlu1 %4331 }
 0x618   : > { %4497 = vst.msk [vmem:[#allocation3 + $0xf1] sm:$0xff] %vm384_vm1, %v4480_v52  ;;  %v4397_v46 = vmax.f32 %v11342_v40, %v4332_v62  ;;  %v11575_v40 = vpop.f32.mrf.mxu3 }
 0x61a   : > { %v4432_v25 = vadd.f32 %v11076_v33, %v4397_v46  ;;  %v11573_v33 = vpop.f32.mrf.mxu2 }
 0x61b   : > { %v11597_v30 = vpop.f32.mrf.mxu0 }
 0x61c   : > { %v4464_v31 = vmax.f32 %v4432_v25, 0.0  ;;  %v7978_v25 = vld [vmem:[%s13793_s5 + $0x238] sm:$0xff] }
 0x61d   : > { %5780 = vmatpush.msrb.mxu3 %v7978_v25  ;;  %v7975_v25 = vld [vmem:[%s13793_s5 + $0x220] sm:$0xff] }
 0x61e   : > { %v4481_v22 = vmax.f32 %v4464_v31, %v4465_v6  ;;  %v7977_v6 = vld [vmem:[%s13793_s5 + $0x230] sm:$0xff] }
 0x61f   : > { %v11562_v13 = vld [vmem:[#allocation3 + $0xf1] sm:$0xff]  ;;  %5781 = vmatpush.msrb.mxu3 %v7977_v6 }
 0x620   : > { %v11564_v63 = vld [vmem:[#allocation3 + $0xf0] sm:$0xff]  ;;  %4498 = vst.msk [vmem:[#allocation3 + $0x101] sm:$0xff] %vm384_vm1, %v4481_v22  ;;  %7810 = vmatmul.msk.f32.gmra.mxu2 %vm384_vm1, %v11562_v13  ;;  %v11595_v37 = vpop.f32.mrf.mxu3  ;;  %v7952_v22 = vld [vmem:[%s13793_s5 + $0x1e8] sm:$0xff] }
 0x621   : > { %v11566_v16 = vld [vmem:[#allocation3 + $0xf2] sm:$0xff]  ;;  %7826 = vmatmul.msk.f32.gmra.mxu3 %vm384_vm1, %v11564_v63  ;;  %7944 = vmatmul.msk.f32.gmra.mxu1 %vm384_vm1, %v11564_v63 }
 0x622   : > { %7850 = vmatmul.msk.f32.gmra.mxu0 %vm384_vm1, %v11566_v16  ;;  %v11593_v58 = vpop.f32.mrf.mxu2 }
 0x627   : > { %v11583_v32 = vld [vmem:[#allocation3 + $0x100] sm:$0xff] }
 0x628   : > { %7859 = vmatmul.msk.f32.vlgmr.msra.gmra.mxu2 %vm384_vm1, %v11131_v11  ;;  %v11607_v11 = vpop.f32.mrf.mxu3 }
 0x629   : > { %7883 = vmatmul.msk.f32.vlgmr.msra.gmra.mxu3 %vm384_vm1, %v11129_v2  ;;  %7945 = vmatmul.msk.f32.gmra.mxu1 %vm384_vm1, %v11583_v32 }
 0x62a   : > { %7907 = vmatmul.msk.f32.vlgmr.msrb.gmra.mxu0 %vm384_vm1, %v11133_v56  ;;  %v11605_v2 = vpop.f32.mrf.mxu2  ;;  %v11609_v56 = vpop.f32.mrf.mxu0 }
 0x630   : > { %7860 = vmatmul.msk.f32.gmra.mxu2 %vm384_vm1, %v11170_v39 }
 0x631   : > { %7884 = vmatmul.msk.f32.gmra.mxu3 %vm384_vm1, %v11168_v24  ;;  %v11619_v24 = vpop.f32.mrf.mxu3 }
 0x632   : > { %7908 = vmatmul.msk.f32.gmra.mxu0 %vm384_vm1, %v11172_v45  ;;  %v11617_v39 = vpop.f32.mrf.mxu2  ;;  %v11621_v45 = vpop.f32.mrf.mxu0 }
 0x638   : > { %7861 = vmatmul.msk.f32.gmra.mxu2 %vm384_vm1, %v11204_v47 }
 0x639   : > { %7885 = vmatmul.msk.f32.gmra.mxu3 %vm384_vm1, %v11202_v3  ;;  %v11631_v3 = vpop.f32.mrf.mxu3 }
 0x63a   : > { %7909 = vmatmul.msk.f32.gmra.mxu0 %vm384_vm1, %v11206_v50  ;;  %v11629_v47 = vpop.f32.mrf.mxu2  ;;  %v11633_v50 = vpop.f32.mrf.mxu0 }
 0x640   : > { %7862 = vmatmul.msk.f32.gmra.mxu2 %vm384_vm1, %v11225_v12 }
 0x641   : > { %7886 = vmatmul.msk.f32.gmra.mxu3 %vm384_vm1, %v11223_v34  ;;  %v11643_v34 = vpop.f32.mrf.mxu3 }
 0x642   : > { %7910 = vmatmul.msk.f32.gmra.mxu0 %vm384_vm1, %v11227_v9  ;;  %v11641_v12 = vpop.f32.mrf.mxu2  ;;  %v11645_v9 = vpop.f32.mrf.mxu0 }
 0x648   : > { %7863 = vmatmul.msk.f32.gmra.mxu2 %vm384_vm1, %v11263_v51 }
 0x649   : > { %7887 = vmatmul.msk.f32.gmra.mxu3 %vm384_vm1, %v11261_v49  ;;  %v11655_v49 = vpop.f32.mrf.mxu3 }
 0x64a   : > { %7911 = vmatmul.msk.f32.gmra.mxu0 %vm384_vm1, %v11265_v10  ;;  %v11653_v51 = vpop.f32.mrf.mxu2  ;;  %v11663_v10 = vpop.f32.mrf.mxu0 }
 0x650   : > { %7864 = vmatmul.msk.f32.gmra.mxu2 %vm384_vm1, %v11297_v8 }
 0x651   : > { %7888 = vmatmul.msk.f32.gmra.mxu3 %vm384_vm1, %v11295_v27  ;;  %v11667_v55 = vpop.f32.mrf.mxu3 }
 0x652   : > { %7912 = vmatmul.msk.f32.gmra.mxu0 %vm384_vm1, %v11299_v18  ;;  %v11665_v8 = vpop.f32.mrf.mxu2 }
 0x658   : > { %7865 = vmatmul.msk.f32.gmra.mxu2 %vm384_vm1, %v11318_v29  ;;  %v11675_v29 = vpop.f32.mrf.mxu0 }
 0x659   : > { %7889 = vmatmul.msk.f32.gmra.mxu3 %vm384_vm1, %v11316_v61  ;;  %v11679_v41 = vpop.f32.mrf.mxu3 }
 0x65a   : > { %7913 = vmatmul.msk.f32.gmra.mxu0 %vm384_vm1, %v11320_v38  ;;  %v11677_v54 = vpop.f32.mrf.mxu2 }
 0x660   : > { %7866 = vmatmul.msk.f32.gmra.mxu2 %vm384_vm1, %v11354_v28  ;;  %v11687_v28 = vpop.f32.mrf.mxu0 }
 0x661   : > { %7890 = vmatmul.msk.f32.gmra.mxu3 %vm384_vm1, %v11352_v43  ;;  %v11691_v62 = vpop.f32.mrf.mxu3 }
 0x662   : > { %7914 = vmatmul.msk.f32.gmra.mxu0 %vm384_vm1, %v11356_v1  ;;  %v11689_v52 = vpop.f32.mrf.mxu2 }
 0x668   : > { %7867 = vmatmul.msk.f32.gmra.mxu2 %vm384_vm1, %v11376_v4  ;;  %v11699_v4 = vpop.f32.mrf.mxu0 }
 0x669   : > { %7891 = vmatmul.msk.f32.gmra.mxu3 %vm384_vm1, %v11374_v19  ;;  %14028 = vst [vmem:[#allocation44_spill] sm:$0xff] %v11699_v4  ;;  %v11707_v46 = vpop.f32.mrf.mxu3  ;;  %v7976_v4 = vld [vmem:[%s13793_s5 + $0x228] sm:$0xff] }
 0x66a   : > { %7915 = vmatmul.msk.f32.gmra.mxu0 %vm384_vm1, %v11378_v21  ;;  %v11705_v14 = vpop.f32.mrf.mxu2  ;;  %14030 = vst [vmem:[#allocation37_spill] sm:$0xff] %v11707_v46  ;;  %5782 = vmatpush.msrb.mxu3 %v7976_v4  ;;  %v7950_v4 = vld [vmem:[%s13793_s5 + $0x1d8] sm:$0xff] }
 0x66b   : > { %14029 = vst [vmem:[#allocation45_spill] sm:$0xff] %v11705_v14 }
 0x66c   : > { %5783 = vmatpush.msrb.mxu3 %v7975_v25  ;;  %v7972_v25 = vld [vmem:[%s13793_s5 + $0x208] sm:$0xff] }
 0x670   : > { %7868 = vmatmul.msk.f32.gmra.mxu2 %vm384_vm1, %v11391_v59  ;;  %v7954_v59 = vld [vmem:[%s13793_s5 + $0x1f8] sm:$0xff]  ;;  %v11723_v31 = vpop.f32.mrf.mxu0 }
 0x671   : > { %7892 = vmatmul.msk.f32.gmra.mxu3 %vm384_vm1, %v11389_v15  ;;  %5626 = vmatpush.msrb.mxu2 %v7954_v59  ;;  %14031 = vst [vmem:[#allocation38_spill] sm:$0xff] %v11723_v31  ;;  %v7951_v59 = vld [vmem:[%s13793_s5 + $0x1e0] sm:$0xff]  ;;  %v11743_v6 = vpop.f32.mrf.mxu3  ;;  %v7949_v31 = vld [vmem:[%s13793_s5 + $0x1d0] sm:$0xff] }
 0x672   : > { %7916 = vmatmul.msk.f32.gmra.mxu0 %vm384_vm1, %v11393_v42  ;;  %14033 = vst [vmem:[#allocation50_spill] sm:$0xff] %v11743_v6  ;;  %v7948_v6 = vld [vmem:[%s13793_s5 + $0x1c8] sm:$0xff] }
 0x678   : > { %7869 = vmatmul.msk.f32.gmra.mxu2 %vm384_vm1, %v11411_v35  ;;  %v7953_v35 = vld [vmem:[%s13793_s5 + $0x1f0] sm:$0xff] }
 0x679   : > { %7893 = vmatmul.msk.f32.gmra.mxu3 %vm384_vm1, %v11409_v53  ;;  %5627 = vmatpush.msrb.mxu2 %v7953_v35  ;;  %v11741_v35 = vpop.f32.mrf.mxu2 }
 0x67a   : > { %7917 = vmatmul.msk.f32.gmra.mxu0 %vm384_vm1, %v11413_v17  ;;  %14032 = vst [vmem:[#allocation49_spill] sm:$0xff] %v11741_v35 }
 0x67b   : > { %5628 = vmatpush.msrb.mxu2 %v7952_v22  ;;  %v7974_v22 = vld [vmem:[%s13793_s5 + $0x218] sm:$0xff] }
 0x67c   : > { %5784 = vmatpush.msrb.mxu3 %v7974_v22 }
 0x67d   : > { %5629 = vmatpush.msrb.mxu2 %v7951_v59  ;;  %v7973_v59 = vld [vmem:[%s13793_s5 + $0x210] sm:$0xff] }
 0x67e   : > { %5785 = vmatpush.msrb.mxu3 %v7973_v59  ;;  %v11779_v59 = vpop.f32.mrf.mxu3 }
 0x67f   : > { %5630 = vmatpush.msrb.mxu2 %v7950_v4  ;;  %v7947_v4 = vld [vmem:[%s13793_s5 + $0x1c0] sm:$0xff]  ;;  %14036 = vst [vmem:[#allocation54_spill] sm:$0xff] %v11779_v59 }
 0x680   : > { %7870 = vmatmul.msk.f32.gmra.mxu2 %vm384_vm1, %v11433_v44  ;;  %v11753_v44 = vpop.f32.mrf.mxu0  ;;  %5786 = vmatpush.msrb.mxu3 %v7972_v25 }
 0x681   : > { %7894 = vmatmul.msk.f32.gmra.mxu3 %vm384_vm1, %v11431_v26  ;;  %14034 = vst [vmem:[#allocation42_spill] sm:$0xff] %v11753_v44  ;;  %5631 = vmatpush.msrb.mxu2 %v7949_v31  ;;  %v7971_v31 = vld [vmem:[%s13793_s5 + $0x200] sm:$0xff]  ;;  %v11777_v22 = vpop.f32.mrf.mxu2 }
 0x682   : > { %7918 = vmatmul.msk.f32.gmra.mxu0 %vm384_vm1, %v11435_v23  ;;  %14035 = vst [vmem:[#allocation43_spill] sm:$0xff] %v11777_v22  ;;  %5787 = vmatpush.msrb.mxu3 %v7971_v31  ;;  %v5699_v22 = vld [vmem:[#allocation3 + $0x22] sm:$0xff] }
 0x683   : > { %5632 = vmatpush.msrb.mxu2 %v7948_v6 }
 0x685   : > { %5633 = vmatpush.msrb.mxu2 %v7947_v4 }
 0x686   : > { %v11794_v59 = vpop.f32.mrf.mxu3 }
 0x687   : > { %14039 = vst [vmem:[#allocation48_spill] sm:$0xff] %v11794_v59 }
 0x688   : > { %7871 = vmatmul.msk.f32.gmra.mxu2 %vm384_vm1, %v11448_v36  ;;  %v11783_v6 = vpop.f32.mrf.mxu0  ;;  %v5406_v36 = vld [vmem:[#allocation3 + $0x110] sm:$0xff] }
 0x689   : > { %7895 = vmatmul.msk.f32.gmra.mxu3 %vm384_vm1, %v11446_v0  ;;  %14037 = vst [vmem:[#allocation55_spill] sm:$0xff] %v11783_v6  ;;  %7946 = vmatmul.msk.f32.gmra.mxu1 %vm384_vm1, %v5406_v36  ;;  %v11792_v44 = vpop.f32.mrf.mxu2  ;;  %v11810_v36 = vld [vmem:[#allocation3 + $0x101] sm:$0xff] }
 0x68a   : > { %7919 = vmatmul.msk.f32.gmra.mxu0 %vm384_vm1, %v11450_v5  ;;  %14038 = vst [vmem:[#allocation47_spill] sm:$0xff] %v11792_v44 }
 0x690   : > { %7872 = vmatmul.msk.f32.gmra.mxu2 %vm384_vm1, %v11540_v48  ;;  %v11796_v25 = vpop.f32.mrf.mxu0 }
 0x691   : > { %7896 = vmatmul.msk.f32.gmra.mxu3 %vm384_vm1, %v11538_v7  ;;  %14040 = vst [vmem:[#allocation58_spill] sm:$0xff] %v11796_v25  ;;  %v4727_v25 = vadd.f32 %v11575_v40, %v11573_v33  ;;  %v5546_v40 = vld [vmem:[#allocation3 + $0x31] sm:$0xff] }
 0x692   : > { %7920 = vmatmul.msk.f32.gmra.mxu0 %vm384_vm1, %v11542_v57 }
 0x693   : > { %v11804_v48 = vpop.f32.mrf.mxu2 }
 0x694   : > { %14041 = vst [vmem:[#allocation59_spill] sm:$0xff] %v11804_v48  ;;  %v11806_v4 = vpop.f32.mrf.mxu3  ;;  %v5545_v48 = vld [vmem:[#allocation3 + $0x21] sm:$0xff] }
 0x695   : > { %14042 = vst [vmem:[#allocation52_spill] sm:$0xff] %v11806_v4 }
 0x698   : > { %7873 = vmatmul.msk.f32.gmra.mxu2 %vm384_vm1, %v11564_v63  ;;  %v11816_v63 = vld [vmem:[#allocation3 + $0x102] sm:$0xff] }
 0x699   : > { %7897 = vmatmul.msk.f32.gmra.mxu3 %vm384_vm1, %v11562_v13 }
 0x69a   : > { %7921 = vmatmul.msk.f32.gmra.mxu0 %vm384_vm1, %v11566_v16 }
 0x69f   : > { %v11808_v31 = vpop.f32.mrf.mxu0 }
 0x6a0   : > { %14043 = vst [vmem:[#allocation53_spill] sm:$0xff] %v11808_v31  ;;  %7874 = vmatmul.msk.f32.gmra.mxu2 %vm384_vm1, %v11583_v32  ;;  %v4912_v32 = vadd.f32 %v11560_v20, %v4727_v25 }
 0x6a1   : > { %7898 = vmatmul.msk.f32.gmra.mxu3 %vm384_vm1, %v11810_v36 }
 0x6a2   : > { %7922 = vmatmul.msk.f32.gmra.mxu0 %vm384_vm1, %v11816_v63 }
 0x6a3   : > { %v4658_v6 = vpop.f32.mrf.mxu2 }
 0x6a4   : > { %v4771_v59 = vpop.f32.mrf.mxu3 }
 0x6a5   : > { %v11820_v44 = vadd.f32 %v4771_v59, %v4658_v6  ;;  %v4730_v59 = vadd.f32 %v11595_v37, %v11593_v58  ;;  %v11831_v6 = vpop.f32.mrf.mxu1  ;;  %v4733_v58 = vadd.f32 %v11607_v11, %v11605_v2  ;;  %v4736_v2 = vadd.f32 %v11619_v24, %v11617_v39 }
 0x6a6   : > { %v4739_v39 = vadd.f32 %v11631_v3, %v11629_v47 }
 0x6a7   : > { %v11824_v4 = vpop.f32.mrf.mxu0  ;;  %v4913_v20 = vadd.f32 %v11581_v60, %v4730_v59  ;;  %v4914_v60 = vadd.f32 %v11597_v30, %v4733_v58  ;;  %v4915_v30 = vadd.f32 %v11609_v56, %v4736_v2 }
 0x6a8   : > { %14044 = vst [vmem:[#allocation63_spill] sm:$0xff] %v11824_v4  ;;  %7955 = vmatmul.msk.f32.vlgmr.msrb.gmra.mxu2 %vm384_vm1, %v5545_v48  ;;  %v5700_v4 = vld [vmem:[#allocation3 + $0x32] sm:$0xff]  ;;  %v5547_v48 = vld [vmem:[#allocation3 + $0x41] sm:$0xff] }
 0x6a9   : > { %7979 = vmatmul.msk.f32.vlgmr.msrb.gmra.mxu3 %vm384_vm1, %v5699_v22 }
 0x6ab   : > { %v5018_v35 = vpop.f32.mrf.mxu2 }
 0x6ac   : > { %v5172_v46 = vpop.f32.mrf.mxu3  ;;  %v5066_v14 = vadd.f32 %v5018_v35, %v4912_v32  ;;  %v5701_v32 = vld [vmem:[#allocation3 + $0x42] sm:$0xff] }
 0x6ad   : > { %v11842_v37 = vpop.f32.mrf.mxu1 }
 0x6ae   : > { %v11833_v31 = vadd.f32 %v5172_v46, %v5066_v14 }
 0x6af   : > { %v11835_v33 = vpop.f32.mrf.mxu0 }
 0x6b0   : > { %7956 = vmatmul.msk.f32.gmra.mxu2 %vm384_vm1, %v5546_v40 }
 0x6b1   : > { %7980 = vmatmul.msk.f32.gmra.mxu3 %vm384_vm1, %v5700_v4 }
 0x6b3   : > { %v5021_v22 = vpop.f32.mrf.mxu2 }
 0x6b4   : > { %v5175_v25 = vpop.f32.mrf.mxu3  ;;  %v5067_v35 = vadd.f32 %v5021_v22, %v4913_v20  ;;  %v5548_v22 = vld [vmem:[#allocation3 + $0x51] sm:$0xff] }
 0x6b6   : > { %v11844_v14 = vadd.f32 %v5175_v25, %v5067_v35  ;;  %v5702_v25 = vld [vmem:[#allocation3 + $0x52] sm:$0xff]  ;;  %v11857_v35 = vpop.f32.mrf.mxu1 }
 0x6b7   : > { %v11846_v46 = vpop.f32.mrf.mxu0 }
 0x6b8   : > { %7957 = vmatmul.msk.f32.gmra.mxu2 %vm384_vm1, %v5547_v48 }
 0x6b9   : > { %7981 = vmatmul.msk.f32.gmra.mxu3 %vm384_vm1, %v5701_v32 }
 0x6bb   : > { %v5024_v4 = vpop.f32.mrf.mxu2 }
 0x6bc   : > { %v5178_v59 = vpop.f32.mrf.mxu3  ;;  %v5068_v40 = vadd.f32 %v5024_v4, %v4914_v60 }
 0x6be   : > { %v11853_v11 = vadd.f32 %v5178_v59, %v5068_v40  ;;  %v11866_v4 = vpop.f32.mrf.mxu1  ;;  %v4916_v59 = vadd.f32 %v11621_v45, %v4739_v39 }
 0x6bf   : > { %v11855_v20 = vpop.f32.mrf.mxu0 }
 0x6c0   : > { %7958 = vmatmul.msk.f32.gmra.mxu2 %vm384_vm1, %v5548_v22  ;;  %v4742_v22 = vadd.f32 %v11643_v34, %v11641_v12  ;;  %v4745_v12 = vadd.f32 %v11655_v49, %v11653_v51  ;;  %v4748_v51 = vadd.f32 %v11667_v55, %v11665_v8  ;;  %v4751_v8 = vadd.f32 %v11679_v41, %v11677_v54 }
 0x6c1   : > { %7982 = vmatmul.msk.f32.gmra.mxu3 %vm384_vm1, %v5702_v25 }
 0x6c3   : > { %v5027_v58 = vpop.f32.mrf.mxu2 }
 0x6c4   : > { %v5181_v48 = vpop.f32.mrf.mxu3  ;;  %v5069_v32 = vadd.f32 %v5027_v58, %v4915_v30 }
 0x6c6   : > { %v11864_v24 = vadd.f32 %v5181_v48, %v5069_v32  ;;  %v11875_v3 = vpop.f32.mrf.mxu1 }
 0x6c7   : > { %v5338_v60 = vpop.f32.mrf.mxu0 }
 0x6c8   : > { %7959 = vmatmul.msk.f32.gmra.mxu2 %vm384_vm1, %v11295_v27  ;;  %v4917_v27 = vadd.f32 %v11633_v50, %v4742_v22 }
 0x6c9   : > { %7983 = vmatmul.msk.f32.gmra.mxu3 %vm384_vm1, %v11299_v18 }
 0x6cb   : > { %v5030_v56 = vpop.f32.mrf.mxu2 }
 0x6cc   : > { %v5184_v40 = vpop.f32.mrf.mxu3  ;;  %v5070_v2 = vadd.f32 %v5030_v56, %v4916_v59 }
 0x6ce   : > { %v5224_v47 = vadd.f32 %v5184_v40, %v5070_v2 }
 0x6cf   : > { %v5341_v30 = vpop.f32.mrf.mxu0 }
 0x6d0   : > { %v11877_v25 = vadd.f32 %v5338_v60, %v5224_v47  ;;  %7960 = vmatmul.msk.f32.gmra.mxu2 %vm384_vm1, %v11316_v61  ;;  %v5496_v61 = vpop.f32.mrf.mxu1 }
 0x6d1   : > { %7984 = vmatmul.msk.f32.gmra.mxu3 %vm384_vm1, %v11320_v38  ;;  %v4918_v38 = vadd.f32 %v11645_v9, %v4745_v12 }
 0x6d3   : > { %v5033_v18 = vpop.f32.mrf.mxu2 }
 0x6d4   : > { %v5187_v45 = vpop.f32.mrf.mxu3  ;;  %v5071_v58 = vadd.f32 %v5033_v18, %v4917_v27 }
 0x6d6   : > { %v5225_v34 = vadd.f32 %v5187_v45, %v5071_v58 }
 0x6d7   : > { %v11890_v32 = vpop.f32.mrf.mxu0 }
 0x6d8   : > { %v5379_v48 = vadd.f32 %v5341_v30, %v5225_v34  ;;  %7961 = vmatmul.msk.f32.gmra.mxu2 %vm384_vm1, %v11352_v43  ;;  %v11903_v43 = vpop.f32.mrf.mxu1  ;;  %v4754_v30 = vadd.f32 %v11691_v62, %v11689_v52 }
 0x6d9   : > { %7985 = vmatmul.msk.f32.gmra.mxu3 %vm384_vm1, %v11356_v1  ;;  %v4919_v1 = vadd.f32 %v11663_v10, %v4748_v51 }
 0x6da   : > { %v11893_v59 = vadd.f32 %v5496_v61, %v5379_v48 }
 0x6db   : > { %v5036_v50 = vpop.f32.mrf.mxu2 }
 0x6dc   : > { %v5190_v39 = vpop.f32.mrf.mxu3  ;;  %v5072_v60 = vadd.f32 %v5036_v50, %v4918_v38  ;;  %v5560_v38 = vld [vmem:[#allocation3 + $0x111] sm:$0xff] }
 0x6dd   : > { %v5714_v50 = vld [vmem:[#allocation3 + $0x112] sm:$0xff] }
 0x6de   : > { %v11897_v49 = vadd.f32 %v5190_v39, %v5072_v60 }
 0x6df   : > { %v11906_v40 = vpop.f32.mrf.mxu0 }
 0x6e0   : > { %7962 = vmatmul.msk.f32.gmra.mxu2 %vm384_vm1, %v11374_v19  ;;  %v11916_v19 = vpop.f32.mrf.mxu1 }
 0x6e1   : > { %7986 = vmatmul.msk.f32.gmra.mxu3 %vm384_vm1, %v11378_v21  ;;  %v4920_v21 = vadd.f32 %v11675_v29, %v4751_v8 }
 0x6e3   : > { %v5039_v9 = vpop.f32.mrf.mxu2 }
 0x6e4   : > { %v5193_v56 = vpop.f32.mrf.mxu3  ;;  %v5073_v2 = vadd.f32 %v5039_v9, %v4919_v1 }
 0x6e6   : > { %v11910_v55 = vadd.f32 %v5193_v56, %v5073_v2 }
 0x6e7   : > { %v5350_v27 = vpop.f32.mrf.mxu0 }
 0x6e8   : > { %7963 = vmatmul.msk.f32.gmra.mxu2 %vm384_vm1, %v11389_v15  ;;  %v5505_v29 = vpop.f32.mrf.mxu1 }
 0x6e9   : > { %7987 = vmatmul.msk.f32.gmra.mxu3 %vm384_vm1, %v11393_v42  ;;  %v4921_v42 = vadd.f32 %v11687_v28, %v4754_v30 }
 0x6eb   : > { %v5042_v10 = vpop.f32.mrf.mxu2 }
 0x6ec   : > { %v5196_v22 = vpop.f32.mrf.mxu3  ;;  %v5074_v47 = vadd.f32 %v5042_v10, %v4920_v21  ;;  %v5375_v21 = vadd.f32 %v11835_v33, %v11844_v14  ;;  %v5377_v33 = vadd.f32 %v11855_v20, %v11864_v24 }
 0x6ee   : > { %v5228_v54 = vadd.f32 %v5196_v22, %v5074_v47 }
 0x6ef   : > { %v5353_v34 = vpop.f32.mrf.mxu0 }
 0x6f0   : > { %7964 = vmatmul.msk.f32.gmra.mxu2 %vm384_vm1, %v11409_v53  ;;  %v5382_v15 = vadd.f32 %v5350_v27, %v5228_v54  ;;  %v5508_v28 = vpop.f32.mrf.mxu1 }
 0x6f1   : > { %7988 = vmatmul.msk.f32.gmra.mxu3 %vm384_vm1, %v11413_v17 }
 0x6f2   : > { %v11926_v58 = vadd.f32 %v5505_v29, %v5382_v15 }
 0x6f3   : > { %v5045_v41 = vpop.f32.mrf.mxu2 }
 0x6f4   : > { %v5199_v18 = vpop.f32.mrf.mxu3  ;;  %v5075_v45 = vadd.f32 %v5045_v41, %v4921_v42 }
 0x6f6   : > { %v5229_v12 = vadd.f32 %v5199_v18, %v5075_v45 }
 0x6f8   : > { %7965 = vmatmul.msk.f32.gmra.mxu2 %vm384_vm1, %v11431_v26  ;;  %v5383_v53 = vadd.f32 %v5353_v34, %v5229_v12 }
 0x6f9   : > { %7989 = vmatmul.msk.f32.gmra.mxu3 %vm384_vm1, %v11435_v23 }
 0x6fa   : > { %v11936_v62 = vadd.f32 %v5508_v28, %v5383_v53  ;;  %v5380_v53 = vadd.f32 %v11890_v32, %v11897_v49 }
 0x6fb   : > { %v11932_v52 = vpop.f32.mrf.mxu2 }
 0x6fc   : > { %v11934_v17 = vpop.f32.mrf.mxu3 }
 0x700   : > { %7966 = vmatmul.msk.f32.gmra.mxu2 %vm384_vm1, %v11446_v0 }
 0x701   : > { %7990 = vmatmul.msk.f32.gmra.mxu3 %vm384_vm1, %v11450_v5 }
 0x703   : > { %v11942_v48 = vpop.f32.mrf.mxu2 }
 0x704   : > { %v11944_v26 = vpop.f32.mrf.mxu3 }
 0x708   : > { %7967 = vmatmul.msk.f32.gmra.mxu2 %vm384_vm1, %v11538_v7 }
 0x709   : > { %7991 = vmatmul.msk.f32.gmra.mxu3 %vm384_vm1, %v11542_v57 }
 0x70b   : > { %v11950_v23 = vpop.f32.mrf.mxu2 }
 0x70c   : > { %v11952_v61 = vpop.f32.mrf.mxu3 }
 0x710   : > { %7968 = vmatmul.msk.f32.gmra.mxu2 %vm384_vm1, %v11562_v13  ;;  %v14045_v13 = vld [vmem:[#allocation53_spill] sm:$0xff] }
 0x711   : > { %7992 = vmatmul.msk.f32.gmra.mxu3 %vm384_vm1, %v11566_v16  ;;  %v4927_v16 = vadd.f32 %v14045_v13, %v11820_v44  ;;  %v5530_v44 = vadd.f32 %v11842_v37, %v5375_v21  ;;  %v5532_v37 = vadd.f32 %v11866_v4, %v5377_v33  ;;  %v14050_v21 = vld [vmem:[#allocation49_spill] sm:$0xff] }
 0x713   : > { %v11958_v0 = vpop.f32.mrf.mxu2 }
 0x714   : > { %v11960_v5 = vpop.f32.mrf.mxu3 }
 0x718   : > { %7969 = vmatmul.msk.f32.gmra.mxu2 %vm384_vm1, %v11810_v36  ;;  %v14046_v36 = vld [vmem:[#allocation63_spill] sm:$0xff] }
 0x719   : > { %7993 = vmatmul.msk.f32.gmra.mxu3 %vm384_vm1, %v11816_v63  ;;  %v5374_v1 = vadd.f32 %v14046_v36, %v11833_v31  ;;  %v5376_v31 = vadd.f32 %v11846_v46, %v11853_v11 }
 0x71b   : > { %v11966_v7 = vpop.f32.mrf.mxu2  ;;  %v5529_v9 = vadd.f32 %v11831_v6, %v5374_v1  ;;  %v5531_v6 = vadd.f32 %v11857_v35, %v5376_v31  ;;  %v5533_v35 = vadd.f32 %v11875_v3, %v11877_v25  ;;  %v5381_v3 = vadd.f32 %v11906_v40, %v11910_v55  ;;  %v5356_v1 = vpop.f32.mrf.mxu0 }
 0x71c   : > { %v11968_v57 = vpop.f32.mrf.mxu3 }
 0x720   : > { %7970 = vmatmul.msk.f32.gmra.mxu2 %vm384_vm1, %v5560_v38  ;;  %v5535_v38 = vadd.f32 %v11903_v43, %v5380_v53  ;;  %v14048_v43 = vld [vmem:[#allocation37_spill] sm:$0xff] }
 0x721   : > { %7994 = vmatmul.msk.f32.gmra.mxu3 %vm384_vm1, %v5714_v50 }
 0x723   : > { %v5063_v39 = vpop.f32.mrf.mxu2 }
 0x724   : > { %v5217_v60 = vpop.f32.mrf.mxu3  ;;  %v5081_v51 = vadd.f32 %v5063_v39, %v4927_v16 }
 0x726   : > { %v11976_v63 = vadd.f32 %v5217_v60, %v5081_v51  ;;  %v14047_v51 = vld [vmem:[#allocation45_spill] sm:$0xff] }
 0x727   : > { %v4757_v36 = vadd.f32 %v14048_v43, %v14047_v51 }
 0x72b   : > { %v5635_v56 = vpop.f32.mrf.mxu2 }
 0x72c   : > { %v5789_v2 = vpop.f32.mrf.mxu3  ;;  %v5683_v8 = vadd.f32 %v5635_v56, %v5529_v9  ;;  %v14049_v9 = vld [vmem:[#allocation44_spill] sm:$0xff] }
 0x72d   : > { %v4922_v56 = vadd.f32 %v14049_v9, %v4757_v36 }
 0x72e   : > { %v11981_v10 = vadd.f32 %v5789_v2, %v5683_v8 }
 0x733   : > { %v5638_v22 = vpop.f32.mrf.mxu2 }
 0x734   : > { %v5792_v47 = vpop.f32.mrf.mxu3  ;;  %v5684_v30 = vadd.f32 %v5638_v22, %v5530_v44  ;;  %v14051_v44 = vld [vmem:[#allocation50_spill] sm:$0xff] }
 0x735   : > { %v4760_v22 = vadd.f32 %v14051_v44, %v14050_v21 }
 0x736   : > { %v11986_v27 = vadd.f32 %v5792_v47, %v5684_v30  ;;  %v5511_v47 = vpop.f32.mrf.mxu1 }
 0x73b   : > { %v5641_v54 = vpop.f32.mrf.mxu2 }
 0x73c   : > { %v5795_v15 = vpop.f32.mrf.mxu3  ;;  %v5685_v42 = vadd.f32 %v5641_v54, %v5531_v6  ;;  %v5359_v54 = vpop.f32.mrf.mxu0 }
 0x73e   : > { %v11991_v14 = vadd.f32 %v5795_v15, %v5685_v42  ;;  %v14052_v15 = vld [vmem:[#allocation38_spill] sm:$0xff] }
 0x73f   : > { %v4923_v42 = vadd.f32 %v14052_v15, %v4760_v22 }
 0x740   : > { %5874 = vrot.lane.b32.xlu0 %v11991_v14, %s8557_s29 }
 0x743   : > { %v5644_v41 = vpop.f32.mrf.mxu2 }
 0x744   : > { %v5798_v18 = vpop.f32.mrf.mxu3  ;;  %v5686_v46 = vadd.f32 %v5644_v41, %v5532_v37 }
 0x746   : > { %v11996_v11 = vadd.f32 %v5798_v18, %v5686_v46 }
 0x748   : > { %5876 = vrot.lane.b32.xlu1 %v11996_v11, %s8557_s29 }
 0x74b   : > { %v5647_v29 = vpop.f32.mrf.mxu2 }
 0x74c   : > { %v5801_v20 = vpop.f32.mrf.mxu3  ;;  %v5687_v24 = vadd.f32 %v5647_v29, %v5533_v35 }
 0x74e   : > { %v12002_v45 = vadd.f32 %v5801_v20, %v5687_v24  ;;  %v5514_v20 = vpop.f32.mrf.mxu1  ;;  %v5362_v24 = vpop.f32.mrf.mxu0 }
 0x753   : > { %v5650_v12 = vpop.f32.mrf.mxu2 }
 0x754   : > { %v5804_v34 = vpop.f32.mrf.mxu3  ;;  %v5688_v4 = vadd.f32 %v5650_v12, %v11893_v59  ;;  %v5536_v59 = vadd.f32 %v11916_v19, %v5381_v3  ;;  %v5076_v19 = vadd.f32 %v11932_v52, %v4922_v56  ;;  %v14056_v3 = vld [vmem:[#allocation52_spill] sm:$0xff] }
 0x756   : > { %v12007_v28 = vadd.f32 %v5804_v34, %v5688_v4  ;;  %v5230_v30 = vadd.f32 %v11934_v17, %v5076_v19  ;;  %v5517_v53 = vpop.f32.mrf.mxu1 }
 0x758   : > { %v5384_v37 = vadd.f32 %v5356_v1, %v5230_v30  ;;  %v14058_v1 = vld [vmem:[#allocation58_spill] sm:$0xff] }
 0x75a   : > { %v5539_v18 = vadd.f32 %v5511_v47, %v5384_v37 }
 0x75b   : > { %v5653_v50 = vpop.f32.mrf.mxu2 }
 0x75c   : > { %v5807_v13 = vpop.f32.mrf.mxu3  ;;  %v5689_v16 = vadd.f32 %v5653_v50, %v5535_v38  ;;  %v14053_v38 = vld [vmem:[#allocation43_spill] sm:$0xff]  ;;  %v14054_v50 = vld [vmem:[#allocation54_spill] sm:$0xff] }
 0x75e   : > { %v12012_v25 = vadd.f32 %v5807_v13, %v5689_v16  ;;  %v14055_v16 = vld [vmem:[#allocation59_spill] sm:$0xff] }
 0x760   : > { %5882 = vrot.lane.b32.xlu2 %v12012_v25, %s8557_s29 }
 0x763   : > { %v5656_v39 = vpop.f32.mrf.mxu2 }
 0x764   : > { %v5810_v60 = vpop.f32.mrf.mxu3  ;;  %v5690_v32 = vadd.f32 %v5656_v39, %v5536_v59  ;;  %v4769_v59 = vadd.f32 %v14056_v3, %v14055_v16  ;;  %v5365_v39 = vpop.f32.mrf.mxu0 }
 0x766   : > { %v12017_v49 = vadd.f32 %v5810_v60, %v5690_v32  ;;  %v14057_v60 = vld [vmem:[#allocation42_spill] sm:$0xff] }
 0x768   : > { %5884 = vrot.lane.b32.xlu0 %v12017_v49, %s8557_s29 }
 0x76b   : > { %v5659_v40 = vpop.f32.mrf.mxu2 }
 0x76c   : > { %v5813_v55 = vpop.f32.mrf.mxu3  ;;  %v5691_v2 = vadd.f32 %v5659_v40, %v11926_v58  ;;  %v5077_v58 = vadd.f32 %v11942_v48, %v4923_v42  ;;  %v4926_v40 = vadd.f32 %v14058_v1, %v4769_v59  ;;  %v14059_v42 = vld [vmem:[#allocation47_spill] sm:$0xff] }
 0x76e   : > { %v12026_v8 = vadd.f32 %v5813_v55, %v5691_v2  ;;  %v5231_v52 = vadd.f32 %v11944_v26, %v5077_v58  ;;  %v4763_v26 = vadd.f32 %v14054_v50, %v14053_v38  ;;  %v5520_v55 = vpop.f32.mrf.mxu1  ;;  %v5080_v9 = vadd.f32 %v11966_v7, %v4926_v40  ;;  %v5368_v2 = vpop.f32.mrf.mxu0 }
 0x770   : > { %v5385_v17 = vadd.f32 %v5359_v54, %v5231_v52  ;;  %v4924_v32 = vadd.f32 %v14057_v60, %v4763_v26  ;;  %v5234_v19 = vadd.f32 %v11968_v57, %v5080_v9 }
 0x772   : > { %v5078_v36 = vadd.f32 %v11950_v23, %v4924_v32  ;;  %v5388_v47 = vadd.f32 %v5368_v2, %v5234_v19 }
 0x773   : > { %v5662_v31 = vpop.f32.mrf.mxu2 }
 0x774   : > { %v5816_v6 = vpop.f32.mrf.mxu3  ;;  %v5692_v33 = vadd.f32 %v5662_v31, %v11936_v62  ;;  %v5540_v62 = vadd.f32 %v5514_v20, %v5385_v17  ;;  %v5232_v56 = vadd.f32 %v11952_v61, %v5078_v36 }
 0x776   : > { %v12034_v41 = vadd.f32 %v5816_v6, %v5692_v33  ;;  %v5386_v22 = vadd.f32 %v5362_v24, %v5232_v56  ;;  %v5523_v30 = vpop.f32.mrf.mxu1  ;;  %v5371_v15 = vpop.f32.mrf.mxu0  ;;  %v14060_v33 = vld [vmem:[#allocation48_spill] sm:$0xff] }
 0x777   : > { %v5543_v6 = vadd.f32 %v5523_v30, %v5388_v47  ;;  %v4766_v37 = vadd.f32 %v14060_v33, %v14059_v42  ;;  %v5389_v57 = vadd.f32 %v5371_v15, %v11976_v63 }
 0x778   : > { %v5541_v31 = vadd.f32 %v5517_v53, %v5386_v22 }
 0x77b   : > { %v5665_v46 = vpop.f32.mrf.mxu2 }
 0x77c   : > { %v5819_v35 = vpop.f32.mrf.mxu3  ;;  %v5693_v29 = vadd.f32 %v5665_v46, %v5539_v18  ;;  %v14061_v46 = vld [vmem:[#allocation55_spill] sm:$0xff] }
 0x77e   : > { %v12037_v12 = vadd.f32 %v5819_v35, %v5693_v29  ;;  %v5526_v18 = vpop.f32.mrf.mxu1  ;;  %v4925_v35 = vadd.f32 %v14061_v46, %v4766_v37 }
 0x77f   : > { %v5544_v29 = vadd.f32 %v5526_v18, %v5389_v57  ;;  %v8026_v18 = vld [vmem:[%s13795_s7 + $0x2f8] sm:$0xff] }
 0x780   : > { %5890 = vrot.lane.b32.xlu1 %v12037_v12, %s8557_s29  ;;  %v5079_v24 = vadd.f32 %v11958_v0, %v4925_v35  ;;  %6254 = vmatpush.msra.mxu2 %v8026_v18  ;;  %v8002_v18 = vld [vmem:[%s13795_s7 + $0x238] sm:$0xff] }
 0x782   : > { %v5233_v63 = vadd.f32 %v11960_v5, %v5079_v24  ;;  %v12082_v5 = vld [vmem:[%s13794_s6] ss:$0 sm:$0xff]  ;;  %v8009_v24 = vld [vmem:[%s13795_s7 + $0x270] sm:$0xff] }
 0x783   : > { %v5668_v34 = vpop.f32.mrf.mxu2 }
 0x784   : > { %v5822_v4 = vpop.f32.mrf.mxu3  ;;  %v5694_v48 = vadd.f32 %v5668_v34, %v5540_v62 }
 0x786   : > { %v12043_v13 = vadd.f32 %v5822_v4, %v5694_v48  ;;  %v5387_v4 = vadd.f32 %v5365_v39, %v5233_v63 }
 0x788   : > { %5892 = vrot.lane.b32.xlu2 %v12043_v13, %s8557_s29  ;;  %v5542_v48 = vadd.f32 %v5520_v55, %v5387_v4 }
 0x78b   : > { %v5671_v51 = vpop.f32.mrf.mxu2 }
 0x78c   : > { %v5825_v43 = vpop.f32.mrf.mxu3  ;;  %v5695_v23 = vadd.f32 %v5671_v51, %v5541_v31 }
 0x78e   : > { %v12062_v58 = vadd.f32 %v5825_v43, %v5695_v23 }
 0x790   : > { %5870 = vrot.lane.b32.xlu2 %v11981_v10, %s8557_s29 }
 0x793   : > { %v5674_v21 = vpop.f32.mrf.mxu2 }
 0x794   : > { %v5828_v44 = vpop.f32.mrf.mxu3  ;;  %v5696_v53 = vadd.f32 %v5674_v21, %v5542_v48  ;;  %v8008_v48 = vld [vmem:[%s13795_s7 + $0x268] sm:$0xff] }
 0x796   : > { %v12077_v0 = vadd.f32 %v5828_v44, %v5696_v53  ;;  %v8024_v53 = vld [vmem:[%s13795_s7 + $0x2e8] sm:$0xff] }
 0x798   : > { %5880 = vrot.lane.b32.xlu2 %v12007_v28, %s8557_s29 }
 0x79b   : > { %v5677_v7 = vpop.f32.mrf.mxu2 }
 0x79c   : > { %v5831_v54 = vpop.f32.mrf.mxu3  ;;  %v5697_v61 = vadd.f32 %v5677_v7, %v5543_v6 }
 0x79e   : > { %v5851_v52 = vadd.f32 %v5831_v54, %v5697_v61 }
 0x7a0   : > { %5894 = vrot.lane.b32.xlu2 %v12062_v58, %s8557_s29  ;;  %5898 = vrot.lane.b32.xlu0 %v5851_v52, %s8557_s29 }
 0x7a3   : > { %v5680_v20 = vpop.f32.mrf.mxu2 }
 0x7a4   : > { %v5834_v17 = vpop.f32.mrf.mxu3  ;;  %v5698_v62 = vadd.f32 %v5680_v20, %v5544_v29  ;;  %v8042_v20 = vld [vmem:[%s13795_s7 + $0x378] sm:$0xff] }
 0x7a5   : > { %6274 = vmatpush.msra.mxu3 %v8042_v20  ;;  %v8017_v20 = vld [vmem:[%s13795_s7 + $0x2b0] sm:$0xff] }
 0x7a6   : > { %v5852_v34 = vadd.f32 %v5834_v17, %v5698_v62  ;;  %v6018_v17 = vld [vmem:[%s13795_s7 + $0x70] sm:$0xff] }
 0x7a7   : > { %v8041_v62 = vld [vmem:[%s13795_s7 + $0x370] sm:$0xff] }
 0x7a8   : > { %5872 = vrot.lane.b32.xlu0 %v11986_v27, %s8557_s29  ;;  %5900 = vrot.lane.b32.xlu1 %v5852_v34, %s8557_s29 }
 0x7a9   : > { %6275 = vmatpush.msra.mxu3 %v8041_v62  ;;  %v8016_v62 = vld [vmem:[%s13795_s7 + $0x2a8] sm:$0xff] }
 0x7b0   : > { %5886 = vrot.lane.b32.xlu0 %v12026_v8, %s8557_s29  ;;  %5878 = vrot.lane.b32.xlu1 %v12002_v45, %s8557_s29 }
 0x7b2   : > { %v5875_v38 = vpop.permute.xlu0 %5874 }
 0x7b3   : > { %v5920_v50 = vmax.f32 %v11991_v14, %v5875_v38 }
 0x7b5   : > { %v5939_v16 = vadd.f32 %v12082_v5, %v5920_v50 }
 0x7b7   : > { %v5955_v39 = vmax.f32 %v5939_v16, 0.0  ;;  %v6016_v16 = vld [vmem:[%s13795_s7 + $0x60] sm:$0xff] }
 0x7b8   : > { %5896 = vrot.lane.b32.xlu0 %v12077_v0, %s8557_s29  ;;  %5888 = vrot.lane.b32.xlu1 %v12034_v41, %s8557_s29 }
 0x7ba   : > { %v5877_v26 = vpop.permute.xlu1 %5876  ;;  %v5883_v51 = vpop.permute.xlu2 %5882 }
 0x7bb   : > { %v5921_v3 = vmax.f32 %v11996_v11, %v5877_v26  ;;  %v5924_v14 = vmax.f32 %v12012_v25, %v5883_v51  ;;  %v8040_v26 = vld [vmem:[%s13795_s7 + $0x368] sm:$0xff]  ;;  %v8039_v51 = vld [vmem:[%s13795_s7 + $0x360] sm:$0xff] }
 0x7bc   : > { %6276 = vmatpush.msra.mxu3 %v8040_v26  ;;  %v8014_v26 = vld [vmem:[%s13795_s7 + $0x298] sm:$0xff] }
 0x7bd   : > { %v5940_v59 = vadd.f32 %v12082_v5, %v5921_v3  ;;  %v5943_v36 = vadd.f32 %v12082_v5, %v5924_v14 }
 0x7be   : > { %6277 = vmatpush.msra.mxu3 %v8039_v51  ;;  %v7996_v51 = vld [vmem:[%s13795_s7 + $0x208] sm:$0xff] }
 0x7bf   : > { %v5956_v60 = vmax.f32 %v5940_v59, 0.0  ;;  %v5959_v55 = vmax.f32 %v5943_v36, 0.0  ;;  %v8022_v36 = vld [vmem:[%s13795_s7 + $0x2d8] sm:$0xff] }
 0x7c1   : > { %v5970_v32 = vmax.f32 %v5955_v39, %v5956_v60  ;;  %v8007_v60 = vld [vmem:[%s13795_s7 + $0x260] sm:$0xff] }
 0x7c3   : > { %5979 = vrot.lane.b32.xlu1 %v5970_v32, %s8557_s29  ;;  %v8023_v32 = vld [vmem:[%s13795_s7 + $0x2e0] sm:$0xff] }
 0x7da   : > { %v5885_v43 = vpop.permute.xlu0 %5884 }
 0x7db   : > { %v5925_v1 = vmax.f32 %v12017_v49, %v5885_v43  ;;  %v8006_v43 = vld [vmem:[%s13795_s7 + $0x258] sm:$0xff] }
 0x7dd   : > { %v5944_v40 = vadd.f32 %v12082_v5, %v5925_v1 }
 0x7df   : > { %v5960_v9 = vmax.f32 %v5944_v40, 0.0  ;;  %v8038_v40 = vld [vmem:[%s13795_s7 + $0x358] sm:$0xff] }
 0x7e0   : > { %6278 = vmatpush.msra.mxu3 %v8038_v40  ;;  %v8027_v40 = vld [vmem:[%s13795_s7 + $0x300] sm:$0xff] }
 0x7e1   : > { %v5972_v11 = vmax.f32 %v5959_v55, %v5960_v9  ;;  %v6014_v55 = vld [vmem:[%s13795_s7 + $0x50] sm:$0xff] }
 0x7e2   : > { %v5893_v56 = vpop.permute.xlu2 %5892 }
 0x7e3   : > { %5986 = vrot.lane.b32.xlu2 %v5972_v11, %s8557_s29  ;;  %v5929_v2 = vmax.f32 %v12043_v13, %v5893_v56 }
 0x7e5   : > { %v5948_v21 = vadd.f32 %v12082_v5, %v5929_v2  ;;  %v8021_v2 = vld [vmem:[%s13795_s7 + $0x2d0] sm:$0xff] }
 0x7e7   : > { %v5964_v22 = vmax.f32 %v5948_v21, 0.0 }
 0x7ea   : > { %v5871_v30 = vpop.permute.xlu2 %5870 }
 0x7eb   : > { %v5918_v23 = vmax.f32 %v11981_v10, %v5871_v30  ;;  %v6019_v10 = vld [vmem:[%s13795_s7 + $0x78] sm:$0xff] }
 0x7ec   : > { %6077 = vmatpush.msra.mxu0 %v6019_v10  ;;  %v8035_v10 = vld [vmem:[%s13795_s7 + $0x340] sm:$0xff] }
 0x7ed   : > { %v5937_v13 = vadd.f32 %v12082_v5, %v5918_v23 }
 0x7ee   : > { %6078 = vmatpush.msra.mxu0 %v6018_v17  ;;  %v8033_v17 = vld [vmem:[%s13795_s7 + $0x330] sm:$0xff] }
 0x7ef   : > { %v5953_v57 = vmax.f32 %v5937_v13, 0.0 }
 0x7f2   : > { %v5891_v19 = vpop.permute.xlu1 %5890  ;;  %v5881_v7 = vpop.permute.xlu2 %5880 }
 0x7f3   : > { %v5928_v25 = vmax.f32 %v12037_v12, %v5891_v19  ;;  %v8037_v19 = vld [vmem:[%s13795_s7 + $0x350] sm:$0xff] }
 0x7f4   : > { %6279 = vmatpush.msra.mxu3 %v8037_v19  ;;  %v8089_v19 = vld [vmem:[%s13795_s7 + $0x4f0] sm:$0xff] }
 0x7f5   : > { %v5947_v44 = vadd.f32 %v12082_v5, %v5928_v25 }
 0x7f7   : > { %v5963_v47 = vmax.f32 %v5947_v44, 0.0 }
 0x7f9   : > { %v5974_v49 = vmax.f32 %v5963_v47, %v5964_v22 }
 0x7fa   : > { %v5895_v59 = vpop.permute.xlu2 %5894 }
 0x7fb   : > { %5992 = vrot.lane.b32.xlu0 %v5974_v49, %s8557_s29  ;;  %v5930_v1 = vmax.f32 %v12062_v58, %v5895_v59  ;;  %v8005_v58 = vld [vmem:[%s13795_s7 + $0x250] sm:$0xff] }
 0x7fc   : > { %v7997_v59 = vld [vmem:[%s13795_s7 + $0x210] sm:$0xff] }
 0x812   : > { %v5899_v31 = vpop.permute.xlu0 %5898 }
 0x813   : > { %v5932_v6 = vmax.f32 %v5851_v52, %v5899_v31  ;;  %v8010_v52 = vld [vmem:[%s13795_s7 + $0x278] sm:$0xff] }
 0x814   : > { %6234 = vmatpush.msra.mxu1 %v8010_v52  ;;  %v6011_v52 = vld [vmem:[%s13795_s7 + $0x38] sm:$0xff] }
 0x815   : > { %v5951_v15 = vadd.f32 %v12082_v5, %v5932_v6 }
 0x816   : > { %6235 = vmatpush.msra.mxu1 %v8009_v24  ;;  %v6009_v24 = vld [vmem:[%s13795_s7 + $0x28] sm:$0xff] }
 0x817   : > { %v5967_v46 = vmax.f32 %v5951_v15, 0.0 }
 0x818   : > { %6236 = vmatpush.msra.mxu1 %v8008_v48  ;;  %v8015_v48 = vld [vmem:[%s13795_s7 + $0x2a0] sm:$0xff] }
 0x81a   : > { %v5873_v54 = vpop.permute.xlu0 %5872  ;;  %v5901_v61 = vpop.permute.xlu1 %5900  ;;  %6237 = vmatpush.msra.mxu1 %v8007_v60  ;;  %v8029_v60 = vld [vmem:[%s13795_s7 + $0x310] sm:$0xff] }
 0x81b   : > { %v5919_v12 = vmax.f32 %v11986_v27, %v5873_v54  ;;  %v5933_v42 = vmax.f32 %v5852_v34, %v5901_v61  ;;  %v5923_v27 = vmax.f32 %v12007_v28, %v5881_v7  ;;  %v8025_v28 = vld [vmem:[%s13795_s7 + $0x2f0] sm:$0xff]  ;;  %v6017_v34 = vld [vmem:[%s13795_s7 + $0x68] sm:$0xff] }
 0x81c   : > { %6255 = vmatpush.msra.mxu2 %v8025_v28  ;;  %6079 = vmatpush.msra.mxu0 %v6017_v34  ;;  %v8000_v28 = vld [vmem:[%s13795_s7 + $0x228] sm:$0xff] }
 0x81d   : > { %v5938_v33 = vadd.f32 %v12082_v5, %v5919_v12  ;;  %v5952_v37 = vadd.f32 %v12082_v5, %v5933_v42  ;;  %v5942_v3 = vadd.f32 %v12082_v5, %v5923_v27  ;;  %6238 = vmatpush.msra.mxu1 %v8006_v43  ;;  %v8020_v12 = vld [vmem:[%s13795_s7 + $0x2c8] sm:$0xff]  ;;  %v8018_v27 = vld [vmem:[%s13795_s7 + $0x2b8] sm:$0xff]  ;;  %v6004_v43 = vld [vmem:[%s13795_s7] sm:$0xff] }
 0x81e   : > { %6256 = vmatpush.msra.mxu2 %v8024_v53  ;;  %6080 = vmatpush.msra.mxu0 %v6016_v16  ;;  %v8036_v42 = vld [vmem:[%s13795_s7 + $0x348] sm:$0xff]  ;;  %v8031_v53 = vld [vmem:[%s13795_s7 + $0x320] sm:$0xff]  ;;  %v8030_v16 = vld [vmem:[%s13795_s7 + $0x318] sm:$0xff] }
 0x81f   : > { %v5954_v35 = vmax.f32 %v5938_v33, 0.0  ;;  %v5968_v29 = vmax.f32 %v5952_v37, 0.0  ;;  %v5958_v9 = vmax.f32 %v5942_v3, 0.0  ;;  %6239 = vmatpush.msra.mxu1 %v8005_v58  ;;  %v6012_v33 = vld [vmem:[%s13795_s7 + $0x40] sm:$0xff]  ;;  %6280 = vmatpush.msra.mxu3 %v8036_v42  ;;  %v8032_v34 = vld [vmem:[%s13795_s7 + $0x328] sm:$0xff]  ;;  %v6006_v3 = vld [vmem:[%s13795_s7 + $0x10] sm:$0xff] }
 0x820   : > { %6257 = vmatpush.msra.mxu2 %v8023_v32  ;;  %v8003_v37 = vld [vmem:[%s13795_s7 + $0x240] sm:$0xff]  ;;  %v6005_v32 = vld [vmem:[%s13795_s7 + $0x8] sm:$0xff]  ;;  %v6034_v58 = vld [vmem:[%s13795_s7 + $0xf0] sm:$0xff] }
 0x821   : > { %v5969_v63 = vmax.f32 %v5953_v57, %v5954_v35  ;;  %v5976_v4 = vmax.f32 %v5967_v46, %v5968_v29  ;;  %v8019_v57 = vld [vmem:[%s13795_s7 + $0x2c0] sm:$0xff]  ;;  %v8034_v46 = vld [vmem:[%s13795_s7 + $0x338] sm:$0xff]  ;;  %6281 = vmatpush.msra.mxu3 %v8035_v10  ;;  %v6010_v35 = vld [vmem:[%s13795_s7 + $0x30] sm:$0xff] }
 0x822   : > { %v5887_v38 = vpop.permute.xlu0 %5886  ;;  %v5879_v50 = vpop.permute.xlu1 %5878  ;;  %6258 = vmatpush.msra.mxu2 %v8022_v36  ;;  %v8001_v29 = vld [vmem:[%s13795_s7 + $0x230] sm:$0xff]  ;;  %v7995_v36 = vld [vmem:[%s13795_s7 + $0x200] sm:$0xff]  ;;  %v8084_v42 = vld [vmem:[%s13795_s7 + $0x4c8] sm:$0xff] }
 0x823   : > { %5977 = vst.msk [vmem:[#allocation4] sm:$0xff] %vm384_vm1, %v5969_v63  ;;  %v5922_v39 = vmax.f32 %v12002_v45, %v5879_v50  ;;  %5998 = vrot.lane.b32.xlu1 %v5976_v4, %s8557_s29  ;;  %v6015_v45 = vld [vmem:[%s13795_s7 + $0x58] sm:$0xff]  ;;  %v5926_v11 = vmax.f32 %v12026_v8, %v5887_v38  ;;  %v5949_v8 = vadd.f32 %v12082_v5, %v5930_v1  ;;  %v6008_v63 = vld [vmem:[%s13795_s7 + $0x20] sm:$0xff]  ;;  %s8507_s29 = sshra.s32 %s7311_s26, 4  ;;  %s8508_s29 = int_to_ptr.hbm [resolvable:$true] %s8507_s29 }
 0x824   : > { %6081 = vmatpush.msra.mxu0 %v6015_v45  ;;  %6259 = vmatpush.msra.mxu2 %v8021_v2  ;;  %v7999_v4 = vld [vmem:[%s13795_s7 + $0x220] sm:$0xff]  ;;  %v6007_v38 = vld [vmem:[%s13795_s7 + $0x18] sm:$0xff]  ;;  %v8012_v45 = vld [vmem:[%s13795_s7 + $0x288] sm:$0xff]  ;;  %s8509_s0 = scalar_lea.hbm %s8508_s29, 1  ;;  %p8514_p0 = scmp.lt.s32.totalorder %s8508_s29, %s13799_s11 }
 0x825   : > { %v5941_v14 = vadd.f32 %v12082_v5, %v5922_v39  ;;  %v5945_v22 = vadd.f32 %v12082_v5, %v5926_v11  ;;  %v5965_v23 = vmax.f32 %v5949_v8, 0.0  ;;  %6282 = vmatpush.msra.mxu3 %v8034_v46  ;;  %v7998_v50 = vld [vmem:[%s13795_s7 + $0x218] sm:$0xff]  ;;  %v8013_v39 = vld [vmem:[%s13795_s7 + $0x290] sm:$0xff]  ;;  %v8011_v1 = vld [vmem:[%s13795_s7 + $0x280] sm:$0xff]  ;;  %p8510_p11 = scmp.ne.s32.totalorder %s8508_s29, %s8509_s0  ;;  %p8515_p1 = scmp.lt.s32.totalorder %s8513_s25, %s8509_s0 }
 0x826   : > { %6082 = vmatpush.msra.mxu0 %v6014_v55  ;;  %6260 = vmatpush.msra.mxu2 %v8020_v12  ;;  %v6035_v55 = vld [vmem:[%s13795_s7 + $0xf8] sm:$0xff]  ;;  %v8073_v2 = vld [vmem:[%s13795_s7 + $0x470] sm:$0xff]  ;;  %v6033_v8 = vld [vmem:[%s13795_s7 + $0xe8] sm:$0xff] }
 0x827   : > { %v5957_v56 = vmax.f32 %v5941_v14, 0.0  ;;  %v5961_v6 = vmax.f32 %v5945_v22, 0.0  ;;  %6283 = vmatpush.msra.mxu3 %v8033_v17  ;;  %v8028_v14 = vld [vmem:[%s13795_s7 + $0x308] sm:$0xff]  ;;  %v8090_v11 = vld [vmem:[%s13795_s7 + $0x4f8] sm:$0xff]  ;;  %v8083_v10 = vld [vmem:[%s13795_s7 + $0x4c0] sm:$0xff]  ;;  %p8511_p12 = pnand %p8510_p11, %p8657_p5  ;;  %p8516_p2 = por %p8515_p1, %p8514_p0 }
 0x828   : > { %6261 = vmatpush.msra.mxu2 %v8019_v57  ;;  %v8104_v22 = vld [vmem:[%s13795_s7 + $0x568] sm:$0xff]  ;;  %v8067_v57 = vld [vmem:[%s13795_s7 + $0x440] sm:$0xff]  ;;  %v8082_v46 = vld [vmem:[%s13795_s7 + $0x4b8] sm:$0xff] }
 0x829   : > { %v5971_v21 = vmax.f32 %v5957_v56, %v5958_v9  ;;  %6284 = vmatpush.msra.mxu3 %v8032_v34  ;;  %v8074_v9 = vld [vmem:[%s13795_s7 + $0x478] sm:$0xff]  ;;  %v8081_v17 = vld [vmem:[%s13795_s7 + $0x4b0] sm:$0xff]  ;;  %v8080_v34 = vld [vmem:[%s13795_s7 + $0x4a8] sm:$0xff]  ;;  %p8512_p13 = pneg %p8511_p12 }
 0x82a   : > { %v5897_v25 = vpop.permute.xlu0 %5896  ;;  %v5889_v44 = vpop.permute.xlu1 %5888  ;;  %6262 = vmatpush.msra.mxu2 %v8018_v27  ;;  %v8106_v56 = vld [vmem:[%s13795_s7 + $0x578] sm:$0xff] }
 0x82b   : > { %5984 = vst.msk [vmem:[#allocation4 + $0x8] sm:$0xff] %vm384_vm1, %v5971_v21  ;;  %v5931_v47 = vmax.f32 %v12077_v0, %v5897_v25  ;;  %v5927_v49 = vmax.f32 %v12034_v41, %v5889_v44  ;;  %v6013_v0 = vld [vmem:[%s13795_s7 + $0x48] sm:$0xff]  ;;  %6285 = vmatpush.msra.mxu3 %v8031_v53  ;;  %v8105_v21 = vld [vmem:[%s13795_s7 + $0x570] sm:$0xff]  ;;  %v8066_v27 = vld [vmem:[%s13795_s7 + $0x438] sm:$0xff]  ;;  %p8517_p3 = pnand %p8516_p2, %p8512_p13 }
 0x82c   : > { %6083 = vmatpush.msra.mxu0 %v6013_v0  ;;  %6263 = vmatpush.msra.mxu2 %v8017_v20  ;;  %v8072_v25 = vld [vmem:[%s13795_s7 + $0x468] sm:$0xff]  ;;  %v8065_v20 = vld [vmem:[%s13795_s7 + $0x430] sm:$0xff]  ;;  %v8079_v53 = vld [vmem:[%s13795_s7 + $0x4a0] sm:$0xff] }
 0x82d   : > { %v5950_v30 = vadd.f32 %v12082_v5, %v5931_v47  ;;  %v5946_v31 = vadd.f32 %v12082_v5, %v5927_v49  ;;  %v8004_v5 = vld [vmem:[%s13795_s7 + $0x248] sm:$0xff]  ;;  %6286 = vmatpush.msra.mxu3 %v8030_v16  ;;  %v6032_v47 = vld [vmem:[%s13795_s7 + $0xe0] sm:$0xff]  ;;  %v8078_v16 = vld [vmem:[%s13795_s7 + $0x498] sm:$0xff] }
 0x82e   : > { %6240 = vmatpush.msra.mxu1 %v8004_v5  ;;  %6084 = vmatpush.msra.mxu0 %v6012_v33  ;;  %v8088_v44 = vld [vmem:[%s13795_s7 + $0x4e8] sm:$0xff]  ;;  %v8071_v49 = vld [vmem:[%s13795_s7 + $0x460] sm:$0xff] }
 0x82f   : > { %v5966_v7 = vmax.f32 %v5950_v30, 0.0  ;;  %v5962_v13 = vmax.f32 %v5946_v31, 0.0  ;;  %6264 = vmatpush.msra.mxu2 %v8016_v62  ;;  %6287 = vmatpush.msra.mxu3 %v8029_v60  ;;  %v8087_v30 = vld [vmem:[%s13795_s7 + $0x4e0] sm:$0xff]  ;;  %v6029_v0 = vld [vmem:[%s13795_s7 + $0xc8] sm:$0xff]  ;;  %v8077_v60 = vld [vmem:[%s13795_s7 + $0x490] sm:$0xff] }
 0x830   : > { %6241 = vmatpush.msra.mxu1 %v8003_v37  ;;  %6085 = vmatpush.msra.mxu0 %v6011_v52  ;;  %v8103_v31 = vld [vmem:[%s13795_s7 + $0x560] sm:$0xff]  ;;  %v8068_v5 = vld [vmem:[%s13795_s7 + $0x448] sm:$0xff] }
 0x831   : > { %v5975_v54 = vmax.f32 %v5965_v23, %v5966_v7  ;;  %v5973_v61 = vmax.f32 %v5961_v6, %v5962_v13  ;;  %6265 = vmatpush.msra.mxu2 %v8015_v48  ;;  %6288 = vmatpush.msra.mxu3 %v8028_v14  ;;  %v6031_v23 = vld [vmem:[%s13795_s7 + $0xd8] sm:$0xff]  ;;  %v8100_v33 = vld [vmem:[%s13795_s7 + $0x548] sm:$0xff]  ;;  %v6028_v37 = vld [vmem:[%s13795_s7 + $0xc0] sm:$0xff] }
 0x832   : > { %6242 = vmatpush.msra.mxu1 %v8002_v18  ;;  %6086 = vmatpush.msra.mxu0 %v6010_v35  ;;  %v8070_v6 = vld [vmem:[%s13795_s7 + $0x458] sm:$0xff]  ;;  %v8099_v52 = vld [vmem:[%s13795_s7 + $0x540] sm:$0xff]  ;;  %v8064_v62 = vld [vmem:[%s13795_s7 + $0x428] sm:$0xff] }
 0x833   : > { %5996 = vst.msk [vmem:[#allocation4 + $0x18] sm:$0xff] %vm384_vm1, %v5975_v54  ;;  %6266 = vmatpush.msra.mxu2 %v8014_v26  ;;  %6289 = vmatpush.msra.mxu3 %v8027_v40  ;;  %v8086_v7 = vld [vmem:[%s13795_s7 + $0x4d8] sm:$0xff]  ;;  %v6030_v54 = vld [vmem:[%s13795_s7 + $0xd0] sm:$0xff]  ;;  %v8063_v48 = vld [vmem:[%s13795_s7 + $0x420] sm:$0xff] }
 0x834   : > { %5990 = vst.msk [vmem:[#allocation4 + $0x10] sm:$0xff] %vm384_vm1, %v5973_v61  ;;  %6243 = vmatpush.msra.mxu1 %v8001_v29  ;;  %6087 = vmatpush.msra.mxu0 %v6009_v24  ;;  %v8102_v13 = vld [vmem:[%s13795_s7 + $0x558] sm:$0xff]  ;;  %v8069_v61 = vld [vmem:[%s13795_s7 + $0x450] sm:$0xff]  ;;  %v8076_v14 = vld [vmem:[%s13795_s7 + $0x488] sm:$0xff] }
 0x835   : > { %v5980_v15 = vpop.permute.xlu1 %5979  ;;  %6267 = vmatpush.msra.mxu2 %v8013_v39  ;;  %6431 = vmatpush.msrb.mxu3 %v8106_v56  ;;  %v6027_v18 = vld [vmem:[%s13795_s7 + $0xb8] sm:$0xff]  ;;  %v6026_v29 = vld [vmem:[%s13795_s7 + $0xb0] sm:$0xff]  ;;  %v8075_v40 = vld [vmem:[%s13795_s7 + $0x480] sm:$0xff] }
 0x836   : > { %5983 = vst.msk [vmem:[#allocation4] sm:$0xff] %vm5982_vm3, %v5980_v15  ;;  %6244 = vmatpush.msra.mxu1 %v8000_v28  ;;  %6088 = vmatpush.msra.mxu0 %v6008_v63  ;;  %v8085_v15 = vld [vmem:[%s13795_s7 + $0x4d0] sm:$0xff]  ;;  %v8098_v35 = vld [vmem:[%s13795_s7 + $0x538] sm:$0xff]  ;;  %v6025_v28 = vld [vmem:[%s13795_s7 + $0xa8] sm:$0xff] }
 0x837   : > { %6268 = vmatpush.msra.mxu2 %v8012_v45  ;;  %6432 = vmatpush.msrb.mxu3 %v8105_v21  ;;  %v8097_v24 = vld [vmem:[%s13795_s7 + $0x530] sm:$0xff]  ;;  %v8096_v63 = vld [vmem:[%s13795_s7 + $0x528] sm:$0xff]  ;;  %v8062_v26 = vld [vmem:[%s13795_s7 + $0x418] sm:$0xff] }
 0x838   : > { %6245 = vmatpush.msra.mxu1 %v7999_v4  ;;  %6089 = vmatpush.msra.mxu0 %v6007_v38  ;;  %v6024_v4 = vld [vmem:[%s13795_s7 + $0xa0] sm:$0xff]  ;;  %v8061_v39 = vld [vmem:[%s13795_s7 + $0x410] sm:$0xff]  ;;  %v8060_v45 = vld [vmem:[%s13795_s7 + $0x408] sm:$0xff] }
 0x839   : > { %6269 = vmatpush.msra.mxu2 %v8011_v1  ;;  %6433 = vmatpush.msrb.mxu3 %v8104_v22  ;;  %v8095_v38 = vld [vmem:[%s13795_s7 + $0x520] sm:$0xff]  ;;  %v8170_v22 = vld [vmem:[%s13795_s7 + $0x778] sm:$0xff] }
 0x83a   : > { %6246 = vmatpush.msra.mxu1 %v7998_v50  ;;  %6090 = vmatpush.msra.mxu0 %v6006_v3  ;;  %v6023_v50 = vld [vmem:[%s13795_s7 + $0x98] sm:$0xff]  ;;  %v8059_v1 = vld [vmem:[%s13795_s7 + $0x400] sm:$0xff] }
 0x83b   : > { %6411 = vmatpush.msrb.mxu2 %v8090_v11  ;;  %6434 = vmatpush.msrb.mxu3 %v8103_v31  ;;  %v8094_v3 = vld [vmem:[%s13795_s7 + $0x518] sm:$0xff]  ;;  %v8169_v31 = vld [vmem:[%s13795_s7 + $0x770] sm:$0xff] }
 0x83c   : > { %6247 = vmatpush.msra.mxu1 %v7997_v59  ;;  %6091 = vmatpush.msra.mxu0 %v6005_v32  ;;  %v6022_v59 = vld [vmem:[%s13795_s7 + $0x90] sm:$0xff] }
 0x83d   : > { %v5987_v41 = vpop.permute.xlu2 %5986  ;;  %6412 = vmatpush.msrb.mxu2 %v8089_v19  ;;  %6435 = vmatpush.msrb.mxu3 %v8102_v13  ;;  %v8093_v32 = vld [vmem:[%s13795_s7 + $0x510] sm:$0xff]  ;;  %v8168_v13 = vld [vmem:[%s13795_s7 + $0x768] sm:$0xff] }
 0x83e   : > { %5989 = vst.msk [vmem:[#allocation4 + $0x8] sm:$0xff] %vm5982_vm3, %v5987_v41  ;;  %6248 = vmatpush.msra.mxu1 %v7996_v51  ;;  %6092 = vmatpush.msra.mxu0 %v6004_v43  ;;  %v8101_v41 = vld [vmem:[%s13795_s7 + $0x550] sm:$0xff]  ;;  %v6021_v51 = vld [vmem:[%s13795_s7 + $0x88] sm:$0xff] }
 0x83f   : > { %6413 = vmatpush.msrb.mxu2 %v8088_v44  ;;  %6436 = vmatpush.msrb.mxu3 %v8101_v41  ;;  %v8092_v43 = vld [vmem:[%s13795_s7 + $0x508] sm:$0xff]  ;;  %v8154_v44 = vld [vmem:[%s13795_s7 + $0x6f8] sm:$0xff]  ;;  %v8151_v41 = vld [vmem:[%s13795_s7 + $0x6e0] sm:$0xff] }
 0x840   : > { %6249 = vmatpush.msra.mxu1 %v7995_v36  ;;  %6097 = vmatpush.msrb.mxu0 %v6035_v55  ;;  %v6020_v36 = vld [vmem:[%s13795_s7 + $0x80] sm:$0xff] }
 0x841   : > { %6414 = vmatpush.msrb.mxu2 %v8087_v30  ;;  %6437 = vmatpush.msrb.mxu3 %v8100_v33  ;;  %v8091_v55 = vld [vmem:[%s13795_s7 + $0x500] sm:$0xff]  ;;  %v8153_v30 = vld [vmem:[%s13795_s7 + $0x6f0] sm:$0xff] }
 0x842   : > { %6391 = vmatpush.msrb.mxu1 %v8074_v9  ;;  %6098 = vmatpush.msrb.mxu0 %v6034_v58 }
 0x843   : > { %6415 = vmatpush.msrb.mxu2 %v8086_v7  ;;  %6438 = vmatpush.msrb.mxu3 %v8099_v52  ;;  %v8152_v7 = vld [vmem:[%s13795_s7 + $0x6e8] sm:$0xff]  ;;  %v8166_v52 = vld [vmem:[%s13795_s7 + $0x758] sm:$0xff] }
 0x844   : > { %6392 = vmatpush.msrb.mxu1 %v8073_v2  ;;  %6099 = vmatpush.msrb.mxu0 %v6033_v8  ;;  %v6051_v2 = vld [vmem:[%s13795_s7 + $0x178] sm:$0xff] }
 0x845   : > { %6416 = vmatpush.msrb.mxu2 %v8085_v15  ;;  %6439 = vmatpush.msrb.mxu3 %v8098_v35  ;;  %v8165_v35 = vld [vmem:[%s13795_s7 + $0x750] sm:$0xff] }
 0x846   : > { %6393 = vmatpush.msrb.mxu1 %v8072_v25  ;;  %6100 = vmatpush.msrb.mxu0 %v6032_v47  ;;  %v8138_v25 = vld [vmem:[%s13795_s7 + $0x678] sm:$0xff]  ;;  %v6050_v47 = vld [vmem:[%s13795_s7 + $0x170] sm:$0xff] }
 0x847   : > { %6417 = vmatpush.msrb.mxu2 %v8084_v42  ;;  %6440 = vmatpush.msrb.mxu3 %v8097_v24  ;;  %v8164_v24 = vld [vmem:[%s13795_s7 + $0x748] sm:$0xff] }
 0x848   : > { %6394 = vmatpush.msrb.mxu1 %v8071_v49  ;;  %6101 = vmatpush.msrb.mxu0 %v6031_v23  ;;  %v8137_v49 = vld [vmem:[%s13795_s7 + $0x670] sm:$0xff]  ;;  %v6049_v23 = vld [vmem:[%s13795_s7 + $0x168] sm:$0xff] }
 0x849   : > { %6418 = vmatpush.msrb.mxu2 %v8083_v10  ;;  %6441 = vmatpush.msrb.mxu3 %v8096_v63  ;;  %v8150_v10 = vld [vmem:[%s13795_s7 + $0x6d8] sm:$0xff]  ;;  %v8163_v63 = vld [vmem:[%s13795_s7 + $0x740] sm:$0xff] }
 0x84a   : > { %6395 = vmatpush.msrb.mxu1 %v8070_v6  ;;  %6102 = vmatpush.msrb.mxu0 %v6030_v54  ;;  %v8136_v6 = vld [vmem:[%s13795_s7 + $0x668] sm:$0xff]  ;;  %v6048_v54 = vld [vmem:[%s13795_s7 + $0x160] sm:$0xff] }
 0x84b   : > { %6419 = vmatpush.msrb.mxu2 %v8082_v46  ;;  %6442 = vmatpush.msrb.mxu3 %v8095_v38  ;;  %v8149_v46 = vld [vmem:[%s13795_s7 + $0x6d0] sm:$0xff]  ;;  %v8162_v38 = vld [vmem:[%s13795_s7 + $0x738] sm:$0xff] }
 0x84c   : > { %6396 = vmatpush.msrb.mxu1 %v8069_v61  ;;  %6103 = vmatpush.msrb.mxu0 %v6029_v0  ;;  %v8135_v61 = vld [vmem:[%s13795_s7 + $0x660] sm:$0xff] }
 0x84d   : > { %6420 = vmatpush.msrb.mxu2 %v8081_v17  ;;  %6443 = vmatpush.msrb.mxu3 %v8094_v3  ;;  %v8167_v0 = vld [vmem:[%s13795_s7 + $0x760] sm:$0xff]  ;;  %v8148_v17 = vld [vmem:[%s13795_s7 + $0x6c8] sm:$0xff]  ;;  %v8161_v3 = vld [vmem:[%s13795_s7 + $0x730] sm:$0xff] }
 0x84e   : > { %6397 = vmatpush.msrb.mxu1 %v8068_v5  ;;  %6104 = vmatpush.msrb.mxu0 %v6028_v37  ;;  %v8134_v37 = vld [vmem:[%s13795_s7 + $0x658] sm:$0xff] }
 0x84f   : > { %6421 = vmatpush.msrb.mxu2 %v8080_v34  ;;  %6444 = vmatpush.msrb.mxu3 %v8093_v32  ;;  %v8147_v34 = vld [vmem:[%s13795_s7 + $0x6c0] sm:$0xff]  ;;  %v8160_v32 = vld [vmem:[%s13795_s7 + $0x728] sm:$0xff] }
 0x850   : > { %6398 = vmatpush.msrb.mxu1 %v8067_v57  ;;  %6105 = vmatpush.msrb.mxu0 %v6027_v18  ;;  %v6046_v18 = vld [vmem:[%s13795_s7 + $0x150] sm:$0xff] }
 0x851   : > { %6422 = vmatpush.msrb.mxu2 %v8079_v53  ;;  %6445 = vmatpush.msrb.mxu3 %v8092_v43  ;;  %v8146_v53 = vld [vmem:[%s13795_s7 + $0x6b8] sm:$0xff]  ;;  %v8159_v43 = vld [vmem:[%s13795_s7 + $0x720] sm:$0xff] }
 0x852   : > { %6399 = vmatpush.msrb.mxu1 %v8066_v27  ;;  %6106 = vmatpush.msrb.mxu0 %v6026_v29  ;;  %v8133_v27 = vld [vmem:[%s13795_s7 + $0x650] sm:$0xff]  ;;  %v6045_v29 = vld [vmem:[%s13795_s7 + $0x148] sm:$0xff] }
 0x853   : > { %6423 = vmatpush.msrb.mxu2 %v8078_v16  ;;  %6446 = vmatpush.msrb.mxu3 %v8091_v55  ;;  %v8145_v16 = vld [vmem:[%s13795_s7 + $0x6b0] sm:$0xff]  ;;  %v8158_v55 = vld [vmem:[%s13795_s7 + $0x718] sm:$0xff] }
 0x854   : > { %6400 = vmatpush.msrb.mxu1 %v8065_v20  ;;  %6107 = vmatpush.msrb.mxu0 %v6025_v28  ;;  %v8132_v20 = vld [vmem:[%s13795_s7 + $0x648] sm:$0xff]  ;;  %v6044_v28 = vld [vmem:[%s13795_s7 + $0x140] sm:$0xff] }
 0x855   : > { %6424 = vmatpush.msrb.mxu2 %v8077_v60  ;;  %v8144_v60 = vld [vmem:[%s13795_s7 + $0x6a8] sm:$0xff] }
 0x856   : > { %6401 = vmatpush.msrb.mxu1 %v8064_v62  ;;  %6108 = vmatpush.msrb.mxu0 %v6024_v4  ;;  %v8131_v62 = vld [vmem:[%s13795_s7 + $0x640] sm:$0xff]  ;;  %v6043_v4 = vld [vmem:[%s13795_s7 + $0x138] sm:$0xff] }
 0x857   : > { %6425 = vmatpush.msrb.mxu2 %v8076_v14  ;;  %v8143_v14 = vld [vmem:[%s13795_s7 + $0x6a0] sm:$0xff] }
 0x858   : > { %6402 = vmatpush.msrb.mxu1 %v8063_v48  ;;  %6109 = vmatpush.msrb.mxu0 %v6023_v50  ;;  %v8130_v48 = vld [vmem:[%s13795_s7 + $0x638] sm:$0xff]  ;;  %v6042_v50 = vld [vmem:[%s13795_s7 + $0x130] sm:$0xff] }
 0x859   : > { %6426 = vmatpush.msrb.mxu2 %v8075_v40  ;;  %v8142_v40 = vld [vmem:[%s13795_s7 + $0x698] sm:$0xff] }
 0x85a   : > { %6403 = vmatpush.msrb.mxu1 %v8062_v26  ;;  %6110 = vmatpush.msrb.mxu0 %v6022_v59  ;;  %v8129_v26 = vld [vmem:[%s13795_s7 + $0x630] sm:$0xff]  ;;  %v6041_v59 = vld [vmem:[%s13795_s7 + $0x128] sm:$0xff] }
 0x85c   : > { %6404 = vmatpush.msrb.mxu1 %v8061_v39  ;;  %6111 = vmatpush.msrb.mxu0 %v6021_v51  ;;  %v8128_v39 = vld [vmem:[%s13795_s7 + $0x628] sm:$0xff]  ;;  %v6040_v51 = vld [vmem:[%s13795_s7 + $0x120] sm:$0xff] }
 0x85e   : > { %6405 = vmatpush.msrb.mxu1 %v8060_v45  ;;  %6112 = vmatpush.msrb.mxu0 %v6020_v36  ;;  %v8127_v45 = vld [vmem:[%s13795_s7 + $0x620] sm:$0xff]  ;;  %v6039_v36 = vld [vmem:[%s13795_s7 + $0x118] sm:$0xff] }
 0x860   : > { %6406 = vmatpush.msrb.mxu1 %v8059_v1  ;;  %v8126_v1 = vld [vmem:[%s13795_s7 + $0x618] sm:$0xff] }
 0x86d   : > { %v5993_v12 = vpop.permute.xlu0 %5992 }
 0x86e   : > { %5995 = vst.msk [vmem:[#allocation4 + $0x10] sm:$0xff] %vm5982_vm3, %v5993_v12  ;;  %v6047_v12 = vld [vmem:[%s13795_s7 + $0x158] sm:$0xff] }
 0x895   : > { %v5999_v9 = vpop.permute.xlu1 %5998 }
 0x896   : > { %6001 = vst.msk [vmem:[#allocation4 + $0x18] sm:$0xff] %vm5982_vm3, %v5999_v9  ;;  %v6038_v9 = vld [vmem:[%s13795_s7 + $0x110] sm:$0xff] }
 0x89d   : > { %v12514_v11 = vld [vmem:[#allocation4] ss:$8 sm:$0xf]  ;;  %v12516_v56 = vld [vmem:[#allocation4 + $0x1] ss:$8 sm:$0xf] }
 0x89e   : > { %v6069_v58 = vperm.slane %v12514_v11, 0  ;;  %v6226_v19 = vperm.slane %v12516_v56, 0  ;;  %v6227_v21 = vperm.slane %v12516_v56, 1  ;;  %v6228_v8 = vperm.slane %v12516_v56, 2 }
 0x89f   : > { %v6316_v15 = vld [vmem:[#allocation4 + $0x2] ss:$8 sm:$0xf]  ;;  %v6070_v5 = vperm.slane %v12514_v11, 1 }
 0x8a0   : > { %6093 = vmatmul.f32.vlgmr.msra.gmra.mxu0 %v6069_v58  ;;  %6250 = vmatmul.f32.vlgmr.msra.gmra.mxu1 %v6226_v19  ;;  %v6383_v42 = vperm.slane %v6316_v15, 0  ;;  %v6384_v33 = vperm.slane %v6316_v15, 1  ;;  %v6385_v57 = vperm.slane %v6316_v15, 2  ;;  %v8125_v58 = vld [vmem:[%s13795_s7 + $0x610] sm:$0xff]  ;;  %v8218_v15 = vld [vmem:[%s13795_s7 + $0x8f8] sm:$0xff] }
 0x8a1   : > { %6117 = vmatpush.msra.mxu0 %v6051_v2  ;;  %6270 = vmatmul.f32.vlgmr.msra.gmra.mxu2 %v6227_v21  ;;  %v8141_v2 = vld [vmem:[%s13795_s7 + $0x690] sm:$0xff]  ;;  %v6037_v21 = vld [vmem:[%s13795_s7 + $0x108] sm:$0xff] }
 0x8a2   : > { %6290 = vmatmul.f32.vlgmr.msra.gmra.mxu3 %v6228_v8  ;;  %6548 = vmatpush.msra.mxu1 %v8138_v25  ;;  %v8157_v19 = vld [vmem:[%s13795_s7 + $0x710] sm:$0xff]  ;;  %v8124_v8 = vld [vmem:[%s13795_s7 + $0x608] sm:$0xff] }
 0x8a3   : > { %6568 = vmatpush.msra.mxu2 %v8154_v44  ;;  %6588 = vmatpush.msra.mxu3 %v8170_v22  ;;  %v8140_v25 = vld [vmem:[%s13795_s7 + $0x688] sm:$0xff]  ;;  %v6036_v22 = vld [vmem:[%s13795_s7 + $0x100] sm:$0xff] }
 0x8a4   : > { %6118 = vmatpush.msra.mxu0 %v6050_v47  ;;  %6549 = vmatpush.msra.mxu1 %v8137_v49  ;;  %v8156_v44 = vld [vmem:[%s13795_s7 + $0x708] sm:$0xff]  ;;  %v8123_v47 = vld [vmem:[%s13795_s7 + $0x600] sm:$0xff] }
 0x8a5   : > { %6569 = vmatpush.msra.mxu2 %v8153_v30  ;;  %6589 = vmatpush.msra.mxu3 %v8169_v31  ;;  %v6473_v49 = vld [vmem:[#allocation4 + $0x3] ss:$8 sm:$0xf] }
 0x8a6   : > { %6119 = vmatpush.msra.mxu0 %v6049_v23  ;;  %6550 = vmatpush.msra.mxu1 %v8136_v6  ;;  %v8139_v30 = vld [vmem:[%s13795_s7 + $0x680] sm:$0xff]  ;;  %v6071_v23 = vperm.slane %v12514_v11, 2  ;;  %v6067_v6 = vld [vmem:[%s13795_s7 + $0x1f8] sm:$0xff] }
 0x8a7   : > { %6570 = vmatpush.msra.mxu2 %v8152_v7  ;;  %6590 = vmatpush.msra.mxu3 %v8168_v13  ;;  %v8155_v31 = vld [vmem:[%s13795_s7 + $0x700] sm:$0xff]  ;;  %v6540_v7 = vperm.slane %v6473_v49, 0  ;;  %v6541_v13 = vperm.slane %v6473_v49, 1 }
 0x8a8   : > { %6120 = vmatpush.msra.mxu0 %v6048_v54  ;;  %6551 = vmatpush.msra.mxu1 %v8135_v61  ;;  %v8202_v54 = vld [vmem:[%s13795_s7 + $0x878] sm:$0xff]  ;;  %v6542_v61 = vperm.slane %v6473_v49, 2  ;;  %v8221_v49 = vld [vmem:[%s13795_s7 + $0x910] sm:$0xff] }
 0x8a9   : > { %6571 = vmatpush.msra.mxu2 %v8151_v41  ;;  %6591 = vmatpush.msra.mxu3 %v8167_v0  ;;  %v8234_v41 = vld [vmem:[%s13795_s7 + $0x978] sm:$0xff]  ;;  %v6066_v0 = vld [vmem:[%s13795_s7 + $0x1f0] sm:$0xff] }
 0x8aa   : > { %6113 = vmatmul.f32.vlgmr.msrb.gmra.mxu0 %v6070_v5  ;;  %6407 = vmatmul.f32.vlgmr.msrb.gmra.mxu1 %v6383_v42  ;;  %v8201_v5 = vld [vmem:[%s13795_s7 + $0x870] sm:$0xff] }
 0x8ab   : > { %6121 = vmatpush.msra.mxu0 %v6047_v12  ;;  %6427 = vmatmul.f32.vlgmr.msrb.gmra.mxu2 %v6384_v33  ;;  %v8217_v12 = vld [vmem:[%s13795_s7 + $0x8f0] sm:$0xff]  ;;  %v6065_v33 = vld [vmem:[%s13795_s7 + $0x1e8] sm:$0xff] }
 0x8ac   : > { %6447 = vmatmul.f32.vlgmr.msrb.gmra.mxu3 %v6385_v57  ;;  %6552 = vmatpush.msra.mxu1 %v8134_v37  ;;  %v8233_v42 = vld [vmem:[%s13795_s7 + $0x970] sm:$0xff]  ;;  %v8200_v37 = vld [vmem:[%s13795_s7 + $0x868] sm:$0xff] }
 0x8ad   : > { %6572 = vmatpush.msra.mxu2 %v8150_v10  ;;  %6592 = vmatpush.msra.mxu3 %v8166_v52  ;;  %v8216_v57 = vld [vmem:[%s13795_s7 + $0x8e8] sm:$0xff]  ;;  %v6064_v52 = vld [vmem:[%s13795_s7 + $0x1e0] sm:$0xff] }
 0x8ae   : > { %6122 = vmatpush.msra.mxu0 %v6046_v18  ;;  %6553 = vmatpush.msra.mxu1 %v8133_v27  ;;  %v8232_v10 = vld [vmem:[%s13795_s7 + $0x968] sm:$0xff]  ;;  %v8199_v18 = vld [vmem:[%s13795_s7 + $0x860] sm:$0xff] }
 0x8af   : > { %6573 = vmatpush.msra.mxu2 %v8149_v46  ;;  %6593 = vmatpush.msra.mxu3 %v8165_v35  ;;  %v8215_v27 = vld [vmem:[%s13795_s7 + $0x8e0] sm:$0xff]  ;;  %v6063_v35 = vld [vmem:[%s13795_s7 + $0x1d8] sm:$0xff] }
 0x8b0   : > { %6123 = vmatpush.msra.mxu0 %v6045_v29  ;;  %6554 = vmatpush.msra.mxu1 %v8132_v20  ;;  %v8231_v46 = vld [vmem:[%s13795_s7 + $0x960] sm:$0xff]  ;;  %v8198_v29 = vld [vmem:[%s13795_s7 + $0x858] sm:$0xff] }
 0x8b1   : > { %6574 = vmatpush.msra.mxu2 %v8148_v17  ;;  %6594 = vmatpush.msra.mxu3 %v8164_v24  ;;  %v8214_v20 = vld [vmem:[%s13795_s7 + $0x8d8] sm:$0xff]  ;;  %v6062_v24 = vld [vmem:[%s13795_s7 + $0x1d0] sm:$0xff] }
 0x8b2   : > { %6124 = vmatpush.msra.mxu0 %v6044_v28  ;;  %6555 = vmatpush.msra.mxu1 %v8131_v62  ;;  %v8230_v17 = vld [vmem:[%s13795_s7 + $0x958] sm:$0xff]  ;;  %v8197_v28 = vld [vmem:[%s13795_s7 + $0x850] sm:$0xff] }
 0x8b3   : > { %6575 = vmatpush.msra.mxu2 %v8147_v34  ;;  %6595 = vmatpush.msra.mxu3 %v8163_v63  ;;  %v8213_v62 = vld [vmem:[%s13795_s7 + $0x8d0] sm:$0xff]  ;;  %v6061_v63 = vld [vmem:[%s13795_s7 + $0x1c8] sm:$0xff] }
 0x8b4   : > { %6125 = vmatpush.msra.mxu0 %v6043_v4  ;;  %6556 = vmatpush.msra.mxu1 %v8130_v48  ;;  %v8229_v34 = vld [vmem:[%s13795_s7 + $0x950] sm:$0xff]  ;;  %v8196_v4 = vld [vmem:[%s13795_s7 + $0x848] sm:$0xff] }
 0x8b5   : > { %6576 = vmatpush.msra.mxu2 %v8146_v53  ;;  %6596 = vmatpush.msra.mxu3 %v8162_v38  ;;  %v8212_v48 = vld [vmem:[%s13795_s7 + $0x8c8] sm:$0xff]  ;;  %v6060_v38 = vld [vmem:[%s13795_s7 + $0x1c0] sm:$0xff] }
 0x8b6   : > { %6126 = vmatpush.msra.mxu0 %v6042_v50  ;;  %6557 = vmatpush.msra.mxu1 %v8129_v26  ;;  %v8228_v53 = vld [vmem:[%s13795_s7 + $0x948] sm:$0xff]  ;;  %v8195_v50 = vld [vmem:[%s13795_s7 + $0x840] sm:$0xff] }
 0x8b7   : > { %6577 = vmatpush.msra.mxu2 %v8145_v16  ;;  %6597 = vmatpush.msra.mxu3 %v8161_v3  ;;  %v8211_v26 = vld [vmem:[%s13795_s7 + $0x8c0] sm:$0xff]  ;;  %v6059_v3 = vld [vmem:[%s13795_s7 + $0x1b8] sm:$0xff] }
 0x8b8   : > { %6127 = vmatpush.msra.mxu0 %v6041_v59  ;;  %6558 = vmatpush.msra.mxu1 %v8128_v39  ;;  %v8227_v16 = vld [vmem:[%s13795_s7 + $0x940] sm:$0xff]  ;;  %v8194_v59 = vld [vmem:[%s13795_s7 + $0x838] sm:$0xff] }
 0x8b9   : > { %6578 = vmatpush.msra.mxu2 %v8144_v60  ;;  %6598 = vmatpush.msra.mxu3 %v8160_v32  ;;  %v8210_v39 = vld [vmem:[%s13795_s7 + $0x8b8] sm:$0xff]  ;;  %v6058_v32 = vld [vmem:[%s13795_s7 + $0x1b0] sm:$0xff] }
 0x8ba   : > { %6128 = vmatpush.msra.mxu0 %v6040_v51  ;;  %6559 = vmatpush.msra.mxu1 %v8127_v45  ;;  %v8226_v60 = vld [vmem:[%s13795_s7 + $0x938] sm:$0xff]  ;;  %v8193_v51 = vld [vmem:[%s13795_s7 + $0x830] sm:$0xff] }
 0x8bb   : > { %6579 = vmatpush.msra.mxu2 %v8143_v14  ;;  %6599 = vmatpush.msra.mxu3 %v8159_v43  ;;  %v8209_v45 = vld [vmem:[%s13795_s7 + $0x8b0] sm:$0xff]  ;;  %v6057_v43 = vld [vmem:[%s13795_s7 + $0x1a8] sm:$0xff] }
 0x8bc   : > { %6129 = vmatpush.msra.mxu0 %v6039_v36  ;;  %6560 = vmatpush.msra.mxu1 %v8126_v1  ;;  %v8225_v14 = vld [vmem:[%s13795_s7 + $0x930] sm:$0xff]  ;;  %v8192_v36 = vld [vmem:[%s13795_s7 + $0x828] sm:$0xff] }
 0x8bd   : > { %6580 = vmatpush.msra.mxu2 %v8142_v40  ;;  %6600 = vmatpush.msra.mxu3 %v8158_v55  ;;  %v8208_v1 = vld [vmem:[%s13795_s7 + $0x8a8] sm:$0xff]  ;;  %v6056_v55 = vld [vmem:[%s13795_s7 + $0x1a0] sm:$0xff] }
 0x8be   : > { %6130 = vmatpush.msra.mxu0 %v6038_v9  ;;  %6561 = vmatpush.msra.mxu1 %v8125_v58  ;;  %v8224_v40 = vld [vmem:[%s13795_s7 + $0x928] sm:$0xff]  ;;  %v8191_v9 = vld [vmem:[%s13795_s7 + $0x820] sm:$0xff] }
 0x8bf   : > { %6581 = vmatpush.msra.mxu2 %v8141_v2  ;;  %6601 = vmatpush.msra.mxu3 %v8157_v19  ;;  %v8207_v58 = vld [vmem:[%s13795_s7 + $0x8a0] sm:$0xff]  ;;  %v6055_v19 = vld [vmem:[%s13795_s7 + $0x198] sm:$0xff] }
 0x8c0   : > { %6131 = vmatpush.msra.mxu0 %v6037_v21  ;;  %6562 = vmatpush.msra.mxu1 %v8124_v8  ;;  %v8223_v2 = vld [vmem:[%s13795_s7 + $0x920] sm:$0xff]  ;;  %v8190_v21 = vld [vmem:[%s13795_s7 + $0x818] sm:$0xff] }
 0x8c1   : > { %6582 = vmatpush.msra.mxu2 %v8140_v25  ;;  %6602 = vmatpush.msra.mxu3 %v8156_v44  ;;  %v8206_v8 = vld [vmem:[%s13795_s7 + $0x898] sm:$0xff]  ;;  %v6054_v44 = vld [vmem:[%s13795_s7 + $0x190] sm:$0xff] }
 0x8c2   : > { %6132 = vmatpush.msra.mxu0 %v6036_v22  ;;  %6563 = vmatpush.msra.mxu1 %v8123_v47  ;;  %v8222_v25 = vld [vmem:[%s13795_s7 + $0x918] sm:$0xff]  ;;  %v8189_v22 = vld [vmem:[%s13795_s7 + $0x810] sm:$0xff] }
 0x8c3   : > { %6583 = vmatpush.msra.mxu2 %v8139_v30  ;;  %6603 = vmatpush.msra.mxu3 %v8155_v31  ;;  %v8205_v47 = vld [vmem:[%s13795_s7 + $0x890] sm:$0xff]  ;;  %v6053_v30 = vld [vmem:[%s13795_s7 + $0x188] sm:$0xff] }
 0x8c4   : > { %6133 = vmatmul.f32.vlgmr.msra.gmra.mxu0 %v6071_v23  ;;  %6564 = vmatmul.f32.vlgmr.msra.gmra.mxu1 %v6540_v7  ;;  %v8188_v31 = vld [vmem:[%s13795_s7 + $0x808] sm:$0xff]  ;;  %v6052_v7 = vld [vmem:[%s13795_s7 + $0x180] sm:$0xff] }
 0x8c5   : > { %6137 = vmatpush.msrb.mxu0 %v6067_v6  ;;  %6584 = vmatmul.f32.vlgmr.msra.gmra.mxu2 %v6541_v13  ;;  %v8204_v23 = vld [vmem:[%s13795_s7 + $0x888] sm:$0xff]  ;;  %v8187_v13 = vld [vmem:[%s13795_s7 + $0x800] sm:$0xff] }
 0x8c6   : > { %6604 = vmatmul.f32.vlgmr.msra.gmra.mxu3 %v6542_v61  ;;  %6705 = vmatpush.msrb.mxu1 %v8202_v54  ;;  %v8220_v6 = vld [vmem:[%s13795_s7 + $0x908] sm:$0xff]  ;;  %v8203_v61 = vld [vmem:[%s13795_s7 + $0x880] sm:$0xff] }
 0x8c7   : > { %6725 = vmatpush.msrb.mxu2 %v8218_v15  ;;  %6745 = vmatpush.msrb.mxu3 %v8234_v41  ;;  %v12902_v54 = vld [vmem:[#allocation4 + $0x4] ss:$8 sm:$0xf]  ;;  %v6072_v41 = vperm.slane %v12514_v11, 3 }
 0x8c8   : > { %6138 = vmatpush.msrb.mxu0 %v6066_v0  ;;  %6706 = vmatpush.msrb.mxu1 %v8201_v5  ;;  %v8219_v15 = vld [vmem:[%s13795_s7 + $0x900] sm:$0xff]  ;;  %v8058_v0 = vld [vmem:[%s13795_s7 + $0x3f8] sm:$0xff]  ;;  %v6697_v5 = vperm.slane %v12902_v54, 0 }
 0x8c9   : > { %6726 = vmatpush.msrb.mxu2 %v8217_v12  ;;  %6746 = vmatpush.msrb.mxu3 %v8233_v42  ;;  %v6698_v12 = vperm.slane %v12902_v54, 1  ;;  %v8266_v42 = vld [vmem:[%s13795_s7 + $0xa78] sm:$0xff] }
 0x8ca   : > { %6139 = vmatpush.msrb.mxu0 %v6065_v33  ;;  %6707 = vmatpush.msrb.mxu1 %v8200_v37  ;;  %v6699_v33 = vperm.slane %v12902_v54, 2  ;;  %v8282_v11 = vld [vmem:[%s13795_s7 + $0xaf8] sm:$0xff] }
 0x8cb   : > { %6727 = vmatpush.msrb.mxu2 %v8216_v57  ;;  %6747 = vmatpush.msrb.mxu3 %v8232_v10  ;;  %v8298_v37 = vld [vmem:[%s13795_s7 + $0xb78] sm:$0xff]  ;;  %v8057_v57 = vld [vmem:[%s13795_s7 + $0x3f0] sm:$0xff] }
 0x8cc   : > { %6140 = vmatpush.msrb.mxu0 %v6064_v52  ;;  %6708 = vmatpush.msrb.mxu1 %v8199_v18  ;;  %v8265_v10 = vld [vmem:[%s13795_s7 + $0xa70] sm:$0xff] }
 0x8cd   : > { %6728 = vmatpush.msrb.mxu2 %v8215_v27  ;;  %6748 = vmatpush.msrb.mxu3 %v8231_v46  ;;  %v8281_v52 = vld [vmem:[%s13795_s7 + $0xaf0] sm:$0xff]  ;;  %v8056_v27 = vld [vmem:[%s13795_s7 + $0x3e8] sm:$0xff] }
 0x8ce   : > { %6141 = vmatpush.msrb.mxu0 %v6063_v35  ;;  %6709 = vmatpush.msrb.mxu1 %v8198_v29  ;;  %v8297_v18 = vld [vmem:[%s13795_s7 + $0xb70] sm:$0xff]  ;;  %v8264_v46 = vld [vmem:[%s13795_s7 + $0xa68] sm:$0xff] }
 0x8cf   : > { %6729 = vmatpush.msrb.mxu2 %v8214_v20  ;;  %6749 = vmatpush.msrb.mxu3 %v8230_v17  ;;  %v8280_v35 = vld [vmem:[%s13795_s7 + $0xae8] sm:$0xff]  ;;  %v8055_v20 = vld [vmem:[%s13795_s7 + $0x3e0] sm:$0xff] }
 0x8d0   : > { %6142 = vmatpush.msrb.mxu0 %v6062_v24  ;;  %6710 = vmatpush.msrb.mxu1 %v8197_v28  ;;  %v8296_v29 = vld [vmem:[%s13795_s7 + $0xb68] sm:$0xff]  ;;  %v8263_v17 = vld [vmem:[%s13795_s7 + $0xa60] sm:$0xff] }
 0x8d1   : > { %6730 = vmatpush.msrb.mxu2 %v8213_v62  ;;  %6750 = vmatpush.msrb.mxu3 %v8229_v34  ;;  %v8279_v24 = vld [vmem:[%s13795_s7 + $0xae0] sm:$0xff]  ;;  %v8054_v62 = vld [vmem:[%s13795_s7 + $0x3d8] sm:$0xff] }
 0x8d2   : > { %6143 = vmatpush.msrb.mxu0 %v6061_v63  ;;  %6711 = vmatpush.msrb.mxu1 %v8196_v4  ;;  %v8295_v28 = vld [vmem:[%s13795_s7 + $0xb60] sm:$0xff]  ;;  %v8262_v34 = vld [vmem:[%s13795_s7 + $0xa58] sm:$0xff] }
 0x8d3   : > { %6731 = vmatpush.msrb.mxu2 %v8212_v48  ;;  %6751 = vmatpush.msrb.mxu3 %v8228_v53  ;;  %v8278_v63 = vld [vmem:[%s13795_s7 + $0xad8] sm:$0xff]  ;;  %v8053_v48 = vld [vmem:[%s13795_s7 + $0x3d0] sm:$0xff] }
 0x8d4   : > { %6144 = vmatpush.msrb.mxu0 %v6060_v38  ;;  %6712 = vmatpush.msrb.mxu1 %v8195_v50  ;;  %v8294_v4 = vld [vmem:[%s13795_s7 + $0xb58] sm:$0xff]  ;;  %v8261_v53 = vld [vmem:[%s13795_s7 + $0xa50] sm:$0xff] }
 0x8d5   : > { %6732 = vmatpush.msrb.mxu2 %v8211_v26  ;;  %6752 = vmatpush.msrb.mxu3 %v8227_v16  ;;  %v8277_v38 = vld [vmem:[%s13795_s7 + $0xad0] sm:$0xff]  ;;  %v8052_v26 = vld [vmem:[%s13795_s7 + $0x3c8] sm:$0xff] }
 0x8d6   : > { %6145 = vmatpush.msrb.mxu0 %v6059_v3  ;;  %6713 = vmatpush.msrb.mxu1 %v8194_v59  ;;  %v8293_v50 = vld [vmem:[%s13795_s7 + $0xb50] sm:$0xff]  ;;  %v8260_v16 = vld [vmem:[%s13795_s7 + $0xa48] sm:$0xff] }
 0x8d7   : > { %6733 = vmatpush.msrb.mxu2 %v8210_v39  ;;  %6753 = vmatpush.msrb.mxu3 %v8226_v60  ;;  %v8276_v3 = vld [vmem:[%s13795_s7 + $0xac8] sm:$0xff]  ;;  %v8051_v39 = vld [vmem:[%s13795_s7 + $0x3c0] sm:$0xff] }
 0x8d8   : > { %6146 = vmatpush.msrb.mxu0 %v6058_v32  ;;  %6714 = vmatpush.msrb.mxu1 %v8193_v51  ;;  %v8292_v59 = vld [vmem:[%s13795_s7 + $0xb48] sm:$0xff]  ;;  %v8259_v60 = vld [vmem:[%s13795_s7 + $0xa40] sm:$0xff] }
 0x8d9   : > { %6734 = vmatpush.msrb.mxu2 %v8209_v45  ;;  %6754 = vmatpush.msrb.mxu3 %v8225_v14  ;;  %v8275_v32 = vld [vmem:[%s13795_s7 + $0xac0] sm:$0xff]  ;;  %v8050_v45 = vld [vmem:[%s13795_s7 + $0x3b8] sm:$0xff] }
 0x8da   : > { %6147 = vmatpush.msrb.mxu0 %v6057_v43  ;;  %6715 = vmatpush.msrb.mxu1 %v8192_v36  ;;  %v8291_v51 = vld [vmem:[%s13795_s7 + $0xb40] sm:$0xff]  ;;  %v8258_v14 = vld [vmem:[%s13795_s7 + $0xa38] sm:$0xff] }
 0x8db   : > { %6735 = vmatpush.msrb.mxu2 %v8208_v1  ;;  %6755 = vmatpush.msrb.mxu3 %v8224_v40  ;;  %v8274_v43 = vld [vmem:[%s13795_s7 + $0xab8] sm:$0xff]  ;;  %v8049_v1 = vld [vmem:[%s13795_s7 + $0x3b0] sm:$0xff] }
 0x8dc   : > { %6148 = vmatpush.msrb.mxu0 %v6056_v55  ;;  %6716 = vmatpush.msrb.mxu1 %v8191_v9  ;;  %v8290_v36 = vld [vmem:[%s13795_s7 + $0xb38] sm:$0xff]  ;;  %v8257_v40 = vld [vmem:[%s13795_s7 + $0xa30] sm:$0xff] }
 0x8dd   : > { %6736 = vmatpush.msrb.mxu2 %v8207_v58  ;;  %6756 = vmatpush.msrb.mxu3 %v8223_v2  ;;  %v8273_v55 = vld [vmem:[%s13795_s7 + $0xab0] sm:$0xff]  ;;  %v8048_v58 = vld [vmem:[%s13795_s7 + $0x3a8] sm:$0xff] }
 0x8de   : > { %6149 = vmatpush.msrb.mxu0 %v6055_v19  ;;  %6717 = vmatpush.msrb.mxu1 %v8190_v21  ;;  %v8289_v9 = vld [vmem:[%s13795_s7 + $0xb30] sm:$0xff]  ;;  %v8256_v2 = vld [vmem:[%s13795_s7 + $0xa28] sm:$0xff] }
 0x8df   : > { %6737 = vmatpush.msrb.mxu2 %v8206_v8  ;;  %6757 = vmatpush.msrb.mxu3 %v8222_v25  ;;  %v8272_v19 = vld [vmem:[%s13795_s7 + $0xaa8] sm:$0xff]  ;;  %v8047_v8 = vld [vmem:[%s13795_s7 + $0x3a0] sm:$0xff] }
 0x8e0   : > { %6150 = vmatpush.msrb.mxu0 %v6054_v44  ;;  %6718 = vmatpush.msrb.mxu1 %v8189_v22  ;;  %v8288_v21 = vld [vmem:[%s13795_s7 + $0xb28] sm:$0xff]  ;;  %v8255_v25 = vld [vmem:[%s13795_s7 + $0xa20] sm:$0xff] }
 0x8e1   : > { %6738 = vmatpush.msrb.mxu2 %v8205_v47  ;;  %6758 = vmatpush.msrb.mxu3 %v8221_v49  ;;  %v8271_v44 = vld [vmem:[%s13795_s7 + $0xaa0] sm:$0xff]  ;;  %v8046_v47 = vld [vmem:[%s13795_s7 + $0x398] sm:$0xff] }
 0x8e2   : > { %6151 = vmatpush.msrb.mxu0 %v6053_v30  ;;  %6719 = vmatpush.msrb.mxu1 %v8188_v31  ;;  %v8287_v22 = vld [vmem:[%s13795_s7 + $0xb20] sm:$0xff]  ;;  %v8254_v49 = vld [vmem:[%s13795_s7 + $0xa18] sm:$0xff] }
 0x8e3   : > { %6739 = vmatpush.msrb.mxu2 %v8204_v23  ;;  %6759 = vmatpush.msrb.mxu3 %v8220_v6  ;;  %v8270_v30 = vld [vmem:[%s13795_s7 + $0xa98] sm:$0xff]  ;;  %v8045_v23 = vld [vmem:[%s13795_s7 + $0x390] sm:$0xff] }
 0x8e4   : > { %6152 = vmatpush.msrb.mxu0 %v6052_v7  ;;  %6720 = vmatpush.msrb.mxu1 %v8187_v13  ;;  %v8286_v31 = vld [vmem:[%s13795_s7 + $0xb18] sm:$0xff]  ;;  %v8253_v6 = vld [vmem:[%s13795_s7 + $0xa10] sm:$0xff] }
 0x8e5   : > { %6740 = vmatpush.msrb.mxu2 %v8203_v61  ;;  %6760 = vmatpush.msrb.mxu3 %v8219_v15  ;;  %v8269_v7 = vld [vmem:[%s13795_s7 + $0xa90] sm:$0xff]  ;;  %v8044_v61 = vld [vmem:[%s13795_s7 + $0x388] sm:$0xff] }
 0x8e6   : > { %6153 = vmatmul.f32.vlgmr.msrb.gmra.mxu0 %v6072_v41  ;;  %6721 = vmatmul.f32.vlgmr.msrb.gmra.mxu1 %v6697_v5  ;;  %v8285_v13 = vld [vmem:[%s13795_s7 + $0xb10] sm:$0xff]  ;;  %v8252_v15 = vld [vmem:[%s13795_s7 + $0xa08] sm:$0xff]  ;;  %v8043_v5 = vld [vmem:[%s13795_s7 + $0x380] sm:$0xff] }
 0x8e7   : > { %6294 = vmatpush.msra.mxu0 %v8058_v0  ;;  %6741 = vmatmul.f32.vlgmr.msrb.gmra.mxu2 %v6698_v12  ;;  %v8268_v41 = vld [vmem:[%s13795_s7 + $0xa88] sm:$0xff]  ;;  %v8251_v12 = vld [vmem:[%s13795_s7 + $0xa00] sm:$0xff] }
 0x8e8   : > { %6761 = vmatmul.f32.vlgmr.msrb.gmra.mxu3 %v6699_v33  ;;  %6862 = vmatpush.msra.mxu1 %v8266_v42  ;;  %v8284_v0 = vld [vmem:[%s13795_s7 + $0xb08] sm:$0xff]  ;;  %v8267_v33 = vld [vmem:[%s13795_s7 + $0xa80] sm:$0xff] }
 0x8e9   : > { %6882 = vmatpush.msra.mxu2 %v8282_v11  ;;  %6902 = vmatpush.msra.mxu3 %v8298_v37  ;;  %v13100_v42 = vld [vmem:[#allocation4 + $0x5] ss:$8 sm:$0xf]  ;;  %v6229_v37 = vperm.slane %v12516_v56, 3 }
 0x8ea   : > { %6295 = vmatpush.msra.mxu0 %v8057_v57  ;;  %6863 = vmatpush.msra.mxu1 %v8265_v10  ;;  %v8283_v11 = vld [vmem:[%s13795_s7 + $0xb00] sm:$0xff]  ;;  %v8122_v57 = vld [vmem:[%s13795_s7 + $0x5f8] sm:$0xff]  ;;  %v6854_v10 = vperm.slane %v13100_v42, 0 }
 0x8eb   : > { %6883 = vmatpush.msra.mxu2 %v8281_v52  ;;  %6903 = vmatpush.msra.mxu3 %v8297_v18  ;;  %v6855_v52 = vperm.slane %v13100_v42, 1  ;;  %v8330_v18 = vld [vmem:[%s13795_s7 + $0xc78] sm:$0xff] }
 0x8ec   : > { %6296 = vmatpush.msra.mxu0 %v8056_v27  ;;  %6864 = vmatpush.msra.mxu1 %v8264_v46  ;;  %v6856_v27 = vperm.slane %v13100_v42, 2  ;;  %v8346_v56 = vld [vmem:[%s13795_s7 + $0xcf8] sm:$0xff] }
 0x8ed   : > { %6884 = vmatpush.msra.mxu2 %v8280_v35  ;;  %6904 = vmatpush.msra.mxu3 %v8296_v29  ;;  %v8362_v46 = vld [vmem:[%s13795_s7 + $0xd78] sm:$0xff]  ;;  %v8121_v35 = vld [vmem:[%s13795_s7 + $0x5f0] sm:$0xff] }
 0x8ee   : > { %6297 = vmatpush.msra.mxu0 %v8055_v20  ;;  %6865 = vmatpush.msra.mxu1 %v8263_v17  ;;  %v8329_v29 = vld [vmem:[%s13795_s7 + $0xc70] sm:$0xff] }
 0x8ef   : > { %6885 = vmatpush.msra.mxu2 %v8279_v24  ;;  %6905 = vmatpush.msra.mxu3 %v8295_v28  ;;  %v8345_v20 = vld [vmem:[%s13795_s7 + $0xcf0] sm:$0xff]  ;;  %v8120_v24 = vld [vmem:[%s13795_s7 + $0x5e8] sm:$0xff] }
 0x8f0   : > { %6298 = vmatpush.msra.mxu0 %v8054_v62  ;;  %6866 = vmatpush.msra.mxu1 %v8262_v34  ;;  %v8361_v17 = vld [vmem:[%s13795_s7 + $0xd70] sm:$0xff]  ;;  %v8328_v28 = vld [vmem:[%s13795_s7 + $0xc68] sm:$0xff] }
 0x8f1   : > { %6886 = vmatpush.msra.mxu2 %v8278_v63  ;;  %6906 = vmatpush.msra.mxu3 %v8294_v4  ;;  %v8344_v62 = vld [vmem:[%s13795_s7 + $0xce8] sm:$0xff]  ;;  %v8119_v63 = vld [vmem:[%s13795_s7 + $0x5e0] sm:$0xff] }
 0x8f2   : > { %6299 = vmatpush.msra.mxu0 %v8053_v48  ;;  %6867 = vmatpush.msra.mxu1 %v8261_v53  ;;  %v8360_v34 = vld [vmem:[%s13795_s7 + $0xd68] sm:$0xff]  ;;  %v8327_v4 = vld [vmem:[%s13795_s7 + $0xc60] sm:$0xff] }
 0x8f3   : > { %6887 = vmatpush.msra.mxu2 %v8277_v38  ;;  %6907 = vmatpush.msra.mxu3 %v8293_v50  ;;  %v8343_v48 = vld [vmem:[%s13795_s7 + $0xce0] sm:$0xff]  ;;  %v8118_v38 = vld [vmem:[%s13795_s7 + $0x5d8] sm:$0xff] }
 0x8f4   : > { %6300 = vmatpush.msra.mxu0 %v8052_v26  ;;  %6868 = vmatpush.msra.mxu1 %v8260_v16  ;;  %v8359_v53 = vld [vmem:[%s13795_s7 + $0xd60] sm:$0xff]  ;;  %v8326_v50 = vld [vmem:[%s13795_s7 + $0xc58] sm:$0xff] }
 0x8f5   : > { %6888 = vmatpush.msra.mxu2 %v8276_v3  ;;  %6908 = vmatpush.msra.mxu3 %v8292_v59  ;;  %v8342_v26 = vld [vmem:[%s13795_s7 + $0xcd8] sm:$0xff]  ;;  %v8117_v3 = vld [vmem:[%s13795_s7 + $0x5d0] sm:$0xff] }
 0x8f6   : > { %6301 = vmatpush.msra.mxu0 %v8051_v39  ;;  %6869 = vmatpush.msra.mxu1 %v8259_v60  ;;  %v8358_v16 = vld [vmem:[%s13795_s7 + $0xd58] sm:$0xff]  ;;  %v8325_v59 = vld [vmem:[%s13795_s7 + $0xc50] sm:$0xff] }
 0x8f7   : > { %6889 = vmatpush.msra.mxu2 %v8275_v32  ;;  %6909 = vmatpush.msra.mxu3 %v8291_v51  ;;  %v8341_v39 = vld [vmem:[%s13795_s7 + $0xcd0] sm:$0xff]  ;;  %v8116_v32 = vld [vmem:[%s13795_s7 + $0x5c8] sm:$0xff] }
 0x8f8   : > { %6302 = vmatpush.msra.mxu0 %v8050_v45  ;;  %6870 = vmatpush.msra.mxu1 %v8258_v14  ;;  %v8357_v60 = vld [vmem:[%s13795_s7 + $0xd50] sm:$0xff]  ;;  %v8324_v51 = vld [vmem:[%s13795_s7 + $0xc48] sm:$0xff] }
 0x8f9   : > { %6890 = vmatpush.msra.mxu2 %v8274_v43  ;;  %6910 = vmatpush.msra.mxu3 %v8290_v36  ;;  %v8340_v45 = vld [vmem:[%s13795_s7 + $0xcc8] sm:$0xff]  ;;  %v8115_v43 = vld [vmem:[%s13795_s7 + $0x5c0] sm:$0xff] }
 0x8fa   : > { %6303 = vmatpush.msra.mxu0 %v8049_v1  ;;  %6871 = vmatpush.msra.mxu1 %v8257_v40  ;;  %v8356_v14 = vld [vmem:[%s13795_s7 + $0xd48] sm:$0xff]  ;;  %v8323_v36 = vld [vmem:[%s13795_s7 + $0xc40] sm:$0xff] }
 0x8fb   : > { %6891 = vmatpush.msra.mxu2 %v8273_v55  ;;  %6911 = vmatpush.msra.mxu3 %v8289_v9  ;;  %v8339_v1 = vld [vmem:[%s13795_s7 + $0xcc0] sm:$0xff]  ;;  %v8114_v55 = vld [vmem:[%s13795_s7 + $0x5b8] sm:$0xff] }
 0x8fc   : > { %6304 = vmatpush.msra.mxu0 %v8048_v58  ;;  %6872 = vmatpush.msra.mxu1 %v8256_v2  ;;  %v8355_v40 = vld [vmem:[%s13795_s7 + $0xd40] sm:$0xff]  ;;  %v8322_v9 = vld [vmem:[%s13795_s7 + $0xc38] sm:$0xff] }
 0x8fd   : > { %6892 = vmatpush.msra.mxu2 %v8272_v19  ;;  %6912 = vmatpush.msra.mxu3 %v8288_v21  ;;  %v8338_v58 = vld [vmem:[%s13795_s7 + $0xcb8] sm:$0xff]  ;;  %v8113_v19 = vld [vmem:[%s13795_s7 + $0x5b0] sm:$0xff] }
 0x8fe   : > { %6305 = vmatpush.msra.mxu0 %v8047_v8  ;;  %6873 = vmatpush.msra.mxu1 %v8255_v25  ;;  %v8354_v2 = vld [vmem:[%s13795_s7 + $0xd38] sm:$0xff]  ;;  %v8321_v21 = vld [vmem:[%s13795_s7 + $0xc30] sm:$0xff] }
 0x8ff   : > { %6893 = vmatpush.msra.mxu2 %v8271_v44  ;;  %6913 = vmatpush.msra.mxu3 %v8287_v22  ;;  %v8337_v8 = vld [vmem:[%s13795_s7 + $0xcb0] sm:$0xff]  ;;  %v8112_v44 = vld [vmem:[%s13795_s7 + $0x5a8] sm:$0xff] }
 0x900   : > { %6306 = vmatpush.msra.mxu0 %v8046_v47  ;;  %6874 = vmatpush.msra.mxu1 %v8254_v49  ;;  %v8353_v25 = vld [vmem:[%s13795_s7 + $0xd30] sm:$0xff]  ;;  %v8320_v22 = vld [vmem:[%s13795_s7 + $0xc28] sm:$0xff] }
 0x901   : > { %6894 = vmatpush.msra.mxu2 %v8270_v30  ;;  %6914 = vmatpush.msra.mxu3 %v8286_v31  ;;  %v8336_v47 = vld [vmem:[%s13795_s7 + $0xca8] sm:$0xff]  ;;  %v8111_v30 = vld [vmem:[%s13795_s7 + $0x5a0] sm:$0xff] }
 0x902   : > { %6307 = vmatpush.msra.mxu0 %v8045_v23  ;;  %6875 = vmatpush.msra.mxu1 %v8253_v6  ;;  %v8352_v49 = vld [vmem:[%s13795_s7 + $0xd28] sm:$0xff]  ;;  %v8319_v31 = vld [vmem:[%s13795_s7 + $0xc20] sm:$0xff] }
 0x903   : > { %6895 = vmatpush.msra.mxu2 %v8269_v7  ;;  %6915 = vmatpush.msra.mxu3 %v8285_v13  ;;  %v8335_v23 = vld [vmem:[%s13795_s7 + $0xca0] sm:$0xff]  ;;  %v8110_v7 = vld [vmem:[%s13795_s7 + $0x598] sm:$0xff] }
 0x904   : > { %6308 = vmatpush.msra.mxu0 %v8044_v61  ;;  %6876 = vmatpush.msra.mxu1 %v8252_v15  ;;  %v8351_v6 = vld [vmem:[%s13795_s7 + $0xd20] sm:$0xff]  ;;  %v8318_v13 = vld [vmem:[%s13795_s7 + $0xc18] sm:$0xff] }
 0x905   : > { %6896 = vmatpush.msra.mxu2 %v8268_v41  ;;  %6916 = vmatpush.msra.mxu3 %v8284_v0  ;;  %v8334_v61 = vld [vmem:[%s13795_s7 + $0xc98] sm:$0xff]  ;;  %v8109_v41 = vld [vmem:[%s13795_s7 + $0x590] sm:$0xff] }
 0x906   : > { %6309 = vmatpush.msra.mxu0 %v8043_v5  ;;  %6877 = vmatpush.msra.mxu1 %v8251_v12  ;;  %v8350_v15 = vld [vmem:[%s13795_s7 + $0xd18] sm:$0xff]  ;;  %v8317_v0 = vld [vmem:[%s13795_s7 + $0xc10] sm:$0xff] }
 0x907   : > { %6897 = vmatpush.msra.mxu2 %v8267_v33  ;;  %6917 = vmatpush.msra.mxu3 %v8283_v11  ;;  %v8333_v5 = vld [vmem:[%s13795_s7 + $0xc90] sm:$0xff]  ;;  %v8108_v33 = vld [vmem:[%s13795_s7 + $0x588] sm:$0xff] }
 0x908   : > { %6310 = vmatmul.f32.vlgmr.msra.gmra.mxu0 %v6229_v37  ;;  %6878 = vmatmul.f32.vlgmr.msra.gmra.mxu1 %v6854_v10  ;;  %v8349_v12 = vld [vmem:[%s13795_s7 + $0xd10] sm:$0xff]  ;;  %v8316_v11 = vld [vmem:[%s13795_s7 + $0xc08] sm:$0xff]  ;;  %v8107_v10 = vld [vmem:[%s13795_s7 + $0x580] sm:$0xff] }
 0x909   : > { %6451 = vmatpush.msrb.mxu0 %v8122_v57  ;;  %6898 = vmatmul.f32.vlgmr.msra.gmra.mxu2 %v6855_v52  ;;  %v8332_v37 = vld [vmem:[%s13795_s7 + $0xc88] sm:$0xff]  ;;  %v8315_v52 = vld [vmem:[%s13795_s7 + $0xc00] sm:$0xff] }
 0x90a   : > { %6918 = vmatmul.f32.vlgmr.msra.gmra.mxu3 %v6856_v27  ;;  %7019 = vmatpush.msrb.mxu1 %v8330_v18  ;;  %v8348_v57 = vld [vmem:[%s13795_s7 + $0xd08] sm:$0xff]  ;;  %v8331_v27 = vld [vmem:[%s13795_s7 + $0xc80] sm:$0xff] }
 0x90b   : > { %7039 = vmatpush.msrb.mxu2 %v8346_v56  ;;  %7059 = vmatpush.msrb.mxu3 %v8362_v46  ;;  %v13298_v18 = vld [vmem:[#allocation4 + $0x6] ss:$8 sm:$0xf]  ;;  %v8491_v46 = vld [vmem:[#allocation4 + $0x2] ss:$8 sm:$0xf] }
 0x90c   : > { %6452 = vmatpush.msrb.mxu0 %v8121_v35  ;;  %7020 = vmatpush.msrb.mxu1 %v8329_v29  ;;  %v8347_v56 = vld [vmem:[%s13795_s7 + $0xd00] sm:$0xff]  ;;  %v6386_v35 = vperm.slane %v8491_v46, 3  ;;  %v8186_v29 = vld [vmem:[%s13795_s7 + $0x7f8] sm:$0xff]  ;;  %v8172_v46 = vld [vmem:[%s13795_s7 + $0x788] sm:$0xff] }
 0x90d   : > { %7040 = vmatpush.msrb.mxu2 %v8345_v20  ;;  %7060 = vmatpush.msrb.mxu3 %v8361_v17  ;;  %v7011_v20 = vperm.slane %v13298_v18, 0  ;;  %v7012_v17 = vperm.slane %v13298_v18, 1 }
 0x90e   : > { %6453 = vmatpush.msrb.mxu0 %v8120_v24  ;;  %7021 = vmatpush.msrb.mxu1 %v8328_v28  ;;  %v8394_v24 = vld [vmem:[%s13795_s7 + $0xe78] sm:$0xff]  ;;  %v7013_v28 = vperm.slane %v13298_v18, 2 }
 0x90f   : > { %7041 = vmatpush.msrb.mxu2 %v8344_v62  ;;  %7061 = vmatpush.msrb.mxu3 %v8360_v34  ;;  %v8410_v62 = vld [vmem:[%s13795_s7 + $0xef8] sm:$0xff] }
 0x910   : > { %6454 = vmatpush.msrb.mxu0 %v8119_v63  ;;  %7022 = vmatpush.msrb.mxu1 %v8327_v4  ;;  %v8426_v34 = vld [vmem:[%s13795_s7 + $0xf78] sm:$0xff]  ;;  %v8185_v63 = vld [vmem:[%s13795_s7 + $0x7f0] sm:$0xff] }
 0x911   : > { %7042 = vmatpush.msrb.mxu2 %v8343_v48  ;;  %7062 = vmatpush.msrb.mxu3 %v8359_v53  ;;  %v8393_v4 = vld [vmem:[%s13795_s7 + $0xe70] sm:$0xff] }
 0x912   : > { %6455 = vmatpush.msrb.mxu0 %v8118_v38  ;;  %7023 = vmatpush.msrb.mxu1 %v8326_v50  ;;  %v8409_v48 = vld [vmem:[%s13795_s7 + $0xef0] sm:$0xff]  ;;  %v8184_v38 = vld [vmem:[%s13795_s7 + $0x7e8] sm:$0xff] }
 0x913   : > { %7043 = vmatpush.msrb.mxu2 %v8342_v26  ;;  %7063 = vmatpush.msrb.mxu3 %v8358_v16  ;;  %v8425_v53 = vld [vmem:[%s13795_s7 + $0xf70] sm:$0xff]  ;;  %v8392_v50 = vld [vmem:[%s13795_s7 + $0xe68] sm:$0xff] }
 0x914   : > { %6456 = vmatpush.msrb.mxu0 %v8117_v3  ;;  %7024 = vmatpush.msrb.mxu1 %v8325_v59  ;;  %v8408_v26 = vld [vmem:[%s13795_s7 + $0xee8] sm:$0xff]  ;;  %v8183_v3 = vld [vmem:[%s13795_s7 + $0x7e0] sm:$0xff] }
 0x915   : > { %7044 = vmatpush.msrb.mxu2 %v8341_v39  ;;  %7064 = vmatpush.msrb.mxu3 %v8357_v60  ;;  %v8424_v16 = vld [vmem:[%s13795_s7 + $0xf68] sm:$0xff]  ;;  %v8391_v59 = vld [vmem:[%s13795_s7 + $0xe60] sm:$0xff] }
 0x916   : > { %6457 = vmatpush.msrb.mxu0 %v8116_v32  ;;  %7025 = vmatpush.msrb.mxu1 %v8324_v51  ;;  %v8407_v39 = vld [vmem:[%s13795_s7 + $0xee0] sm:$0xff]  ;;  %v8182_v32 = vld [vmem:[%s13795_s7 + $0x7d8] sm:$0xff] }
 0x917   : > { %7045 = vmatpush.msrb.mxu2 %v8340_v45  ;;  %7065 = vmatpush.msrb.mxu3 %v8356_v14  ;;  %v8423_v60 = vld [vmem:[%s13795_s7 + $0xf60] sm:$0xff]  ;;  %v8390_v51 = vld [vmem:[%s13795_s7 + $0xe58] sm:$0xff] }
 0x918   : > { %6458 = vmatpush.msrb.mxu0 %v8115_v43  ;;  %7026 = vmatpush.msrb.mxu1 %v8323_v36  ;;  %v8406_v45 = vld [vmem:[%s13795_s7 + $0xed8] sm:$0xff]  ;;  %v8181_v43 = vld [vmem:[%s13795_s7 + $0x7d0] sm:$0xff] }
 0x919   : > { %7046 = vmatpush.msrb.mxu2 %v8339_v1  ;;  %7066 = vmatpush.msrb.mxu3 %v8355_v40  ;;  %v8422_v14 = vld [vmem:[%s13795_s7 + $0xf58] sm:$0xff]  ;;  %v8389_v36 = vld [vmem:[%s13795_s7 + $0xe50] sm:$0xff] }
 0x91a   : > { %6459 = vmatpush.msrb.mxu0 %v8114_v55  ;;  %7027 = vmatpush.msrb.mxu1 %v8322_v9  ;;  %v8405_v1 = vld [vmem:[%s13795_s7 + $0xed0] sm:$0xff]  ;;  %v8180_v55 = vld [vmem:[%s13795_s7 + $0x7c8] sm:$0xff] }
 0x91b   : > { %7047 = vmatpush.msrb.mxu2 %v8338_v58  ;;  %7067 = vmatpush.msrb.mxu3 %v8354_v2  ;;  %v8421_v40 = vld [vmem:[%s13795_s7 + $0xf50] sm:$0xff]  ;;  %v8388_v9 = vld [vmem:[%s13795_s7 + $0xe48] sm:$0xff] }
 0x91c   : > { %6460 = vmatpush.msrb.mxu0 %v8113_v19  ;;  %7028 = vmatpush.msrb.mxu1 %v8321_v21  ;;  %v8404_v58 = vld [vmem:[%s13795_s7 + $0xec8] sm:$0xff]  ;;  %v8179_v19 = vld [vmem:[%s13795_s7 + $0x7c0] sm:$0xff] }
 0x91d   : > { %7048 = vmatpush.msrb.mxu2 %v8337_v8  ;;  %7068 = vmatpush.msrb.mxu3 %v8353_v25  ;;  %v8420_v2 = vld [vmem:[%s13795_s7 + $0xf48] sm:$0xff]  ;;  %v8387_v21 = vld [vmem:[%s13795_s7 + $0xe40] sm:$0xff] }
 0x91e   : > { %6461 = vmatpush.msrb.mxu0 %v8112_v44  ;;  %7029 = vmatpush.msrb.mxu1 %v8320_v22  ;;  %v8403_v8 = vld [vmem:[%s13795_s7 + $0xec0] sm:$0xff]  ;;  %v8178_v44 = vld [vmem:[%s13795_s7 + $0x7b8] sm:$0xff] }
 0x91f   : > { %7049 = vmatpush.msrb.mxu2 %v8336_v47  ;;  %7069 = vmatpush.msrb.mxu3 %v8352_v49  ;;  %v8419_v25 = vld [vmem:[%s13795_s7 + $0xf40] sm:$0xff]  ;;  %v8386_v22 = vld [vmem:[%s13795_s7 + $0xe38] sm:$0xff] }
 0x920   : > { %6462 = vmatpush.msrb.mxu0 %v8111_v30  ;;  %7030 = vmatpush.msrb.mxu1 %v8319_v31  ;;  %v8402_v47 = vld [vmem:[%s13795_s7 + $0xeb8] sm:$0xff]  ;;  %v8177_v30 = vld [vmem:[%s13795_s7 + $0x7b0] sm:$0xff] }
 0x921   : > { %7050 = vmatpush.msrb.mxu2 %v8335_v23  ;;  %7070 = vmatpush.msrb.mxu3 %v8351_v6  ;;  %v8418_v49 = vld [vmem:[%s13795_s7 + $0xf38] sm:$0xff]  ;;  %v8385_v31 = vld [vmem:[%s13795_s7 + $0xe30] sm:$0xff] }
 0x922   : > { %6463 = vmatpush.msrb.mxu0 %v8110_v7  ;;  %7031 = vmatpush.msrb.mxu1 %v8318_v13  ;;  %v8401_v23 = vld [vmem:[%s13795_s7 + $0xeb0] sm:$0xff]  ;;  %v8176_v7 = vld [vmem:[%s13795_s7 + $0x7a8] sm:$0xff] }
 0x923   : > { %7051 = vmatpush.msrb.mxu2 %v8334_v61  ;;  %7071 = vmatpush.msrb.mxu3 %v8350_v15  ;;  %v8417_v6 = vld [vmem:[%s13795_s7 + $0xf30] sm:$0xff]  ;;  %v8384_v13 = vld [vmem:[%s13795_s7 + $0xe28] sm:$0xff] }
 0x924   : > { %6464 = vmatpush.msrb.mxu0 %v8109_v41  ;;  %7032 = vmatpush.msrb.mxu1 %v8317_v0  ;;  %v8400_v61 = vld [vmem:[%s13795_s7 + $0xea8] sm:$0xff]  ;;  %v8175_v41 = vld [vmem:[%s13795_s7 + $0x7a0] sm:$0xff] }
 0x925   : > { %7052 = vmatpush.msrb.mxu2 %v8333_v5  ;;  %7072 = vmatpush.msrb.mxu3 %v8349_v12  ;;  %v8416_v15 = vld [vmem:[%s13795_s7 + $0xf28] sm:$0xff]  ;;  %v8383_v0 = vld [vmem:[%s13795_s7 + $0xe20] sm:$0xff] }
 0x926   : > { %6465 = vmatpush.msrb.mxu0 %v8108_v33  ;;  %7033 = vmatpush.msrb.mxu1 %v8316_v11  ;;  %v8399_v5 = vld [vmem:[%s13795_s7 + $0xea0] sm:$0xff]  ;;  %v8174_v33 = vld [vmem:[%s13795_s7 + $0x798] sm:$0xff] }
 0x927   : > { %7053 = vmatpush.msrb.mxu2 %v8332_v37  ;;  %7073 = vmatpush.msrb.mxu3 %v8348_v57  ;;  %v8415_v12 = vld [vmem:[%s13795_s7 + $0xf20] sm:$0xff]  ;;  %v8382_v11 = vld [vmem:[%s13795_s7 + $0xe18] sm:$0xff] }
 0x928   : > { %6466 = vmatpush.msrb.mxu0 %v8107_v10  ;;  %7034 = vmatpush.msrb.mxu1 %v8315_v52  ;;  %v8398_v37 = vld [vmem:[%s13795_s7 + $0xe98] sm:$0xff]  ;;  %v8173_v10 = vld [vmem:[%s13795_s7 + $0x790] sm:$0xff] }
 0x929   : > { %7054 = vmatpush.msrb.mxu2 %v8331_v27  ;;  %7074 = vmatpush.msrb.mxu3 %v8347_v56  ;;  %v8414_v57 = vld [vmem:[%s13795_s7 + $0xf18] sm:$0xff]  ;;  %v8381_v52 = vld [vmem:[%s13795_s7 + $0xe10] sm:$0xff] }
 0x92a   : > { %6467 = vmatmul.f32.vlgmr.msrb.gmra.mxu0 %v6386_v35  ;;  %7035 = vmatmul.f32.vlgmr.msrb.gmra.mxu1 %v7011_v20  ;;  %v8397_v27 = vld [vmem:[%s13795_s7 + $0xe90] sm:$0xff]  ;;  %v8380_v35 = vld [vmem:[%s13795_s7 + $0xe08] sm:$0xff] }
 0x92b   : > { %6608 = vmatpush.msra.mxu0 %v8186_v29  ;;  %7055 = vmatmul.f32.vlgmr.msrb.gmra.mxu2 %v7012_v17  ;;  %v8413_v56 = vld [vmem:[%s13795_s7 + $0xf10] sm:$0xff]  ;;  %v8396_v29 = vld [vmem:[%s13795_s7 + $0xe88] sm:$0xff]  ;;  %v8171_v17 = vld [vmem:[%s13795_s7 + $0x780] sm:$0xff] }
 0x92c   : > { %7075 = vmatmul.f32.vlgmr.msrb.gmra.mxu3 %v7013_v28  ;;  %7176 = vmatpush.msra.mxu1 %v8394_v24  ;;  %v8412_v20 = vld [vmem:[%s13795_s7 + $0xf08] sm:$0xff]  ;;  %v8379_v24 = vld [vmem:[%s13795_s7 + $0xe00] sm:$0xff] }
 0x92d   : > { %7196 = vmatpush.msra.mxu2 %v8410_v62  ;;  %7216 = vmatpush.msra.mxu3 %v8426_v34  ;;  %v13495_v28 = vld [vmem:[#allocation4 + $0x7] ss:$8 sm:$0xf] }
 0x92e   : > { %6609 = vmatpush.msra.mxu0 %v8185_v63  ;;  %7177 = vmatpush.msra.mxu1 %v8393_v4  ;;  %v8395_v62 = vld [vmem:[%s13795_s7 + $0xe80] sm:$0xff] }
 0x92f   : > { %7197 = vmatpush.msra.mxu2 %v8409_v48  ;;  %7217 = vmatpush.msra.mxu3 %v8425_v53  ;;  %v8411_v34 = vld [vmem:[%s13795_s7 + $0xf00] sm:$0xff]  ;;  %v8250_v48 = vld [vmem:[%s13795_s7 + $0x9f8] sm:$0xff]  ;;  %v7168_v53 = vperm.slane %v13495_v28, 0 }
 0x930   : > { %6610 = vmatpush.msra.mxu0 %v8184_v38  ;;  %7178 = vmatpush.msra.mxu1 %v8392_v50  ;;  %v8492_v63 = vld [vmem:[#allocation4 + $0x3] ss:$8 sm:$0xf]  ;;  %v7169_v38 = vperm.slane %v13495_v28, 1  ;;  %v7170_v50 = vperm.slane %v13495_v28, 2 }
 0x931   : > { %7198 = vmatpush.msra.mxu2 %v8408_v26  ;;  %7218 = vmatpush.msra.mxu3 %v8424_v16  ;;  %v6543_v4 = vperm.slane %v8492_v63, 3  ;;  %v8249_v26 = vld [vmem:[%s13795_s7 + $0x9f0] sm:$0xff]  ;;  %v8248_v16 = vld [vmem:[%s13795_s7 + $0x9e8] sm:$0xff]  ;;  %v8435_v63 = vld [vmem:[%s13795_s7 + $0xfc0] sm:$0xff] }
 0x932   : > { %6611 = vmatpush.msra.mxu0 %v8183_v3  ;;  %7179 = vmatpush.msra.mxu1 %v8391_v59  ;;  %v8247_v3 = vld [vmem:[%s13795_s7 + $0x9e0] sm:$0xff]  ;;  %v8246_v59 = vld [vmem:[%s13795_s7 + $0x9d8] sm:$0xff] }
 0x933   : > { %7199 = vmatpush.msra.mxu2 %v8407_v39  ;;  %7219 = vmatpush.msra.mxu3 %v8423_v60  ;;  %v8245_v39 = vld [vmem:[%s13795_s7 + $0x9d0] sm:$0xff]  ;;  %v8244_v60 = vld [vmem:[%s13795_s7 + $0x9c8] sm:$0xff] }
 0x934   : > { %6612 = vmatpush.msra.mxu0 %v8182_v32  ;;  %7180 = vmatpush.msra.mxu1 %v8390_v51  ;;  %v8243_v32 = vld [vmem:[%s13795_s7 + $0x9c0] sm:$0xff]  ;;  %v8242_v51 = vld [vmem:[%s13795_s7 + $0x9b8] sm:$0xff] }
 0x935   : > { %7200 = vmatpush.msra.mxu2 %v8406_v45  ;;  %7220 = vmatpush.msra.mxu3 %v8422_v14  ;;  %v8241_v45 = vld [vmem:[%s13795_s7 + $0x9b0] sm:$0xff]  ;;  %v8240_v14 = vld [vmem:[%s13795_s7 + $0x9a8] sm:$0xff] }
 0x936   : > { %6613 = vmatpush.msra.mxu0 %v8181_v43  ;;  %7181 = vmatpush.msra.mxu1 %v8389_v36  ;;  %v8239_v43 = vld [vmem:[%s13795_s7 + $0x9a0] sm:$0xff]  ;;  %v8238_v36 = vld [vmem:[%s13795_s7 + $0x998] sm:$0xff] }
 0x937   : > { %7201 = vmatpush.msra.mxu2 %v8405_v1  ;;  %7221 = vmatpush.msra.mxu3 %v8421_v40  ;;  %v8237_v1 = vld [vmem:[%s13795_s7 + $0x990] sm:$0xff]  ;;  %v8236_v40 = vld [vmem:[%s13795_s7 + $0x988] sm:$0xff] }
 0x938   : > { %6614 = vmatpush.msra.mxu0 %v8180_v55  ;;  %7182 = vmatpush.msra.mxu1 %v8388_v9  ;;  %v8235_v55 = vld [vmem:[%s13795_s7 + $0x980] sm:$0xff]  ;;  %v6700_v9 = vperm.slane %v12902_v54, 3 }
 0x939   : > { %7202 = vmatpush.msra.mxu2 %v8404_v58  ;;  %7222 = vmatpush.msra.mxu3 %v8420_v2  ;;  %v8314_v58 = vld [vmem:[%s13795_s7 + $0xbf8] sm:$0xff]  ;;  %v8313_v2 = vld [vmem:[%s13795_s7 + $0xbf0] sm:$0xff]  ;;  %v8311_v54 = vld [vmem:[%s13795_s7 + $0xbe0] sm:$0xff] }
 0x93a   : > { %6615 = vmatpush.msra.mxu0 %v8179_v19  ;;  %7183 = vmatpush.msra.mxu1 %v8387_v21  ;;  %v8312_v19 = vld [vmem:[%s13795_s7 + $0xbe8] sm:$0xff]  ;;  %v8310_v21 = vld [vmem:[%s13795_s7 + $0xbd8] sm:$0xff] }
 0x93b   : > { %7203 = vmatpush.msra.mxu2 %v8403_v8  ;;  %7223 = vmatpush.msra.mxu3 %v8419_v25  ;;  %v8309_v8 = vld [vmem:[%s13795_s7 + $0xbd0] sm:$0xff]  ;;  %v8308_v25 = vld [vmem:[%s13795_s7 + $0xbc8] sm:$0xff] }
 0x93c   : > { %6616 = vmatpush.msra.mxu0 %v8178_v44  ;;  %7184 = vmatpush.msra.mxu1 %v8386_v22  ;;  %v8307_v44 = vld [vmem:[%s13795_s7 + $0xbc0] sm:$0xff]  ;;  %v8306_v22 = vld [vmem:[%s13795_s7 + $0xbb8] sm:$0xff] }
 0x93d   : > { %7204 = vmatpush.msra.mxu2 %v8402_v47  ;;  %7224 = vmatpush.msra.mxu3 %v8418_v49  ;;  %v8305_v47 = vld [vmem:[%s13795_s7 + $0xbb0] sm:$0xff]  ;;  %v8304_v49 = vld [vmem:[%s13795_s7 + $0xba8] sm:$0xff] }
 0x93e   : > { %6617 = vmatpush.msra.mxu0 %v8177_v30  ;;  %7185 = vmatpush.msra.mxu1 %v8385_v31  ;;  %v8303_v30 = vld [vmem:[%s13795_s7 + $0xba0] sm:$0xff]  ;;  %v8302_v31 = vld [vmem:[%s13795_s7 + $0xb98] sm:$0xff] }
 0x93f   : > { %7205 = vmatpush.msra.mxu2 %v8401_v23  ;;  %7225 = vmatpush.msra.mxu3 %v8417_v6  ;;  %v8301_v23 = vld [vmem:[%s13795_s7 + $0xb90] sm:$0xff]  ;;  %v8300_v6 = vld [vmem:[%s13795_s7 + $0xb88] sm:$0xff] }
 0x940   : > { %6618 = vmatpush.msra.mxu0 %v8176_v7  ;;  %7186 = vmatpush.msra.mxu1 %v8384_v13  ;;  %v8299_v7 = vld [vmem:[%s13795_s7 + $0xb80] sm:$0xff]  ;;  %v6857_v13 = vperm.slane %v13100_v42, 3 }
 0x941   : > { %7206 = vmatpush.msra.mxu2 %v8400_v61  ;;  %7226 = vmatpush.msra.mxu3 %v8416_v15  ;;  %v8378_v61 = vld [vmem:[%s13795_s7 + $0xdf8] sm:$0xff]  ;;  %v8377_v15 = vld [vmem:[%s13795_s7 + $0xdf0] sm:$0xff]  ;;  %v8375_v42 = vld [vmem:[%s13795_s7 + $0xde0] sm:$0xff] }
 0x942   : > { %6619 = vmatpush.msra.mxu0 %v8175_v41  ;;  %7187 = vmatpush.msra.mxu1 %v8383_v0  ;;  %v8376_v41 = vld [vmem:[%s13795_s7 + $0xde8] sm:$0xff]  ;;  %v8374_v0 = vld [vmem:[%s13795_s7 + $0xdd8] sm:$0xff] }
 0x943   : > { %7207 = vmatpush.msra.mxu2 %v8399_v5  ;;  %7227 = vmatpush.msra.mxu3 %v8415_v12  ;;  %v8373_v5 = vld [vmem:[%s13795_s7 + $0xdd0] sm:$0xff]  ;;  %v8372_v12 = vld [vmem:[%s13795_s7 + $0xdc8] sm:$0xff] }
 0x944   : > { %6620 = vmatpush.msra.mxu0 %v8174_v33  ;;  %7188 = vmatpush.msra.mxu1 %v8382_v11  ;;  %v8371_v33 = vld [vmem:[%s13795_s7 + $0xdc0] sm:$0xff]  ;;  %v8370_v11 = vld [vmem:[%s13795_s7 + $0xdb8] sm:$0xff] }
 0x945   : > { %7208 = vmatpush.msra.mxu2 %v8398_v37  ;;  %7228 = vmatpush.msra.mxu3 %v8414_v57  ;;  %v8369_v37 = vld [vmem:[%s13795_s7 + $0xdb0] sm:$0xff]  ;;  %v8368_v57 = vld [vmem:[%s13795_s7 + $0xda8] sm:$0xff] }
 0x946   : > { %6621 = vmatpush.msra.mxu0 %v8173_v10  ;;  %7189 = vmatpush.msra.mxu1 %v8381_v52  ;;  %v8367_v10 = vld [vmem:[%s13795_s7 + $0xda0] sm:$0xff]  ;;  %v8366_v52 = vld [vmem:[%s13795_s7 + $0xd98] sm:$0xff] }
 0x947   : > { %7209 = vmatpush.msra.mxu2 %v8397_v27  ;;  %7229 = vmatpush.msra.mxu3 %v8413_v56  ;;  %v8365_v27 = vld [vmem:[%s13795_s7 + $0xd90] sm:$0xff]  ;;  %v8364_v56 = vld [vmem:[%s13795_s7 + $0xd88] sm:$0xff] }
 0x948   : > { %6622 = vmatpush.msra.mxu0 %v8172_v46  ;;  %7190 = vmatpush.msra.mxu1 %v8380_v35  ;;  %v8363_v46 = vld [vmem:[%s13795_s7 + $0xd80] sm:$0xff]  ;;  %v7014_v35 = vperm.slane %v13298_v18, 3 }
 0x949   : > { %7210 = vmatpush.msra.mxu2 %v8396_v29  ;;  %7230 = vmatpush.msra.mxu3 %v8412_v20  ;;  %v8442_v29 = vld [vmem:[%s13795_s7 + $0xff8] sm:$0xff]  ;;  %v8441_v20 = vld [vmem:[%s13795_s7 + $0xff0] sm:$0xff]  ;;  %v8439_v18 = vld [vmem:[%s13795_s7 + $0xfe0] sm:$0xff] }
 0x94a   : > { %6623 = vmatpush.msra.mxu0 %v8171_v17  ;;  %7191 = vmatpush.msra.mxu1 %v8379_v24  ;;  %v8440_v17 = vld [vmem:[%s13795_s7 + $0xfe8] sm:$0xff]  ;;  %v8438_v24 = vld [vmem:[%s13795_s7 + $0xfd8] sm:$0xff] }
 0x94b   : > { %7211 = vmatpush.msra.mxu2 %v8395_v62  ;;  %7231 = vmatpush.msra.mxu3 %v8411_v34  ;;  %v8437_v62 = vld [vmem:[%s13795_s7 + $0xfd0] sm:$0xff]  ;;  %v8436_v34 = vld [vmem:[%s13795_s7 + $0xfc8] sm:$0xff] }
 0x94c   : > { %6624 = vmatmul.f32.vlgmr.msra.gmra.mxu0 %v6543_v4  ;;  %7192 = vmatmul.f32.vlgmr.msra.gmra.mxu1 %v7168_v53  ;;  %v8434_v4 = vld [vmem:[%s13795_s7 + $0xfb8] sm:$0xff]  ;;  %v8432_v53 = vld [vmem:[%s13795_s7 + $0xfa8] sm:$0xff] }
 0x94d   : > { %6765 = vmatpush.msrb.mxu0 %v8250_v48  ;;  %7212 = vmatmul.f32.vlgmr.msra.gmra.mxu2 %v7169_v38  ;;  %v8433_v48 = vld [vmem:[%s13795_s7 + $0xfb0] sm:$0xff]  ;;  %v8431_v38 = vld [vmem:[%s13795_s7 + $0xfa0] sm:$0xff] }
 0x94e   : > { %7232 = vmatmul.f32.vlgmr.msra.gmra.mxu3 %v7170_v50  ;;  %v8430_v50 = vld [vmem:[%s13795_s7 + $0xf98] sm:$0xff] }
 0x94f   : > { %6766 = vmatpush.msrb.mxu0 %v8249_v26  ;;  %v8429_v26 = vld [vmem:[%s13795_s7 + $0xf90] sm:$0xff] }
 0x951   : > { %6767 = vmatpush.msrb.mxu0 %v8248_v16  ;;  %v8428_v16 = vld [vmem:[%s13795_s7 + $0xf88] sm:$0xff] }
 0x953   : > { %6768 = vmatpush.msrb.mxu0 %v8247_v3  ;;  %v8427_v3 = vld [vmem:[%s13795_s7 + $0xf80] sm:$0xff] }
 0x955   : > { %6769 = vmatpush.msrb.mxu0 %v8246_v59  ;;  %v7171_v59 = vperm.slane %v13495_v28, 3  ;;  %v7270_v28 = vld [vmem:[%s13797_s9 + $0x60] sm:$0xff] }
 0x957   : > { %6770 = vmatpush.msrb.mxu0 %v8245_v39  ;;  %v6094_v39 = vpop.f32.mrf.mxu0 }
 0x959   : > { %6771 = vmatpush.msrb.mxu0 %v8244_v60 }
 0x95b   : > { %6772 = vmatpush.msrb.mxu0 %v8243_v32 }
 0x95d   : > { %6773 = vmatpush.msrb.mxu0 %v8242_v51  ;;  %v7273_v51 = vld [vmem:[%s13797_s9 + $0x78] sm:$0xff] }
 0x95e   : > { %7275 = vmatpush.msrb.mxu1 %v7273_v51 }
 0x95f   : > { %6774 = vmatpush.msrb.mxu0 %v8241_v45  ;;  %v6114_v60 = vpop.f32.mrf.mxu0  ;;  %v7272_v45 = vld [vmem:[%s13797_s9 + $0x70] sm:$0xff] }
 0x960   : > { %7276 = vmatpush.msrb.mxu1 %v7272_v45 }
 0x961   : > { %6775 = vmatpush.msrb.mxu0 %v8240_v14  ;;  %v7271_v14 = vld [vmem:[%s13797_s9 + $0x68] sm:$0xff] }
 0x962   : > { %7277 = vmatpush.msrb.mxu1 %v7271_v14 }
 0x963   : > { %6776 = vmatpush.msrb.mxu0 %v8239_v43  ;;  %v6271_v43 = vpop.f32.mrf.mxu2 }
 0x964   : > { %7278 = vmatpush.msrb.mxu1 %v7270_v28 }
 0x965   : > { %6777 = vmatpush.msrb.mxu0 %v8238_v36  ;;  %v6251_v36 = vpop.f32.mrf.mxu1 }
 0x967   : > { %6778 = vmatpush.msrb.mxu0 %v8237_v1  ;;  %v6134_v32 = vpop.f32.mrf.mxu0 }
 0x969   : > { %6779 = vmatpush.msrb.mxu0 %v8236_v40  ;;  %v7269_v40 = vld [vmem:[%s13797_s9 + $0x58] sm:$0xff] }
 0x96a   : > { %7279 = vmatpush.msrb.mxu1 %v7269_v40 }
 0x96b   : > { %6780 = vmatpush.msrb.mxu0 %v8235_v55  ;;  %v7268_v55 = vld [vmem:[%s13797_s9 + $0x50] sm:$0xff] }
 0x96c   : > { %6781 = vmatmul.f32.vlgmr.msrb.gmra.mxu0 %v6700_v9  ;;  %v6291_v9 = vpop.f32.mrf.mxu3  ;;  %7280 = vmatpush.msrb.mxu1 %v7268_v55 }
 0x96d   : > { %6922 = vmatpush.msra.mxu0 %v8314_v58  ;;  %v7267_v58 = vld [vmem:[%s13797_s9 + $0x48] sm:$0xff] }
 0x96e   : > { %7281 = vmatpush.msrb.mxu1 %v7267_v58 }
 0x96f   : > { %6923 = vmatpush.msra.mxu0 %v8313_v2  ;;  %v6154_v1 = vpop.f32.mrf.mxu0  ;;  %v7266_v2 = vld [vmem:[%s13797_s9 + $0x40] sm:$0xff] }
 0x970   : > { %7282 = vmatpush.msrb.mxu1 %v7266_v2 }
 0x971   : > { %6924 = vmatpush.msra.mxu0 %v8312_v19  ;;  %v6428_v19 = vpop.f32.mrf.mxu2 }
 0x973   : > { %6925 = vmatpush.msra.mxu0 %v8311_v54 }
 0x975   : > { %6926 = vmatpush.msra.mxu0 %v8310_v21  ;;  %v7265_v21 = vld [vmem:[%s13797_s9 + $0x38] sm:$0xff] }
 0x976   : > { %7283 = vmatpush.msrb.mxu1 %v7265_v21 }
 0x977   : > { %6927 = vmatpush.msra.mxu0 %v8309_v8  ;;  %v6408_v8 = vpop.f32.mrf.mxu1 }
 0x979   : > { %6928 = vmatpush.msra.mxu0 %v8308_v25  ;;  %v7264_v25 = vld [vmem:[%s13797_s9 + $0x30] sm:$0xff] }
 0x97a   : > { %7284 = vmatpush.msrb.mxu1 %v7264_v25 }
 0x97b   : > { %6929 = vmatpush.msra.mxu0 %v8307_v44  ;;  %v7263_v44 = vld [vmem:[%s13797_s9 + $0x28] sm:$0xff] }
 0x97c   : > { %7285 = vmatpush.msrb.mxu1 %v7263_v44 }
 0x97d   : > { %6930 = vmatpush.msra.mxu0 %v8306_v22  ;;  %v6448_v22 = vpop.f32.mrf.mxu3 }
 0x97f   : > { %6931 = vmatpush.msra.mxu0 %v8305_v47  ;;  %v7262_v47 = vld [vmem:[%s13797_s9 + $0x20] sm:$0xff] }
 0x980   : > { %7286 = vmatpush.msrb.mxu1 %v7262_v47 }
 0x981   : > { %6932 = vmatpush.msra.mxu0 %v8304_v49  ;;  %v6585_v49 = vpop.f32.mrf.mxu2 }
 0x983   : > { %6933 = vmatpush.msra.mxu0 %v8303_v30 }
 0x985   : > { %6934 = vmatpush.msra.mxu0 %v8302_v31  ;;  %v6311_v54 = vpop.f32.mrf.mxu0  ;;  %v6565_v31 = vpop.f32.mrf.mxu1 }
 0x987   : > { %6935 = vmatpush.msra.mxu0 %v8301_v23  ;;  %v6605_v23 = vpop.f32.mrf.mxu3 }
 0x989   : > { %6936 = vmatpush.msra.mxu0 %v8300_v6  ;;  %v6742_v6 = vpop.f32.mrf.mxu2 }
 0x98b   : > { %6937 = vmatpush.msra.mxu0 %v8299_v7 }
 0x98c   : > { %6938 = vmatmul.f32.vlgmr.msra.gmra.mxu0 %v6857_v13 }
 0x98d   : > { %7079 = vmatpush.msrb.mxu0 %v8378_v61  ;;  %v6722_v13 = vpop.f32.mrf.mxu1  ;;  %v7261_v61 = vld [vmem:[%s13797_s9 + $0x18] sm:$0xff] }
 0x98e   : > { %7287 = vmatpush.msrb.mxu1 %v7261_v61 }
 0x98f   : > { %7080 = vmatpush.msrb.mxu0 %v8377_v15  ;;  %v7260_v15 = vld [vmem:[%s13797_s9 + $0x10] sm:$0xff] }
 0x990   : > { %7288 = vmatpush.msrb.mxu1 %v7260_v15 }
 0x991   : > { %7081 = vmatpush.msrb.mxu0 %v8376_v41  ;;  %v6762_v41 = vpop.f32.mrf.mxu3 }
 0x993   : > { %7082 = vmatpush.msrb.mxu0 %v8375_v42  ;;  %v7259_v42 = vld [vmem:[%s13797_s9 + $0x8] sm:$0xff] }
 0x994   : > { %7289 = vmatpush.msrb.mxu1 %v7259_v42 }
 0x995   : > { %7083 = vmatpush.msrb.mxu0 %v8374_v0  ;;  %v6899_v0 = vpop.f32.mrf.mxu2 }
 0x997   : > { %7084 = vmatpush.msrb.mxu0 %v8373_v5 }
 0x999   : > { %7085 = vmatpush.msrb.mxu0 %v8372_v12  ;;  %v7258_v12 = vld [vmem:[%s13797_s9] sm:$0xff] }
 0x99a   : > { %7290 = vmatpush.msrb.mxu1 %v7258_v12 }
 0x99b   : > { %7086 = vmatpush.msrb.mxu0 %v8371_v33  ;;  %v6879_v33 = vpop.f32.mrf.mxu1 }
 0x99d   : > { %7087 = vmatpush.msrb.mxu0 %v8370_v11  ;;  %v6272_v11 = vadd.f32 %v6271_v43, %v6251_v36 }
 0x99f   : > { %7088 = vmatpush.msrb.mxu0 %v8369_v37  ;;  %v6115_v37 = vadd.f32 %v6114_v60, %v6094_v39 }
 0x9a1   : > { %7089 = vmatpush.msrb.mxu0 %v8368_v57  ;;  %v6919_v57 = vpop.f32.mrf.mxu3 }
 0x9a3   : > { %7090 = vmatpush.msrb.mxu0 %v8367_v10  ;;  %v6429_v10 = vadd.f32 %v6428_v19, %v6408_v8  ;;  %v7274_v8 = vld [vmem:[%s13798_s10] sm:$0x1] }
 0x9a5   : > { %7091 = vmatpush.msrb.mxu0 %v8366_v52  ;;  %v6135_v52 = vadd.f32 %v6134_v32, %v6115_v37 }
 0x9a7   : > { %7092 = vmatpush.msrb.mxu0 %v8365_v27  ;;  %v6468_v30 = vpop.f32.mrf.mxu0 }
 0x9a9   : > { %7093 = vmatpush.msrb.mxu0 %v8364_v56 }
 0x9ab   : > { %7094 = vmatpush.msrb.mxu0 %v8363_v46  ;;  %v6292_v46 = vadd.f32 %v6291_v9, %v6272_v11 }
 0x9ac   : > { %7095 = vmatmul.f32.vlgmr.msrb.gmra.mxu0 %v7014_v35  ;;  %v6586_v35 = vadd.f32 %v6585_v49, %v6565_v31 }
 0x9ad   : > { %7236 = vmatpush.msra.mxu0 %v8442_v29  ;;  %v6155_v29 = vadd.f32 %v6154_v1, %v6135_v52 }
 0x9ae   : > { %v7056_v27 = vpop.f32.mrf.mxu2 }
 0x9af   : > { %7237 = vmatpush.msra.mxu0 %v8441_v20  ;;  %v6002_v20 = vld [vmem:[%s13796_s8] sm:$0x1] }
 0x9b1   : > { %7238 = vmatpush.msra.mxu0 %v8440_v17  ;;  %v7036_v17 = vpop.f32.mrf.mxu1 }
 0x9b3   : > { %7239 = vmatpush.msra.mxu0 %v8439_v18  ;;  %v6449_v18 = vadd.f32 %v6448_v22, %v6429_v10 }
 0x9b5   : > { %7240 = vmatpush.msra.mxu0 %v8438_v24  ;;  %v6743_v24 = vadd.f32 %v6742_v6, %v6722_v13 }
 0x9b7   : > { %7241 = vmatpush.msra.mxu0 %v8437_v62  ;;  %v6312_v62 = vadd.f32 %v6311_v54, %v6292_v46 }
 0x9b9   : > { %7242 = vmatpush.msra.mxu0 %v8436_v34  ;;  %v6606_v34 = vadd.f32 %v6605_v23, %v6586_v35 }
 0x9bb   : > { %7243 = vmatpush.msra.mxu0 %v8435_v63  ;;  %v6157_v63 = vadd.f32 %v6155_v29, %v6002_v20 }
 0x9bd   : > { %7244 = vmatpush.msra.mxu0 %v8434_v4  ;;  %v6900_v4 = vadd.f32 %v6899_v0, %v6879_v33 }
 0x9bf   : > { %7245 = vmatpush.msra.mxu0 %v8433_v48  ;;  %v6469_v48 = vadd.f32 %v6468_v30, %v6449_v18  ;;  %v6920_v39 = vadd.f32 %v6919_v57, %v6900_v4 }
 0x9c1   : > { %7246 = vmatpush.msra.mxu0 %v8432_v53  ;;  %v7076_v53 = vpop.f32.mrf.mxu3 }
 0x9c3   : > { %7247 = vmatpush.msra.mxu0 %v8431_v38  ;;  %v6763_v38 = vadd.f32 %v6762_v41, %v6743_v24 }
 0x9c5   : > { %7248 = vmatpush.msra.mxu0 %v8430_v50  ;;  %v6314_v50 = vadd.f32 %v6312_v62, %v6157_v63 }
 0x9c7   : > { %7249 = vmatpush.msra.mxu0 %v8429_v26  ;;  %v7057_v26 = vadd.f32 %v7056_v27, %v7036_v17  ;;  %v6471_v60 = vadd.f32 %v6469_v48, %v6314_v50 }
 0x9c9   : > { %7250 = vmatpush.msra.mxu0 %v8428_v16  ;;  %v6625_v7 = vpop.f32.mrf.mxu0  ;;  %v7193_v51 = vpop.f32.mrf.mxu1  ;;  %v7077_v45 = vadd.f32 %v7076_v53, %v7057_v26 }
 0x9ca   : > { %v6626_v16 = vadd.f32 %v6625_v7, %v6606_v34 }
 0x9cb   : > { %7251 = vmatpush.msra.mxu0 %v8427_v3 }
 0x9cc   : > { %7252 = vmatmul.f32.vlgmr.msra.gmra.mxu0 %v7171_v59  ;;  %v6628_v14 = vadd.f32 %v6626_v16, %v6471_v60 }
 0x9d0   : > { %v7213_v3 = vpop.f32.mrf.mxu2 }
 0x9d1   : > { %v7214_v43 = vadd.f32 %v7213_v3, %v7193_v51  ;;  %v7233_v40 = vpop.f32.mrf.mxu3 }
 0x9d3   : > { %v7234_v55 = vadd.f32 %v7233_v40, %v7214_v43 }
 0x9e9   : > { %v6782_v5 = vpop.f32.mrf.mxu0 }
 0x9ea   : > { %v6783_v32 = vadd.f32 %v6782_v5, %v6763_v38 }
 0x9ec   : > { %v6785_v36 = vadd.f32 %v6783_v32, %v6628_v14 }
 0xa09   : > { %v6939_v56 = vpop.f32.mrf.mxu0 }
 0xa0a   : > { %v6940_v28 = vadd.f32 %v6939_v56, %v6920_v39 }
 0xa0c   : > { %v6942_v9 = vadd.f32 %v6940_v28, %v6785_v36 }
 0xa29   : > { %v7096_v59 = vpop.f32.mrf.mxu0 }
 0xa2a   : > { %v7097_v1 = vadd.f32 %v7096_v59, %v7077_v45 }
 0xa2c   : > { %v7099_v2 = vadd.f32 %v7097_v1, %v6942_v9 }
 0xa49   : > { %v7253_v58 = vpop.f32.mrf.mxu0 }
 0xa4a   : > { %v7254_v19 = vadd.f32 %v7253_v58, %v7234_v55 }
 0xa4c   : > { %v7256_v54 = vadd.f32 %v7254_v19, %v7099_v2 }
 0xa4e   : > { %v7257_v21 = vmax.f32 %v7256_v54, 0.0 }
 0xa50   : > { %7291 = vmatmul.f32.vlgmr.msrb.gmra.mxu1 %v7257_v21 }
 0xacd   : > { %v7292_v25 = vpop.f32.mrf.mxu1 }
 0xace   : > { %v7293_v44 = vadd.f32 %v7292_v25, %v7274_v8 }
 0xad0   : > { %7296 = vst.msk [vmem:[%s378_s14] sm:$0x1] %vm7295_vm4, %v7293_v44 }
 0xad1   : > { %8520 = shalt.err (!%p8517_p3)
}
 0xad2   : > { %8446 = dma.vmem_to_hbm [thread:$0]  (%p8657_p5), %s7309_s15, 16, %s7311_s26, %s7298_s16  }
 0xad3 PF: > { %p8452_p4 = scmp.ge.s32.totalorder %s8555_s20, 2  ;;  %s7322_s22 = sand.u32 1, %s8543_s17  }
 0xad4   : > { %s7323_s13 = scalar_lea.sflag [#allocation6], %s7322_s22 }
 0xad5   : > { %p8449_p7 = pnand %p8452_p4, %p8661_p6 }
 0xad7   : > { %p8450_p8 = pneg %p8449_p7 }
 0xad9   : > { %8538 = dma.done.wait (%p8450_p8), %s7323_s13, 16  }
 0xada   : > { %8540 = vsyncadd (%p8450_p8), %s7323_s13, 4294967280  ;;  %s14062_s0 = sld [smem:[#allocation8_spill]]  ;;  %p21_p9 = scmp.ge.s32.totalorder %s8644_s23, 4  }
 0xadb   : > { %s14063_s17 = smov %s8547_s18  ;;  %s14064_s18 = smov %s8551_s19 }
 0xadc   : > { %s14066_s20 = smov %s8644_s23  ;;  %23 = sbr.rel (!%p21_p9) target bundleno = 5 (0x5), region = 133 }
 0xae0   : > { %s14065_s19 = smov %s14062_s0 }
 0xae1   :  { %7328 = vsyncpa [#allocation6], 1 }
 0xae2   :  { %7330 = vsyncpa [#allocation6 + $0x1], 1 }

</bundles_post_ra>
